<compile_context>
chip_gen: v6e
topology: v6e:2x2x1
jax: 0.10.0
libtpu: 0.0.40
codegen_flags: <defaults>
</compile_context>

<pallas_src>
import jax
import jax.numpy as jnp
from jax.experimental import pallas as pl
from jax.experimental.pallas import tpu as pltpu


def _round_up(n, m):
    return ((n + m - 1) // m) * m


def _pad2(a, rows, cols):
    return jnp.pad(a, ((0, rows - a.shape[0]), (0, cols - a.shape[1])))


def _pad1(v, n):
    return jnp.pad(v, (0, n - v.shape[0]))


# ----------------------------------------------------------------------------
# Pallas kernel: SN-Linear -> PReLU -> SN-Linear -> PReLU -> Linear(F, 1)
# ----------------------------------------------------------------------------
def _make_kernel(F, Fp):
    """F: true feature count, Fp: lane-aligned (multiple of 128) feature count."""

    def _mlp_kernel(x_ref, w1_ref, ba1_ref, w2_ref, ba2_ref, wo_ref, bo_ref,
                    out_ref, *scratch):
        ba1 = ba1_ref[...]                         # (2, Fp) f32: [bias ; slope]
        b1, a1 = ba1[0:1, :], ba1[1:2, :]
        ba2 = ba2_ref[...]
        b2, a2 = ba2[0:1, :], ba2[1:2, :]

        # x arrives as raw f32 straight from HBM (no wrapper pad/cast pass).
        # bf16 cast + zero feature-pad happen here on the VPU per tile and
        # hide under the MXU-bound matmuls.
        if F == Fp:
            xb = x_ref[...].astype(jnp.bfloat16)
        else:
            xpad_ref = scratch[0]                  # (tm, Fp) bf16 VMEM scratch
            rows = xpad_ref.shape[0]
            xpad_ref[:, :F] = x_ref[...].astype(jnp.bfloat16)
            xpad_ref[:, F:] = jnp.zeros((rows, Fp - F), jnp.bfloat16)
            xb = xpad_ref[...]

        # fc1 (spectral-normalized weight pre-applied) + PReLU   [MXU + VPU]
        h1 = jnp.dot(xb, w1_ref[...], preferred_element_type=jnp.float32) + b1
        h1 = jnp.where(h1 >= 0.0, h1, a1 * h1)

        # fc2 + PReLU
        h2 = jnp.dot(h1.astype(jnp.bfloat16), w2_ref[...],
                     preferred_element_type=jnp.float32) + b2
        h2 = jnp.where(h2 >= 0.0, h2, a2 * h2)

        # Head Linear(F, 1): VPU multiply + XLU lane reduce (keeps MXU free).
        out_ref[...] = (jnp.sum(h2 * wo_ref[...], axis=-1, keepdims=True)
                        + bo_ref[...])

    return _mlp_kernel


# ----------------------------------------------------------------------------
# One-time parameter prep (hoisted out of the hot path)
# ----------------------------------------------------------------------------
def prepare_params(w1_sn, b1, a1, w2_sn, b2, a2, wo, bo):
    """Transpose/pad/cast weights once per parameter update."""
    F = w1_sn.shape[1]
    Fp = _round_up(F, 128)
    return dict(
        F=F, Fp=Fp,
        w1_t=_pad2(w1_sn.T, Fp, Fp).astype(jnp.bfloat16),     # [in, out]
        w2_t=_pad2(w2_sn.T, Fp, Fp).astype(jnp.bfloat16),
        ba1=jnp.stack([_pad1(b1, Fp), _pad1(a1, Fp)]).astype(jnp.float32),
        ba2=jnp.stack([_pad1(b2, Fp), _pad1(a2, Fp)]).astype(jnp.float32),
        wo_r=_pad2(wo, 1, Fp).astype(jnp.float32),             # (1, Fp)
        bo_r=bo.reshape(1, 1).astype(jnp.float32),
    )


def mlp_forward(x, prep, *, tm=512):
    """x: [B, F] f32 (raw, unpadded).  prep: output of prepare_params()."""
    B, F = x.shape
    assert F == prep["F"], "x feature dim does not match prepared params"
    Fp = prep["Fp"]

    # Batch tiling.  For production B=10000 prefer tm=1000 (divides B -> no
    # batch pad; grid=10 is even and >=8 for v7x's two TensorCores).
    tm = min(tm, _round_up(B, 8))
    Bp = _round_up(B, tm)
    if Bp != B:
        x = jnp.pad(x, ((0, Bp - B), (0, 0)))      # batch-only f32 pad
    grid = (Bp // tm,)

    kernel = _make_kernel(F, Fp)
    scratch = [pltpu.VMEM((tm, Fp), jnp.bfloat16)] if F != Fp else []

    def build(single_buffered):
        res_kw = dict(pipeline_mode=pl.Buffered(1)) if single_buffered else {}

        def resident(shape):
            # Constant block index -> fetched once; single buffer saves VMEM.
            return pl.BlockSpec(shape, lambda i: (0,) * len(shape), **res_kw)

        return pl.pallas_call(
            kernel,
            out_shape=jax.ShapeDtypeStruct((Bp, 1), jnp.float32),
            grid=grid,
            in_specs=[
                pl.BlockSpec((tm, F), lambda i: (i, 0)),   # x tile, raw f32
                resident((Fp, Fp)),                        # W1^T / sigma1
                resident((2, Fp)),                         # [b1 ; prelu a1]
                resident((Fp, Fp)),                        # W2^T / sigma2
                resident((2, Fp)),                         # [b2 ; prelu a2]
                resident((1, Fp)),                         # Wout row
                resident((1, 1)),                          # bout
            ],
            out_specs=pl.BlockSpec((tm, 1), lambda i: (i, 0)),
            scratch_shapes=scratch,
            compiler_params=pltpu.CompilerParams(
                dimension_semantics=("parallel",),         # megacore on v7x
                vmem_limit_bytes=32 * 1024 * 1024,
            ),
        )

    args = (x, prep["w1_t"], prep["ba1"], prep["w2_t"], prep["ba2"],
            prep["wo_r"], prep["bo_r"])
    try:
        out = build(True)(*args)
    except Exception:
        # Fallback for JAX builds without pipeline_mode support on pallas_call.
        out = build(False)(*args)
    return out[:B]                                          # (B, 1)


# ----------------------------------------------------------------------------
# Parameter setup (plain JAX glue — not part of the hot path)
# ----------------------------------------------------------------------------
def _orthogonal(key, rows, cols):
    """Mimics nn.init.orthogonal_(gain=1) for a [rows, cols] weight."""
    n, m = (rows, cols) if rows >= cols else (cols, rows)
    a = jax.random.normal(key, (n, m), dtype=jnp.float32)
    q, r = jnp.linalg.qr(a)
    d = jnp.diagonal(r)
    q = q * jnp.where(d >= 0, 1.0, -1.0)[None, :]
    if rows < cols:
        q = q.T
    return q[:rows, :cols]


def _l2_normalize(v, eps=1e-12):
    return v / (jnp.linalg.norm(v) + eps)


def spectral_normalize(w, u0):
    """One PyTorch-style power iteration (training forward) on w [out, in]."""
    v = _l2_normalize(w.T @ u0)
    u = _l2_normalize(w @ v)
    sigma = u @ (w @ v)
    return w / sigma


def make_params(key, F):
    ks = jax.random.split(key, 6)
    w1 = _orthogonal(ks[0], F, F)
    b1 = jnp.zeros((F,), jnp.float32)
    u1 = _l2_normalize(jax.random.normal(ks[1], (F,), jnp.float32))
    w1_sn = spectral_normalize(w1, u1)
    a1 = jnp.full((F,), 0.25, jnp.float32)

    w2 = _orthogonal(ks[2], F, F)
    b2 = jnp.zeros((F,), jnp.float32)
    u2 = _l2_normalize(jax.random.normal(ks[3], (F,), jnp.float32))
    w2_sn = spectral_normalize(w2, u2)
    a2 = jnp.full((F,), 0.25, jnp.float32)

    wo = _orthogonal(ks[4], 1, F)
    bo = jnp.zeros((1,), jnp.float32)
    return (w1_sn, b1, a1, w2_sn, b2, a2, wo, bo)


def reference_forward_f32(x, params):
    w1, b1, a1, w2, b2, a2, wo, bo = params
    h1 = x @ w1.T + b1
    h1 = jnp.where(h1 >= 0, h1, a1 * h1)
    h2 = h1 @ w2.T + b2
    h2 = jnp.where(h2 >= 0, h2, a2 * h2)
    return h2 @ wo.T + bo


def reference_forward_bf16(x, params):
    """Reference with the kernel's bf16-MXU / f32-accumulate numerics."""
    w1, b1, a1, w2, b2, a2, wo, bo = params
    bf = jnp.bfloat16
    h1 = jnp.dot(x.astype(bf), w1.T.astype(bf),
                 preferred_element_type=jnp.float32) + b1
    h1 = jnp.where(h1 >= 0, h1, a1 * h1)
    h2 = jnp.dot(h1.astype(bf), w2.T.astype(bf),
                 preferred_element_type=jnp.float32) + b2
    h2 = jnp.where(h2 >= 0, h2, a2 * h2)
    return h2 @ wo.T + bo


# ----------------------------------------------------------------------------
if __name__ == "__main__":
    # Small stand-in for the real (10000, 1000): exercises the in-kernel
    # feature pad (200 -> 256), the batch pad (1000 -> 1024 at tm=512), and a
    # multi-step parallel grid.
    B, F = 1000, 200

    key = jax.random.PRNGKey(0)
    kx, kp = jax.random.split(key)
    x = jax.random.normal(kx, (B, F), dtype=jnp.float32)

    params = make_params(kp, F)
    prep = prepare_params(*params)        # once per parameter update

    out = mlp_forward(x, prep, tm=512)
    out = jax.block_until_ready(out)

    ref_bf16 = reference_forward_bf16(x, params)
    ref_f32 = reference_forward_f32(x, params)

    assert out.shape == (B, 1)
    # Tight check vs a reference with identical bf16-matmul numerics.
    assert jnp.allclose(out, ref_bf16, atol=5e-3, rtol=5e-3), (
        f"bf16-ref mismatch, max abs err {jnp.max(jnp.abs(out - ref_bf16))}")
    # Loose sanity check vs the pure-f32 model (bf16 MXU operands lose precision).
    assert jnp.allclose(out, ref_f32, atol=0.25, rtol=0.25), (
        f"f32-ref mismatch, max abs err {jnp.max(jnp.abs(out - ref_f32))}")

    print("KERNEL_OK")
</pallas_src>

<mosaic_0001>
module attributes {stable_mosaic.version = 11 : i64} {
  func.func @_mlp_kernel(%arg0: i32, %arg1: memref<512x200xf32, #tpu.memory_space<vmem>>, %arg2: memref<256x256xbf16, #tpu.memory_space<vmem>>, %arg3: memref<2x256xf32, #tpu.memory_space<vmem>>, %arg4: memref<256x256xbf16, #tpu.memory_space<vmem>>, %arg5: memref<2x256xf32, #tpu.memory_space<vmem>>, %arg6: memref<1x256xf32, #tpu.memory_space<vmem>>, %arg7: memref<1x1xf32, #tpu.memory_space<vmem>>, %arg8: memref<512x1xf32, #tpu.memory_space<vmem>>, %arg9: memref<512x256xbf16, #tpu.memory_space<vmem>>) attributes {dimension_semantics = [#tpu.dimension_semantics<parallel>], iteration_bounds = array<i64: 2>, scalar_prefetch = 0 : i64, scratch_operands = 1 : i64, tpu.core_type = #tpu.core_type<tc>, window_params = [{transform_indices = @transform_0, window_bounds = array<i64: 512, 200>}, {pipeline_mode = #tpu.pipeline_mode<synchronous>, transform_indices = @transform_1, window_bounds = array<i64: 256, 256>}, {pipeline_mode = #tpu.pipeline_mode<synchronous>, transform_indices = @transform_2, window_bounds = array<i64: 2, 256>}, {pipeline_mode = #tpu.pipeline_mode<synchronous>, transform_indices = @transform_3, window_bounds = array<i64: 256, 256>}, {pipeline_mode = #tpu.pipeline_mode<synchronous>, transform_indices = @transform_4, window_bounds = array<i64: 2, 256>}, {pipeline_mode = #tpu.pipeline_mode<synchronous>, transform_indices = @transform_5, window_bounds = array<i64: 1, 256>}, {pipeline_mode = #tpu.pipeline_mode<synchronous>, transform_indices = @transform_6, window_bounds = array<i64: 1, 1>}, {transform_indices = @transform_7, window_bounds = array<i64: 512, 1>}]} {
    %c0 = arith.constant 0 : index
    %c0_0 = arith.constant 0 : index
    %0 = vector.load %arg3[%c0, %c0_0] : memref<2x256xf32, #tpu.memory_space<vmem>>, vector<2x256xf32>
    %1 = vector.extract_strided_slice %0 {offsets = [0, 0], sizes = [1, 256], strides = [1, 1]} : vector<2x256xf32> to vector<1x256xf32>
    %2 = vector.extract_strided_slice %0 {offsets = [1, 0], sizes = [1, 256], strides = [1, 1]} : vector<2x256xf32> to vector<1x256xf32>
    %c0_1 = arith.constant 0 : index
    %c0_2 = arith.constant 0 : index
    %3 = vector.load %arg5[%c0_1, %c0_2] : memref<2x256xf32, #tpu.memory_space<vmem>>, vector<2x256xf32>
    %4 = vector.extract_strided_slice %3 {offsets = [0, 0], sizes = [1, 256], strides = [1, 1]} : vector<2x256xf32> to vector<1x256xf32>
    %5 = vector.extract_strided_slice %3 {offsets = [1, 0], sizes = [1, 256], strides = [1, 1]} : vector<2x256xf32> to vector<1x256xf32>
    %c0_3 = arith.constant 0 : index
    %c0_4 = arith.constant 0 : index
    %6 = vector.load %arg1[%c0_3, %c0_4] : memref<512x200xf32, #tpu.memory_space<vmem>>, vector<512x200xf32>
    %7 = arith.truncf %6 : vector<512x200xf32> to vector<512x200xbf16>
    %c0_5 = arith.constant 0 : index
    %c0_6 = arith.constant 0 : index
    %8 = vector.load %arg9[%c0_5, %c0_6] : memref<512x256xbf16, #tpu.memory_space<vmem>>, vector<512x200xbf16>
    tpu.vector_store %arg9[%c0_5, %c0_6], %7 {strides = array<i32>} : memref<512x256xbf16, #tpu.memory_space<vmem>>, vector<512x200xbf16>,
    %cst = arith.constant 0.000000e+00 : bf16
    %9 = vector.broadcast %cst : bf16 to vector<512x56xbf16>
    %c0_7 = arith.constant 0 : index
    %c200 = arith.constant 200 : index
    %10 = vector.load %arg9[%c0_7, %c200] : memref<512x256xbf16, #tpu.memory_space<vmem>>, vector<512x56xbf16>
    tpu.vector_store %arg9[%c0_7, %c200], %9 {strides = array<i32>} : memref<512x256xbf16, #tpu.memory_space<vmem>>, vector<512x56xbf16>,
    %c0_8 = arith.constant 0 : index
    %c0_9 = arith.constant 0 : index
    %11 = vector.load %arg9[%c0_8, %c0_9] : memref<512x256xbf16, #tpu.memory_space<vmem>>, vector<512x256xbf16>
    %c0_10 = arith.constant 0 : index
    %c0_11 = arith.constant 0 : index
    %12 = vector.load %arg2[%c0_10, %c0_11] : memref<256x256xbf16, #tpu.memory_space<vmem>>, vector<256x256xbf16>
    %cst_12 = arith.constant dense<0.000000e+00> : vector<512x256xf32>
    %13 = tpu.matmul %11, %12, %cst_12 {dimension_numbers = #tpu.dot_dimension_numbers<[1], [0], [0], [1], [0, 0, 1, 1], [], []>} : vector<512x256xbf16>, vector<256x256xbf16>, vector<512x256xf32> -> vector<512x256xf32>
    %14 = vector.broadcast %1 : vector<1x256xf32> to vector<512x256xf32>
    %15 = arith.addf %13, %14 : vector<512x256xf32>
    %cst_13 = arith.constant 0.000000e+00 : f32
    %16 = vector.broadcast %cst_13 : f32 to vector<512x256xf32>
    %17 = arith.cmpf oge, %15, %16 : vector<512x256xf32>
    %18 = vector.broadcast %2 : vector<1x256xf32> to vector<512x256xf32>
    %19 = arith.mulf %18, %15 : vector<512x256xf32>
    %20 = arith.select %17, %15, %19 : vector<512x256xi1>, vector<512x256xf32>
    %21 = arith.truncf %20 : vector<512x256xf32> to vector<512x256xbf16>
    %c0_14 = arith.constant 0 : index
    %c0_15 = arith.constant 0 : index
    %22 = vector.load %arg4[%c0_14, %c0_15] : memref<256x256xbf16, #tpu.memory_space<vmem>>, vector<256x256xbf16>
    %cst_16 = arith.constant dense<0.000000e+00> : vector<512x256xf32>
    %23 = tpu.matmul %21, %22, %cst_16 {dimension_numbers = #tpu.dot_dimension_numbers<[1], [0], [0], [1], [0, 0, 1, 1], [], []>} : vector<512x256xbf16>, vector<256x256xbf16>, vector<512x256xf32> -> vector<512x256xf32>
    %24 = vector.broadcast %4 : vector<1x256xf32> to vector<512x256xf32>
    %25 = arith.addf %23, %24 : vector<512x256xf32>
    %cst_17 = arith.constant 0.000000e+00 : f32
    %26 = vector.broadcast %cst_17 : f32 to vector<512x256xf32>
    %27 = arith.cmpf oge, %25, %26 : vector<512x256xf32>
    %28 = vector.broadcast %5 : vector<1x256xf32> to vector<512x256xf32>
    %29 = arith.mulf %28, %25 : vector<512x256xf32>
    %30 = arith.select %27, %25, %29 : vector<512x256xi1>, vector<512x256xf32>
    %c0_18 = arith.constant 0 : index
    %c0_19 = arith.constant 0 : index
    %31 = vector.load %arg6[%c0_18, %c0_19] : memref<1x256xf32, #tpu.memory_space<vmem>>, vector<1x256xf32>
    %32 = vector.broadcast %31 : vector<1x256xf32> to vector<512x256xf32>
    %33 = arith.mulf %30, %32 : vector<512x256xf32>
    %cst_20 = arith.constant dense<0.000000e+00> : vector<512xf32>
    %34 = vector.multi_reduction <add>, %33, %cst_20 [1] : vector<512x256xf32> to vector<512xf32>
    %35 = vector.shape_cast %34 : vector<512xf32> to vector<512x1xf32>
    %c0_21 = arith.constant 0 : index
    %c0_22 = arith.constant 0 : index
    %36 = vector.load %arg7[%c0_21, %c0_22] : memref<1x1xf32, #tpu.memory_space<vmem>>, vector<1x1xf32>
    %37 = vector.broadcast %36 : vector<1x1xf32> to vector<512x1xf32>
    %38 = arith.addf %35, %37 : vector<512x1xf32>
    %c0_23 = arith.constant 0 : index
    %c0_24 = arith.constant 0 : index
    %39 = vector.load %arg8[%c0_23, %c0_24] : memref<512x1xf32, #tpu.memory_space<vmem>>, vector<512x1xf32>
    tpu.vector_store %arg8[%c0_23, %c0_24], %38 {strides = array<i32>} : memref<512x1xf32, #tpu.memory_space<vmem>>, vector<512x1xf32>,
    return
  }
  func.func @transform_0(%arg0: i32) -> (i32, i32) {
    %c0_i32 = arith.constant 0 : i32
    %c0_i32_0 = arith.constant 0 : i32
    return %arg0, %c0_i32 : i32, i32
  }
  func.func @transform_1(%arg0: i32) -> (i32, i32) {
    %c0_i32 = arith.constant 0 : i32
    %c0_i32_0 = arith.constant 0 : i32
    %c0_i32_1 = arith.constant 0 : i32
    return %c0_i32, %c0_i32_0 : i32, i32
  }
  func.func @transform_2(%arg0: i32) -> (i32, i32) {
    %c0_i32 = arith.constant 0 : i32
    %c0_i32_0 = arith.constant 0 : i32
    %c0_i32_1 = arith.constant 0 : i32
    return %c0_i32, %c0_i32_0 : i32, i32
  }
  func.func @transform_3(%arg0: i32) -> (i32, i32) {
    %c0_i32 = arith.constant 0 : i32
    %c0_i32_0 = arith.constant 0 : i32
    %c0_i32_1 = arith.constant 0 : i32
    return %c0_i32, %c0_i32_0 : i32, i32
  }
  func.func @transform_4(%arg0: i32) -> (i32, i32) {
    %c0_i32 = arith.constant 0 : i32
    %c0_i32_0 = arith.constant 0 : i32
    %c0_i32_1 = arith.constant 0 : i32
    return %c0_i32, %c0_i32_0 : i32, i32
  }
  func.func @transform_5(%arg0: i32) -> (i32, i32) {
    %c0_i32 = arith.constant 0 : i32
    %c0_i32_0 = arith.constant 0 : i32
    %c0_i32_1 = arith.constant 0 : i32
    return %c0_i32, %c0_i32_0 : i32, i32
  }
  func.func @transform_6(%arg0: i32) -> (i32, i32) {
    %c0_i32 = arith.constant 0 : i32
    %c0_i32_0 = arith.constant 0 : i32
    %c0_i32_1 = arith.constant 0 : i32
    return %c0_i32, %c0_i32_0 : i32, i32
  }
  func.func @transform_7(%arg0: i32) -> (i32, i32) {
    %c0_i32 = arith.constant 0 : i32
    %c0_i32_0 = arith.constant 0 : i32
    return %arg0, %c0_i32 : i32, i32
  }
}

module attributes {stable_mosaic.version = 11 : i64} {
  func.func @_mlp_kernel(%arg0: i32, %arg1: memref<512x200xf32, #tpu.memory_space<vmem>>, %arg2: memref<256x256xbf16, #tpu.memory_space<vmem>>, %arg3: memref<2x256xf32, #tpu.memory_space<vmem>>, %arg4: memref<256x256xbf16, #tpu.memory_space<vmem>>, %arg5: memref<2x256xf32, #tpu.memory_space<vmem>>, %arg6: memref<1x256xf32, #tpu.memory_space<vmem>>, %arg7: memref<1x1xf32, #tpu.memory_space<vmem>>, %arg8: memref<512x1xf32, #tpu.memory_space<vmem>>, %arg9: memref<512x256xbf16, #tpu.memory_space<vmem>>) attributes {dimension_semantics = [#tpu.dimension_semantics<parallel>], iteration_bounds = array<i64: 2>, scalar_prefetch = 0 : i64, scratch_operands = 1 : i64, tpu.core_type = #tpu.core_type<tc>, window_params = [{transform_indices = @transform_0, window_bounds = array<i64: 512, 200>}, {pipeline_mode = #tpu.pipeline_mode<synchronous>, transform_indices = @transform_1, window_bounds = array<i64: 256, 256>}, {pipeline_mode = #tpu.pipeline_mode<synchronous>, transform_indices = @transform_2, window_bounds = array<i64: 2, 256>}, {pipeline_mode = #tpu.pipeline_mode<synchronous>, transform_indices = @transform_3, window_bounds = array<i64: 256, 256>}, {pipeline_mode = #tpu.pipeline_mode<synchronous>, transform_indices = @transform_4, window_bounds = array<i64: 2, 256>}, {pipeline_mode = #tpu.pipeline_mode<synchronous>, transform_indices = @transform_5, window_bounds = array<i64: 1, 256>}, {pipeline_mode = #tpu.pipeline_mode<synchronous>, transform_indices = @transform_6, window_bounds = array<i64: 1, 1>}, {transform_indices = @transform_7, window_bounds = array<i64: 512, 1>}]} {
    %c0 = arith.constant 0 : index
    %c0_0 = arith.constant 0 : index
    %0 = vector.load %arg3[%c0, %c0_0] : memref<2x256xf32, #tpu.memory_space<vmem>>, vector<2x256xf32>
    %1 = vector.extract_strided_slice %0 {offsets = [0, 0], sizes = [1, 256], strides = [1, 1]} : vector<2x256xf32> to vector<1x256xf32>
    %2 = vector.extract_strided_slice %0 {offsets = [1, 0], sizes = [1, 256], strides = [1, 1]} : vector<2x256xf32> to vector<1x256xf32>
    %c0_1 = arith.constant 0 : index
    %c0_2 = arith.constant 0 : index
    %3 = vector.load %arg5[%c0_1, %c0_2] : memref<2x256xf32, #tpu.memory_space<vmem>>, vector<2x256xf32>
    %4 = vector.extract_strided_slice %3 {offsets = [0, 0], sizes = [1, 256], strides = [1, 1]} : vector<2x256xf32> to vector<1x256xf32>
    %5 = vector.extract_strided_slice %3 {offsets = [1, 0], sizes = [1, 256], strides = [1, 1]} : vector<2x256xf32> to vector<1x256xf32>
    %c0_3 = arith.constant 0 : index
    %c0_4 = arith.constant 0 : index
    %6 = vector.load %arg1[%c0_3, %c0_4] : memref<512x200xf32, #tpu.memory_space<vmem>>, vector<512x200xf32>
    %7 = arith.truncf %6 : vector<512x200xf32> to vector<512x200xbf16>
    %c0_5 = arith.constant 0 : index
    %c0_6 = arith.constant 0 : index
    %8 = vector.load %arg9[%c0_5, %c0_6] : memref<512x256xbf16, #tpu.memory_space<vmem>>, vector<512x200xbf16>
    tpu.vector_store %arg9[%c0_5, %c0_6], %7 {strides = array<i32>} : memref<512x256xbf16, #tpu.memory_space<vmem>>, vector<512x200xbf16>,
    %cst = arith.constant 0.000000e+00 : bf16
    %9 = vector.broadcast %cst : bf16 to vector<512x56xbf16>
    %c0_7 = arith.constant 0 : index
    %c200 = arith.constant 200 : index
    %10 = vector.load %arg9[%c0_7, %c200] : memref<512x256xbf16, #tpu.memory_space<vmem>>, vector<512x56xbf16>
    tpu.vector_store %arg9[%c0_7, %c200], %9 {strides = array<i32>} : memref<512x256xbf16, #tpu.memory_space<vmem>>, vector<512x56xbf16>,
    %c0_8 = arith.constant 0 : index
    %c0_9 = arith.constant 0 : index
    %11 = vector.load %arg9[%c0_8, %c0_9] : memref<512x256xbf16, #tpu.memory_space<vmem>>, vector<512x256xbf16>
    %c0_10 = arith.constant 0 : index
    %c0_11 = arith.constant 0 : index
    %12 = vector.load %arg2[%c0_10, %c0_11] : memref<256x256xbf16, #tpu.memory_space<vmem>>, vector<256x256xbf16>
    %cst_12 = arith.constant dense<0.000000e+00> : vector<512x256xf32>
    %13 = tpu.matmul %11, %12, %cst_12 {dimension_numbers = #tpu.dot_dimension_numbers<[1], [0], [0], [1], [0, 0, 1, 1], [], []>} : vector<512x256xbf16>, vector<256x256xbf16>, vector<512x256xf32> -> vector<512x256xf32>
    %14 = vector.broadcast %1 : vector<1x256xf32> to vector<512x256xf32>
    %15 = arith.addf %13, %14 : vector<512x256xf32>
    %cst_13 = arith.constant 0.000000e+00 : f32
    %16 = vector.broadcast %cst_13 : f32 to vector<512x256xf32>
    %17 = arith.cmpf oge, %15, %16 : vector<512x256xf32>
    %18 = vector.broadcast %2 : vector<1x256xf32> to vector<512x256xf32>
    %19 = arith.mulf %18, %15 : vector<512x256xf32>
    %20 = arith.select %17, %15, %19 : vector<512x256xi1>, vector<512x256xf32>
    %21 = arith.truncf %20 : vector<512x256xf32> to vector<512x256xbf16>
    %c0_14 = arith.constant 0 : index
    %c0_15 = arith.constant 0 : index
    %22 = vector.load %arg4[%c0_14, %c0_15] : memref<256x256xbf16, #tpu.memory_space<vmem>>, vector<256x256xbf16>
    %cst_16 = arith.constant dense<0.000000e+00> : vector<512x256xf32>
    %23 = tpu.matmul %21, %22, %cst_16 {dimension_numbers = #tpu.dot_dimension_numbers<[1], [0], [0], [1], [0, 0, 1, 1], [], []>} : vector<512x256xbf16>, vector<256x256xbf16>, vector<512x256xf32> -> vector<512x256xf32>
    %24 = vector.broadcast %4 : vector<1x256xf32> to vector<512x256xf32>
    %25 = arith.addf %23, %24 : vector<512x256xf32>
    %cst_17 = arith.constant 0.000000e+00 : f32
    %26 = vector.broadcast %cst_17 : f32 to vector<512x256xf32>
    %27 = arith.cmpf oge, %25, %26 : vector<512x256xf32>
    %28 = vector.broadcast %5 : vector<1x256xf32> to vector<512x256xf32>
    %29 = arith.mulf %28, %25 : vector<512x256xf32>
    %30 = arith.select %27, %25, %29 : vector<512x256xi1>, vector<512x256xf32>
    %c0_18 = arith.constant 0 : index
    %c0_19 = arith.constant 0 : index
    %31 = vector.load %arg6[%c0_18, %c0_19] : memref<1x256xf32, #tpu.memory_space<vmem>>, vector<1x256xf32>
    %32 = vector.broadcast %31 : vector<1x256xf32> to vector<512x256xf32>
    %33 = arith.mulf %30, %32 : vector<512x256xf32>
    %cst_20 = arith.constant dense<0.000000e+00> : vector<512xf32>
    %34 = vector.multi_reduction <add>, %33, %cst_20 [1] : vector<512x256xf32> to vector<512xf32>
    %35 = vector.shape_cast %34 : vector<512xf32> to vector<512x1xf32>
    %c0_21 = arith.constant 0 : index
    %c0_22 = arith.constant 0 : index
    %36 = vector.load %arg7[%c0_21, %c0_22] : memref<1x1xf32, #tpu.memory_space<vmem>>, vector<1x1xf32>
    %37 = vector.broadcast %36 : vector<1x1xf32> to vector<512x1xf32>
    %38 = arith.addf %35, %37 : vector<512x1xf32>
    %c0_23 = arith.constant 0 : index
    %c0_24 = arith.constant 0 : index
    %39 = vector.load %arg8[%c0_23, %c0_24] : memref<512x1xf32, #tpu.memory_space<vmem>>, vector<512x1xf32>
    tpu.vector_store %arg8[%c0_23, %c0_24], %38 {strides = array<i32>} : memref<512x1xf32, #tpu.memory_space<vmem>>, vector<512x1xf32>,
    return
  }
  func.func @transform_0(%arg0: i32) -> (i32, i32) {
    %c0_i32 = arith.constant 0 : i32
    %c0_i32_0 = arith.constant 0 : i32
    return %arg0, %c0_i32 : i32, i32
  }
  func.func @transform_1(%arg0: i32) -> (i32, i32) {
    %c0_i32 = arith.constant 0 : i32
    %c0_i32_0 = arith.constant 0 : i32
    %c0_i32_1 = arith.constant 0 : i32
    return %c0_i32, %c0_i32_0 : i32, i32
  }
  func.func @transform_2(%arg0: i32) -> (i32, i32) {
    %c0_i32 = arith.constant 0 : i32
    %c0_i32_0 = arith.constant 0 : i32
    %c0_i32_1 = arith.constant 0 : i32
    return %c0_i32, %c0_i32_0 : i32, i32
  }
  func.func @transform_3(%arg0: i32) -> (i32, i32) {
    %c0_i32 = arith.constant 0 : i32
    %c0_i32_0 = arith.constant 0 : i32
    %c0_i32_1 = arith.constant 0 : i32
    return %c0_i32, %c0_i32_0 : i32, i32
  }
  func.func @transform_4(%arg0: i32) -> (i32, i32) {
    %c0_i32 = arith.constant 0 : i32
    %c0_i32_0 = arith.constant 0 : i32
    %c0_i32_1 = arith.constant 0 : i32
    return %c0_i32, %c0_i32_0 : i32, i32
  }
  func.func @transform_5(%arg0: i32) -> (i32, i32) {
    %c0_i32 = arith.constant 0 : i32
    %c0_i32_0 = arith.constant 0 : i32
    %c0_i32_1 = arith.constant 0 : i32
    return %c0_i32, %c0_i32_0 : i32, i32
  }
  func.func @transform_6(%arg0: i32) -> (i32, i32) {
    %c0_i32 = arith.constant 0 : i32
    %c0_i32_0 = arith.constant 0 : i32
    %c0_i32_1 = arith.constant 0 : i32
    return %c0_i32, %c0_i32_0 : i32, i32
  }
  func.func @transform_7(%arg0: i32) -> (i32, i32) {
    %c0_i32 = arith.constant 0 : i32
    %c0_i32_0 = arith.constant 0 : i32
    return %arg0, %c0_i32 : i32, i32
  }
}

</mosaic_0001>

<bundles_post_ra>
// kernel: tpu_custom_call.1
= control target key start
LH: loop header
LB: loop body
LE: loop exit
PB: predicated region body
PF: predicated region fallthrough
CT: control target
= control target key end

     0   :  { %s4362_s26 = smov 0   ;;  %s6080_s0 = inlined_call_operand.vmem [shape: f32[1024,200], index: 0, kind: input, shape index: {}]   ;;  %s6081_s1 = inlined_call_operand.vmem [shape: bf16[256,256], index: 1, kind: input, shape index: {}]   ;;  %s6082_s2 = inlined_call_operand.vmem [shape: f32[2,256], index: 2, kind: input, shape index: {}]   ;;  %s6083_s3 = inlined_call_operand.vmem [shape: bf16[256,256], index: 3, kind: input, shape index: {}]   ;;  %s6084_s4 = inlined_call_operand.vmem [shape: f32[2,256], index: 4, kind: input, shape index: {}]   ;;  %s6085_s5 = inlined_call_operand.vmem [shape: f32[1,256], index: 5, kind: input, shape index: {}]   ;;  %s6086_s6 = inlined_call_operand.<no memory space> [shape: f32[1,1], index: 6, kind: input, shape index: {}]   ;;  %s6087_s7 = inlined_call_operand.vmem [shape: f32[1024,1], index: 7, kind: output, shape index: {}]  }
   0x1   :  { %v12_v0 = vstv %s6086_s6 }
   0x2   :  { %13 = vst [vmem:[#allocation3] sm:$0x1] %v12_v0 }
   0x3 LB: > { %s3838_s27 = sadd.s32 4294967295, %s4316_s26   ;;  %p3842_p0 = scmp.ge.s32.totalorder %s4316_s26, 1  ;;  %s4316_s26 = sphi %s4362_s26, %s19_s26  }
   0x4   : > { %p241_p1 = scmp.lt.s32.totalorder %s4316_s26, 3 }
   0x6   : > { %p242_p2 = pnand %p3842_p0, %p241_p1 }
   0x7   : > { %s3843_s14 = sshll.u32 (!%p242_p2), %s3838_s27, 6 }
   0x8   : > { %245 = sbr.rel (%p242_p2) target bundleno = 895 (0x37f), region = 48  ;;  %p275_p3 = scmp.lt.s32.totalorder (!%p242_p2), %s3843_s14, 127 }
   0xd   : > { %v4117_v1 = vld [vmem:[%s6081_s1 + $0x74] ss:$8 sps:$4 sm:$0xff]   ;;  %v4119_v2 = vld [vmem:[%s6081_s1 + $0x70] ss:$8 sps:$4 sm:$0xff]   ;;  %v4120_v3 = vld [vmem:[%s6081_s1 + $0x64] ss:$8 sps:$4 sm:$0xff]  }
   0xe   : > { %1529 = vmatprep.subr.bf16.mxu0 %v4117_v1  ;;  %v4122_v4 = vld [vmem:[%s6081_s1 + $0x60] ss:$8 sps:$4 sm:$0xff]   ;;  %v4123_v5 = vld [vmem:[%s6081_s1 + $0x54] ss:$8 sps:$4 sm:$0xff]   ;;  %v4125_v6 = vld [vmem:[%s6081_s1 + $0x50] ss:$8 sps:$4 sm:$0xff]  }
   0xf   : > { %1530 = vmatpush1.bf16.msra.mxu0 %v4119_v2  ;;  %v4126_v7 = vld [vmem:[%s6081_s1 + $0x44] ss:$8 sps:$4 sm:$0xff]   ;;  %v4128_v8 = vld [vmem:[%s6081_s1 + $0x40] ss:$8 sps:$4 sm:$0xff]   ;;  %s6091_s14 = smov (!%p275_p3, %s3843_s14), 127  ;;  %vm802_vm0 = vcmask 1043456  }
  0x10   : > { %1531 = vmatprep.subr.bf16.mxu0 %v4120_v3  ;;  %v4129_v9 = vld [vmem:[%s6081_s1 + $0x34] ss:$8 sps:$4 sm:$0xff]   ;;  %v4131_v10 = vld [vmem:[%s6081_s1 + $0x30] ss:$8 sps:$4 sm:$0xff]   ;;  %s4043_s25 = sshll.u32 %s6091_s14, 4  ;;  %vm803_vm1 = vcmask 588804  }
  0x11   : > { %v4132_v11 = vld [vmem:[%s6081_s1 + $0x24] ss:$8 sps:$4 sm:$0xff]   ;;  %s4409_s30 = scalar_lea.vmem %s6080_s0, %s4043_s25  ;;  %v4134_v12 = vld [vmem:[%s6081_s1 + $0x20] ss:$8 sps:$4 sm:$0xff]   ;;  %v4135_v13 = vld [vmem:[%s6081_s1 + $0x14] ss:$8 sps:$4 sm:$0xff]  }
  0x12   : > { %v4137_v14 = vld [vmem:[%s6081_s1 + $0x10] ss:$8 sps:$4 sm:$0xff]   ;;  %v290_v15 = vld [vmem:[%s4409_s30] sm:$0xff]  ;;  %v291_v16 = vld [vmem:[%s4409_s30 + $0x8] sm:$0xff]  ;;  %vm869_vm3 = vcmask 1044032   ;;  %v4318_v31 = vmov 0  }
  0x13   : > { %1532 = vmatpush1.bf16.msra.mxu0 %v4122_v4  ;;  %v4138_v17 = vld [vmem:[%s6081_s1 + $0x4] ss:$8 sps:$4 sm:$0xff]   ;;  %v292_v18 = vld [vmem:[%s4409_s30 + $0x10] sm:$0xff]  ;;  %v293_v19 = vld [vmem:[%s4409_s30 + $0x18] sm:$0xff]  ;;  %v4044_v20 = vpack.c.bf16 %v291_v16, %v290_v15  ;;  %s3847_s15 = sshll.u32 %s6091_s14, 3 }
  0x14   : > { %1533 = vmatprep.subr.bf16.mxu0 %v4123_v5  ;;  %vm4427_vm2 = vmor %vm803_vm1, %vm802_vm0  ;;  %v4045_v22 = vpack.c.bf16 %v293_v19, %v292_v18  ;;  %v294_v23 = vld [vmem:[%s4409_s30 + $0x20] sm:$0xff]  ;;  %v295_v24 = vld [vmem:[%s4409_s30 + $0x28] sm:$0xff]  ;;  %s5714_s18 = scalar_lea.vmem %s6087_s7, %s3847_s15 }
  0x15   : > { %v296_v25 = vld [vmem:[%s4409_s30 + $0x30] sm:$0xff]  ;;  %805 = vst.msk [vmem:[#allocation2] sm:$0xff] %vm4427_vm2, %v4044_v20  ;;  %v297_v26 = vld [vmem:[%s4409_s30 + $0x38] sm:$0xff]  ;;  %v4046_v27 = vpack.c.bf16 %v295_v24, %v294_v23  ;;  %v298_v28 = vld [vmem:[%s4409_s30 + $0x40] sm:$0xff] }
  0x16   : > { %v299_v29 = vld [vmem:[%s4409_s30 + $0x48] sm:$0xff]  ;;  %806 = vst.msk [vmem:[#allocation2 + $0x8] sm:$0xff] %vm4427_vm2, %v4045_v22  ;;  %v4047_v32 = vpack.c.bf16 %v297_v26, %v296_v25  ;;  %v300_v33 = vld [vmem:[%s4409_s30 + $0x50] sm:$0xff]  ;;  %v301_v34 = vld [vmem:[%s4409_s30 + $0x58] sm:$0xff] }
  0x17   : > { %1534 = vmatpush1.bf16.msra.mxu0 %v4125_v6  ;;  %v4140_v30 = vld [vmem:[%s6081_s1] ss:$8 sps:$4 sm:$0xff]   ;;  %870 = vst.msk [vmem:[#allocation2 + $0x4] sm:$0xf] %vm869_vm3, %v4318_v31  ;;  %v4048_v35 = vpack.c.bf16 %v299_v29, %v298_v28  ;;  %v4141_v37 = vld [vmem:[%s6081_s1 + $0xf4] ss:$8 sps:$4 sm:$0xff]   ;;  %v4049_v38 = vpack.c.bf16 %v301_v34, %v300_v33 }
  0x18   : > { %1535 = vmatprep.subr.bf16.mxu0 %v4126_v7  ;;  %v302_v36 = vld [vmem:[%s4409_s30 + $0x60] sm:$0xff]  ;;  %871 = vst.msk [vmem:[#allocation2 + $0xc] sm:$0xf] %vm869_vm3, %v4318_v31  ;;  %v303_v39 = vld [vmem:[%s4409_s30 + $0x68] sm:$0xff]  ;;  %v304_v40 = vld [vmem:[%s4409_s30 + $0x70] sm:$0xff] }
  0x19   : > { %807 = vst.msk [vmem:[#allocation2 + $0x10] sm:$0xff] %vm4427_vm2, %v4046_v27  ;;  %v305_v41 = vld [vmem:[%s4409_s30 + $0x78] sm:$0xff]  ;;  %808 = vst.msk [vmem:[#allocation2 + $0x18] sm:$0xff] %vm4427_vm2, %v4047_v32  ;;  %v4050_v42 = vpack.c.bf16 %v303_v39, %v302_v36  ;;  %v306_v44 = vld [vmem:[%s4409_s30 + $0x80] sm:$0xff] }
  0x1a   : > { %872 = vst.msk [vmem:[#allocation2 + $0x14] sm:$0xf] %vm869_vm3, %v4318_v31  ;;  %v4051_v43 = vpack.c.bf16 %v305_v41, %v304_v40  ;;  %v307_v45 = vld [vmem:[%s4409_s30 + $0x88] sm:$0xff]  ;;  %v308_v46 = vld [vmem:[%s4409_s30 + $0x90] sm:$0xff]  ;;  %873 = vst.msk [vmem:[#allocation2 + $0x1c] sm:$0xf] %vm869_vm3, %v4318_v31 }
  0x1b   : > { %1536 = vmatpush1.bf16.msra.mxu0 %v4128_v8  ;;  %809 = vst.msk [vmem:[#allocation2 + $0x20] sm:$0xff] %vm4427_vm2, %v4048_v35  ;;  %810 = vst.msk [vmem:[#allocation2 + $0x28] sm:$0xff] %vm4427_vm2, %v4049_v38  ;;  %v309_v47 = vld [vmem:[%s4409_s30 + $0x98] sm:$0xff]  ;;  %v4052_v48 = vpack.c.bf16 %v307_v45, %v306_v44  ;;  %v310_v49 = vld [vmem:[%s4409_s30 + $0xa0] sm:$0xff] }
  0x1c   : > { %1537 = vmatprep.subr.bf16.mxu0 %v4129_v9  ;;  %874 = vst.msk [vmem:[#allocation2 + $0x24] sm:$0xf] %vm869_vm3, %v4318_v31  ;;  %v311_v50 = vld [vmem:[%s4409_s30 + $0xa8] sm:$0xff]  ;;  %v4143_v51 = vld [vmem:[%s6081_s1 + $0xf0] ss:$8 sps:$4 sm:$0xff]   ;;  %v4053_v52 = vpack.c.bf16 %v309_v47, %v308_v46  ;;  %v314_v56 = vld [vmem:[%s4409_s30 + $0xc0] sm:$0xff] }
  0x1d   : > { %875 = vst.msk [vmem:[#allocation2 + $0x2c] sm:$0xf] %vm869_vm3, %v4318_v31  ;;  %v312_v53 = vld [vmem:[%s4409_s30 + $0xb0] sm:$0xff]  ;;  %v313_v54 = vld [vmem:[%s4409_s30 + $0xb8] sm:$0xff]  ;;  %v4054_v55 = vpack.c.bf16 %v311_v50, %v310_v49  ;;  %v4144_v57 = vld [vmem:[%s6081_s1 + $0xe4] ss:$8 sps:$4 sm:$0xff]  }
  0x1e   : > { %811 = vst.msk [vmem:[#allocation2 + $0x30] sm:$0xff] %vm4427_vm2, %v4050_v42  ;;  %812 = vst.msk [vmem:[#allocation2 + $0x38] sm:$0xff] %vm4427_vm2, %v4051_v43  ;;  %v4055_v58 = vpack.c.bf16 %v313_v54, %v312_v53  ;;  %v315_v59 = vld [vmem:[%s4409_s30 + $0xc8] sm:$0xff]  ;;  %v316_v60 = vld [vmem:[%s4409_s30 + $0xd0] sm:$0xff] }
  0x1f   : > { %1538 = vmatpush1.bf16.msra.mxu0 %v4131_v10  ;;  %876 = vst.msk [vmem:[#allocation2 + $0x34] sm:$0xf] %vm869_vm3, %v4318_v31  ;;  %877 = vst.msk [vmem:[#allocation2 + $0x3c] sm:$0xf] %vm869_vm3, %v4318_v31  ;;  %v317_v61 = vld [vmem:[%s4409_s30 + $0xd8] sm:$0xff]  ;;  %v4056_v62 = vpack.c.bf16 %v315_v59, %v314_v56  ;;  %v318_v0 = vld [vmem:[%s4409_s30 + $0xe0] sm:$0xff] }
  0x20   : > { %1539 = vmatprep.subr.bf16.mxu0 %v4132_v11  ;;  %813 = vst.msk [vmem:[#allocation2 + $0x40] sm:$0xff] %vm4427_vm2, %v4052_v48  ;;  %814 = vst.msk [vmem:[#allocation2 + $0x48] sm:$0xff] %vm4427_vm2, %v4053_v52  ;;  %v4057_v63 = vpack.c.bf16 %v317_v61, %v316_v60  ;;  %v319_v1 = vld [vmem:[%s4409_s30 + $0xe8] sm:$0xff]  ;;  %v320_v2 = vld [vmem:[%s4409_s30 + $0xf0] sm:$0xff] }
  0x21   : > { %878 = vst.msk [vmem:[#allocation2 + $0x44] sm:$0xf] %vm869_vm3, %v4318_v31  ;;  %879 = vst.msk [vmem:[#allocation2 + $0x4c] sm:$0xf] %vm869_vm3, %v4318_v31  ;;  %v321_v3 = vld [vmem:[%s4409_s30 + $0xf8] sm:$0xff]  ;;  %v4058_v4 = vpack.c.bf16 %v319_v1, %v318_v0  ;;  %v322_v5 = vld [vmem:[%s4409_s30 + $0x100] sm:$0xff] }
  0x22   : > { %815 = vst.msk [vmem:[#allocation2 + $0x50] sm:$0xff] %vm4427_vm2, %v4054_v55  ;;  %816 = vst.msk [vmem:[#allocation2 + $0x58] sm:$0xff] %vm4427_vm2, %v4055_v58  ;;  %v4167_v6 = vld [vmem:[#allocation2 + $0x4] ss:$8 sps:$4 sm:$0xff]   ;;  %v4059_v7 = vpack.c.bf16 %v321_v3, %v320_v2  ;;  %v4146_v9 = vld [vmem:[%s6081_s1 + $0xe0] ss:$8 sps:$4 sm:$0xff]  }
  0x23   : > { %1540 = vmatpush1.bf16.msra.mxu0 %v4134_v12  ;;  %880 = vst.msk [vmem:[#allocation2 + $0x54] sm:$0xf] %vm869_vm3, %v4318_v31  ;;  %881 = vst.msk [vmem:[#allocation2 + $0x5c] sm:$0xf] %vm869_vm3, %v4318_v31  ;;  %v323_v8 = vld [vmem:[%s4409_s30 + $0x108] sm:$0xff]  ;;  %1561 = vmatprep.mubr.bf16.mxu0 %v4167_v6  ;;  %v326_v18 = vld [vmem:[%s4409_s30 + $0x120] sm:$0xff] }
  0x24   : > { %1541 = vmatprep.subr.bf16.mxu0 %v4135_v13  ;;  %817 = vst.msk [vmem:[#allocation2 + $0x60] sm:$0xff] %vm4427_vm2, %v4056_v62  ;;  %818 = vst.msk [vmem:[#allocation2 + $0x68] sm:$0xff] %vm4427_vm2, %v4057_v63  ;;  %v4060_v10 = vpack.c.bf16 %v323_v8, %v322_v5  ;;  %v4147_v11 = vld [vmem:[%s6081_s1 + $0xd4] ss:$8 sps:$4 sm:$0xff]   ;;  %v4149_v12 = vld [vmem:[%s6081_s1 + $0xd0] ss:$8 sps:$4 sm:$0xff]  }
  0x25   : > { %882 = vst.msk [vmem:[#allocation2 + $0x64] sm:$0xf] %vm869_vm3, %v4318_v31  ;;  %883 = vst.msk [vmem:[#allocation2 + $0x6c] sm:$0xf] %vm869_vm3, %v4318_v31  ;;  %v4150_v13 = vld [vmem:[%s6081_s1 + $0xc4] ss:$8 sps:$4 sm:$0xff]  }
  0x26   : > { %819 = vst.msk [vmem:[#allocation2 + $0x70] sm:$0xff] %vm4427_vm2, %v4058_v4  ;;  %820 = vst.msk [vmem:[#allocation2 + $0x78] sm:$0xff] %vm4427_vm2, %v4059_v7  ;;  %v4152_v15 = vld [vmem:[%s6081_s1 + $0xc0] ss:$8 sps:$4 sm:$0xff]   ;;  %v4153_v16 = vld [vmem:[%s6081_s1 + $0xb4] ss:$8 sps:$4 sm:$0xff]  }
  0x27   : > { %1542 = vmatpush1.bf16.msra.mxu0 %v4137_v14  ;;  %884 = vst.msk [vmem:[#allocation2 + $0x74] sm:$0xf] %vm869_vm3, %v4318_v31  ;;  %885 = vst.msk [vmem:[#allocation2 + $0x7c] sm:$0xf] %vm869_vm3, %v4318_v31  ;;  %v324_v14 = vld [vmem:[%s4409_s30 + $0x110] sm:$0xff]  ;;  %v327_v19 = vld [vmem:[%s4409_s30 + $0x128] sm:$0xff] }
  0x28   : > { %1543 = vmatprep.subr.bf16.mxu0 %v4138_v17  ;;  %821 = vst.msk [vmem:[#allocation2 + $0x80] sm:$0xff] %vm4427_vm2, %v4060_v10  ;;  %v325_v17 = vld [vmem:[%s4409_s30 + $0x118] sm:$0xff]  ;;  %v328_v23 = vld [vmem:[%s4409_s30 + $0x130] sm:$0xff]  ;;  %v4062_v25 = vpack.c.bf16 %v327_v19, %v326_v18  ;;  %v4156_v26 = vld [vmem:[%s6081_s1 + $0xa4] ss:$8 sps:$4 sm:$0xff]  }
  0x29   : > { %886 = vst.msk [vmem:[#allocation2 + $0x84] sm:$0xf] %vm869_vm3, %v4318_v31  ;;  %v4155_v20 = vld [vmem:[%s6081_s1 + $0xb0] ss:$8 sps:$4 sm:$0xff]   ;;  %v4061_v22 = vpack.c.bf16 %v325_v17, %v324_v14  ;;  %v330_v28 = vld [vmem:[%s4409_s30 + $0x140] sm:$0xff]  ;;  %v331_v29 = vld [vmem:[%s4409_s30 + $0x148] sm:$0xff] }
  0x2a   : > { %v329_v24 = vld [vmem:[%s4409_s30 + $0x138] sm:$0xff]  ;;  %823 = vst.msk [vmem:[#allocation2 + $0x90] sm:$0xff] %vm4427_vm2, %v4062_v25  ;;  %v4064_v33 = vpack.c.bf16 %v331_v29, %v330_v28  ;;  %v334_v34 = vld [vmem:[%s4409_s30 + $0x160] sm:$0xff]  ;;  %v335_v35 = vld [vmem:[%s4409_s30 + $0x168] sm:$0xff] }
  0x2b   : > { %1544 = vmatpush1.bf16.msra.mxu0 %v4140_v30  ;;  %v4063_v27 = vpack.c.bf16 %v329_v24, %v328_v23  ;;  %v332_v30 = vld [vmem:[%s4409_s30 + $0x150] sm:$0xff]  ;;  %822 = vst.msk [vmem:[#allocation2 + $0x88] sm:$0xff] %vm4427_vm2, %v4061_v22  ;;  %v333_v32 = vld [vmem:[%s4409_s30 + $0x158] sm:$0xff]  ;;  %v4066_v39 = vpack.c.bf16 %v335_v35, %v334_v34  ;;  %v338_v40 = vld [vmem:[%s4409_s30 + $0x180] sm:$0xff] }
  0x2c   : > { %1545 = vmatprep.subr.bf16.mxu0 %v4141_v37  ;;  %887 = vst.msk [vmem:[#allocation2 + $0x8c] sm:$0xf] %vm869_vm3, %v4318_v31  ;;  %888 = vst.msk [vmem:[#allocation2 + $0x94] sm:$0xf] %vm869_vm3, %v4318_v31  ;;  %v4065_v36 = vpack.c.bf16 %v333_v32, %v332_v30  ;;  %v336_v37 = vld [vmem:[%s4409_s30 + $0x170] sm:$0xff]  ;;  %v337_v38 = vld [vmem:[%s4409_s30 + $0x178] sm:$0xff] }
  0x2d   : > { %824 = vst.msk [vmem:[#allocation2 + $0x98] sm:$0xff] %vm4427_vm2, %v4063_v27  ;;  %v4158_v41 = vld [vmem:[%s6081_s1 + $0xa0] ss:$8 sps:$4 sm:$0xff]   ;;  %825 = vst.msk [vmem:[#allocation2 + $0xa0] sm:$0xff] %vm4427_vm2, %v4064_v33  ;;  %v4067_v42 = vpack.c.bf16 %v337_v38, %v336_v37  ;;  %v340_v44 = vld [vmem:[%s4409_s30 + $0x190] sm:$0xff] }
  0x2e   : > { %889 = vst.msk [vmem:[#allocation2 + $0x9c] sm:$0xf] %vm869_vm3, %v4318_v31  ;;  %v339_v43 = vld [vmem:[%s4409_s30 + $0x188] sm:$0xff]  ;;  %v341_v45 = vld [vmem:[%s4409_s30 + $0x198] sm:$0xff]  ;;  %890 = vst.msk [vmem:[#allocation2 + $0xa4] sm:$0xf] %vm869_vm3, %v4318_v31 }
  0x2f   : > { %1546 = vmatpush2.bf16.msra.mxu0 %v4143_v51  ;;  %v4159_v46 = vld [vmem:[%s6081_s1 + $0x94] ss:$8 sps:$4 sm:$0xff]   ;;  %826 = vst.msk [vmem:[#allocation2 + $0xa8] sm:$0xff] %vm4427_vm2, %v4065_v36  ;;  %827 = vst.msk [vmem:[#allocation2 + $0xb0] sm:$0xff] %vm4427_vm2, %v4066_v39  ;;  %v4068_v47 = vpack.c.bf16 %v339_v43, %v338_v40  ;;  %v4069_v48 = vpack.c.bf16 %v341_v45, %v340_v44  ;;  %v342_v49 = vld [vmem:[%s4409_s30 + $0x1a0] sm:$0xff] }
  0x30   : > { %1547 = vmatprep.subr.bf16.mxu0 %v4144_v57  ;;  %v343_v50 = vld [vmem:[%s4409_s30 + $0x1a8] sm:$0xff]  ;;  %v344_v51 = vld [vmem:[%s4409_s30 + $0x1b0] sm:$0xff]  ;;  %891 = vst.msk [vmem:[#allocation2 + $0xac] sm:$0xf] %vm869_vm3, %v4318_v31  ;;  %892 = vst.msk [vmem:[#allocation2 + $0xb4] sm:$0xf] %vm869_vm3, %v4318_v31 }
  0x31   : > { %828 = vst.msk [vmem:[#allocation2 + $0xb8] sm:$0xff] %vm4427_vm2, %v4067_v42  ;;  %v345_v52 = vld [vmem:[%s4409_s30 + $0x1b8] sm:$0xff]  ;;  %v4070_v53 = vpack.c.bf16 %v343_v50, %v342_v49  ;;  %v346_v54 = vld [vmem:[%s4409_s30 + $0x1c0] sm:$0xff]  ;;  %v347_v55 = vld [vmem:[%s4409_s30 + $0x1c8] sm:$0xff] }
  0x32   : > { %893 = vst.msk [vmem:[#allocation2 + $0xbc] sm:$0xf] %vm869_vm3, %v4318_v31  ;;  %v4071_v56 = vpack.c.bf16 %v345_v52, %v344_v51  ;;  %v348_v57 = vld [vmem:[%s4409_s30 + $0x1d0] sm:$0xff]  ;;  %v349_v58 = vld [vmem:[%s4409_s30 + $0x1d8] sm:$0xff]  ;;  %v4072_v59 = vpack.c.bf16 %v347_v55, %v346_v54  ;;  %v350_v60 = vld [vmem:[%s4409_s30 + $0x1e0] sm:$0xff] }
  0x33   : > { %1548 = vmatpush2.bf16.msra.mxu0 %v4146_v9  ;;  %829 = vst.msk [vmem:[#allocation2 + $0xc0] sm:$0xff] %vm4427_vm2, %v4068_v47  ;;  %830 = vst.msk [vmem:[#allocation2 + $0xc8] sm:$0xff] %vm4427_vm2, %v4069_v48  ;;  %v4073_v61 = vpack.c.bf16 %v349_v58, %v348_v57  ;;  %v351_v62 = vld [vmem:[%s4409_s30 + $0x1e8] sm:$0xff]  ;;  %v352_v63 = vld [vmem:[%s4409_s30 + $0x1f0] sm:$0xff] }
  0x34   : > { %1549 = vmatprep.subr.bf16.mxu0 %v4147_v11  ;;  %894 = vst.msk [vmem:[#allocation2 + $0xc4] sm:$0xf] %vm869_vm3, %v4318_v31  ;;  %895 = vst.msk [vmem:[#allocation2 + $0xcc] sm:$0xf] %vm869_vm3, %v4318_v31  ;;  %v353_v0 = vld [vmem:[%s4409_s30 + $0x1f8] sm:$0xff]  ;;  %v4074_v1 = vpack.c.bf16 %v351_v62, %v350_v60  ;;  %v354_v3 = vld [vmem:[%s4409_s30 + $0x200] sm:$0xff] }
  0x35   : > { %831 = vst.msk [vmem:[#allocation2 + $0xd0] sm:$0xff] %vm4427_vm2, %v4070_v53  ;;  %832 = vst.msk [vmem:[#allocation2 + $0xd8] sm:$0xff] %vm4427_vm2, %v4071_v56  ;;  %v4075_v2 = vpack.c.bf16 %v353_v0, %v352_v63  ;;  %v355_v4 = vld [vmem:[%s4409_s30 + $0x208] sm:$0xff]  ;;  %v4161_v5 = vld [vmem:[%s6081_s1 + $0x90] ss:$8 sps:$4 sm:$0xff]  }
  0x36   : > { %896 = vst.msk [vmem:[#allocation2 + $0xd4] sm:$0xf] %vm869_vm3, %v4318_v31  ;;  %897 = vst.msk [vmem:[#allocation2 + $0xdc] sm:$0xf] %vm869_vm3, %v4318_v31  ;;  %v356_v6 = vld [vmem:[%s4409_s30 + $0x210] sm:$0xff]  ;;  %v4076_v7 = vpack.c.bf16 %v355_v4, %v354_v3  ;;  %v357_v9 = vld [vmem:[%s4409_s30 + $0x218] sm:$0xff] }
  0x37   : > { %1550 = vmatpush2.bf16.msra.mxu0 %v4149_v12  ;;  %833 = vst.msk [vmem:[#allocation2 + $0xe0] sm:$0xff] %vm4427_vm2, %v4072_v59  ;;  %834 = vst.msk [vmem:[#allocation2 + $0xe8] sm:$0xff] %vm4427_vm2, %v4073_v61  ;;  %v4162_v8 = vld [vmem:[%s6081_s1 + $0x84] ss:$8 sps:$4 sm:$0xff]   ;;  %v4077_v10 = vpack.c.bf16 %v357_v9, %v356_v6  ;;  %v4164_v11 = vld [vmem:[%s6081_s1 + $0x80] ss:$8 sps:$4 sm:$0xff]  }
  0x38   : > { %1551 = vmatprep.subr.bf16.mxu0 %v4150_v13  ;;  %898 = vst.msk [vmem:[#allocation2 + $0xe4] sm:$0xf] %vm869_vm3, %v4318_v31  ;;  %899 = vst.msk [vmem:[#allocation2 + $0xec] sm:$0xf] %vm869_vm3, %v4318_v31  ;;  %v4165_v12 = vld [vmem:[#allocation2] ss:$8 sps:$4 sm:$0xff]  }
  0x39   : > { %835 = vst.msk [vmem:[#allocation2 + $0xf0] sm:$0xff] %vm4427_vm2, %v4074_v1  ;;  %836 = vst.msk [vmem:[#allocation2 + $0xf8] sm:$0xff] %vm4427_vm2, %v4075_v2  ;;  %v4168_v13 = vld [vmem:[#allocation2 + $0x14] ss:$8 sps:$4 sm:$0xff]   ;;  %v358_v14 = vld [vmem:[%s4409_s30 + $0x220] sm:$0xff] }
  0x3a   : > { %900 = vst.msk [vmem:[#allocation2 + $0xf4] sm:$0xf] %vm869_vm3, %v4318_v31  ;;  %901 = vst.msk [vmem:[#allocation2 + $0xfc] sm:$0xf] %vm869_vm3, %v4318_v31  ;;  %v361_v17 = vld [vmem:[%s4409_s30 + $0x238] sm:$0xff]  ;;  %v362_v23 = vld [vmem:[%s4409_s30 + $0x240] sm:$0xff] }
  0x3b   : > { %1552 = vmatpush2.bf16.msra.mxu0 %v4152_v15  ;;  %837 = vst.msk [vmem:[#allocation2 + $0x100] sm:$0xff] %vm4427_vm2, %v4076_v7  ;;  %838 = vst.msk [vmem:[#allocation2 + $0x108] sm:$0xff] %vm4427_vm2, %v4077_v10  ;;  %v359_v15 = vld [vmem:[%s4409_s30 + $0x228] sm:$0xff]  ;;  %v4170_v19 = vld [vmem:[#allocation2 + $0x10] ss:$8 sps:$4 sm:$0xff]  }
  0x3c   : > { %1553 = vmatprep.subr.bf16.mxu0 %v4153_v16  ;;  %902 = vst.msk [vmem:[#allocation2 + $0x104] sm:$0xf] %vm869_vm3, %v4318_v31  ;;  %903 = vst.msk [vmem:[#allocation2 + $0x10c] sm:$0xf] %vm869_vm3, %v4318_v31  ;;  %v360_v16 = vld [vmem:[%s4409_s30 + $0x230] sm:$0xff]  ;;  %v4078_v18 = vpack.c.bf16 %v359_v15, %v358_v14  ;;  %v363_v24 = vld [vmem:[%s4409_s30 + $0x248] sm:$0xff] }
  0x3d   : > { %v4171_v22 = vld [vmem:[#allocation2 + $0x24] ss:$8 sps:$4 sm:$0xff]   ;;  %v364_v25 = vld [vmem:[%s4409_s30 + $0x250] sm:$0xff]  ;;  %v4080_v27 = vpack.c.bf16 %v363_v24, %v362_v23  ;;  %v369_v34 = vld [vmem:[%s4409_s30 + $0x278] sm:$0xff] }
  0x3e   : > { %839 = vst.msk [vmem:[#allocation2 + $0x110] sm:$0xff] %vm4427_vm2, %v4078_v18  ;;  %v4221_v29 = vld [vmem:[%s6083_s3 + $0x74] ss:$8 sps:$4 sm:$0xff]   ;;  %v366_v30 = vld [vmem:[%s4409_s30 + $0x260] sm:$0xff]  ;;  %v367_v32 = vld [vmem:[%s4409_s30 + $0x268] sm:$0xff] }
  0x3f   : > { %1554 = vmatpush2.bf16.msra.mxu0 %v4155_v20  ;;  %v4079_v20 = vpack.c.bf16 %v361_v17, %v360_v16  ;;  %904 = vst.msk [vmem:[#allocation2 + $0x114] sm:$0xf] %vm869_vm3, %v4318_v31  ;;  %v368_v33 = vld [vmem:[%s4409_s30 + $0x270] sm:$0xff]  ;;  %2559 = vmatprep.subr.bf16.mxu1 %v4221_v29  ;;  %v4082_v35 = vpack.c.bf16 %v367_v32, %v366_v30  ;;  %v4173_v36 = vld [vmem:[#allocation2 + $0x20] ss:$8 sps:$4 sm:$0xff]   ;;  %v373_v47 = vld [vmem:[%s4409_s30 + $0x298] sm:$0xff] }
  0x40   : > { %1555 = vmatprep.subr.bf16.mxu0 %v4156_v26  ;;  %v365_v26 = vld [vmem:[%s4409_s30 + $0x258] sm:$0xff]  ;;  %841 = vst.msk [vmem:[#allocation2 + $0x120] sm:$0xff] %vm4427_vm2, %v4080_v27  ;;  %v4083_v38 = vpack.c.bf16 %v369_v34, %v368_v33  ;;  %v4225_v40 = vld [vmem:[%s6083_s3 + $0x64] ss:$8 sps:$4 sm:$0xff]   ;;  %v4236_v53 = vld [vmem:[%s6083_s3 + $0x40] ss:$8 sps:$4 sm:$0xff]  }
  0x41   : > { %840 = vst.msk [vmem:[#allocation2 + $0x118] sm:$0xff] %vm4427_vm2, %v4079_v20  ;;  %v4081_v28 = vpack.c.bf16 %v365_v26, %v364_v25  ;;  %v4174_v37 = vld [vmem:[#allocation2 + $0x34] ss:$8 sps:$4 sm:$0xff]   ;;  %843 = vst.msk [vmem:[#allocation2 + $0x130] sm:$0xff] %vm4427_vm2, %v4082_v35  ;;  %v4224_v39 = vld [vmem:[%s6083_s3 + $0x70] ss:$8 sps:$4 sm:$0xff]  }
  0x42   : > { %905 = vst.msk [vmem:[#allocation2 + $0x11c] sm:$0xf] %vm869_vm3, %v4318_v31  ;;  %906 = vst.msk [vmem:[#allocation2 + $0x124] sm:$0xf] %vm869_vm3, %v4318_v31  ;;  %2560 = vmatpush1.bf16.msra.mxu1 %v4224_v39  ;;  %v4230_v42 = vld [vmem:[%s6083_s3 + $0x54] ss:$8 sps:$4 sm:$0xff]  }
  0x43   : > { %1556 = vmatpush2.bf16.msra.mxu0 %v4158_v41  ;;  %842 = vst.msk [vmem:[#allocation2 + $0x128] sm:$0xff] %vm4427_vm2, %v4081_v28  ;;  %844 = vst.msk [vmem:[#allocation2 + $0x138] sm:$0xff] %vm4427_vm2, %v4083_v38  ;;  %v4227_v41 = vld [vmem:[%s6083_s3 + $0x60] ss:$8 sps:$4 sm:$0xff]   ;;  %v4176_v43 = vld [vmem:[#allocation2 + $0x30] ss:$8 sps:$4 sm:$0xff]   ;;  %2561 = vmatprep.subr.bf16.mxu1 %v4225_v40 }
  0x44   : > { %1557 = vmatprep.subr.bf16.mxu0 %v4159_v46  ;;  %907 = vst.msk [vmem:[#allocation2 + $0x12c] sm:$0xf] %vm869_vm3, %v4318_v31  ;;  %908 = vst.msk [vmem:[#allocation2 + $0x134] sm:$0xf] %vm869_vm3, %v4318_v31  ;;  %v370_v44 = vld [vmem:[%s4409_s30 + $0x280] sm:$0xff]  ;;  %v371_v45 = vld [vmem:[%s4409_s30 + $0x288] sm:$0xff] }
  0x45   : > { %909 = vst.msk [vmem:[#allocation2 + $0x13c] sm:$0xf] %vm869_vm3, %v4318_v31  ;;  %v372_v46 = vld [vmem:[%s4409_s30 + $0x290] sm:$0xff]  ;;  %v4084_v48 = vpack.c.bf16 %v371_v45, %v370_v44  ;;  %v4177_v50 = vld [vmem:[#allocation2 + $0x44] ss:$8 sps:$4 sm:$0xff]   ;;  %v377_v58 = vld [vmem:[%s4409_s30 + $0x2b8] sm:$0xff] }
  0x46   : > { %2562 = vmatpush1.bf16.msra.mxu1 %v4227_v41  ;;  %v4085_v49 = vpack.c.bf16 %v373_v47, %v372_v46  ;;  %v4233_v51 = vld [vmem:[%s6083_s3 + $0x50] ss:$8 sps:$4 sm:$0xff]   ;;  %v4234_v52 = vld [vmem:[%s6083_s3 + $0x44] ss:$8 sps:$4 sm:$0xff]   ;;  %v4239_v54 = vld [vmem:[%s6083_s3 + $0x34] ss:$8 sps:$4 sm:$0xff]  }
  0x47   : > { %1558 = vmatpush2.bf16.msra.mxu0 %v4161_v5  ;;  %2563 = vmatprep.subr.bf16.mxu1 %v4230_v42  ;;  %845 = vst.msk [vmem:[#allocation2 + $0x140] sm:$0xff] %vm4427_vm2, %v4084_v48  ;;  %v374_v55 = vld [vmem:[%s4409_s30 + $0x2a0] sm:$0xff]  ;;  %v375_v56 = vld [vmem:[%s4409_s30 + $0x2a8] sm:$0xff]  ;;  %v376_v57 = vld [vmem:[%s4409_s30 + $0x2b0] sm:$0xff] }
  0x48   : > { %1559 = vmatprep.subr.bf16.mxu0 %v4162_v8  ;;  %846 = vst.msk [vmem:[#allocation2 + $0x148] sm:$0xff] %vm4427_vm2, %v4085_v49  ;;  %v4086_v59 = vpack.c.bf16 %v375_v56, %v374_v55  ;;  %v4179_v60 = vld [vmem:[#allocation2 + $0x40] ss:$8 sps:$4 sm:$0xff]   ;;  %v4087_v61 = vpack.c.bf16 %v377_v58, %v376_v57  ;;  %v4180_v62 = vld [vmem:[#allocation2 + $0x54] ss:$8 sps:$4 sm:$0xff]  }
  0x49   : > { %910 = vst.msk [vmem:[#allocation2 + $0x144] sm:$0xf] %vm869_vm3, %v4318_v31  ;;  %911 = vst.msk [vmem:[#allocation2 + $0x14c] sm:$0xf] %vm869_vm3, %v4318_v31  ;;  %v4242_v63 = vld [vmem:[%s6083_s3 + $0x30] ss:$8 sps:$4 sm:$0xff]  }
  0x4a   : > { %2564 = vmatpush1.bf16.msra.mxu1 %v4233_v51  ;;  %847 = vst.msk [vmem:[#allocation2 + $0x150] sm:$0xff] %vm4427_vm2, %v4086_v59  ;;  %848 = vst.msk [vmem:[#allocation2 + $0x158] sm:$0xff] %vm4427_vm2, %v4087_v61  ;;  %v4243_v0 = vld [vmem:[%s6083_s3 + $0x24] ss:$8 sps:$4 sm:$0xff]   ;;  %v4245_v1 = vld [vmem:[%s6083_s3 + $0x20] ss:$8 sps:$4 sm:$0xff]  }
  0x4b   : > { %1560 = vmatpush2.bf16.msra.mxu0 %v4164_v11  ;;  %2565 = vmatprep.subr.bf16.mxu1 %v4234_v52  ;;  %912 = vst.msk [vmem:[#allocation2 + $0x154] sm:$0xf] %vm869_vm3, %v4318_v31  ;;  %913 = vst.msk [vmem:[#allocation2 + $0x15c] sm:$0xf] %vm869_vm3, %v4318_v31  ;;  %v4248_v2 = vld [vmem:[%s6083_s3 + $0x14] ss:$8 sps:$4 sm:$0xff]  }
  0x4c   : > { %v378_v3 = vld [vmem:[%s4409_s30 + $0x2c0] sm:$0xff]  ;;  %v379_v4 = vld [vmem:[%s4409_s30 + $0x2c8] sm:$0xff]  ;;  %v380_v5 = vld [vmem:[%s4409_s30 + $0x2d0] sm:$0xff] }
  0x4d   : > { %v381_v6 = vld [vmem:[%s4409_s30 + $0x2d8] sm:$0xff]  ;;  %v4088_v7 = vpack.c.bf16 %v379_v4, %v378_v3  ;;  %v4183_v10 = vld [vmem:[#allocation2 + $0x64] ss:$8 sps:$4 sm:$0xff]   ;;  %v384_v17 = vld [vmem:[%s4409_s30 + $0x2f0] sm:$0xff] }
  0x4e   : > { %1562 = vmatmul.mubr.bf16.vlgmr.msra.gmra.mxu0 %v4165_v12  ;;  %2566 = vmatpush1.bf16.msra.mxu1 %v4236_v53  ;;  %v4182_v8 = vld [vmem:[#allocation2 + $0x50] ss:$8 sps:$4 sm:$0xff]   ;;  %v4089_v9 = vpack.c.bf16 %v381_v6, %v380_v5  ;;  %v4252_v12 = vld [vmem:[%s6083_s3 + $0x4] ss:$8 sps:$4 sm:$0xff]   ;;  %v4257_v14 = vld [vmem:[%s6083_s3 + $0xf4] ss:$8 sps:$4 sm:$0xff]  }
  0x4f   : > { %1571 = vmatprep.mubr.bf16.mxu0 %v4168_v13  ;;  %2567 = vmatprep.subr.bf16.mxu1 %v4239_v54  ;;  %849 = vst.msk [vmem:[#allocation2 + $0x160] sm:$0xff] %vm4427_vm2, %v4088_v7  ;;  %v4251_v11 = vld [vmem:[%s6083_s3 + $0x10] ss:$8 sps:$4 sm:$0xff]   ;;  %v4254_v13 = vld [vmem:[%s6083_s3] ss:$8 sps:$4 sm:$0xff]  }
  0x50   : > { %850 = vst.msk [vmem:[#allocation2 + $0x168] sm:$0xff] %vm4427_vm2, %v4089_v9  ;;  %v382_v15 = vld [vmem:[%s4409_s30 + $0x2e0] sm:$0xff]  ;;  %v383_v16 = vld [vmem:[%s4409_s30 + $0x2e8] sm:$0xff]  ;;  %v385_v18 = vld [vmem:[%s4409_s30 + $0x2f8] sm:$0xff] }
  0x51   : > { %914 = vst.msk [vmem:[#allocation2 + $0x164] sm:$0xf] %vm869_vm3, %v4318_v31  ;;  %915 = vst.msk [vmem:[#allocation2 + $0x16c] sm:$0xf] %vm869_vm3, %v4318_v31  ;;  %v4185_v20 = vld [vmem:[#allocation2 + $0x60] ss:$8 sps:$4 sm:$0xff]  }
  0x52   : > { %2568 = vmatpush1.bf16.msra.mxu1 %v4242_v63  ;;  %v4186_v23 = vld [vmem:[#allocation2 + $0x74] ss:$8 sps:$4 sm:$0xff]   ;;  %v4260_v24 = vld [vmem:[%s6083_s3 + $0xf0] ss:$8 sps:$4 sm:$0xff]   ;;  %v4261_v25 = vld [vmem:[%s6083_s3 + $0xe4] ss:$8 sps:$4 sm:$0xff]  }
  0x53   : > { %2569 = vmatprep.subr.bf16.mxu1 %v4243_v0  ;;  %v4263_v26 = vld [vmem:[%s6083_s3 + $0xe0] ss:$8 sps:$4 sm:$0xff]   ;;  %v4266_v27 = vld [vmem:[%s6083_s3 + $0xd4] ss:$8 sps:$4 sm:$0xff]   ;;  %v4188_v34 = vld [vmem:[#allocation2 + $0x70] ss:$8 sps:$4 sm:$0xff]  }
  0x54   : > { %v386_v28 = vld [vmem:[%s4409_s30 + $0x300] sm:$0xff]  ;;  %v387_v29 = vld [vmem:[%s4409_s30 + $0x308] sm:$0xff]  ;;  %v388_v30 = vld [vmem:[%s4409_s30 + $0x310] sm:$0xff] }
  0x55   : > { %v389_v32 = vld [vmem:[%s4409_s30 + $0x318] sm:$0xff]  ;;  %v4092_v33 = vpack.c.bf16 %v387_v29, %v386_v28  ;;  %v4270_v38 = vld [vmem:[%s6083_s3 + $0xc4] ss:$8 sps:$4 sm:$0xff]   ;;  %v4272_v39 = vld [vmem:[%s6083_s3 + $0xc0] ss:$8 sps:$4 sm:$0xff]  }
  0x56   : > { %1572 = vmatmul.mubr.bf16.gmra.mxu0 %v4170_v19  ;;  %2570 = vmatpush1.bf16.msra.mxu1 %v4245_v1  ;;  %v4090_v19 = vpack.c.bf16 %v383_v16, %v382_v15  ;;  %v4093_v35 = vpack.c.bf16 %v389_v32, %v388_v30  ;;  %v4275_v40 = vld [vmem:[%s6083_s3 + $0xb4] ss:$8 sps:$4 sm:$0xff]   ;;  %v390_v41 = vld [vmem:[%s4409_s30 + $0x320] sm:$0xff]  ;;  %v391_v42 = vld [vmem:[%s4409_s30 + $0x328] sm:$0xff] }
  0x57   : > { %1581 = vmatprep.mubr.bf16.mxu0 %v4171_v22  ;;  %2571 = vmatprep.subr.bf16.mxu1 %v4248_v2  ;;  %v4091_v22 = vpack.c.bf16 %v385_v18, %v384_v17  ;;  %853 = vst.msk [vmem:[#allocation2 + $0x180] sm:$0xff] %vm4427_vm2, %v4092_v33  ;;  %v393_v44 = vld [vmem:[%s4409_s30 + $0x338] sm:$0xff]  ;;  %v4094_v45 = vpack.c.bf16 %v391_v42, %v390_v41  ;;  %v4191_v46 = vld [vmem:[#allocation2 + $0x80] ss:$8 sps:$4 sm:$0xff]   ;;  %v396_v54 = vld [vmem:[%s4409_s30 + $0x350] sm:$0xff] }
  0x58   : > { %851 = vst.msk [vmem:[#allocation2 + $0x170] sm:$0xff] %vm4427_vm2, %v4090_v19  ;;  %854 = vst.msk [vmem:[#allocation2 + $0x188] sm:$0xff] %vm4427_vm2, %v4093_v35  ;;  %v4192_v48 = vld [vmem:[#allocation2 + $0x94] ss:$8 sps:$4 sm:$0xff]   ;;  %v4278_v49 = vld [vmem:[%s6083_s3 + $0xb0] ss:$8 sps:$4 sm:$0xff]  }
  0x59   : > { %852 = vst.msk [vmem:[#allocation2 + $0x178] sm:$0xff] %vm4427_vm2, %v4091_v22  ;;  %855 = vst.msk [vmem:[#allocation2 + $0x190] sm:$0xff] %vm4427_vm2, %v4094_v45  ;;  %v4281_v51 = vld [vmem:[%s6083_s3 + $0xa0] ss:$8 sps:$4 sm:$0xff]   ;;  %v397_v55 = vld [vmem:[%s4409_s30 + $0x358] sm:$0xff] }
  0x5a   : > { %2572 = vmatpush1.bf16.msra.mxu1 %v4251_v11  ;;  %916 = vst.msk [vmem:[#allocation2 + $0x174] sm:$0xf] %vm869_vm3, %v4318_v31  ;;  %917 = vst.msk [vmem:[#allocation2 + $0x17c] sm:$0xf] %vm869_vm3, %v4318_v31  ;;  %v394_v52 = vld [vmem:[%s4409_s30 + $0x340] sm:$0xff]  ;;  %v395_v53 = vld [vmem:[%s4409_s30 + $0x348] sm:$0xff]  ;;  %v4097_v58 = vpack.c.bf16 %v397_v55, %v396_v54 }
  0x5b   : > { %2573 = vmatprep.subr.bf16.mxu1 %v4252_v12  ;;  %918 = vst.msk [vmem:[#allocation2 + $0x184] sm:$0xf] %vm869_vm3, %v4318_v31  ;;  %919 = vst.msk [vmem:[#allocation2 + $0x18c] sm:$0xf] %vm869_vm3, %v4318_v31  ;;  %v4096_v56 = vpack.c.bf16 %v395_v53, %v394_v52  ;;  %v4194_v57 = vld [vmem:[#allocation2 + $0x90] ss:$8 sps:$4 sm:$0xff]  }
  0x5c   : > { %920 = vst.msk [vmem:[#allocation2 + $0x194] sm:$0xf] %vm869_vm3, %v4318_v31  ;;  %v4195_v59 = vld [vmem:[#allocation2 + $0xa4] ss:$8 sps:$4 sm:$0xff]   ;;  %v4287_v61 = vld [vmem:[%s6083_s3 + $0x90] ss:$8 sps:$4 sm:$0xff]  }
  0x5d   : > { %857 = vst.msk [vmem:[#allocation2 + $0x1a0] sm:$0xff] %vm4427_vm2, %v4096_v56  ;;  %858 = vst.msk [vmem:[#allocation2 + $0x1a8] sm:$0xff] %vm4427_vm2, %v4097_v58  ;;  %v4290_v63 = vld [vmem:[%s6083_s3 + $0x80] ss:$8 sps:$4 sm:$0xff]   ;;  %v400_v2 = vld [vmem:[%s4409_s30 + $0x370] sm:$0xff]  ;;  %v1031_v56 = vlaneseq }
  0x5e   : > { %1582 = vmatmul.mubr.bf16.gmra.mxu0 %v4173_v36  ;;  %2574 = vmatpush1.bf16.msra.mxu1 %v4254_v13  ;;  %v4189_v36 = vld [vmem:[#allocation2 + $0x84] ss:$8 sps:$4 sm:$0xff]   ;;  %922 = vst.msk [vmem:[#allocation2 + $0x1a4] sm:$0xf] %vm869_vm3, %v4318_v31  ;;  %923 = vst.msk [vmem:[#allocation2 + $0x1ac] sm:$0xf] %vm869_vm3, %v4318_v31 }
  0x5f   : > { %1591 = vmatprep.mubr.bf16.mxu0 %v4174_v37  ;;  %2575 = vmatprep.subr.bf16.mxu1 %v4257_v14  ;;  %v4269_v37 = vld [vmem:[%s6083_s3 + $0xd0] ss:$8 sps:$4 sm:$0xff]   ;;  %v398_v0 = vld [vmem:[%s4409_s30 + $0x360] sm:$0xff]  ;;  %v399_v1 = vld [vmem:[%s4409_s30 + $0x368] sm:$0xff]  ;;  %v4958_v58 = vshrl.u32 %v1031_v56, 7 }
  0x60   : > { %v401_v3 = vld [vmem:[%s4409_s30 + $0x378] sm:$0xff]  ;;  %v4098_v4 = vpack.c.bf16 %v399_v1, %v398_v0  ;;  %v4197_v5 = vld [vmem:[#allocation2 + $0xa0] ss:$8 sps:$4 sm:$0xff]   ;;  %v4201_v15 = vld [vmem:[#allocation2 + $0xc4] ss:$8 sps:$4 sm:$0xff]  }
  0x61   : > { %v4099_v6 = vpack.c.bf16 %v401_v3, %v400_v2  ;;  %v4198_v7 = vld [vmem:[#allocation2 + $0xb4] ss:$8 sps:$4 sm:$0xff]   ;;  %v403_v9 = vld [vmem:[%s4409_s30 + $0x388] sm:$0xff]  ;;  %v4200_v13 = vld [vmem:[#allocation2 + $0xb0] ss:$8 sps:$4 sm:$0xff]   ;;  %v2016_v0 = vsub.s32 3, %v4958_v58 }
  0x62   : > { %2576 = vmatpush2.bf16.msra.mxu1 %v4260_v24  ;;  %859 = vst.msk [vmem:[#allocation2 + $0x1b0] sm:$0xff] %vm4427_vm2, %v4098_v4  ;;  %v405_v11 = vld [vmem:[%s4409_s30 + $0x398] sm:$0xff]  ;;  %v406_v16 = vld [vmem:[%s4409_s30 + $0x3a0] sm:$0xff]  ;;  %v407_v17 = vld [vmem:[%s4409_s30 + $0x3a8] sm:$0xff]  ;;  %v4972_v2 = vsub.s32 1, %v4958_v58 }
  0x63   : > { %2577 = vmatprep.subr.bf16.mxu1 %v4261_v25  ;;  %860 = vst.msk [vmem:[#allocation2 + $0x1b8] sm:$0xff] %vm4427_vm2, %v4099_v6  ;;  %v408_v18 = vld [vmem:[%s4409_s30 + $0x3b0] sm:$0xff]  ;;  %v409_v19 = vld [vmem:[%s4409_s30 + $0x3b8] sm:$0xff]  ;;  %v4203_v22 = vld [vmem:[#allocation2 + $0xc0] ss:$8 sps:$4 sm:$0xff]  }
  0x64   : > { %924 = vst.msk [vmem:[#allocation2 + $0x1b4] sm:$0xf] %vm869_vm3, %v4318_v31  ;;  %925 = vst.msk [vmem:[#allocation2 + $0x1bc] sm:$0xf] %vm869_vm3, %v4318_v31  ;;  %v4204_v24 = vld [vmem:[#allocation2 + $0xd4] ss:$8 sps:$4 sm:$0xff]  }
  0x65   : > { %v410_v25 = vld [vmem:[%s4409_s30 + $0x3c0] sm:$0xff]  ;;  %v413_v28 = vld [vmem:[%s4409_s30 + $0x3d8] sm:$0xff]  ;;  %v415_v35 = vld [vmem:[%s4409_s30 + $0x3e8] sm:$0xff] }
  0x66   : > { %1592 = vmatmul.mubr.bf16.gmra.mxu0 %v4176_v43  ;;  %2578 = vmatpush2.bf16.msra.mxu1 %v4263_v26  ;;  %v392_v43 = vld [vmem:[%s4409_s30 + $0x330] sm:$0xff]  ;;  %v411_v26 = vld [vmem:[%s4409_s30 + $0x3c8] sm:$0xff] }
  0x67   : > { %1601 = vmatprep.mubr.bf16.mxu0 %v4177_v50  ;;  %2579 = vmatprep.subr.bf16.mxu1 %v4266_v27  ;;  %v4095_v47 = vpack.c.bf16 %v393_v44, %v392_v43  ;;  %v4279_v50 = vld [vmem:[%s6083_s3 + $0xa4] ss:$8 sps:$4 sm:$0xff]   ;;  %v412_v27 = vld [vmem:[%s4409_s30 + $0x3d0] sm:$0xff]  ;;  %v4104_v29 = vpack.c.bf16 %v411_v26, %v410_v25  ;;  %v4215_v44 = vld [vmem:[#allocation2 + $0x100] ss:$8 sps:$4 sm:$0xff]  }
  0x68   : > { %v4206_v30 = vld [vmem:[#allocation2 + $0xd0] ss:$8 sps:$4 sm:$0xff]   ;;  %v4105_v32 = vpack.c.bf16 %v413_v28, %v412_v27  ;;  %v4207_v33 = vld [vmem:[#allocation2 + $0xe4] ss:$8 sps:$4 sm:$0xff]   ;;  %v4210_v41 = vld [vmem:[#allocation2 + $0xf4] ss:$8 sps:$4 sm:$0xff]  }
  0x69   : > { %856 = vst.msk [vmem:[#allocation2 + $0x198] sm:$0xff] %vm4427_vm2, %v4095_v47  ;;  %865 = vst.msk [vmem:[#allocation2 + $0x1e0] sm:$0xff] %vm4427_vm2, %v4104_v29  ;;  %v4212_v42 = vld [vmem:[#allocation2 + $0xf0] ss:$8 sps:$4 sm:$0xff]   ;;  %v4213_v43 = vld [vmem:[#allocation2 + $0x104] ss:$8 sps:$4 sm:$0xff]  }
  0x6a   : > { %2580 = vmatpush2.bf16.msra.mxu1 %v4269_v37  ;;  %921 = vst.msk [vmem:[#allocation2 + $0x19c] sm:$0xf] %vm869_vm3, %v4318_v31  ;;  %930 = vst.msk [vmem:[#allocation2 + $0x1e4] sm:$0xf] %vm869_vm3, %v4318_v31  ;;  %v417_v37 = vld [vmem:[%s4409_s30 + $0x3f8] sm:$0xff] }
  0x6b   : > { %2581 = vmatprep.subr.bf16.mxu1 %v4270_v38  ;;  %866 = vst.msk [vmem:[#allocation2 + $0x1e8] sm:$0xff] %vm4427_vm2, %v4105_v32  ;;  %v4216_v45 = vld [vmem:[#allocation2 + $0x114] ss:$8 sps:$4 sm:$0xff]   ;;  %v4219_v47 = vld [vmem:[#allocation2 + $0x124] ss:$8 sps:$4 sm:$0xff]  }
  0x6c   : > { %931 = vst.msk [vmem:[#allocation2 + $0x1ec] sm:$0xf] %vm869_vm3, %v4318_v31  ;;  %v4223_v21 = vld [vmem:[#allocation2 + $0x120] ss:$8 sps:$4 sm:$0xff]   ;;  %v4250_v52 = vld [vmem:[#allocation2 + $0x150] ss:$8 sps:$4 sm:$0xff]  }
  0x6d   : > { %v4255_v53 = vld [vmem:[#allocation2 + $0x164] ss:$8 sps:$4 sm:$0xff]   ;;  %v4259_v54 = vld [vmem:[#allocation2 + $0x160] ss:$8 sps:$4 sm:$0xff]   ;;  %v4264_v55 = vld [vmem:[#allocation2 + $0x174] ss:$8 sps:$4 sm:$0xff]  }
  0x6e   : > { %1602 = vmatmul.mubr.bf16.gmra.mxu0 %v4179_v60  ;;  %2582 = vmatpush2.bf16.msra.mxu1 %v4272_v39  ;;  %v4284_v60 = vld [vmem:[%s6083_s3 + $0x94] ss:$8 sps:$4 sm:$0xff]   ;;  %v4209_v39 = vld [vmem:[#allocation2 + $0xe0] ss:$8 sps:$4 sm:$0xff]  }
  0x6f   : > { %1611 = vmatprep.mubr.bf16.mxu0 %v4180_v62  ;;  %2583 = vmatprep.subr.bf16.mxu1 %v4275_v40  ;;  %v4288_v62 = vld [vmem:[%s6083_s3 + $0x84] ss:$8 sps:$4 sm:$0xff]   ;;  %v4277_v3 = vld [vmem:[#allocation2 + $0x180] ss:$8 sps:$4 sm:$0xff]  }
  0x71   : > { %v4282_v4 = vld [vmem:[#allocation2 + $0x194] ss:$8 sps:$4 sm:$0xff]  }
  0x72   : > { %2584 = vmatpush2.bf16.msra.mxu1 %v4278_v49  ;;  %v4232_v49 = vld [vmem:[#allocation2 + $0x130] ss:$8 sps:$4 sm:$0xff]  }
  0x73   : > { %2585 = vmatprep.subr.bf16.mxu1 %v4279_v50  ;;  %v4241_v50 = vld [vmem:[#allocation2 + $0x140] ss:$8 sps:$4 sm:$0xff]  }
  0x76   : > { %1612 = vmatmul.mubr.bf16.gmra.mxu0 %v4182_v8  ;;  %2586 = vmatpush2.bf16.msra.mxu1 %v4281_v51  ;;  %v402_v8 = vld [vmem:[%s4409_s30 + $0x380] sm:$0xff]  ;;  %v4246_v51 = vld [vmem:[#allocation2 + $0x154] ss:$8 sps:$4 sm:$0xff]  }
  0x77   : > { %1621 = vmatprep.mubr.bf16.mxu0 %v4183_v10  ;;  %2587 = vmatprep.subr.bf16.mxu1 %v4284_v60  ;;  %v404_v10 = vld [vmem:[%s4409_s30 + $0x390] sm:$0xff]  ;;  %v4100_v12 = vpack.c.bf16 %v403_v9, %v402_v8  ;;  %v1037_v60 = vsub.s32 2, %v4958_v58 }
  0x78   : > { %v4101_v14 = vpack.c.bf16 %v405_v11, %v404_v10 }
  0x79   : > { %861 = vst.msk [vmem:[#allocation2 + $0x1c0] sm:$0xff] %vm4427_vm2, %v4100_v12 }
  0x7a   : > { %2588 = vmatpush2.bf16.msra.mxu1 %v4287_v61  ;;  %862 = vst.msk [vmem:[#allocation2 + $0x1c8] sm:$0xff] %vm4427_vm2, %v4101_v14  ;;  %v4962_v61 = vsub.s32 0, %v4958_v58  ;;  %v3314_v58 = vld [vmem:[%s6085_s5] sm:$0x3] }
  0x7b   : > { %2589 = vmatprep.subr.bf16.mxu1 %v4288_v62  ;;  %926 = vst.msk [vmem:[#allocation2 + $0x1c4] sm:$0xf] %vm869_vm3, %v4318_v31  ;;  %927 = vst.msk [vmem:[#allocation2 + $0x1cc] sm:$0xf] %vm869_vm3, %v4318_v31  ;;  %v288_v62 = vld [vmem:[%s6082_s2] sm:$0xf] }
  0x7c   : > { %v1034_v1 = vrot.slane %v288_v62, %v4962_v61  ;;  %v2017_v6 = vrot.slane %v288_v62, %v2016_v0  ;;  %v2013_v9 = vrot.slane %v288_v62, %v4972_v2 }
  0x7e   : > { %1622 = vmatmul.mubr.bf16.gmra.mxu0 %v4185_v20  ;;  %2590 = vmatpush2.bf16.msra.mxu1 %v4290_v63  ;;  %v4102_v20 = vpack.c.bf16 %v407_v17, %v406_v16  ;;  %v1038_v63 = vrot.slane %v288_v62, %v1037_v60  ;;  %v4985_v12 = vrot.slane %v2017_v6, %v4972_v2  ;;  %v4286_v16 = vld [vmem:[#allocation2 + $0x190] ss:$8 sps:$4 sm:$0xff]  }
  0x7f   : > { %1631 = vmatprep.mubr.bf16.mxu0 %v4186_v23  ;;  %v4103_v23 = vpack.c.bf16 %v409_v19, %v408_v18  ;;  %v4989_v14 = vrot.slane %v2013_v9, %v4972_v2  ;;  %v4291_v18 = vld [vmem:[#allocation2 + $0x1a4] ss:$8 sps:$4 sm:$0xff]  }
  0x80   : > { %863 = vst.msk [vmem:[#allocation2 + $0x1d0] sm:$0xff] %vm4427_vm2, %v4102_v20 }
  0x81   : > { %864 = vst.msk [vmem:[#allocation2 + $0x1d8] sm:$0xff] %vm4427_vm2, %v4103_v23 }
  0x82   : > { %928 = vst.msk [vmem:[#allocation2 + $0x1d4] sm:$0xf] %vm869_vm3, %v4318_v31  ;;  %929 = vst.msk [vmem:[#allocation2 + $0x1dc] sm:$0xf] %vm869_vm3, %v4318_v31 }
  0x86   : > { %1632 = vmatmul.mubr.bf16.gmra.mxu0 %v4188_v34  ;;  %v414_v34 = vld [vmem:[%s4409_s30 + $0x3e0] sm:$0xff] }
  0x87   : > { %1641 = vmatprep.mubr.bf16.mxu0 %v4189_v36  ;;  %v416_v36 = vld [vmem:[%s4409_s30 + $0x3f0] sm:$0xff]  ;;  %v4106_v38 = vpack.c.bf16 %v415_v35, %v414_v34 }
  0x88   : > { %v4107_v40 = vpack.c.bf16 %v417_v37, %v416_v36  ;;  %v4293_v37 = vld [vmem:[#allocation2 + $0x1a0] ss:$8 sps:$4 sm:$0xff]  }
  0x89   : > { %867 = vst.msk [vmem:[#allocation2 + $0x1f0] sm:$0xff] %vm4427_vm2, %v4106_v38 }
  0x8a   : > { %868 = vst.msk [vmem:[#allocation2 + $0x1f8] sm:$0xff] %vm4427_vm2, %v4107_v40  ;;  %v4294_v40 = vld [vmem:[#allocation2 + $0x1b4] ss:$8 sps:$4 sm:$0xff]  }
  0x8b   : > { %932 = vst.msk [vmem:[#allocation2 + $0x1f4] sm:$0xf] %vm869_vm3, %v4318_v31  ;;  %933 = vst.msk [vmem:[#allocation2 + $0x1fc] sm:$0xf] %vm869_vm3, %v4318_v31  ;;  %v4237_v31 = vld [vmem:[#allocation2 + $0x144] ss:$8 sps:$4 sm:$0xff]  }
  0x8e   : > { %1642 = vmatmul.mubr.bf16.gmra.mxu0 %v4191_v46  ;;  %v4218_v46 = vld [vmem:[#allocation2 + $0x110] ss:$8 sps:$4 sm:$0xff]  }
  0x8f   : > { %1651 = vmatprep.mubr.bf16.mxu0 %v4192_v48  ;;  %v4228_v48 = vld [vmem:[#allocation2 + $0x134] ss:$8 sps:$4 sm:$0xff]  }
  0x96   : > { %1652 = vmatmul.mubr.bf16.gmra.mxu0 %v4194_v57  ;;  %v4268_v57 = vld [vmem:[#allocation2 + $0x170] ss:$8 sps:$4 sm:$0xff]  }
  0x97   : > { %1661 = vmatprep.mubr.bf16.mxu0 %v4195_v59  ;;  %v4273_v59 = vld [vmem:[#allocation2 + $0x184] ss:$8 sps:$4 sm:$0xff]  }
  0x9e   : > { %1662 = vmatmul.mubr.bf16.gmra.mxu0 %v4197_v5  ;;  %v4975_v5 = vrot.slane %v1038_v63, %v4962_v61 }
  0x9f   : > { %1671 = vmatprep.mubr.bf16.mxu0 %v4198_v7  ;;  %v4980_v7 = vrot.slane %v1034_v1, %v4962_v61 }
  0xa6   : > { %1672 = vmatmul.mubr.bf16.gmra.mxu0 %v4200_v13 }
  0xa7   : > { %1681 = vmatprep.mubr.bf16.mxu0 %v4201_v15 }
  0xae   : > { %1682 = vmatmul.mubr.bf16.gmra.mxu0 %v4203_v22 }
  0xaf   : > { %1691 = vmatprep.mubr.bf16.mxu0 %v4204_v24 }
  0xb6   : > { %1692 = vmatmul.mubr.bf16.gmra.mxu0 %v4206_v30 }
  0xb7   : > { %1701 = vmatprep.mubr.bf16.mxu0 %v4207_v33 }
  0xbe   : > { %1702 = vmatmul.mubr.bf16.gmra.mxu0 %v4209_v39 }
  0xbf   : > { %1711 = vmatprep.mubr.bf16.mxu0 %v4210_v41 }
  0xc6   : > { %1712 = vmatmul.mubr.bf16.gmra.mxu0 %v4212_v42 }
  0xc7   : > { %1721 = vmatprep.mubr.bf16.mxu0 %v4213_v43 }
  0xce   : > { %1722 = vmatmul.mubr.bf16.gmra.mxu0 %v4215_v44 }
  0xcf   : > { %1731 = vmatprep.mubr.bf16.mxu0 %v4216_v45 }
  0xd6   : > { %1732 = vmatmul.mubr.bf16.gmra.mxu0 %v4218_v46 }
  0xd7   : > { %1741 = vmatprep.mubr.bf16.mxu0 %v4219_v47 }
  0xde   : > { %1742 = vmatmul.mubr.bf16.gmra.mxu0 %v4223_v21 }
  0xdf   : > { %1751 = vmatprep.mubr.bf16.mxu0 %v4228_v48 }
  0xe6   : > { %1752 = vmatmul.mubr.bf16.gmra.mxu0 %v4232_v49 }
  0xe7   : > { %1761 = vmatprep.mubr.bf16.mxu0 %v4237_v31 }
  0xee   : > { %1762 = vmatmul.mubr.bf16.gmra.mxu0 %v4241_v50 }
  0xef   : > { %1771 = vmatprep.mubr.bf16.mxu0 %v4246_v51 }
  0xf6   : > { %1772 = vmatmul.mubr.bf16.gmra.mxu0 %v4250_v52 }
  0xf7   : > { %1781 = vmatprep.mubr.bf16.mxu0 %v4255_v53 }
  0xfe   : > { %1782 = vmatmul.mubr.bf16.gmra.mxu0 %v4259_v54 }
  0xff   : > { %1791 = vmatprep.mubr.bf16.mxu0 %v4264_v55  ;;  %v4296_v55 = vld [vmem:[#allocation2 + $0x1b0] ss:$8 sps:$4 sm:$0xff]  }
 0x106   : > { %1792 = vmatmul.mubr.bf16.gmra.mxu0 %v4268_v57 }
 0x107   : > { %1801 = vmatprep.mubr.bf16.mxu0 %v4273_v59  ;;  %v4299_v59 = vld [vmem:[#allocation2 + $0x1c4] ss:$8 sps:$4 sm:$0xff]  }
 0x10e   : > { %v1563_v8 = vpop.f32.mrf.mxu0  ;;  %1802 = vmatmul.mubr.bf16.gmra.mxu0 %v4277_v3 }
 0x10f   : > { %1811 = vmatprep.mubr.bf16.mxu0 %v4282_v4  ;;  %v1564_v13 = vadd.f32 %v1563_v8, %v4980_v7 }
 0x110   : > { %v1565_v10 = vpop.f32.mrf.mxu0 }
 0x111   : > { %v1566_v11 = vadd.f32 %v1565_v10, %v4975_v5  ;;  %v2028_v24 = vmul.f32 %v4989_v14, %v1564_v13  ;;  %vm1882_vm6 = vcmp.ge.f32.partialorder %v1564_v13, 0.0 }
 0x112   : > { %v1567_v15 = vpop.f32.mrf.mxu0 }
 0x113   : > { %v1568_v17 = vadd.f32 %v1567_v15, %v4980_v7  ;;  %v2029_v20 = vmul.f32 %v4985_v12, %v1566_v11  ;;  %vm1883_vm5 = vcmp.ge.f32.partialorder %v1566_v11, 0.0  ;;  %v2156_v36 = vsel %vm1882_vm6, %v1564_v13, %v2028_v24  ;;  %v4302_v24 = vld [vmem:[#allocation2 + $0x1d4] ss:$8 sps:$4 sm:$0xff]  }
 0x114   : > { %v1569_v19 = vpop.f32.mrf.mxu0 }
 0x115   : > { %vm1884_vm4 = vcmp.ge.f32.partialorder %v1568_v17, 0.0  ;;  %v2030_v22 = vmul.f32 %v4989_v14, %v1568_v17  ;;  %v1570_v23 = vadd.f32 %v1569_v19, %v4975_v5  ;;  %v2157_v30 = vsel %vm1883_vm5, %v1566_v11, %v2029_v20  ;;  %v4297_v19 = vld [vmem:[#allocation2 + $0x1c0] ss:$8 sps:$4 sm:$0xff]  }
 0x116   : > { %v1573_v25 = vpop.f32.mrf.mxu0  ;;  %1812 = vmatmul.mubr.bf16.gmra.mxu0 %v4286_v16 }
 0x117   : > { %vm1885_vm7 = vcmp.ge.f32.partialorder %v1570_v23, 0.0  ;;  %v2031_v26 = vmul.f32 %v4985_v12, %v1570_v23  ;;  %1821 = vmatprep.mubr.bf16.mxu0 %v4291_v18  ;;  %v2158_v28 = vsel %vm1884_vm4, %v1568_v17, %v2030_v22  ;;  %v1574_v33 = vadd.f32 %v1573_v25, %v4980_v7 }
 0x118   : > { %v1575_v27 = vpop.f32.mrf.mxu0  ;;  %v2284_v39 = vpack.c.bf16 %v2158_v28, %v2156_v36 }
 0x119   : > { %v1576_v29 = vadd.f32 %v1575_v27, %v4975_v5  ;;  %v2159_v32 = vsel %vm1885_vm7, %v1570_v23, %v2031_v26  ;;  %v2032_v45 = vmul.f32 %v4989_v14, %v1574_v33  ;;  %vm1886_vm10 = vcmp.ge.f32.partialorder %v1574_v33, 0.0 }
 0x11a   : > { %v1577_v34 = vpop.f32.mrf.mxu0  ;;  %v2285_v35 = vpack.c.bf16 %v2159_v32, %v2157_v30 }
 0x11b   : > { %v1578_v38 = vadd.f32 %v1577_v34, %v4980_v7  ;;  %v2033_v42 = vmul.f32 %v4985_v12, %v1576_v29  ;;  %vm1887_vm9 = vcmp.ge.f32.partialorder %v1576_v29, 0.0  ;;  %v2160_v54 = vsel %vm1886_vm10, %v1574_v33, %v2032_v45  ;;  %v4305_v45 = vld [vmem:[#allocation2 + $0x1e4] ss:$8 sps:$4 sm:$0xff]  }
 0x11c   : > { %v1579_v41 = vpop.f32.mrf.mxu0  ;;  %2591 = vmatprep.mubr.bf16.mxu1 %v2285_v35 }
 0x11d   : > { %vm1888_vm8 = vcmp.ge.f32.partialorder %v1578_v38, 0.0  ;;  %v2034_v43 = vmul.f32 %v4989_v14, %v1578_v38  ;;  %v1580_v44 = vadd.f32 %v1579_v41, %v4975_v5  ;;  %2592 = vmatmul.mubr.bf16.vlgmr.msra.gmra.mxu1 %v2284_v39  ;;  %v2161_v31 = vsel %vm1887_vm9, %v1576_v29, %v2033_v42  ;;  %v4300_v41 = vld [vmem:[#allocation2 + $0x1d0] ss:$8 sps:$4 sm:$0xff]  }
 0x11e   : > { %v1583_v46 = vpop.f32.mrf.mxu0  ;;  %1822 = vmatmul.mubr.bf16.gmra.mxu0 %v4293_v37 }
 0x11f   : > { %vm1889_vm11 = vcmp.ge.f32.partialorder %v1580_v44, 0.0  ;;  %v2035_v47 = vmul.f32 %v4985_v12, %v1580_v44  ;;  %1831 = vmatprep.mubr.bf16.mxu0 %v4294_v40  ;;  %v2162_v48 = vsel %vm1888_vm8, %v1578_v38, %v2034_v43  ;;  %v1584_v51 = vadd.f32 %v1583_v46, %v4980_v7 }
 0x120   : > { %v1585_v21 = vpop.f32.mrf.mxu0  ;;  %v2286_v57 = vpack.c.bf16 %v2162_v48, %v2160_v54 }
 0x121   : > { %v1586_v49 = vadd.f32 %v1585_v21, %v4975_v5  ;;  %v2163_v50 = vsel %vm1889_vm11, %v1580_v44, %v2035_v47  ;;  %v2036_v4 = vmul.f32 %v4989_v14, %v1584_v51  ;;  %vm1890_vm14 = vcmp.ge.f32.partialorder %v1584_v51, 0.0 }
 0x122   : > { %v1587_v52 = vpop.f32.mrf.mxu0  ;;  %v2287_v53 = vpack.c.bf16 %v2163_v50, %v2161_v31 }
 0x123   : > { %v1588_v56 = vadd.f32 %v1587_v52, %v4980_v7  ;;  %v2037_v63 = vmul.f32 %v4985_v12, %v1586_v49  ;;  %vm1891_vm13 = vcmp.ge.f32.partialorder %v1586_v49, 0.0  ;;  %v2164_v20 = vsel %vm1890_vm14, %v1584_v51, %v2036_v4  ;;  %v4308_v4 = vld [vmem:[#allocation2 + $0x1f4] ss:$8 sps:$4 sm:$0xff]  }
 0x124   : > { %v1589_v62 = vpop.f32.mrf.mxu0  ;;  %2601 = vmatprep.mubr.bf16.mxu1 %v2287_v53 }
 0x125   : > { %vm1892_vm12 = vcmp.ge.f32.partialorder %v1588_v56, 0.0  ;;  %v2038_v1 = vmul.f32 %v4989_v14, %v1588_v56  ;;  %v1590_v3 = vadd.f32 %v1589_v62, %v4975_v5  ;;  %2602 = vmatmul.mubr.bf16.gmra.mxu1 %v2286_v57  ;;  %v2165_v13 = vsel %vm1891_vm13, %v1586_v49, %v2037_v63  ;;  %v4303_v62 = vld [vmem:[#allocation2 + $0x1e0] ss:$8 sps:$4 sm:$0xff]  }
 0x126   : > { %v1593_v6 = vpop.f32.mrf.mxu0  ;;  %1832 = vmatmul.mubr.bf16.gmra.mxu0 %v4296_v55 }
 0x127   : > { %vm1893_vm15 = vcmp.ge.f32.partialorder %v1590_v3, 0.0  ;;  %v2039_v8 = vmul.f32 %v4985_v12, %v1590_v3  ;;  %1841 = vmatprep.mubr.bf16.mxu0 %v4299_v59  ;;  %v2166_v10 = vsel %vm1892_vm12, %v1588_v56, %v2038_v1  ;;  %v1594_v16 = vadd.f32 %v1593_v6, %v4980_v7 }
 0x128   : > { %v1595_v9 = vpop.f32.mrf.mxu0  ;;  %v2288_v23 = vpack.c.bf16 %v2166_v10, %v2164_v20 }
 0x129   : > { %v1596_v11 = vadd.f32 %v1595_v9, %v4975_v5  ;;  %v2167_v15 = vsel %vm1893_vm15, %v1590_v3, %v2039_v8  ;;  %v2040_v29 = vmul.f32 %v4989_v14, %v1594_v16  ;;  %vm1894_vm2 = vcmp.ge.f32.partialorder %v1594_v16, 0.0 }
 0x12a   : > { %v1597_v17 = vpop.f32.mrf.mxu0  ;;  %v2289_v18 = vpack.c.bf16 %v2167_v15, %v2165_v13 }
 0x12b   : > { %v1598_v22 = vadd.f32 %v1597_v17, %v4980_v7  ;;  %v2041_v26 = vmul.f32 %v4985_v12, %v1596_v11  ;;  %vm1895_vm1 = vcmp.ge.f32.partialorder %v1596_v11, 0.0  ;;  %v2168_v42 = vsel %vm1894_vm2, %v1594_v16, %v2040_v29 }
 0x12c   : > { %v1599_v25 = vpop.f32.mrf.mxu0  ;;  %2611 = vmatprep.mubr.bf16.mxu1 %v2289_v18 }
 0x12d   : > { %vm1896_vm0 = vcmp.ge.f32.partialorder %v1598_v22, 0.0  ;;  %v2042_v27 = vmul.f32 %v4989_v14, %v1598_v22  ;;  %v1600_v28 = vadd.f32 %v1599_v25, %v4975_v5  ;;  %2612 = vmatmul.mubr.bf16.gmra.mxu1 %v2288_v23  ;;  %v2169_v36 = vsel %vm1895_vm1, %v1596_v11, %v2041_v26  ;;  %v4306_v25 = vld [vmem:[#allocation2 + $0x1f0] ss:$8 sps:$4 sm:$0xff]  }
 0x12e   : > { %v1603_v30 = vpop.f32.mrf.mxu0  ;;  %1842 = vmatmul.mubr.bf16.gmra.mxu0 %v4297_v19 }
 0x12f   : > { %vm1897_vm3 = vcmp.ge.f32.partialorder %v1600_v28, 0.0  ;;  %v2043_v32 = vmul.f32 %v4985_v12, %v1600_v28  ;;  %1851 = vmatprep.mubr.bf16.mxu0 %v4302_v24  ;;  %v2170_v34 = vsel %vm1896_vm0, %v1598_v22, %v2042_v27  ;;  %v1604_v38 = vadd.f32 %v1603_v30, %v4980_v7 }
 0x130   : > { %v1605_v33 = vpop.f32.mrf.mxu0  ;;  %v2290_v44 = vpack.c.bf16 %v2170_v34, %v2168_v42 }
 0x131   : > { %v1606_v35 = vadd.f32 %v1605_v33, %v4975_v5  ;;  %v2171_v37 = vsel %vm1897_vm3, %v1600_v28, %v2043_v32  ;;  %v2044_v49 = vmul.f32 %v4989_v14, %v1604_v38  ;;  %vm1898_vm6 = vcmp.ge.f32.partialorder %v1604_v38, 0.0 }
 0x132   : > { %v1607_v39 = vpop.f32.mrf.mxu0  ;;  %v2291_v40 = vpack.c.bf16 %v2171_v37, %v2169_v36 }
 0x133   : > { %v1608_v43 = vadd.f32 %v1607_v39, %v4980_v7  ;;  %v2045_v47 = vmul.f32 %v4985_v12, %v1606_v35  ;;  %vm1899_vm5 = vcmp.ge.f32.partialorder %v1606_v35, 0.0  ;;  %v2172_v63 = vsel %vm1898_vm6, %v1604_v38, %v2044_v49 }
 0x134   : > { %v1609_v46 = vpop.f32.mrf.mxu0  ;;  %2621 = vmatprep.mubr.bf16.mxu1 %v2291_v40 }
 0x135   : > { %vm1900_vm4 = vcmp.ge.f32.partialorder %v1608_v43, 0.0  ;;  %v2046_v21 = vmul.f32 %v4989_v14, %v1608_v43  ;;  %v1610_v48 = vadd.f32 %v1609_v46, %v4975_v5  ;;  %2622 = vmatmul.mubr.bf16.gmra.mxu1 %v2290_v44  ;;  %v2173_v54 = vsel %vm1899_vm5, %v1606_v35, %v2045_v47 }
 0x136   : > { %v1613_v31 = vpop.f32.mrf.mxu0  ;;  %1852 = vmatmul.mubr.bf16.gmra.mxu0 %v4300_v41 }
 0x137   : > { %vm1901_vm7 = vcmp.ge.f32.partialorder %v1610_v48, 0.0  ;;  %v2047_v50 = vmul.f32 %v4985_v12, %v1610_v48  ;;  %1861 = vmatprep.mubr.bf16.mxu0 %v4305_v45  ;;  %v2174_v52 = vsel %vm1900_vm4, %v1608_v43, %v2046_v21  ;;  %v1614_v56 = vadd.f32 %v1613_v31, %v4980_v7 }
 0x138   : > { %v1615_v51 = vpop.f32.mrf.mxu0  ;;  %v2292_v3 = vpack.c.bf16 %v2174_v52, %v2172_v63 }
 0x139   : > { %v1616_v53 = vadd.f32 %v1615_v51, %v4975_v5  ;;  %v2175_v55 = vsel %vm1901_vm7, %v1610_v48, %v2047_v50  ;;  %v2048_v11 = vmul.f32 %v4989_v14, %v1614_v56  ;;  %vm1902_vm10 = vcmp.ge.f32.partialorder %v1614_v56, 0.0 }
 0x13a   : > { %v1617_v57 = vpop.f32.mrf.mxu0  ;;  %v2293_v59 = vpack.c.bf16 %v2175_v55, %v2173_v54 }
 0x13b   : > { %v1618_v1 = vadd.f32 %v1617_v57, %v4980_v7  ;;  %v2049_v8 = vmul.f32 %v4985_v12, %v1616_v53  ;;  %vm1903_vm9 = vcmp.ge.f32.partialorder %v1616_v53, 0.0  ;;  %v2176_v26 = vsel %vm1902_vm10, %v1614_v56, %v2048_v11 }
 0x13c   : > { %v1619_v6 = vpop.f32.mrf.mxu0  ;;  %2631 = vmatprep.mubr.bf16.mxu1 %v2293_v59 }
 0x13d   : > { %vm1904_vm8 = vcmp.ge.f32.partialorder %v1618_v1, 0.0  ;;  %v2050_v9 = vmul.f32 %v4989_v14, %v1618_v1  ;;  %v1620_v10 = vadd.f32 %v1619_v6, %v4975_v5  ;;  %2632 = vmatmul.mubr.bf16.gmra.mxu1 %v2292_v3  ;;  %v2177_v19 = vsel %vm1903_vm9, %v1616_v53, %v2049_v8 }
 0x13e   : > { %v1623_v13 = vpop.f32.mrf.mxu0  ;;  %1862 = vmatmul.mubr.bf16.gmra.mxu0 %v4303_v62 }
 0x13f   : > { %vm1905_vm11 = vcmp.ge.f32.partialorder %v1620_v10, 0.0  ;;  %v2051_v15 = vmul.f32 %v4985_v12, %v1620_v10  ;;  %1871 = vmatprep.mubr.bf16.mxu0 %v4308_v4  ;;  %v2178_v17 = vsel %vm1904_vm8, %v1618_v1, %v2050_v9  ;;  %v1624_v22 = vadd.f32 %v1623_v13, %v4980_v7 }
 0x140   : > { %v1625_v16 = vpop.f32.mrf.mxu0  ;;  %v2294_v28 = vpack.c.bf16 %v2178_v17, %v2176_v26 }
 0x141   : > { %v1626_v18 = vadd.f32 %v1625_v16, %v4975_v5  ;;  %v2179_v20 = vsel %vm1905_vm11, %v1620_v10, %v2051_v15  ;;  %v2052_v34 = vmul.f32 %v4989_v14, %v1624_v22  ;;  %vm1906_vm14 = vcmp.ge.f32.partialorder %v1624_v22, 0.0 }
 0x142   : > { %v1627_v23 = vpop.f32.mrf.mxu0  ;;  %v2295_v24 = vpack.c.bf16 %v2179_v20, %v2177_v19 }
 0x143   : > { %v1628_v27 = vadd.f32 %v1627_v23, %v4980_v7  ;;  %v2053_v30 = vmul.f32 %v4985_v12, %v1626_v18  ;;  %vm1907_vm13 = vcmp.ge.f32.partialorder %v1626_v18, 0.0  ;;  %v2180_v45 = vsel %vm1906_vm14, %v1624_v22, %v2052_v34 }
 0x144   : > { %v1629_v29 = vpop.f32.mrf.mxu0  ;;  %2641 = vmatprep.mubr.bf16.mxu1 %v2295_v24 }
 0x145   : > { %vm1908_vm12 = vcmp.ge.f32.partialorder %v1628_v27, 0.0  ;;  %v2054_v32 = vmul.f32 %v4989_v14, %v1628_v27  ;;  %v1630_v33 = vadd.f32 %v1629_v29, %v4975_v5  ;;  %2642 = vmatmul.mubr.bf16.gmra.mxu1 %v2294_v28  ;;  %v2181_v40 = vsel %vm1907_vm13, %v1626_v18, %v2053_v30 }
 0x146   : > { %v1633_v35 = vpop.f32.mrf.mxu0  ;;  %1872 = vmatmul.mubr.bf16.gmra.mxu0 %v4306_v25 }
 0x147   : > { %vm1909_vm15 = vcmp.ge.f32.partialorder %v1630_v33, 0.0  ;;  %v2055_v36 = vmul.f32 %v4985_v12, %v1630_v33  ;;  %v2182_v38 = vsel %vm1908_vm12, %v1628_v27, %v2054_v32  ;;  %v1634_v42 = vadd.f32 %v1633_v35, %v4980_v7 }
 0x148   : > { %v1635_v37 = vpop.f32.mrf.mxu0  ;;  %v2296_v47 = vpack.c.bf16 %v2182_v38, %v2180_v45 }
 0x149   : > { %v1636_v39 = vadd.f32 %v1635_v37, %v4975_v5  ;;  %v2183_v41 = vsel %vm1909_vm15, %v1630_v33, %v2055_v36  ;;  %v2056_v50 = vmul.f32 %v4989_v14, %v1634_v42  ;;  %vm1910_vm2 = vcmp.ge.f32.partialorder %v1634_v42, 0.0 }
 0x14a   : > { %v1637_v43 = vpop.f32.mrf.mxu0  ;;  %v2297_v44 = vpack.c.bf16 %v2183_v41, %v2181_v40 }
 0x14b   : > { %v1638_v46 = vadd.f32 %v1637_v43, %v4980_v7  ;;  %v2057_v48 = vmul.f32 %v4985_v12, %v1636_v39  ;;  %vm1911_vm1 = vcmp.ge.f32.partialorder %v1636_v39, 0.0  ;;  %v2184_v1 = vsel %vm1910_vm2, %v1634_v42, %v2056_v50 }
 0x14c   : > { %v1639_v21 = vpop.f32.mrf.mxu0  ;;  %2651 = vmatprep.mubr.bf16.mxu1 %v2297_v44 }
 0x14d   : > { %vm1912_vm0 = vcmp.ge.f32.partialorder %v1638_v46, 0.0  ;;  %v2058_v49 = vmul.f32 %v4989_v14, %v1638_v46  ;;  %v1640_v31 = vadd.f32 %v1639_v21, %v4975_v5  ;;  %2652 = vmatmul.mubr.bf16.gmra.mxu1 %v2296_v47  ;;  %v2185_v56 = vsel %vm1911_vm1, %v1636_v39, %v2057_v48 }
 0x14e   : > { %v1643_v51 = vpop.f32.mrf.mxu0 }
 0x14f   : > { %vm1913_vm3 = vcmp.ge.f32.partialorder %v1640_v31, 0.0  ;;  %v2059_v52 = vmul.f32 %v4985_v12, %v1640_v31  ;;  %v2186_v54 = vsel %vm1912_vm0, %v1638_v46, %v2058_v49  ;;  %v1644_v59 = vadd.f32 %v1643_v51, %v4980_v7 }
 0x150   : > { %v1645_v53 = vpop.f32.mrf.mxu0  ;;  %v2298_v4 = vpack.c.bf16 %v2186_v54, %v2184_v1 }
 0x151   : > { %v1646_v55 = vadd.f32 %v1645_v53, %v4975_v5  ;;  %v2187_v57 = vsel %vm1913_vm3, %v1640_v31, %v2059_v52  ;;  %v2060_v11 = vmul.f32 %v4989_v14, %v1644_v59  ;;  %vm1914_vm6 = vcmp.ge.f32.partialorder %v1644_v59, 0.0 }
 0x152   : > { %v1647_v62 = vpop.f32.mrf.mxu0  ;;  %v2299_v63 = vpack.c.bf16 %v2187_v57, %v2185_v56 }
 0x153   : > { %v1648_v3 = vadd.f32 %v1647_v62, %v4980_v7  ;;  %v2061_v8 = vmul.f32 %v4985_v12, %v1646_v55  ;;  %vm1915_vm5 = vcmp.ge.f32.partialorder %v1646_v55, 0.0  ;;  %v2188_v25 = vsel %vm1914_vm6, %v1644_v59, %v2060_v11 }
 0x154   : > { %v1649_v6 = vpop.f32.mrf.mxu0  ;;  %2661 = vmatprep.mubr.bf16.mxu1 %v2299_v63 }
 0x155   : > { %vm1916_vm4 = vcmp.ge.f32.partialorder %v1648_v3, 0.0  ;;  %v2062_v9 = vmul.f32 %v4989_v14, %v1648_v3  ;;  %v1650_v10 = vadd.f32 %v1649_v6, %v4975_v5  ;;  %2662 = vmatmul.mubr.bf16.gmra.mxu1 %v2298_v4  ;;  %v2189_v19 = vsel %vm1915_vm5, %v1646_v55, %v2061_v8 }
 0x156   : > { %v1653_v13 = vpop.f32.mrf.mxu0 }
 0x157   : > { %vm1917_vm7 = vcmp.ge.f32.partialorder %v1650_v10, 0.0  ;;  %v2063_v15 = vmul.f32 %v4985_v12, %v1650_v10  ;;  %v2190_v17 = vsel %vm1916_vm4, %v1648_v3, %v2062_v9  ;;  %v1654_v22 = vadd.f32 %v1653_v13, %v4980_v7 }
 0x158   : > { %v1655_v16 = vpop.f32.mrf.mxu0  ;;  %v2300_v27 = vpack.c.bf16 %v2190_v17, %v2188_v25 }
 0x159   : > { %v1656_v18 = vadd.f32 %v1655_v16, %v4975_v5  ;;  %v2191_v20 = vsel %vm1917_vm7, %v1650_v10, %v2063_v15  ;;  %v2064_v33 = vmul.f32 %v4989_v14, %v1654_v22  ;;  %vm1918_vm10 = vcmp.ge.f32.partialorder %v1654_v22, 0.0 }
 0x15a   : > { %v1657_v23 = vpop.f32.mrf.mxu0  ;;  %v2301_v24 = vpack.c.bf16 %v2191_v20, %v2189_v19 }
 0x15b   : > { %v1658_v26 = vadd.f32 %v1657_v23, %v4980_v7  ;;  %v2065_v29 = vmul.f32 %v4985_v12, %v1656_v18  ;;  %vm1919_vm9 = vcmp.ge.f32.partialorder %v1656_v18, 0.0  ;;  %v2192_v44 = vsel %vm1918_vm10, %v1654_v22, %v2064_v33 }
 0x15c   : > { %v1659_v28 = vpop.f32.mrf.mxu0  ;;  %2671 = vmatprep.mubr.bf16.mxu1 %v2301_v24 }
 0x15d   : > { %vm1920_vm8 = vcmp.ge.f32.partialorder %v1658_v26, 0.0  ;;  %v2066_v30 = vmul.f32 %v4989_v14, %v1658_v26  ;;  %v1660_v32 = vadd.f32 %v1659_v28, %v4975_v5  ;;  %2672 = vmatmul.mubr.bf16.gmra.mxu1 %v2300_v27  ;;  %v2193_v39 = vsel %vm1919_vm9, %v1656_v18, %v2065_v29 }
 0x15e   : > { %v1663_v34 = vpop.f32.mrf.mxu0 }
 0x15f   : > { %vm1921_vm11 = vcmp.ge.f32.partialorder %v1660_v32, 0.0  ;;  %v2067_v35 = vmul.f32 %v4985_v12, %v1660_v32  ;;  %v2194_v37 = vsel %vm1920_vm8, %v1658_v26, %v2066_v30  ;;  %v1664_v41 = vadd.f32 %v1663_v34, %v4980_v7 }
 0x160   : > { %v1665_v36 = vpop.f32.mrf.mxu0  ;;  %v2302_v46 = vpack.c.bf16 %v2194_v37, %v2192_v44 }
 0x161   : > { %v1666_v38 = vadd.f32 %v1665_v36, %v4975_v5  ;;  %v2195_v40 = vsel %vm1921_vm11, %v1660_v32, %v2067_v35  ;;  %v2068_v31 = vmul.f32 %v4989_v14, %v1664_v41  ;;  %vm1922_vm14 = vcmp.ge.f32.partialorder %v1664_v41, 0.0 }
 0x162   : > { %v1667_v42 = vpop.f32.mrf.mxu0  ;;  %v2303_v43 = vpack.c.bf16 %v2195_v40, %v2193_v39 }
 0x163   : > { %v1668_v45 = vadd.f32 %v1667_v42, %v4980_v7  ;;  %v2069_v21 = vmul.f32 %v4985_v12, %v1666_v38  ;;  %vm1923_vm13 = vcmp.ge.f32.partialorder %v1666_v38, 0.0  ;;  %v2196_v63 = vsel %vm1922_vm14, %v1664_v41, %v2068_v31 }
 0x164   : > { %v1669_v47 = vpop.f32.mrf.mxu0  ;;  %2681 = vmatprep.mubr.bf16.mxu1 %v2303_v43 }
 0x165   : > { %vm1924_vm12 = vcmp.ge.f32.partialorder %v1668_v45, 0.0  ;;  %v2070_v48 = vmul.f32 %v4989_v14, %v1668_v45  ;;  %v1670_v49 = vadd.f32 %v1669_v47, %v4975_v5  ;;  %2682 = vmatmul.mubr.bf16.gmra.mxu1 %v2302_v46  ;;  %v2197_v55 = vsel %vm1923_vm13, %v1666_v38, %v2069_v21 }
 0x166   : > { %v1673_v50 = vpop.f32.mrf.mxu0 }
 0x167   : > { %vm1925_vm15 = vcmp.ge.f32.partialorder %v1670_v49, 0.0  ;;  %v2071_v51 = vmul.f32 %v4985_v12, %v1670_v49  ;;  %v2198_v53 = vsel %vm1924_vm12, %v1668_v45, %v2070_v48  ;;  %v1674_v57 = vadd.f32 %v1673_v50, %v4980_v7 }
 0x168   : > { %v1675_v52 = vpop.f32.mrf.mxu0  ;;  %v2304_v3 = vpack.c.bf16 %v2198_v53, %v2196_v63 }
 0x169   : > { %v1676_v54 = vadd.f32 %v1675_v52, %v4975_v5  ;;  %v2199_v56 = vsel %vm1925_vm15, %v1670_v49, %v2071_v51  ;;  %v2072_v10 = vmul.f32 %v4989_v14, %v1674_v57  ;;  %vm1926_vm2 = vcmp.ge.f32.partialorder %v1674_v57, 0.0 }
 0x16a   : > { %v1677_v59 = vpop.f32.mrf.mxu0  ;;  %v2305_v62 = vpack.c.bf16 %v2199_v56, %v2197_v55 }
 0x16b   : > { %v1678_v1 = vadd.f32 %v1677_v59, %v4980_v7  ;;  %v2073_v6 = vmul.f32 %v4985_v12, %v1676_v54  ;;  %vm1927_vm1 = vcmp.ge.f32.partialorder %v1676_v54, 0.0  ;;  %v2200_v24 = vsel %vm1926_vm2, %v1674_v57, %v2072_v10 }
 0x16c   : > { %v1679_v4 = vpop.f32.mrf.mxu0  ;;  %2691 = vmatprep.mubr.bf16.mxu1 %v2305_v62 }
 0x16d   : > { %vm1928_vm0 = vcmp.ge.f32.partialorder %v1678_v1, 0.0  ;;  %v2074_v8 = vmul.f32 %v4989_v14, %v1678_v1  ;;  %v1680_v9 = vadd.f32 %v1679_v4, %v4975_v5  ;;  %2692 = vmatmul.mubr.bf16.gmra.mxu1 %v2304_v3  ;;  %v2201_v18 = vsel %vm1927_vm1, %v1676_v54, %v2073_v6 }
 0x16e   : > { %v1683_v11 = vpop.f32.mrf.mxu0 }
 0x16f   : > { %vm1929_vm3 = vcmp.ge.f32.partialorder %v1680_v9, 0.0  ;;  %v2075_v13 = vmul.f32 %v4985_v12, %v1680_v9  ;;  %v2202_v16 = vsel %vm1928_vm0, %v1678_v1, %v2074_v8  ;;  %v1684_v20 = vadd.f32 %v1683_v11, %v4980_v7 }
 0x170   : > { %v1685_v15 = vpop.f32.mrf.mxu0  ;;  %v2306_v26 = vpack.c.bf16 %v2202_v16, %v2200_v24 }
 0x171   : > { %v1686_v17 = vadd.f32 %v1685_v15, %v4975_v5  ;;  %v2203_v19 = vsel %vm1929_vm3, %v1680_v9, %v2075_v13  ;;  %v2076_v32 = vmul.f32 %v4989_v14, %v1684_v20  ;;  %vm1930_vm6 = vcmp.ge.f32.partialorder %v1684_v20, 0.0 }
 0x172   : > { %v1687_v22 = vpop.f32.mrf.mxu0  ;;  %v2307_v23 = vpack.c.bf16 %v2203_v19, %v2201_v18 }
 0x173   : > { %v1688_v25 = vadd.f32 %v1687_v22, %v4980_v7  ;;  %v2077_v28 = vmul.f32 %v4985_v12, %v1686_v17  ;;  %vm1931_vm5 = vcmp.ge.f32.partialorder %v1686_v17, 0.0  ;;  %v2204_v43 = vsel %vm1930_vm6, %v1684_v20, %v2076_v32 }
 0x174   : > { %v1689_v27 = vpop.f32.mrf.mxu0  ;;  %2701 = vmatprep.mubr.bf16.mxu1 %v2307_v23 }
 0x175   : > { %vm1932_vm4 = vcmp.ge.f32.partialorder %v1688_v25, 0.0  ;;  %v2078_v29 = vmul.f32 %v4989_v14, %v1688_v25  ;;  %v1690_v30 = vadd.f32 %v1689_v27, %v4975_v5  ;;  %2702 = vmatmul.mubr.bf16.gmra.mxu1 %v2306_v26  ;;  %v2205_v38 = vsel %vm1931_vm5, %v1686_v17, %v2077_v28 }
 0x176   : > { %v1693_v33 = vpop.f32.mrf.mxu0 }
 0x177   : > { %vm1933_vm7 = vcmp.ge.f32.partialorder %v1690_v30, 0.0  ;;  %v2079_v34 = vmul.f32 %v4985_v12, %v1690_v30  ;;  %v2206_v36 = vsel %vm1932_vm4, %v1688_v25, %v2078_v29  ;;  %v1694_v40 = vadd.f32 %v1693_v33, %v4980_v7 }
 0x178   : > { %v1695_v35 = vpop.f32.mrf.mxu0  ;;  %v2308_v45 = vpack.c.bf16 %v2206_v36, %v2204_v43 }
 0x179   : > { %v1696_v37 = vadd.f32 %v1695_v35, %v4975_v5  ;;  %v2207_v39 = vsel %vm1933_vm7, %v1690_v30, %v2079_v34  ;;  %v2080_v49 = vmul.f32 %v4989_v14, %v1694_v40  ;;  %vm1934_vm10 = vcmp.ge.f32.partialorder %v1694_v40, 0.0 }
 0x17a   : > { %v1697_v41 = vpop.f32.mrf.mxu0  ;;  %v2309_v42 = vpack.c.bf16 %v2207_v39, %v2205_v38 }
 0x17b   : > { %v1698_v44 = vadd.f32 %v1697_v41, %v4980_v7  ;;  %v2081_v47 = vmul.f32 %v4985_v12, %v1696_v37  ;;  %vm1935_vm9 = vcmp.ge.f32.partialorder %v1696_v37, 0.0  ;;  %v2208_v62 = vsel %vm1934_vm10, %v1694_v40, %v2080_v49 }
 0x17c   : > { %v1699_v46 = vpop.f32.mrf.mxu0  ;;  %2711 = vmatprep.mubr.bf16.mxu1 %v2309_v42 }
 0x17d   : > { %vm1936_vm8 = vcmp.ge.f32.partialorder %v1698_v44, 0.0  ;;  %v2082_v21 = vmul.f32 %v4989_v14, %v1698_v44  ;;  %v1700_v48 = vadd.f32 %v1699_v46, %v4975_v5  ;;  %2712 = vmatmul.mubr.bf16.gmra.mxu1 %v2308_v45  ;;  %v2209_v54 = vsel %vm1935_vm9, %v1696_v37, %v2081_v47 }
 0x17e   : > { %v1703_v31 = vpop.f32.mrf.mxu0 }
 0x17f   : > { %vm1937_vm11 = vcmp.ge.f32.partialorder %v1700_v48, 0.0  ;;  %v2083_v50 = vmul.f32 %v4985_v12, %v1700_v48  ;;  %v2210_v52 = vsel %vm1936_vm8, %v1698_v44, %v2082_v21  ;;  %v1704_v56 = vadd.f32 %v1703_v31, %v4980_v7 }
 0x180   : > { %v1705_v51 = vpop.f32.mrf.mxu0  ;;  %v2310_v1 = vpack.c.bf16 %v2210_v52, %v2208_v62 }
 0x181   : > { %v1706_v53 = vadd.f32 %v1705_v51, %v4975_v5  ;;  %v2211_v55 = vsel %vm1937_vm11, %v1700_v48, %v2083_v50  ;;  %v2084_v9 = vmul.f32 %v4989_v14, %v1704_v56  ;;  %vm1938_vm14 = vcmp.ge.f32.partialorder %v1704_v56, 0.0 }
 0x182   : > { %v1707_v57 = vpop.f32.mrf.mxu0  ;;  %v2311_v59 = vpack.c.bf16 %v2211_v55, %v2209_v54 }
 0x183   : > { %v1708_v63 = vadd.f32 %v1707_v57, %v4980_v7  ;;  %v2085_v4 = vmul.f32 %v4985_v12, %v1706_v53  ;;  %vm1939_vm13 = vcmp.ge.f32.partialorder %v1706_v53, 0.0  ;;  %v2212_v23 = vsel %vm1938_vm14, %v1704_v56, %v2084_v9 }
 0x184   : > { %v1709_v3 = vpop.f32.mrf.mxu0  ;;  %2721 = vmatprep.mubr.bf16.mxu1 %v2311_v59 }
 0x185   : > { %vm1940_vm12 = vcmp.ge.f32.partialorder %v1708_v63, 0.0  ;;  %v2086_v6 = vmul.f32 %v4989_v14, %v1708_v63  ;;  %v1710_v8 = vadd.f32 %v1709_v3, %v4975_v5  ;;  %2722 = vmatmul.mubr.bf16.gmra.mxu1 %v2310_v1  ;;  %v2213_v17 = vsel %vm1939_vm13, %v1706_v53, %v2085_v4 }
 0x186   : > { %v1713_v10 = vpop.f32.mrf.mxu0 }
 0x187   : > { %vm1941_vm15 = vcmp.ge.f32.partialorder %v1710_v8, 0.0  ;;  %v2087_v11 = vmul.f32 %v4985_v12, %v1710_v8  ;;  %v2214_v15 = vsel %vm1940_vm12, %v1708_v63, %v2086_v6  ;;  %v1714_v19 = vadd.f32 %v1713_v10, %v4980_v7 }
 0x188   : > { %v1715_v13 = vpop.f32.mrf.mxu0  ;;  %v2312_v25 = vpack.c.bf16 %v2214_v15, %v2212_v23 }
 0x189   : > { %v1716_v16 = vadd.f32 %v1715_v13, %v4975_v5  ;;  %v2215_v18 = vsel %vm1941_vm15, %v1710_v8, %v2087_v11  ;;  %v2088_v30 = vmul.f32 %v4989_v14, %v1714_v19  ;;  %vm1942_vm2 = vcmp.ge.f32.partialorder %v1714_v19, 0.0 }
 0x18a   : > { %v1717_v20 = vpop.f32.mrf.mxu0  ;;  %v2313_v22 = vpack.c.bf16 %v2215_v18, %v2213_v17 }
 0x18b   : > { %v1718_v24 = vadd.f32 %v1717_v20, %v4980_v7  ;;  %v2089_v27 = vmul.f32 %v4985_v12, %v1716_v16  ;;  %vm1943_vm1 = vcmp.ge.f32.partialorder %v1716_v16, 0.0  ;;  %v2216_v42 = vsel %vm1942_vm2, %v1714_v19, %v2088_v30 }
 0x18c   : > { %v1719_v26 = vpop.f32.mrf.mxu0  ;;  %2731 = vmatprep.mubr.bf16.mxu1 %v2313_v22 }
 0x18d   : > { %vm1944_vm0 = vcmp.ge.f32.partialorder %v1718_v24, 0.0  ;;  %v2090_v28 = vmul.f32 %v4989_v14, %v1718_v24  ;;  %v1720_v29 = vadd.f32 %v1719_v26, %v4975_v5  ;;  %2732 = vmatmul.mubr.bf16.gmra.mxu1 %v2312_v25  ;;  %v2217_v37 = vsel %vm1943_vm1, %v1716_v16, %v2089_v27 }
 0x18e   : > { %v1723_v32 = vpop.f32.mrf.mxu0 }
 0x18f   : > { %vm1945_vm3 = vcmp.ge.f32.partialorder %v1720_v29, 0.0  ;;  %v2091_v33 = vmul.f32 %v4985_v12, %v1720_v29  ;;  %v2218_v35 = vsel %vm1944_vm0, %v1718_v24, %v2090_v28  ;;  %v1724_v39 = vadd.f32 %v1723_v32, %v4980_v7 }
 0x190   : > { %v1725_v34 = vpop.f32.mrf.mxu0  ;;  %v2314_v44 = vpack.c.bf16 %v2218_v35, %v2216_v42 }
 0x191   : > { %v1726_v36 = vadd.f32 %v1725_v34, %v4975_v5  ;;  %v2219_v38 = vsel %vm1945_vm3, %v1720_v29, %v2091_v33  ;;  %v2092_v48 = vmul.f32 %v4989_v14, %v1724_v39  ;;  %vm1946_vm6 = vcmp.ge.f32.partialorder %v1724_v39, 0.0 }
 0x192   : > { %v1727_v40 = vpop.f32.mrf.mxu0  ;;  %v2315_v41 = vpack.c.bf16 %v2219_v38, %v2217_v37 }
 0x193   : > { %v1728_v43 = vadd.f32 %v1727_v40, %v4980_v7  ;;  %v2093_v46 = vmul.f32 %v4985_v12, %v1726_v36  ;;  %vm1947_vm5 = vcmp.ge.f32.partialorder %v1726_v36, 0.0  ;;  %v2220_v59 = vsel %vm1946_vm6, %v1724_v39, %v2092_v48 }
 0x194   : > { %v1729_v45 = vpop.f32.mrf.mxu0  ;;  %2741 = vmatprep.mubr.bf16.mxu1 %v2315_v41 }
 0x195   : > { %vm1948_vm4 = vcmp.ge.f32.partialorder %v1728_v43, 0.0  ;;  %v2094_v47 = vmul.f32 %v4989_v14, %v1728_v43  ;;  %v1730_v21 = vadd.f32 %v1729_v45, %v4975_v5  ;;  %2742 = vmatmul.mubr.bf16.gmra.mxu1 %v2314_v44  ;;  %v2221_v53 = vsel %vm1947_vm5, %v1726_v36, %v2093_v46 }
 0x196   : > { %v1733_v49 = vpop.f32.mrf.mxu0 }
 0x197   : > { %vm1949_vm7 = vcmp.ge.f32.partialorder %v1730_v21, 0.0  ;;  %v2095_v31 = vmul.f32 %v4985_v12, %v1730_v21  ;;  %v2222_v51 = vsel %vm1948_vm4, %v1728_v43, %v2094_v47  ;;  %v1734_v55 = vadd.f32 %v1733_v49, %v4980_v7 }
 0x198   : > { %v1735_v50 = vpop.f32.mrf.mxu0  ;;  %v2316_v63 = vpack.c.bf16 %v2222_v51, %v2220_v59 }
 0x199   : > { %v1736_v52 = vadd.f32 %v1735_v50, %v4975_v5  ;;  %v2223_v54 = vsel %vm1949_vm7, %v1730_v21, %v2095_v31  ;;  %v2096_v8 = vmul.f32 %v4989_v14, %v1734_v55  ;;  %vm1950_vm10 = vcmp.ge.f32.partialorder %v1734_v55, 0.0 }
 0x19a   : > { %v1737_v56 = vpop.f32.mrf.mxu0  ;;  %v2317_v57 = vpack.c.bf16 %v2223_v54, %v2221_v53 }
 0x19b   : > { %v1738_v62 = vadd.f32 %v1737_v56, %v4980_v7  ;;  %v2097_v3 = vmul.f32 %v4985_v12, %v1736_v52  ;;  %vm1951_vm9 = vcmp.ge.f32.partialorder %v1736_v52, 0.0  ;;  %v2224_v22 = vsel %vm1950_vm10, %v1734_v55, %v2096_v8 }
 0x19c   : > { %v1739_v1 = vpop.f32.mrf.mxu0  ;;  %2751 = vmatprep.mubr.bf16.mxu1 %v2317_v57 }
 0x19d   : > { %vm1952_vm8 = vcmp.ge.f32.partialorder %v1738_v62, 0.0  ;;  %v2098_v4 = vmul.f32 %v4989_v14, %v1738_v62  ;;  %v1740_v6 = vadd.f32 %v1739_v1, %v4975_v5  ;;  %2752 = vmatmul.mubr.bf16.gmra.mxu1 %v2316_v63  ;;  %v2225_v16 = vsel %vm1951_vm9, %v1736_v52, %v2097_v3 }
 0x19e   : > { %v1743_v9 = vpop.f32.mrf.mxu0 }
 0x19f   : > { %vm1953_vm11 = vcmp.ge.f32.partialorder %v1740_v6, 0.0  ;;  %v2099_v10 = vmul.f32 %v4985_v12, %v1740_v6  ;;  %v2226_v13 = vsel %vm1952_vm8, %v1738_v62, %v2098_v4  ;;  %v1744_v18 = vadd.f32 %v1743_v9, %v4980_v7 }
 0x1a0   : > { %v1745_v11 = vpop.f32.mrf.mxu0  ;;  %v2318_v24 = vpack.c.bf16 %v2226_v13, %v2224_v22 }
 0x1a1   : > { %v1746_v15 = vadd.f32 %v1745_v11, %v4975_v5  ;;  %v2227_v17 = vsel %vm1953_vm11, %v1740_v6, %v2099_v10  ;;  %v2100_v29 = vmul.f32 %v4989_v14, %v1744_v18  ;;  %vm1954_vm14 = vcmp.ge.f32.partialorder %v1744_v18, 0.0 }
 0x1a2   : > { %v1747_v19 = vpop.f32.mrf.mxu0  ;;  %v2319_v20 = vpack.c.bf16 %v2227_v17, %v2225_v16 }
 0x1a3   : > { %v1748_v23 = vadd.f32 %v1747_v19, %v4980_v7  ;;  %v2101_v26 = vmul.f32 %v4985_v12, %v1746_v15  ;;  %vm1955_vm13 = vcmp.ge.f32.partialorder %v1746_v15, 0.0  ;;  %v2228_v41 = vsel %vm1954_vm14, %v1744_v18, %v2100_v29 }
 0x1a4   : > { %v1749_v25 = vpop.f32.mrf.mxu0  ;;  %2761 = vmatprep.mubr.bf16.mxu1 %v2319_v20 }
 0x1a5   : > { %vm1956_vm12 = vcmp.ge.f32.partialorder %v1748_v23, 0.0  ;;  %v2102_v27 = vmul.f32 %v4989_v14, %v1748_v23  ;;  %v1750_v28 = vadd.f32 %v1749_v25, %v4975_v5  ;;  %2762 = vmatmul.mubr.bf16.gmra.mxu1 %v2318_v24  ;;  %v2229_v36 = vsel %vm1955_vm13, %v1746_v15, %v2101_v26 }
 0x1a6   : > { %v1753_v30 = vpop.f32.mrf.mxu0 }
 0x1a7   : > { %vm1957_vm15 = vcmp.ge.f32.partialorder %v1750_v28, 0.0  ;;  %v2103_v32 = vmul.f32 %v4985_v12, %v1750_v28  ;;  %v2230_v34 = vsel %vm1956_vm12, %v1748_v23, %v2102_v27  ;;  %v1754_v38 = vadd.f32 %v1753_v30, %v4980_v7 }
 0x1a8   : > { %v1755_v33 = vpop.f32.mrf.mxu0  ;;  %v2320_v43 = vpack.c.bf16 %v2230_v34, %v2228_v41 }
 0x1a9   : > { %v1756_v35 = vadd.f32 %v1755_v33, %v4975_v5  ;;  %v2231_v37 = vsel %vm1957_vm15, %v1750_v28, %v2103_v32  ;;  %v2104_v21 = vmul.f32 %v4989_v14, %v1754_v38  ;;  %vm1958_vm2 = vcmp.ge.f32.partialorder %v1754_v38, 0.0 }
 0x1aa   : > { %v1757_v39 = vpop.f32.mrf.mxu0  ;;  %v2321_v40 = vpack.c.bf16 %v2231_v37, %v2229_v36 }
 0x1ab   : > { %v1758_v42 = vadd.f32 %v1757_v39, %v4980_v7  ;;  %v2105_v45 = vmul.f32 %v4985_v12, %v1756_v35  ;;  %vm1959_vm1 = vcmp.ge.f32.partialorder %v1756_v35, 0.0  ;;  %v2232_v57 = vsel %vm1958_vm2, %v1754_v38, %v2104_v21 }
 0x1ac   : > { %v1759_v44 = vpop.f32.mrf.mxu0  ;;  %2771 = vmatprep.mubr.bf16.mxu1 %v2321_v40 }
 0x1ad   : > { %vm1960_vm0 = vcmp.ge.f32.partialorder %v1758_v42, 0.0  ;;  %v2106_v46 = vmul.f32 %v4989_v14, %v1758_v42  ;;  %v1760_v47 = vadd.f32 %v1759_v44, %v4975_v5  ;;  %2772 = vmatmul.mubr.bf16.gmra.mxu1 %v2320_v43  ;;  %v2233_v52 = vsel %vm1959_vm1, %v1756_v35, %v2105_v45 }
 0x1ae   : > { %v1763_v48 = vpop.f32.mrf.mxu0 }
 0x1af   : > { %vm1961_vm3 = vcmp.ge.f32.partialorder %v1760_v47, 0.0  ;;  %v2107_v49 = vmul.f32 %v4985_v12, %v1760_v47  ;;  %v2234_v50 = vsel %vm1960_vm0, %v1758_v42, %v2106_v46  ;;  %v1764_v54 = vadd.f32 %v1763_v48, %v4980_v7 }
 0x1b0   : > { %v1765_v31 = vpop.f32.mrf.mxu0  ;;  %v2322_v62 = vpack.c.bf16 %v2234_v50, %v2232_v57 }
 0x1b1   : > { %v1766_v51 = vadd.f32 %v1765_v31, %v4975_v5  ;;  %v2235_v53 = vsel %vm1961_vm3, %v1760_v47, %v2107_v49  ;;  %v2108_v6 = vmul.f32 %v4989_v14, %v1764_v54  ;;  %vm1962_vm6 = vcmp.ge.f32.partialorder %v1764_v54, 0.0 }
 0x1b2   : > { %v1767_v55 = vpop.f32.mrf.mxu0  ;;  %v2323_v56 = vpack.c.bf16 %v2235_v53, %v2233_v52 }
 0x1b3   : > { %v1768_v59 = vadd.f32 %v1767_v55, %v4980_v7  ;;  %v2109_v1 = vmul.f32 %v4985_v12, %v1766_v51  ;;  %vm1963_vm5 = vcmp.ge.f32.partialorder %v1766_v51, 0.0  ;;  %v2236_v20 = vsel %vm1962_vm6, %v1764_v54, %v2108_v6 }
 0x1b4   : > { %v1769_v63 = vpop.f32.mrf.mxu0  ;;  %2781 = vmatprep.mubr.bf16.mxu1 %v2323_v56 }
 0x1b5   : > { %vm1964_vm4 = vcmp.ge.f32.partialorder %v1768_v59, 0.0  ;;  %v2110_v3 = vmul.f32 %v4989_v14, %v1768_v59  ;;  %v1770_v4 = vadd.f32 %v1769_v63, %v4975_v5  ;;  %2782 = vmatmul.mubr.bf16.gmra.mxu1 %v2322_v62  ;;  %v2237_v15 = vsel %vm1963_vm5, %v1766_v51, %v2109_v1 }
 0x1b6   : > { %v1773_v8 = vpop.f32.mrf.mxu0 }
 0x1b7   : > { %vm1965_vm7 = vcmp.ge.f32.partialorder %v1770_v4, 0.0  ;;  %v2111_v9 = vmul.f32 %v4985_v12, %v1770_v4  ;;  %v2238_v11 = vsel %vm1964_vm4, %v1768_v59, %v2110_v3  ;;  %v1774_v17 = vadd.f32 %v1773_v8, %v4980_v7 }
 0x1b8   : > { %v1775_v10 = vpop.f32.mrf.mxu0  ;;  %v2324_v23 = vpack.c.bf16 %v2238_v11, %v2236_v20 }
 0x1b9   : > { %v1776_v13 = vadd.f32 %v1775_v10, %v4975_v5  ;;  %v2239_v16 = vsel %vm1965_vm7, %v1770_v4, %v2111_v9  ;;  %v2112_v28 = vmul.f32 %v4989_v14, %v1774_v17  ;;  %vm1966_vm10 = vcmp.ge.f32.partialorder %v1774_v17, 0.0 }
 0x1ba   : > { %v1777_v18 = vpop.f32.mrf.mxu0  ;;  %v2325_v19 = vpack.c.bf16 %v2239_v16, %v2237_v15 }
 0x1bb   : > { %v1778_v22 = vadd.f32 %v1777_v18, %v4980_v7  ;;  %v2113_v25 = vmul.f32 %v4985_v12, %v1776_v13  ;;  %vm1967_vm9 = vcmp.ge.f32.partialorder %v1776_v13, 0.0  ;;  %v2240_v40 = vsel %vm1966_vm10, %v1774_v17, %v2112_v28 }
 0x1bc   : > { %v1779_v24 = vpop.f32.mrf.mxu0  ;;  %2791 = vmatprep.mubr.bf16.mxu1 %v2325_v19 }
 0x1bd   : > { %vm1968_vm8 = vcmp.ge.f32.partialorder %v1778_v22, 0.0  ;;  %v2114_v26 = vmul.f32 %v4989_v14, %v1778_v22  ;;  %v1780_v27 = vadd.f32 %v1779_v24, %v4975_v5  ;;  %2792 = vmatmul.mubr.bf16.gmra.mxu1 %v2324_v23  ;;  %v2241_v35 = vsel %vm1967_vm9, %v1776_v13, %v2113_v25  ;;  %v289_v23 = vld [vmem:[%s6084_s4] sm:$0xf] }
 0x1be   : > { %v1783_v29 = vpop.f32.mrf.mxu0 }
 0x1bf   : > { %vm1969_vm11 = vcmp.ge.f32.partialorder %v1780_v27, 0.0  ;;  %v2115_v30 = vmul.f32 %v4985_v12, %v1780_v27  ;;  %v2242_v33 = vsel %vm1968_vm8, %v1778_v22, %v2114_v26  ;;  %v1784_v37 = vadd.f32 %v1783_v29, %v4980_v7 }
 0x1c0   : > { %v1785_v32 = vpop.f32.mrf.mxu0  ;;  %v2326_v42 = vpack.c.bf16 %v2242_v33, %v2240_v40 }
 0x1c1   : > { %v1786_v34 = vadd.f32 %v1785_v32, %v4975_v5  ;;  %v2243_v36 = vsel %vm1969_vm11, %v1780_v27, %v2115_v30  ;;  %v2116_v47 = vmul.f32 %v4989_v14, %v1784_v37  ;;  %vm1970_vm14 = vcmp.ge.f32.partialorder %v1784_v37, 0.0 }
 0x1c2   : > { %v1787_v38 = vpop.f32.mrf.mxu0  ;;  %v2327_v39 = vpack.c.bf16 %v2243_v36, %v2241_v35  ;;  %v2384_v30 = vrot.slane %v289_v23, %v4962_v61  ;;  %v2388_v36 = vrot.slane %v289_v23, %v1037_v60 }
 0x1c3   : > { %v1788_v41 = vadd.f32 %v1787_v38, %v4980_v7  ;;  %v2117_v44 = vmul.f32 %v4985_v12, %v1786_v34  ;;  %vm1971_vm13 = vcmp.ge.f32.partialorder %v1786_v34, 0.0  ;;  %v2244_v56 = vsel %vm1970_vm14, %v1784_v37, %v2116_v47 }
 0x1c4   : > { %v1789_v43 = vpop.f32.mrf.mxu0  ;;  %2801 = vmatprep.mubr.bf16.mxu1 %v2327_v39  ;;  %v3047_v37 = vrot.slane %v289_v23, %v2016_v0 }
 0x1c5   : > { %vm1972_vm12 = vcmp.ge.f32.partialorder %v1788_v41, 0.0  ;;  %v2118_v45 = vmul.f32 %v4989_v14, %v1788_v41  ;;  %v1790_v46 = vadd.f32 %v1789_v43, %v4975_v5  ;;  %2802 = vmatmul.mubr.bf16.gmra.mxu1 %v2326_v42  ;;  %v2245_v51 = vsel %vm1971_vm13, %v1786_v34, %v2117_v44 }
 0x1c6   : > { %v1793_v21 = vpop.f32.mrf.mxu0  ;;  %v3043_v34 = vrot.slane %v289_v23, %v4972_v2  ;;  %v5201_v44 = vrot.slane %v2384_v30, %v4962_v61 }
 0x1c7   : > { %vm1973_vm15 = vcmp.ge.f32.partialorder %v1790_v46, 0.0  ;;  %v2119_v48 = vmul.f32 %v4985_v12, %v1790_v46  ;;  %v2246_v31 = vsel %vm1972_vm12, %v1788_v41, %v2118_v45  ;;  %v1794_v53 = vadd.f32 %v1793_v21, %v4980_v7 }
 0x1c8   : > { %v1795_v49 = vpop.f32.mrf.mxu0  ;;  %v2328_v59 = vpack.c.bf16 %v2246_v31, %v2244_v56  ;;  %v5208_v0 = vrot.slane %v3043_v34, %v4972_v2  ;;  %v5211_v21 = vrot.slane %v2388_v36, %v4962_v61 }
 0x1c9   : > { %v1796_v50 = vadd.f32 %v1795_v49, %v4975_v5  ;;  %v2247_v52 = vsel %vm1973_vm15, %v1790_v46, %v2119_v48  ;;  %v2120_v4 = vmul.f32 %v4989_v14, %v1794_v53  ;;  %vm1974_vm2 = vcmp.ge.f32.partialorder %v1794_v53, 0.0 }
 0x1ca   : > { %v1797_v54 = vpop.f32.mrf.mxu0  ;;  %v2329_v55 = vpack.c.bf16 %v2247_v52, %v2245_v51  ;;  %v5214_v48 = vrot.slane %v3047_v37, %v4972_v2 }
 0x1cb   : > { %v1798_v57 = vadd.f32 %v1797_v54, %v4980_v7  ;;  %v2121_v63 = vmul.f32 %v4985_v12, %v1796_v50  ;;  %vm1975_vm1 = vcmp.ge.f32.partialorder %v1796_v50, 0.0  ;;  %v2248_v19 = vsel %vm1974_vm2, %v1794_v53, %v2120_v4 }
 0x1cc   : > { %v1799_v62 = vpop.f32.mrf.mxu0  ;;  %2811 = vmatprep.mubr.bf16.mxu1 %v2329_v55  ;;  %v5222_v55 = vrot.slane %v3314_v58, %v4962_v61 }
 0x1cd   : > { %vm1976_vm0 = vcmp.ge.f32.partialorder %v1798_v57, 0.0  ;;  %v2122_v1 = vmul.f32 %v4989_v14, %v1798_v57  ;;  %v1800_v3 = vadd.f32 %v1799_v62, %v4975_v5  ;;  %2812 = vmatmul.mubr.bf16.gmra.mxu1 %v2328_v59  ;;  %v2249_v13 = vsel %vm1975_vm1, %v1796_v50, %v2121_v63 }
 0x1ce   : > { %v1803_v6 = vpop.f32.mrf.mxu0  ;;  %v5226_v59 = vrot.slane %v3314_v58, %v4972_v2 }
 0x1cf   : > { %vm1977_vm3 = vcmp.ge.f32.partialorder %v1800_v3, 0.0  ;;  %v2123_v8 = vmul.f32 %v4985_v12, %v1800_v3  ;;  %v2250_v10 = vsel %vm1976_vm0, %v1798_v57, %v2122_v1  ;;  %v1804_v16 = vadd.f32 %v1803_v6, %v4980_v7 }
 0x1d0   : > { %v1805_v9 = vpop.f32.mrf.mxu0  ;;  %v2330_v22 = vpack.c.bf16 %v2250_v10, %v2248_v19 }
 0x1d1   : > { %v1806_v11 = vadd.f32 %v1805_v9, %v4975_v5  ;;  %v2251_v15 = vsel %vm1977_vm3, %v1800_v3, %v2123_v8  ;;  %v2124_v28 = vmul.f32 %v4989_v14, %v1804_v16  ;;  %vm1978_vm6 = vcmp.ge.f32.partialorder %v1804_v16, 0.0 }
 0x1d2   : > { %v1807_v17 = vpop.f32.mrf.mxu0  ;;  %v2331_v18 = vpack.c.bf16 %v2251_v15, %v2249_v13 }
 0x1d3   : > { %v1808_v20 = vadd.f32 %v1807_v17, %v4980_v7  ;;  %v2125_v25 = vmul.f32 %v4985_v12, %v1806_v11  ;;  %vm1979_vm5 = vcmp.ge.f32.partialorder %v1806_v11, 0.0  ;;  %v2252_v45 = vsel %vm1978_vm6, %v1804_v16, %v2124_v28 }
 0x1d4   : > { %v1809_v24 = vpop.f32.mrf.mxu0  ;;  %2821 = vmatprep.mubr.bf16.mxu1 %v2331_v18 }
 0x1d5   : > { %vm1980_vm4 = vcmp.ge.f32.partialorder %v1808_v20, 0.0  ;;  %v2126_v26 = vmul.f32 %v4989_v14, %v1808_v20  ;;  %v1810_v27 = vadd.f32 %v1809_v24, %v4975_v5  ;;  %2822 = vmatmul.mubr.bf16.gmra.mxu1 %v2330_v22  ;;  %v2253_v39 = vsel %vm1979_vm5, %v1806_v11, %v2125_v25 }
 0x1d6   : > { %v1813_v29 = vpop.f32.mrf.mxu0 }
 0x1d7   : > { %vm1981_vm7 = vcmp.ge.f32.partialorder %v1810_v27, 0.0  ;;  %v2127_v32 = vmul.f32 %v4985_v12, %v1810_v27  ;;  %v2254_v35 = vsel %vm1980_vm4, %v1808_v20, %v2126_v26  ;;  %v1814_v41 = vadd.f32 %v1813_v29, %v4980_v7 }
 0x1d8   : > { %v1815_v33 = vpop.f32.mrf.mxu0  ;;  %v2332_v47 = vpack.c.bf16 %v2254_v35, %v2252_v45 }
 0x1d9   : > { %v1816_v38 = vadd.f32 %v1815_v33, %v4975_v5  ;;  %v2255_v40 = vsel %vm1981_vm7, %v1810_v27, %v2127_v32  ;;  %v2128_v52 = vmul.f32 %v4989_v14, %v1814_v41  ;;  %vm1982_vm10 = vcmp.ge.f32.partialorder %v1814_v41, 0.0 }
 0x1da   : > { %v1817_v42 = vpop.f32.mrf.mxu0  ;;  %v2333_v43 = vpack.c.bf16 %v2255_v40, %v2253_v39 }
 0x1db   : > { %v1818_v46 = vadd.f32 %v1817_v42, %v4980_v7  ;;  %v2129_v49 = vmul.f32 %v4985_v12, %v1816_v38  ;;  %vm1983_vm9 = vcmp.ge.f32.partialorder %v1816_v38, 0.0  ;;  %v2256_v13 = vsel %vm1982_vm10, %v1814_v41, %v2128_v52 }
 0x1dc   : > { %v1819_v60 = vpop.f32.mrf.mxu0  ;;  %2831 = vmatprep.mubr.bf16.mxu1 %v2333_v43 }
 0x1dd   : > { %vm1984_vm8 = vcmp.ge.f32.partialorder %v1818_v46, 0.0  ;;  %v2130_v31 = vmul.f32 %v4989_v14, %v1818_v46  ;;  %v1820_v50 = vadd.f32 %v1819_v60, %v4975_v5  ;;  %v2593_v51 = vpop.f32.mrf.mxu1  ;;  %2832 = vmatmul.mubr.bf16.gmra.mxu1 %v2332_v47  ;;  %v2257_v8 = vsel %vm1983_vm9, %v1816_v38, %v2129_v49 }
 0x1de   : > { %v2594_v53 = vadd.f32 %v2593_v51, %v5201_v44  ;;  %v1823_v54 = vpop.f32.mrf.mxu0 }
 0x1df   : > { %vm1985_vm11 = vcmp.ge.f32.partialorder %v1820_v50, 0.0  ;;  %v2131_v56 = vmul.f32 %v4985_v12, %v1820_v50  ;;  %v2595_v57 = vpop.f32.mrf.mxu1  ;;  %v2258_v3 = vsel %vm1984_vm8, %v1818_v46, %v2130_v31  ;;  %v1824_v4 = vadd.f32 %v1823_v54, %v4980_v7 }
 0x1e0   : > { %vm2912_vm12 = vcmp.ge.f32.partialorder %v2594_v53, 0.0  ;;  %v3058_v62 = vmul.f32 %v5208_v0, %v2594_v53  ;;  %v2596_v63 = vadd.f32 %v2595_v57, %v5211_v21  ;;  %v1825_v1 = vpop.f32.mrf.mxu0  ;;  %v2334_v16 = vpack.c.bf16 %v2258_v3, %v2256_v13 }
 0x1e1   : > { %v1826_v61 = vadd.f32 %v1825_v1, %v4975_v5  ;;  %v2597_v6 = vpop.f32.mrf.mxu1  ;;  %v2259_v9 = vsel %vm1985_vm11, %v1820_v50, %v2131_v56  ;;  %vm1986_vm14 = vcmp.ge.f32.partialorder %v1824_v4, 0.0  ;;  %v2132_v29 = vmul.f32 %v4989_v14, %v1824_v4 }
 0x1e2   : > { %vm2913_vm13 = vcmp.ge.f32.partialorder %v2596_v63, 0.0  ;;  %v3059_v2 = vmul.f32 %v5214_v48, %v2596_v63  ;;  %v1827_v10 = vpop.f32.mrf.mxu0  ;;  %v2335_v11 = vpack.c.bf16 %v2259_v9, %v2257_v8  ;;  %v3186_v17 = vsel %vm2912_vm12, %v2594_v53, %v3058_v62 }
 0x1e3   : > { %v2599_v15 = vpop.f32.mrf.mxu1  ;;  %v1828_v18 = vadd.f32 %v1827_v10, %v4980_v7  ;;  %v2133_v22 = vmul.f32 %v4985_v12, %v1826_v61  ;;  %vm1987_vm15 = vcmp.ge.f32.partialorder %v1826_v61, 0.0  ;;  %v2598_v25 = vadd.f32 %v2597_v6, %v5201_v44 }
 0x1e4   : > { %v1829_v19 = vpop.f32.mrf.mxu0  ;;  %2841 = vmatprep.mubr.bf16.mxu1 %v2335_v11  ;;  %v3187_v20 = vsel %vm2913_vm13, %v2596_v63, %v3059_v2  ;;  %v3326_v27 = vmul.f32 %v5222_v55, %v3186_v17  ;;  %v2600_v30 = vadd.f32 %v2599_v15, %v5211_v21  ;;  %v2260_v52 = vsel %vm1986_vm14, %v1824_v4, %v2132_v29 }
 0x1e5   : > { %v1830_v23 = vadd.f32 %v1829_v19, %v4975_v5  ;;  %v2603_v24 = vpop.f32.mrf.mxu1  ;;  %2842 = vmatmul.mubr.bf16.gmra.mxu1 %v2334_v16  ;;  %v3327_v28 = vmul.f32 %v5226_v59, %v3187_v20  ;;  %vm1988_vm1 = vcmp.ge.f32.partialorder %v1828_v18, 0.0  ;;  %v2134_v34 = vmul.f32 %v4989_v14, %v1828_v18 }
 0x1e6   : > { %v1833_v26 = vpop.f32.mrf.mxu0  ;;  %v2604_v35 = vadd.f32 %v2603_v24, %v5201_v44  ;;  %v2261_v41 = vsel %vm1987_vm15, %v1826_v61, %v2133_v22  ;;  %vm2914_vm2 = vcmp.ge.f32.partialorder %v2598_v25, 0.0  ;;  %v3060_v43 = vmul.f32 %v5208_v0, %v2598_v25 }
 0x1e7   : > { %vm1989_vm0 = vcmp.ge.f32.partialorder %v1830_v23, 0.0  ;;  %v2135_v32 = vmul.f32 %v4985_v12, %v1830_v23  ;;  %v2605_v33 = vpop.f32.mrf.mxu1  ;;  %v3454_v37 = vadd.f32 %v3327_v28, %v3326_v27  ;;  %v5249_v38 = vadd.f32 %v1833_v26, %v4980_v7 }
 0x1e8   : > { %v1835_v36 = vpop.f32.mrf.mxu0  ;;  %v2606_v39 = vadd.f32 %v2605_v33, %v5211_v21  ;;  %vm2915_vm3 = vcmp.ge.f32.partialorder %v2600_v30, 0.0  ;;  %v3061_v58 = vmul.f32 %v5214_v48, %v2600_v30  ;;  %vm2916_vm4 = vcmp.ge.f32.partialorder %v2604_v35, 0.0 }
 0x1e9   : > { %v2607_v40 = vpop.f32.mrf.mxu1  ;;  %v2263_v42 = vsel %vm1989_vm0, %v1830_v23, %v2135_v32  ;;  %v5255_v45 = vadd.f32 %v1835_v36, %v4975_v5  ;;  %3455 = vadd.xlane.f32.xlu0 %v3454_v37  ;;  %v3062_v50 = vmul.f32 %v5208_v0, %v2604_v35  ;;  %v2262_v53 = vsel %vm1988_vm1, %v1828_v18, %v2134_v34 }
 0x1ea   : > { %v1837_v46 = vpop.f32.mrf.mxu0  ;;  %v2337_v47 = vpack.c.bf16 %v2263_v42, %v2261_v41  ;;  %v5259_v60 = vadd.f32 %v2607_v40, %v5201_v44  ;;  %v5269_v54 = vmul.f32 %v4989_v14, %v5249_v38  ;;  %vm2917_vm5 = vcmp.ge.f32.partialorder %v2606_v39, 0.0 }
 0x1eb   : > { %v5262_v49 = vadd.f32 %v1837_v46, %v4980_v7  ;;  %v2609_v31 = vpop.f32.mrf.mxu1  ;;  %v2336_v62 = vpack.c.bf16 %v2262_v53, %v2260_v52  ;;  %vm1990_vm6 = vcmp.ge.f32.partialorder %v5249_v38, 0.0  ;;  %v3063_v63 = vmul.f32 %v5214_v48, %v2606_v39 }
 0x1ec   : > { %v1839_v51 = vpop.f32.mrf.mxu0  ;;  %2851 = vmatprep.mubr.bf16.mxu1 %v2337_v47  ;;  %vm1991_vm7 = vcmp.ge.f32.partialorder %v5255_v45, 0.0  ;;  %v2137_v1 = vmul.f32 %v4985_v12, %v5255_v45  ;;  %v3188_v3 = vsel %vm2914_vm2, %v2598_v25, %v3060_v43  ;;  %vm2918_vm8 = vcmp.ge.f32.partialorder %v5259_v60, 0.0 }
 0x1ed   : > { %v1840_v56 = vadd.f32 %v1839_v51, %v4975_v5  ;;  %v2613_v57 = vpop.f32.mrf.mxu1  ;;  %v5281_v61 = vmul.f32 %v5208_v0, %v5259_v60  ;;  %vm1992_vm9 = vcmp.ge.f32.partialorder %v5262_v49, 0.0  ;;  %v5285_v6 = vadd.f32 %v2609_v31, %v5211_v21  ;;  %2852 = vmatmul.mubr.bf16.gmra.mxu1 %v2336_v62 }
 0x1ee   : > { %v1843_v4 = vpop.f32.mrf.mxu0  ;;  %v3189_v8 = vsel %vm2915_vm3, %v2600_v30, %v3061_v58  ;;  %v5289_v2 = vadd.f32 %v2613_v57, %v5201_v44  ;;  %v3328_v10 = vmul.f32 %v5222_v55, %v3188_v3  ;;  %v2138_v16 = vmul.f32 %v4989_v14, %v5262_v49 }
 0x1ef   : > { %v2615_v9 = vpop.f32.mrf.mxu1  ;;  %v3329_v11 = vmul.f32 %v5226_v59, %v3189_v8  ;;  %v1844_v13 = vadd.f32 %v1843_v4, %v4980_v7  ;;  %v2139_v17 = vmul.f32 %v4985_v12, %v1840_v56  ;;  %v3190_v24 = vsel %vm2916_vm4, %v2604_v35, %v3062_v50 }
 0x1f0   : > { %v1845_v15 = vpop.f32.mrf.mxu0  ;;  %v5298_v18 = vadd.f32 %v2615_v9, %v5211_v21  ;;  %v3191_v25 = vsel %vm2917_vm5, %v2606_v39, %v3063_v63  ;;  %vm2919_vm10 = vcmp.ge.f32.partialorder %v5285_v6, 0.0  ;;  %vm1993_vm11 = vcmp.ge.f32.partialorder %v1840_v56, 0.0 }
 0x1f1   : > { %v5301_v19 = vadd.f32 %v1845_v15, %v4975_v5  ;;  %v2617_v20 = vpop.f32.mrf.mxu1  ;;  %v3457_v22 = vadd.f32 %v3329_v11, %v3328_v10  ;;  %v2140_v23 = vmul.f32 %v4989_v14, %v1844_v13  ;;  %vm1994_vm12 = vcmp.ge.f32.partialorder %v1844_v13, 0.0 }
 0x1f2   : > { %v1847_v26 = vpop.f32.mrf.mxu0  ;;  %v5308_v27 = vadd.f32 %v2617_v20, %v5201_v44  ;;  %v3065_v29 = vmul.f32 %v5214_v48, %v5285_v6  ;;  %vm2920_vm13 = vcmp.ge.f32.partialorder %v5289_v2, 0.0  ;;  %v3066_v30 = vmul.f32 %v5208_v0, %v5289_v2 }
 0x1f3   : > { %v2619_v28 = vpop.f32.mrf.mxu1  ;;  %3458 = vadd.xlane.f32.xlu0 %v3457_v22  ;;  %vm2921_vm14 = vcmp.ge.f32.partialorder %v5298_v18, 0.0  ;;  %v3330_v33 = vmul.f32 %v5222_v55, %v3190_v24  ;;  %v3331_v34 = vmul.f32 %v5226_v59, %v3191_v25  ;;  %v1848_v35 = vadd.f32 %v1847_v26, %v4980_v7 }
 0x1f4   : > { %v1849_v32 = vpop.f32.mrf.mxu0  ;;  %v5320_v36 = vadd.f32 %v2619_v28, %v5211_v21  ;;  %v5322_v39 = vsel %vm1994_vm12, %v1844_v13, %v2140_v23  ;;  %v3067_v40 = vmul.f32 %v5214_v48, %v5298_v18  ;;  %v5328_v41 = vmul.f32 %v4985_v12, %v5301_v19 }
 0x1f5   : > { %v2623_v37 = vpop.f32.mrf.mxu1  ;;  %v2267_v42 = vsel %vm1993_vm11, %v1840_v56, %v2139_v17  ;;  %vm1995_vm15 = vcmp.ge.f32.partialorder %v5301_v19, 0.0  ;;  %vm2922_vm0 = vcmp.ge.f32.partialorder %v5308_v27, 0.0  ;;  %v3460_v46 = vadd.f32 %v3331_v34, %v3330_v33 }
 0x1f6   : > { %v1853_v43 = vpop.f32.mrf.mxu0  ;;  %vm1996_vm1 = vcmp.ge.f32.partialorder %v1848_v35, 0.0  ;;  %v2142_v47 = vmul.f32 %v4989_v14, %v1848_v35  ;;  %v2265_v58 = vsel %vm1991_vm7, %v5255_v45, %v2137_v1  ;;  %v3068_v50 = vmul.f32 %v5208_v0, %v5308_v27 }
 0x1f7   : > { %v2625_v31 = vpop.f32.mrf.mxu1  ;;  %v1850_v51 = vadd.f32 %v1849_v32, %v4975_v5  ;;  %v2339_v52 = vpack.c.bf16 %v2267_v42, %v2265_v58  ;;  %v5341_v53 = vadd.f32 %v2623_v37, %v5201_v44  ;;  %3461 = vadd.xlane.f32.xlu1 %v3460_v46  ;;  %vm2923_vm2 = vcmp.ge.f32.partialorder %v5320_v36, 0.0 }
 0x1f8   : > { %v1855_v56 = vpop.f32.mrf.mxu0  ;;  %v5346_v57 = vmul.f32 %v5214_v48, %v5320_v36  ;;  %v2264_v45 = vsel %vm1990_vm6, %v5249_v38, %v5269_v54  ;;  %v2266_v62 = vsel %vm1992_vm9, %v5262_v49, %v2138_v16  ;;  %v5355_v1 = vsel %vm1996_vm1, %v1848_v35, %v2142_v47 }
 0x1f9   : > { %v2627_v63 = vpop.f32.mrf.mxu1  ;;  %2861 = vmatprep.mubr.bf16.mxu1 %v2339_v52  ;;  %v2338_v3 = vpack.c.bf16 %v2266_v62, %v2264_v45  ;;  %v3192_v4 = vsel %vm2918_vm8, %v5259_v60, %v5281_v61  ;;  %v3193_v8 = vsel %vm2919_vm10, %v5285_v6, %v3065_v29  ;;  %v1854_v49 = vadd.f32 %v1853_v43, %v4980_v7 }
 0x1fa   : > { %v1857_v9 = vpop.f32.mrf.mxu0  ;;  %v3332_v38 = vmul.f32 %v5222_v55, %v3192_v4  ;;  %v3333_v54 = vmul.f32 %v5226_v59, %v3193_v8  ;;  %v2626_v10 = vadd.f32 %v2625_v31, %v5211_v21  ;;  %vm1997_vm3 = vcmp.ge.f32.partialorder %v1850_v51, 0.0 }
 0x1fb   : > { %v2629_v11 = vpop.f32.mrf.mxu1  ;;  %2862 = vmatmul.mubr.bf16.gmra.mxu1 %v2338_v3  ;;  %v5369_v13 = vadd.f32 %v1855_v56, %v4975_v5  ;;  %v3194_v60 = vsel %vm2920_vm13, %v5289_v2, %v3066_v30  ;;  %v3195_v61 = vsel %vm2921_vm14, %v5298_v18, %v3067_v40  ;;  %v2143_v15 = vmul.f32 %v4985_v12, %v1850_v51 }
 0x1fc   : > { %v1859_v6 = vpop.f32.mrf.mxu0  ;;  %v3463_v16 = vadd.f32 %v3333_v54, %v3332_v38  ;;  %v2144_v17 = vmul.f32 %v4989_v14, %v1854_v49  ;;  %v5380_v20 = vadd.f32 %v2627_v63, %v5201_v44  ;;  %v2340_v23 = vpack.c.bf16 %v5355_v1, %v5322_v39 }
 0x1fd   : > { %v2633_v22 = vpop.f32.mrf.mxu1  ;;  %vm2924_vm4 = vcmp.ge.f32.partialorder %v5341_v53, 0.0  ;;  %v3070_v2 = vmul.f32 %v5208_v0, %v5341_v53  ;;  %vm1998_vm5 = vcmp.ge.f32.partialorder %v1854_v49, 0.0  ;;  %vm2925_vm6 = vcmp.ge.f32.partialorder %v2626_v10, 0.0 }
 0x1fe   : > { %v1863_v18 = vpop.f32.mrf.mxu0  ;;  %3464 = vadd.xlane.f32.xlu1 %v3463_v16  ;;  %v3071_v24 = vmul.f32 %v5214_v48, %v2626_v10  ;;  %v3334_v25 = vmul.f32 %v5222_v55, %v3194_v60  ;;  %v3335_v26 = vmul.f32 %v5226_v59, %v3195_v61  ;;  %v5392_v29 = vmul.f32 %v4985_v12, %v5369_v13 }
 0x1ff   : > { %v2635_v28 = vpop.f32.mrf.mxu1  ;;  %v1858_v30 = vadd.f32 %v1857_v9, %v4980_v7  ;;  %v5396_v32 = vadd.f32 %v2629_v11, %v5211_v21  ;;  %v1860_v33 = vadd.f32 %v1859_v6, %v4975_v5  ;;  %v5399_v35 = vsel %vm1998_vm5, %v1854_v49, %v2144_v17 }
 0x200   : > { %v1865_v34 = vpop.f32.mrf.mxu0  ;;  %vm1999_vm7 = vcmp.ge.f32.partialorder %v5369_v13, 0.0  ;;  %vm2926_vm8 = vcmp.ge.f32.partialorder %v5380_v20, 0.0  ;;  %v3466_v37 = vadd.f32 %v3335_v26, %v3334_v25  ;;  %v2271_v39 = vsel %vm1997_vm3, %v1850_v51, %v2143_v15 }
 0x201   : > { %v2637_v40 = vpop.f32.mrf.mxu1  ;;  %vm2000_vm9 = vcmp.ge.f32.partialorder %v1858_v30, 0.0  ;;  %v2146_v42 = vmul.f32 %v4989_v14, %v1858_v30  ;;  %v2269_v43 = vsel %vm1995_vm15, %v5301_v19, %v5328_v41  ;;  %v3196_v46 = vsel %vm2922_vm0, %v5308_v27, %v3068_v50 }
 0x202   : > { %v1867_v47 = vpop.f32.mrf.mxu0  ;;  %v3072_v58 = vmul.f32 %v5208_v0, %v5380_v20  ;;  %3467 = vadd.xlane.f32.xlu0 %v3466_v37  ;;  %vm2927_vm10 = vcmp.ge.f32.partialorder %v5396_v32, 0.0  ;;  %v2341_v31 = vpack.c.bf16 %v2271_v39, %v2269_v43  ;;  %v5416_v51 = vadd.f32 %v2633_v22, %v5201_v44 }
 0x203   : > { %v2639_v52 = vpop.f32.mrf.mxu1  ;;  %v5418_v56 = vsel %vm2000_vm9, %v1858_v30, %v2146_v42  ;;  %v3073_v19 = vmul.f32 %v5214_v48, %v5396_v32  ;;  %vm2001_vm11 = vcmp.ge.f32.partialorder %v1860_v33, 0.0  ;;  %v3197_v27 = vsel %vm2923_vm2, %v5320_v36, %v5346_v57 }
 0x204   : > { %v1869_v41 = vpop.f32.mrf.mxu0  ;;  %2871 = vmatprep.mubr.bf16.mxu1 %v2341_v31  ;;  %v3336_v50 = vmul.f32 %v5222_v55, %v3196_v46  ;;  %v3337_v45 = vmul.f32 %v5226_v59, %v3197_v27  ;;  %v1864_v62 = vadd.f32 %v1863_v18, %v4980_v7  ;;  %v2636_v63 = vadd.f32 %v2635_v28, %v5211_v21 }
 0x205   : > { %v2643_v1 = vpop.f32.mrf.mxu1  ;;  %v2147_v3 = vmul.f32 %v4985_v12, %v1860_v33  ;;  %2872 = vmatmul.mubr.bf16.gmra.mxu1 %v2340_v23  ;;  %v5432_v4 = vadd.f32 %v1865_v34, %v4975_v5  ;;  %v3198_v36 = vsel %vm2924_vm4, %v5341_v53, %v3070_v2  ;;  %v3199_v57 = vsel %vm2925_vm6, %v2626_v10, %v3071_v24 }
 0x206   : > { %v1873_v8 = vpop.f32.mrf.mxu0  ;;  %v3469_v9 = vadd.f32 %v3337_v45, %v3336_v50  ;;  %vm2002_vm12 = vcmp.ge.f32.partialorder %v1864_v62, 0.0  ;;  %v2148_v38 = vmul.f32 %v4989_v14, %v1864_v62  ;;  %v5440_v54 = vadd.f32 %v2637_v40, %v5201_v44 }
 0x207   : > { %v2645_v49 = vpop.f32.mrf.mxu1  ;;  %v2342_v11 = vpack.c.bf16 %v5418_v56, %v5399_v35  ;;  %vm2928_vm13 = vcmp.ge.f32.partialorder %v5416_v51, 0.0  ;;  %v3074_v60 = vmul.f32 %v5208_v0, %v5416_v51  ;;  %vm2929_vm14 = vcmp.ge.f32.partialorder %v2636_v63, 0.0 }
 0x208   : > { %3470 = vadd.xlane.f32.xlu1 %v3469_v9  ;;  %v3075_v53 = vmul.f32 %v5214_v48, %v2636_v63  ;;  %v5450_v10 = vmul.f32 %v4985_v12, %v5432_v4  ;;  %v3338_v61 = vmul.f32 %v5222_v55, %v3198_v36  ;;  %v3339_v6 = vmul.f32 %v5226_v59, %v3199_v57  ;;  %v1875_v15 = vpop.f32.mrf.mxu0 }
 0x209   : > { %v2647_v16 = vpop.f32.mrf.mxu1  ;;  %v5454_v17 = vsel %vm2002_vm12, %v1864_v62, %v2148_v38  ;;  %vm2003_vm15 = vcmp.ge.f32.partialorder %v5432_v4, 0.0  ;;  %v1868_v22 = vadd.f32 %v1867_v47, %v4980_v7  ;;  %v5459_v23 = vadd.f32 %v2639_v52, %v5211_v21 }
 0x20a   : > { %v1870_v2 = vadd.f32 %v1869_v41, %v4975_v5  ;;  %vm2930_vm0 = vcmp.ge.f32.partialorder %v5440_v54, 0.0  ;;  %v3076_v18 = vmul.f32 %v5208_v0, %v5440_v54  ;;  %v3472_v24 = vadd.f32 %v3339_v6, %v3338_v61  ;;  %v1877_v39 = vpop.f32.mrf.mxu0 }
 0x20b   : > { %v2275_v25 = vsel %vm2001_vm11, %v1860_v33, %v2147_v3  ;;  %v5467_v26 = vadd.f32 %v2643_v1, %v5201_v44  ;;  %v2649_v28 = vpop.f32.mrf.mxu1  ;;  %vm2004_vm1 = vcmp.ge.f32.partialorder %v1868_v22, 0.0  ;;  %v2150_v30 = vmul.f32 %v4989_v14, %v1868_v22 }
 0x20c   : > { %v2273_v34 = vsel %vm1999_vm7, %v5369_v13, %v5392_v29  ;;  %v3200_v35 = vsel %vm2926_vm8, %v5380_v20, %v3072_v58  ;;  %3473 = vadd.xlane.f32.xlu0 %v3472_v24  ;;  %vm2931_vm2 = vcmp.ge.f32.partialorder %v5459_v23, 0.0  ;;  %v3077_v33 = vmul.f32 %v5214_v48, %v5459_v23  ;;  %v1879_v45 = vpop.f32.mrf.mxu0 }
 0x20d   : > { %vm2005_vm3 = vcmp.ge.f32.partialorder %v1870_v2, 0.0  ;;  %v2343_v37 = vpack.c.bf16 %v2275_v25, %v2273_v34  ;;  %v2653_v40 = vpop.f32.mrf.mxu1  ;;  %v2278_v42 = vsel %vm2004_vm1, %v1868_v22, %v2150_v30  ;;  %v2151_v43 = vmul.f32 %v4985_v12, %v1870_v2 }
 0x20e   : > { %v3078_v13 = vmul.f32 %v5208_v0, %v5467_v26  ;;  %v3201_v20 = vsel %vm2927_vm10, %v5396_v32, %v3073_v19  ;;  %vm2932_vm4 = vcmp.ge.f32.partialorder %v5467_v26, 0.0  ;;  %v3340_v29 = vmul.f32 %v5222_v55, %v3200_v35 }
 0x20f   : > { %2881 = vmatprep.mubr.bf16.mxu1 %v2343_v37  ;;  %v3341_v46 = vmul.f32 %v5226_v59, %v3201_v20  ;;  %v1874_v47 = vadd.f32 %v1873_v8, %v4980_v7  ;;  %v2646_v58 = vadd.f32 %v2645_v49, %v5211_v21  ;;  %v2655_v31 = vpop.f32.mrf.mxu1  ;;  %v1876_v52 = vadd.f32 %v1875_v15, %v4975_v5 }
 0x210   : > { %2882 = vmatmul.mubr.bf16.gmra.mxu1 %v2342_v11  ;;  %v5493_v56 = vadd.f32 %v2647_v16, %v5201_v44  ;;  %v3202_v32 = vsel %vm2928_vm13, %v5416_v51, %v3074_v60  ;;  %v3203_v19 = vsel %vm2929_vm14, %v2636_v63, %v3075_v53  ;;  %v2344_v27 = vpack.c.bf16 %v2278_v42, %v5454_v17 }
 0x211   : > { %v3475_v41 = vadd.f32 %v3341_v46, %v3340_v29  ;;  %vm2006_vm5 = vcmp.ge.f32.partialorder %v1874_v47, 0.0  ;;  %v2152_v50 = vmul.f32 %v4989_v14, %v1874_v47  ;;  %v2657_v62 = vpop.f32.mrf.mxu1  ;;  %vm2933_vm6 = vcmp.ge.f32.partialorder %v2646_v58, 0.0 }
 0x212   : > { %v3079_v1 = vmul.f32 %v5214_v48, %v2646_v58  ;;  %vm2007_vm7 = vcmp.ge.f32.partialorder %v1876_v52, 0.0  ;;  %v2153_v3 = vmul.f32 %v4985_v12, %v1876_v52  ;;  %vm2934_vm8 = vcmp.ge.f32.partialorder %v5493_v56, 0.0 }
 0x213   : > { %3476 = vadd.xlane.f32.xlu1 %v3475_v41  ;;  %v5503_v36 = vsel %vm2006_vm5, %v1874_v47, %v2152_v50  ;;  %v3342_v51 = vmul.f32 %v5222_v55, %v3202_v32  ;;  %v3343_v63 = vmul.f32 %v5226_v59, %v3203_v19  ;;  %v2659_v57 = vpop.f32.mrf.mxu1  ;;  %v3080_v8 = vmul.f32 %v5208_v0, %v5493_v56 }
 0x214   : > { %v1878_v9 = vadd.f32 %v1877_v39, %v4980_v7  ;;  %v2650_v38 = vadd.f32 %v2649_v28, %v5211_v21  ;;  %v1880_v49 = vadd.f32 %v1879_v45, %v4975_v5  ;;  %v2277_v60 = vsel %vm2003_vm15, %v5432_v4, %v5450_v10 }
 0x215   : > { %v3478_v11 = vadd.f32 %v3343_v63, %v3342_v51  ;;  %v2279_v53 = vsel %vm2005_vm3, %v1870_v2, %v2151_v43  ;;  %v2654_v61 = vadd.f32 %v2653_v40, %v5201_v44  ;;  %v2663_v6 = vpop.f32.mrf.mxu1  ;;  %v3204_v7 = vsel %vm2930_vm0, %v5440_v54, %v3076_v18 }
 0x216   : > { %vm2008_vm9 = vcmp.ge.f32.partialorder %v1878_v9, 0.0  ;;  %v2154_v15 = vmul.f32 %v4989_v14, %v1878_v9  ;;  %vm2935_vm10 = vcmp.ge.f32.partialorder %v2650_v38, 0.0  ;;  %v3081_v5 = vmul.f32 %v5214_v48, %v2650_v38 }
 0x217   : > { %3479 = vadd.xlane.f32.xlu0 %v3478_v11  ;;  %vm2009_vm11 = vcmp.ge.f32.partialorder %v1880_v49, 0.0  ;;  %v2155_v16 = vmul.f32 %v4985_v12, %v1880_v49  ;;  %v2345_v4 = vpack.c.bf16 %v2279_v53, %v2277_v60  ;;  %v2665_v10 = vpop.f32.mrf.mxu1  ;;  %vm2936_vm12 = vcmp.ge.f32.partialorder %v2654_v61, 0.0 }
 0x218   : > { %v2282_v17 = vsel %vm2008_vm9, %v1878_v9, %v2154_v15  ;;  %v3082_v22 = vmul.f32 %v5208_v0, %v2654_v61  ;;  %v3205_v14 = vsel %vm2931_vm2, %v5459_v23, %v3077_v33  ;;  %v3344_v2 = vmul.f32 %v5222_v55, %v3204_v7 }
 0x219   : > { %2891 = vmatprep.mubr.bf16.mxu1 %v2345_v4  ;;  %v3345_v54 = vmul.f32 %v5226_v59, %v3205_v14  ;;  %v2656_v18 = vadd.f32 %v2655_v31, %v5211_v21  ;;  %v2658_v24 = vadd.f32 %v2657_v62, %v5201_v44  ;;  %v2667_v12 = vpop.f32.mrf.mxu1  ;;  %v2346_v25 = vpack.c.bf16 %v2282_v17, %v5503_v36 }
 0x21a   : > { %2892 = vmatmul.mubr.bf16.gmra.mxu1 %v2344_v27  ;;  %v3206_v28 = vsel %vm2932_vm4, %v5467_v26, %v3078_v13  ;;  %v3207_v30 = vsel %vm2933_vm6, %v2646_v58, %v3079_v1  ;;  %v2660_v23 = vadd.f32 %v2659_v57, %v5211_v21  ;;  %v2281_v33 = vsel %vm2007_vm7, %v1876_v52, %v2153_v3 }
 0x21b   : > { %v3481_v34 = vadd.f32 %v3345_v54, %v3344_v2  ;;  %vm2937_vm13 = vcmp.ge.f32.partialorder %v2656_v18, 0.0  ;;  %v3083_v35 = vmul.f32 %v5214_v48, %v2656_v18  ;;  %v2669_v37 = vpop.f32.mrf.mxu1  ;;  %vm2938_vm14 = vcmp.ge.f32.partialorder %v2658_v24, 0.0 }
 0x21c   : > { %v3084_v39 = vmul.f32 %v5208_v0, %v2658_v24  ;;  %v3346_v40 = vmul.f32 %v5222_v55, %v3206_v28  ;;  %v3347_v42 = vmul.f32 %v5226_v59, %v3207_v30  ;;  %vm2939_vm15 = vcmp.ge.f32.partialorder %v2660_v23, 0.0 }
 0x21d   : > { %3482 = vadd.xlane.f32.xlu1 %v3481_v34  ;;  %v2283_v26 = vsel %vm2009_vm11, %v1880_v49, %v2155_v16  ;;  %v2664_v43 = vadd.f32 %v2663_v6, %v5201_v44  ;;  %v3208_v13 = vsel %vm2934_vm8, %v5493_v56, %v3080_v8  ;;  %v2673_v20 = vpop.f32.mrf.mxu1  ;;  %v3085_v46 = vmul.f32 %v5214_v48, %v2660_v23 }
 0x21e   : > { %v3484_v29 = vadd.f32 %v3347_v42, %v3346_v40  ;;  %v2347_v47 = vpack.c.bf16 %v2283_v26, %v2281_v33  ;;  %v3209_v58 = vsel %vm2935_vm10, %v2650_v38, %v3081_v5  ;;  %v3348_v52 = vmul.f32 %v5222_v55, %v3208_v13 }
 0x21f   : > { %v3086_v31 = vmul.f32 %v5208_v0, %v2664_v43  ;;  %v3349_v32 = vmul.f32 %v5226_v59, %v3209_v58  ;;  %v2666_v19 = vadd.f32 %v2665_v10, %v5211_v21  ;;  %v2675_v27 = vpop.f32.mrf.mxu1  ;;  %vm2940_vm0 = vcmp.ge.f32.partialorder %v2664_v43, 0.0 }
 0x220   : > { %3485 = vadd.xlane.f32.xlu0 %v3484_v29  ;;  %2901 = vmatprep.mubr.bf16.mxu1 %v2347_v47  ;;  %v2668_v56 = vadd.f32 %v2667_v12, %v5201_v44  ;;  %v3210_v41 = vsel %vm2936_vm12, %v2654_v61, %v3082_v22  ;;  %v3211_v50 = vsel %vm2937_vm13, %v2656_v18, %v3083_v35 }
 0x221   : > { %v3487_v45 = vadd.f32 %v3349_v32, %v3348_v52  ;;  %vm2941_vm1 = vcmp.ge.f32.partialorder %v2666_v19, 0.0  ;;  %v3087_v62 = vmul.f32 %v5214_v48, %v2666_v19  ;;  %v3350_v1 = vmul.f32 %v5222_v55, %v3210_v41  ;;  %v2677_v3 = vpop.f32.mrf.mxu1 }
 0x222   : > { %2902 = vmatmul.mubr.bf16.gmra.mxu1 %v2346_v25  ;;  %vm2942_vm2 = vcmp.ge.f32.partialorder %v2668_v56, 0.0  ;;  %v3088_v36 = vmul.f32 %v5208_v0, %v2668_v56  ;;  %v3351_v51 = vmul.f32 %v5226_v59, %v3211_v50  ;;  %v2670_v63 = vadd.f32 %v2669_v37, %v5211_v21 }
 0x223   : > { %3488 = vadd.xlane.f32.xlu1 %v3487_v45  ;;  %v2674_v57 = vadd.f32 %v2673_v20, %v5201_v44  ;;  %v3212_v8 = vsel %vm2938_vm14, %v2658_v24, %v3084_v39  ;;  %v3213_v9 = vsel %vm2939_vm15, %v2660_v23, %v3085_v46  ;;  %v2676_v38 = vadd.f32 %v2675_v27, %v5211_v21  ;;  %v2679_v49 = vpop.f32.mrf.mxu1 }
 0x224   : > { %v3490_v11 = vadd.f32 %v3351_v51, %v3350_v1  ;;  %vm2943_vm3 = vcmp.ge.f32.partialorder %v2670_v63, 0.0  ;;  %v3089_v60 = vmul.f32 %v5214_v48, %v2670_v63  ;;  %v3352_v53 = vmul.f32 %v5222_v55, %v3212_v8 }
 0x225   : > { %vm2944_vm4 = vcmp.ge.f32.partialorder %v2674_v57, 0.0  ;;  %v3090_v61 = vmul.f32 %v5208_v0, %v2674_v57  ;;  %v3353_v6 = vmul.f32 %v5226_v59, %v3213_v9  ;;  %vm2945_vm5 = vcmp.ge.f32.partialorder %v2676_v38, 0.0  ;;  %v2683_v15 = vpop.f32.mrf.mxu1 }
 0x226   : > { %3491 = vadd.xlane.f32.xlu0 %v3490_v11  ;;  %v3091_v7 = vmul.f32 %v5214_v48, %v2676_v38  ;;  %v2678_v5 = vadd.f32 %v2677_v3, %v5201_v44  ;;  %v3214_v16 = vsel %vm2940_vm0, %v2664_v43, %v3086_v31  ;;  %v3215_v4 = vsel %vm2941_vm1, %v2666_v19, %v3087_v62 }
 0x227   : > { %v3493_v10 = vadd.f32 %v3353_v6, %v3352_v53  ;;  %v3354_v17 = vmul.f32 %v5222_v55, %v3214_v16  ;;  %v3355_v22 = vmul.f32 %v5226_v59, %v3215_v4  ;;  %v2680_v14 = vadd.f32 %v2679_v49, %v5211_v21  ;;  %v2685_v2 = vpop.f32.mrf.mxu1 }
 0x228   : > { %vm2946_vm6 = vcmp.ge.f32.partialorder %v2678_v5, 0.0  ;;  %v3092_v54 = vmul.f32 %v5208_v0, %v2678_v5  ;;  %v2684_v18 = vadd.f32 %v2683_v15, %v5201_v44  ;;  %v3216_v24 = vsel %vm2942_vm2, %v2668_v56, %v3088_v36 }
 0x229   : > { %3494 = vadd.xlane.f32.xlu1 %v3493_v10  ;;  %v3496_v12 = vadd.f32 %v3355_v22, %v3354_v17  ;;  %vm2947_vm7 = vcmp.ge.f32.partialorder %v2680_v14, 0.0  ;;  %v3093_v25 = vmul.f32 %v5214_v48, %v2680_v14  ;;  %v3217_v28 = vsel %vm2943_vm3, %v2670_v63, %v3089_v60  ;;  %v2687_v30 = vpop.f32.mrf.mxu1 }
 0x22a   : > { %vm2948_vm8 = vcmp.ge.f32.partialorder %v2684_v18, 0.0  ;;  %v3094_v23 = vmul.f32 %v5208_v0, %v2684_v18  ;;  %v3356_v34 = vmul.f32 %v5222_v55, %v3216_v24  ;;  %v3357_v35 = vmul.f32 %v5226_v59, %v3217_v28 }
 0x22b   : > { %3497 = vadd.xlane.f32.xlu0 %v3496_v12  ;;  %v2686_v33 = vadd.f32 %v2685_v2, %v5211_v21  ;;  %v2688_v37 = vadd.f32 %v2687_v30, %v5201_v44  ;;  %v3218_v39 = vsel %vm2944_vm4, %v2674_v57, %v3090_v61  ;;  %v3219_v40 = vsel %vm2945_vm5, %v2676_v38, %v3091_v7  ;;  %v2689_v42 = vpop.f32.mrf.mxu1 }
 0x22c   : > { %v3499_v26 = vadd.f32 %v3357_v35, %v3356_v34  ;;  %v3358_v43 = vmul.f32 %v5222_v55, %v3218_v39  ;;  %v3359_v13 = vmul.f32 %v5226_v59, %v3219_v40  ;;  %v2690_v20 = vadd.f32 %v2689_v42, %v5211_v21 }
 0x22d   : > { %vm2949_vm9 = vcmp.ge.f32.partialorder %v2686_v33, 0.0  ;;  %v3095_v29 = vmul.f32 %v5214_v48, %v2686_v33  ;;  %vm2950_vm10 = vcmp.ge.f32.partialorder %v2688_v37, 0.0  ;;  %v3096_v46 = vmul.f32 %v5208_v0, %v2688_v37  ;;  %v2693_v47 = vpop.f32.mrf.mxu1 }
 0x22e   : > { %3500 = vadd.xlane.f32.xlu1 %v3499_v26  ;;  %v3502_v58 = vadd.f32 %v3359_v13, %v3358_v43  ;;  %vm2951_vm11 = vcmp.ge.f32.partialorder %v2690_v20, 0.0  ;;  %v3097_v31 = vmul.f32 %v5214_v48, %v2690_v20  ;;  %v2694_v52 = vadd.f32 %v2693_v47, %v5201_v44 }
 0x22f   : > { %v3220_v32 = vsel %vm2946_vm6, %v2678_v5, %v3092_v54  ;;  %v3221_v19 = vsel %vm2947_vm7, %v2680_v14, %v3093_v25  ;;  %v2695_v27 = vpop.f32.mrf.mxu1  ;;  %v3222_v56 = vsel %vm2948_vm8, %v2684_v18, %v3094_v23  ;;  %v3223_v41 = vsel %vm2949_vm9, %v2686_v33, %v3095_v29 }
 0x230   : > { %3503 = vadd.xlane.f32.xlu0 %v3502_v58  ;;  %vm2952_vm12 = vcmp.ge.f32.partialorder %v2694_v52, 0.0  ;;  %v3098_v50 = vmul.f32 %v5208_v0, %v2694_v52  ;;  %v3360_v45 = vmul.f32 %v5222_v55, %v3220_v32  ;;  %v3361_v62 = vmul.f32 %v5226_v59, %v3221_v19 }
 0x231   : > { %v2696_v1 = vadd.f32 %v2695_v27, %v5211_v21  ;;  %v2697_v3 = vpop.f32.mrf.mxu1  ;;  %v3362_v36 = vmul.f32 %v5222_v55, %v3222_v56  ;;  %v3363_v51 = vmul.f32 %v5226_v59, %v3223_v41  ;;  %v3224_v63 = vsel %vm2950_vm10, %v2688_v37, %v3096_v46 }
 0x232   : > { %v3505_v57 = vadd.f32 %v3361_v62, %v3360_v45  ;;  %v2698_v8 = vadd.f32 %v2697_v3, %v5201_v44  ;;  %v3225_v9 = vsel %vm2951_vm11, %v2690_v20, %v3097_v31  ;;  %v3364_v38 = vmul.f32 %v5222_v55, %v3224_v63 }
 0x233   : > { %vm2953_vm13 = vcmp.ge.f32.partialorder %v2696_v1, 0.0  ;;  %v3099_v49 = vmul.f32 %v5214_v48, %v2696_v1  ;;  %v3508_v11 = vadd.f32 %v3363_v51, %v3362_v36  ;;  %v2699_v60 = vpop.f32.mrf.mxu1  ;;  %v3365_v53 = vmul.f32 %v5226_v59, %v3225_v9 }
 0x234   : > { %3506 = vadd.xlane.f32.xlu1 %v3505_v57  ;;  %vm2954_vm14 = vcmp.ge.f32.partialorder %v2698_v8, 0.0  ;;  %v3100_v61 = vmul.f32 %v5208_v0, %v2698_v8  ;;  %v2700_v6 = vadd.f32 %v2699_v60, %v5211_v21  ;;  %v3226_v15 = vsel %vm2952_vm12, %v2694_v52, %v3098_v50 }
 0x235   : > { %3509 = vadd.xlane.f32.xlu0 %v3508_v11  ;;  %v2703_v7 = vpop.f32.mrf.mxu1  ;;  %v3511_v5 = vadd.f32 %v3365_v53, %v3364_v38  ;;  %v3227_v16 = vsel %vm2953_vm13, %v2696_v1, %v3099_v49  ;;  %v3366_v4 = vmul.f32 %v5222_v55, %v3226_v15 }
 0x236   : > { %vm2955_vm15 = vcmp.ge.f32.partialorder %v2700_v6, 0.0  ;;  %v3101_v10 = vmul.f32 %v5214_v48, %v2700_v6  ;;  %v2704_v17 = vadd.f32 %v2703_v7, %v5201_v44  ;;  %v3367_v22 = vmul.f32 %v5226_v59, %v3227_v16 }
 0x237   : > { %v2705_v14 = vpop.f32.mrf.mxu1  ;;  %v3228_v2 = vsel %vm2954_vm14, %v2698_v8, %v3100_v61 }
 0x238   : > { %vm2956_vm0 = vcmp.ge.f32.partialorder %v2704_v17, 0.0  ;;  %v3102_v54 = vmul.f32 %v5208_v0, %v2704_v17  ;;  %3512 = vadd.xlane.f32.xlu1 %v3511_v5  ;;  %v2706_v18 = vadd.f32 %v2705_v14, %v5211_v21  ;;  %v3514_v24 = vadd.f32 %v3367_v22, %v3366_v4 }
 0x239   : > { %v2707_v12 = vpop.f32.mrf.mxu1  ;;  %v3229_v25 = vsel %vm2955_vm15, %v2700_v6, %v3101_v10  ;;  %v3368_v28 = vmul.f32 %v5222_v55, %v3228_v2 }
 0x23a   : > { %vm2957_vm1 = vcmp.ge.f32.partialorder %v2706_v18, 0.0  ;;  %v3103_v30 = vmul.f32 %v5214_v48, %v2706_v18  ;;  %v2708_v23 = vadd.f32 %v2707_v12, %v5201_v44  ;;  %3515 = vadd.xlane.f32.xlu0 %v3514_v24  ;;  %v3369_v34 = vmul.f32 %v5226_v59, %v3229_v25 }
 0x23b   : > { %v2709_v35 = vpop.f32.mrf.mxu1  ;;  %v3230_v33 = vsel %vm2956_vm0, %v2704_v17, %v3102_v54 }
 0x23c   : > { %vm2958_vm2 = vcmp.ge.f32.partialorder %v2708_v23, 0.0  ;;  %v3104_v37 = vmul.f32 %v5208_v0, %v2708_v23  ;;  %v2710_v39 = vadd.f32 %v2709_v35, %v5211_v21  ;;  %v3517_v40 = vadd.f32 %v3369_v34, %v3368_v28 }
 0x23d   : > { %v2713_v42 = vpop.f32.mrf.mxu1  ;;  %v3231_v26 = vsel %vm2957_vm1, %v2706_v18, %v3103_v30  ;;  %v3370_v43 = vmul.f32 %v5222_v55, %v3230_v33 }
 0x23e   : > { %vm2959_vm3 = vcmp.ge.f32.partialorder %v2710_v39, 0.0  ;;  %v3105_v13 = vmul.f32 %v5214_v48, %v2710_v39  ;;  %v2714_v20 = vadd.f32 %v2713_v42, %v5201_v44  ;;  %3518 = vadd.xlane.f32.xlu1 %v3517_v40  ;;  %v3371_v29 = vmul.f32 %v5226_v59, %v3231_v26 }
 0x23f   : > { %v2715_v46 = vpop.f32.mrf.mxu1  ;;  %v3232_v47 = vsel %vm2958_vm2, %v2708_v23, %v3104_v37 }
 0x240   : > { %vm2960_vm4 = vcmp.ge.f32.partialorder %v2714_v20, 0.0  ;;  %v3106_v58 = vmul.f32 %v5208_v0, %v2714_v20  ;;  %v2716_v31 = vadd.f32 %v2715_v46, %v5211_v21  ;;  %v3520_v52 = vadd.f32 %v3371_v29, %v3370_v43 }
 0x241   : > { %v2717_v32 = vpop.f32.mrf.mxu1  ;;  %v3233_v19 = vsel %vm2959_vm3, %v2710_v39, %v3105_v13  ;;  %v3372_v27 = vmul.f32 %v5222_v55, %v3232_v47 }
 0x242   : > { %vm2961_vm5 = vcmp.ge.f32.partialorder %v2716_v31, 0.0  ;;  %v3107_v56 = vmul.f32 %v5214_v48, %v2716_v31  ;;  %v2718_v41 = vadd.f32 %v2717_v32, %v5201_v44  ;;  %3521 = vadd.xlane.f32.xlu0 %v3520_v52  ;;  %v3373_v50 = vmul.f32 %v5226_v59, %v3233_v19 }
 0x243   : > { %v2719_v45 = vpop.f32.mrf.mxu1  ;;  %v3234_v62 = vsel %vm2960_vm4, %v2714_v20, %v3106_v58 }
 0x244   : > { %vm2962_vm6 = vcmp.ge.f32.partialorder %v2718_v41, 0.0  ;;  %v3108_v1 = vmul.f32 %v5208_v0, %v2718_v41  ;;  %v2720_v3 = vadd.f32 %v2719_v45, %v5211_v21  ;;  %v3523_v36 = vadd.f32 %v3373_v50, %v3372_v27 }
 0x245   : > { %v2723_v51 = vpop.f32.mrf.mxu1  ;;  %v3235_v63 = vsel %vm2961_vm5, %v2716_v31, %v3107_v56  ;;  %v3374_v57 = vmul.f32 %v5222_v55, %v3234_v62 }
 0x246   : > { %vm2963_vm7 = vcmp.ge.f32.partialorder %v2720_v3, 0.0  ;;  %v3109_v8 = vmul.f32 %v5214_v48, %v2720_v3  ;;  %v2724_v9 = vadd.f32 %v2723_v51, %v5201_v44  ;;  %3524 = vadd.xlane.f32.xlu1 %v3523_v36  ;;  %v3375_v38 = vmul.f32 %v5226_v59, %v3235_v63 }
 0x247   : > { %v2725_v49 = vpop.f32.mrf.mxu1  ;;  %v3236_v11 = vsel %vm2962_vm6, %v2718_v41, %v3108_v1 }
 0x248   : > { %vm2964_vm8 = vcmp.ge.f32.partialorder %v2724_v9, 0.0  ;;  %v3110_v60 = vmul.f32 %v5208_v0, %v2724_v9  ;;  %v2726_v53 = vadd.f32 %v2725_v49, %v5211_v21  ;;  %v3526_v61 = vadd.f32 %v3375_v38, %v3374_v57 }
 0x249   : > { %v2727_v6 = vpop.f32.mrf.mxu1  ;;  %v3237_v15 = vsel %vm2963_vm7, %v2720_v3, %v3109_v8  ;;  %v3376_v7 = vmul.f32 %v5222_v55, %v3236_v11 }
 0x24a   : > { %vm2965_vm9 = vcmp.ge.f32.partialorder %v2726_v53, 0.0  ;;  %v3111_v5 = vmul.f32 %v5214_v48, %v2726_v53  ;;  %v2728_v16 = vadd.f32 %v2727_v6, %v5201_v44  ;;  %3527 = vadd.xlane.f32.xlu0 %v3526_v61  ;;  %v3377_v4 = vmul.f32 %v5226_v59, %v3237_v15 }
 0x24b   : > { %v2729_v10 = vpop.f32.mrf.mxu1  ;;  %v3238_v17 = vsel %vm2964_vm8, %v2724_v9, %v3110_v60 }
 0x24c   : > { %vm2966_vm10 = vcmp.ge.f32.partialorder %v2728_v16, 0.0  ;;  %v3112_v22 = vmul.f32 %v5208_v0, %v2728_v16  ;;  %v2730_v14 = vadd.f32 %v2729_v10, %v5211_v21  ;;  %v3529_v2 = vadd.f32 %v3377_v4, %v3376_v7 }
 0x24d   : > { %v2733_v54 = vpop.f32.mrf.mxu1  ;;  %v3239_v18 = vsel %vm2965_vm9, %v2726_v53, %v3111_v5  ;;  %v3378_v24 = vmul.f32 %v5222_v55, %v3238_v17 }
 0x24e   : > { %vm2967_vm11 = vcmp.ge.f32.partialorder %v2730_v14, 0.0  ;;  %v3113_v12 = vmul.f32 %v5214_v48, %v2730_v14  ;;  %v2734_v25 = vadd.f32 %v2733_v54, %v5201_v44  ;;  %3530 = vadd.xlane.f32.xlu1 %v3529_v2  ;;  %v3379_v28 = vmul.f32 %v5226_v59, %v3239_v18 }
 0x24f   : > { %v2735_v30 = vpop.f32.mrf.mxu1  ;;  %v3240_v23 = vsel %vm2966_vm10, %v2728_v16, %v3112_v22 }
 0x250   : > { %vm2968_vm12 = vcmp.ge.f32.partialorder %v2734_v25, 0.0  ;;  %v3114_v34 = vmul.f32 %v5208_v0, %v2734_v25  ;;  %v2736_v35 = vadd.f32 %v2735_v30, %v5211_v21  ;;  %v3532_v33 = vadd.f32 %v3379_v28, %v3378_v24 }
 0x251   : > { %v2737_v37 = vpop.f32.mrf.mxu1  ;;  %v3241_v39 = vsel %vm2967_vm11, %v2730_v14, %v3113_v12  ;;  %v3380_v40 = vmul.f32 %v5222_v55, %v3240_v23 }
 0x252   : > { %vm2969_vm13 = vcmp.ge.f32.partialorder %v2736_v35, 0.0  ;;  %v3115_v42 = vmul.f32 %v5214_v48, %v2736_v35  ;;  %v2738_v26 = vadd.f32 %v2737_v37, %v5201_v44  ;;  %3533 = vadd.xlane.f32.xlu0 %v3532_v33  ;;  %v3381_v43 = vmul.f32 %v5226_v59, %v3241_v39 }
 0x253   : > { %v2739_v13 = vpop.f32.mrf.mxu1  ;;  %v3242_v20 = vsel %vm2968_vm12, %v2734_v25, %v3114_v34 }
 0x254   : > { %vm2970_vm14 = vcmp.ge.f32.partialorder %v2738_v26, 0.0  ;;  %v3116_v29 = vmul.f32 %v5208_v0, %v2738_v26  ;;  %v2740_v46 = vadd.f32 %v2739_v13, %v5211_v21  ;;  %v3535_v47 = vadd.f32 %v3381_v43, %v3380_v40 }
 0x255   : > { %v2743_v58 = vpop.f32.mrf.mxu1  ;;  %v3243_v31 = vsel %vm2969_vm13, %v2736_v35, %v3115_v42  ;;  %v3382_v52 = vmul.f32 %v5222_v55, %v3242_v20 }
 0x256   : > { %vm2971_vm15 = vcmp.ge.f32.partialorder %v2740_v46, 0.0  ;;  %v3117_v32 = vmul.f32 %v5214_v48, %v2740_v46  ;;  %v2744_v19 = vadd.f32 %v2743_v58, %v5201_v44  ;;  %3536 = vadd.xlane.f32.xlu1 %v3535_v47  ;;  %v3383_v27 = vmul.f32 %v5226_v59, %v3243_v31 }
 0x257   : > { %v2745_v56 = vpop.f32.mrf.mxu1  ;;  %v3244_v41 = vsel %vm2970_vm14, %v2738_v26, %v3116_v29  ;;  %vm3717_vm14 = vcmask 7168  }
 0x258   : > { %vm2972_vm0 = vcmp.ge.f32.partialorder %v2744_v19, 0.0  ;;  %v3118_v50 = vmul.f32 %v5208_v0, %v2744_v19  ;;  %v2746_v45 = vadd.f32 %v2745_v56, %v5211_v21  ;;  %v3538_v62 = vadd.f32 %v3383_v27, %v3382_v52 }
 0x259   : > { %v2747_v1 = vpop.f32.mrf.mxu1  ;;  %v3245_v3 = vsel %vm2971_vm15, %v2740_v46, %v3117_v32  ;;  %v3384_v36 = vmul.f32 %v5222_v55, %v3244_v41 }
 0x25a   : > { %vm2973_vm1 = vcmp.ge.f32.partialorder %v2746_v45, 0.0  ;;  %v3119_v51 = vmul.f32 %v5214_v48, %v2746_v45  ;;  %v2748_v63 = vadd.f32 %v2747_v1, %v5201_v44  ;;  %3539 = vadd.xlane.f32.xlu0 %v3538_v62  ;;  %v3385_v57 = vmul.f32 %v5226_v59, %v3245_v3 }
 0x25b   : > { %v2749_v8 = vpop.f32.mrf.mxu1  ;;  %v3246_v9 = vsel %vm2972_vm0, %v2744_v19, %v3118_v50 }
 0x25c   : > { %vm2974_vm2 = vcmp.ge.f32.partialorder %v2748_v63, 0.0  ;;  %v3120_v38 = vmul.f32 %v5208_v0, %v2748_v63  ;;  %v2750_v49 = vadd.f32 %v2749_v8, %v5211_v21  ;;  %v3541_v11 = vadd.f32 %v3385_v57, %v3384_v36 }
 0x25d   : > { %v2753_v60 = vpop.f32.mrf.mxu1  ;;  %v3247_v53 = vsel %vm2973_vm1, %v2746_v45, %v3119_v51  ;;  %v3386_v61 = vmul.f32 %v5222_v55, %v3246_v9 }
 0x25e   : > { %vm2975_vm3 = vcmp.ge.f32.partialorder %v2750_v49, 0.0  ;;  %v3121_v6 = vmul.f32 %v5214_v48, %v2750_v49  ;;  %v2754_v15 = vadd.f32 %v2753_v60, %v5201_v44  ;;  %3542 = vadd.xlane.f32.xlu1 %v3541_v11  ;;  %v3387_v7 = vmul.f32 %v5226_v59, %v3247_v53 }
 0x25f   : > { %v2755_v5 = vpop.f32.mrf.mxu1  ;;  %v3248_v16 = vsel %vm2974_vm2, %v2748_v63, %v3120_v38 }
 0x260   : > { %vm2976_vm4 = vcmp.ge.f32.partialorder %v2754_v15, 0.0  ;;  %v3122_v4 = vmul.f32 %v5208_v0, %v2754_v15  ;;  %v2756_v10 = vadd.f32 %v2755_v5, %v5211_v21  ;;  %v3544_v17 = vadd.f32 %v3387_v7, %v3386_v61 }
 0x261   : > { %v2757_v22 = vpop.f32.mrf.mxu1  ;;  %v3249_v14 = vsel %vm2975_vm3, %v2750_v49, %v3121_v6  ;;  %v3388_v2 = vmul.f32 %v5222_v55, %v3248_v16  ;;  %v5706_v49 = vld [vmem:[#allocation3] ss:$0 sm:$0xff] }
 0x262   : > { %vm2977_vm5 = vcmp.ge.f32.partialorder %v2756_v10, 0.0  ;;  %v3123_v54 = vmul.f32 %v5214_v48, %v2756_v10  ;;  %v2758_v18 = vadd.f32 %v2757_v22, %v5201_v44  ;;  %3545 = vadd.xlane.f32.xlu0 %v3544_v17  ;;  %v3389_v24 = vmul.f32 %v5226_v59, %v3249_v14 }
 0x263   : > { %v2759_v12 = vpop.f32.mrf.mxu1  ;;  %v3250_v25 = vsel %vm2976_vm4, %v2754_v15, %v3122_v4 }
 0x264   : > { %vm2978_vm6 = vcmp.ge.f32.partialorder %v2758_v18, 0.0  ;;  %v3124_v28 = vmul.f32 %v5208_v0, %v2758_v18  ;;  %v2760_v30 = vadd.f32 %v2759_v12, %v5211_v21  ;;  %v3547_v23 = vadd.f32 %v3389_v24, %v3388_v2 }
 0x265   : > { %v2763_v34 = vpop.f32.mrf.mxu1  ;;  %v3251_v35 = vsel %vm2977_vm5, %v2756_v10, %v3123_v54  ;;  %v3390_v33 = vmul.f32 %v5222_v55, %v3250_v25 }
 0x266   : > { %vm2979_vm7 = vcmp.ge.f32.partialorder %v2760_v30, 0.0  ;;  %v3125_v37 = vmul.f32 %v5214_v48, %v2760_v30  ;;  %v2764_v39 = vadd.f32 %v2763_v34, %v5201_v44  ;;  %3548 = vadd.xlane.f32.xlu1 %v3547_v23  ;;  %v3391_v40 = vmul.f32 %v5226_v59, %v3251_v35 }
 0x267   : > { %v2765_v42 = vpop.f32.mrf.mxu1  ;;  %v3252_v26 = vsel %vm2978_vm6, %v2758_v18, %v3124_v28 }
 0x268   : > { %vm2980_vm8 = vcmp.ge.f32.partialorder %v2764_v39, 0.0  ;;  %v3126_v43 = vmul.f32 %v5208_v0, %v2764_v39  ;;  %v2766_v13 = vadd.f32 %v2765_v42, %v5211_v21  ;;  %v3550_v20 = vadd.f32 %v3391_v40, %v3390_v33 }
 0x269   : > { %v2767_v29 = vpop.f32.mrf.mxu1  ;;  %v3253_v46 = vsel %vm2979_vm7, %v2760_v30, %v3125_v37  ;;  %v3392_v47 = vmul.f32 %v5222_v55, %v3252_v26 }
 0x26a   : > { %vm2981_vm9 = vcmp.ge.f32.partialorder %v2766_v13, 0.0  ;;  %v3127_v58 = vmul.f32 %v5214_v48, %v2766_v13  ;;  %v2768_v31 = vadd.f32 %v2767_v29, %v5201_v44  ;;  %3551 = vadd.xlane.f32.xlu0 %v3550_v20  ;;  %v3393_v52 = vmul.f32 %v5226_v59, %v3253_v46 }
 0x26b   : > { %v2769_v32 = vpop.f32.mrf.mxu1  ;;  %v3254_v19 = vsel %vm2980_vm8, %v2764_v39, %v3126_v43 }
 0x26c   : > { %vm2982_vm10 = vcmp.ge.f32.partialorder %v2768_v31, 0.0  ;;  %v3128_v27 = vmul.f32 %v5208_v0, %v2768_v31  ;;  %v2770_v56 = vadd.f32 %v2769_v32, %v5211_v21  ;;  %v3553_v41 = vadd.f32 %v3393_v52, %v3392_v47 }
 0x26d   : > { %v2773_v50 = vpop.f32.mrf.mxu1  ;;  %v3255_v45 = vsel %vm2981_vm9, %v2766_v13, %v3127_v58  ;;  %v3394_v62 = vmul.f32 %v5222_v55, %v3254_v19 }
 0x26e   : > { %vm2983_vm11 = vcmp.ge.f32.partialorder %v2770_v56, 0.0  ;;  %v3129_v1 = vmul.f32 %v5214_v48, %v2770_v56  ;;  %v2774_v3 = vadd.f32 %v2773_v50, %v5201_v44  ;;  %3554 = vadd.xlane.f32.xlu1 %v3553_v41  ;;  %v3395_v36 = vmul.f32 %v5226_v59, %v3255_v45 }
 0x26f   : > { %v2775_v51 = vpop.f32.mrf.mxu1  ;;  %v3256_v63 = vsel %vm2982_vm10, %v2768_v31, %v3128_v27 }
 0x270   : > { %vm2984_vm12 = vcmp.ge.f32.partialorder %v2774_v3, 0.0  ;;  %v3130_v57 = vmul.f32 %v5208_v0, %v2774_v3  ;;  %v2776_v8 = vadd.f32 %v2775_v51, %v5211_v21  ;;  %v3556_v9 = vadd.f32 %v3395_v36, %v3394_v62 }
 0x271   : > { %v2777_v38 = vpop.f32.mrf.mxu1  ;;  %v3257_v11 = vsel %vm2983_vm11, %v2770_v56, %v3129_v1  ;;  %v3396_v7 = vmul.f32 %v5222_v55, %v3256_v63 }
 0x272   : > { %vm2985_vm13 = vcmp.ge.f32.partialorder %v2776_v8, 0.0  ;;  %v3131_v60 = vmul.f32 %v5214_v48, %v2776_v8  ;;  %v2778_v53 = vadd.f32 %v2777_v38, %v5201_v44  ;;  %3557 = vadd.xlane.f32.xlu0 %v3556_v9  ;;  %v3397_v61 = vmul.f32 %v5226_v59, %v3257_v11  ;;  %v3456_v6 = vpop.xlane.xlu0 %3455 }
 0x273   : > { %v2779_v15 = vpop.f32.mrf.mxu1  ;;  %v3258_v5 = vsel %vm2984_vm12, %v2774_v3, %v3130_v57  ;;  %v3653_v4 = vadd.f32 %v5706_v49, %v3456_v6 }
 0x274   : > { %vm2986_vm15 = vcmp.ge.f32.partialorder %v2778_v53, 0.0  ;;  %v3132_v16 = vmul.f32 %v5208_v0, %v2778_v53  ;;  %v2780_v10 = vadd.f32 %v2779_v15, %v5211_v21  ;;  %v3559_v22 = vadd.f32 %v3397_v61, %v3396_v7 }
 0x275   : > { %v2783_v17 = vpop.f32.mrf.mxu1  ;;  %v3259_v14 = vsel %vm2985_vm13, %v2776_v8, %v3131_v60  ;;  %v3398_v2 = vmul.f32 %v5222_v55, %v3258_v5  ;;  %3718 = vst.msk [vmem:[%s5714_s18] sm:$0xff] %vm3717_vm14, %v3653_v4 }
 0x276   : > { %vm2987_vm0 = vcmp.ge.f32.partialorder %v2780_v10, 0.0  ;;  %v3133_v54 = vmul.f32 %v5214_v48, %v2780_v10  ;;  %v2784_v18 = vadd.f32 %v2783_v17, %v5201_v44  ;;  %v3399_v24 = vmul.f32 %v5226_v59, %v3259_v14  ;;  %3560 = vadd.xlane.f32.xlu1 %v3559_v22 }
 0x277   : > { %v2785_v12 = vpop.f32.mrf.mxu1  ;;  %v3260_v25 = vsel %vm2986_vm15, %v2778_v53, %v3132_v16 }
 0x278   : > { %vm2988_vm1 = vcmp.ge.f32.partialorder %v2784_v18, 0.0  ;;  %v3134_v28 = vmul.f32 %v5208_v0, %v2784_v18  ;;  %v2786_v30 = vadd.f32 %v2785_v12, %v5211_v21  ;;  %v3562_v23 = vadd.f32 %v3399_v24, %v3398_v2 }
 0x279   : > { %v2787_v34 = vpop.f32.mrf.mxu1  ;;  %v3261_v35 = vsel %vm2987_vm0, %v2780_v10, %v3133_v54  ;;  %v3400_v33 = vmul.f32 %v5222_v55, %v3260_v25 }
 0x27a   : > { %vm2989_vm2 = vcmp.ge.f32.partialorder %v2786_v30, 0.0  ;;  %v3135_v37 = vmul.f32 %v5214_v48, %v2786_v30  ;;  %v2788_v39 = vadd.f32 %v2787_v34, %v5201_v44  ;;  %3563 = vadd.xlane.f32.xlu0 %v3562_v23  ;;  %v3401_v40 = vmul.f32 %v5226_v59, %v3261_v35 }
 0x27b   : > { %v2789_v42 = vpop.f32.mrf.mxu1  ;;  %v3262_v26 = vsel %vm2988_vm1, %v2784_v18, %v3134_v28 }
 0x27c   : > { %vm2990_vm3 = vcmp.ge.f32.partialorder %v2788_v39, 0.0  ;;  %v3136_v43 = vmul.f32 %v5208_v0, %v2788_v39  ;;  %v2790_v13 = vadd.f32 %v2789_v42, %v5211_v21  ;;  %v3565_v20 = vadd.f32 %v3401_v40, %v3400_v33  ;;  %v3459_v29 = vpop.xlane.xlu0 %3458 }
 0x27d   : > { %v2793_v46 = vpop.f32.mrf.mxu1  ;;  %v3263_v47 = vsel %vm2989_vm2, %v2786_v30, %v3135_v37  ;;  %v3654_v58 = vadd.f32 %v5706_v49, %v3459_v29  ;;  %v3402_v19 = vmul.f32 %v5222_v55, %v3262_v26 }
 0x27e   : > { %vm2991_vm4 = vcmp.ge.f32.partialorder %v2790_v13, 0.0  ;;  %v3137_v31 = vmul.f32 %v5214_v48, %v2790_v13  ;;  %v2794_v52 = vadd.f32 %v2793_v46, %v5201_v44  ;;  %3566 = vadd.xlane.f32.xlu1 %v3565_v20  ;;  %v3403_v27 = vmul.f32 %v5226_v59, %v3263_v47 }
 0x27f   : > { %v2795_v32 = vpop.f32.mrf.mxu1  ;;  %v3264_v56 = vsel %vm2990_vm3, %v2788_v39, %v3136_v43  ;;  %3719 = vst.msk [vmem:[%s5714_s18 + $0x8] sm:$0xff] %vm3717_vm14, %v3654_v58 }
 0x280   : > { %vm2992_vm5 = vcmp.ge.f32.partialorder %v2794_v52, 0.0  ;;  %v3138_v41 = vmul.f32 %v5208_v0, %v2794_v52  ;;  %v2796_v50 = vadd.f32 %v2795_v32, %v5211_v21  ;;  %v3265_v45 = vsel %vm2991_vm4, %v2790_v13, %v3137_v31  ;;  %v3462_v51 = vpop.xlane.xlu1 %3461 }
 0x281   : > { %v2797_v62 = vpop.f32.mrf.mxu1  ;;  %v3568_v1 = vadd.f32 %v3403_v27, %v3402_v19  ;;  %v3404_v3 = vmul.f32 %v5222_v55, %v3264_v56  ;;  %v3405_v36 = vmul.f32 %v5226_v59, %v3265_v45  ;;  %v3655_v9 = vadd.f32 %v5706_v49, %v3462_v51 }
 0x282   : > { %vm2993_vm6 = vcmp.ge.f32.partialorder %v2796_v50, 0.0  ;;  %v3139_v63 = vmul.f32 %v5214_v48, %v2796_v50  ;;  %v2798_v57 = vadd.f32 %v2797_v62, %v5201_v44  ;;  %v3266_v8 = vsel %vm2992_vm5, %v2794_v52, %v3138_v41 }
 0x283   : > { %3569 = vadd.xlane.f32.xlu0 %v3568_v1  ;;  %v2799_v38 = vpop.f32.mrf.mxu1  ;;  %v3571_v11 = vadd.f32 %v3405_v36, %v3404_v3  ;;  %3720 = vst.msk [vmem:[%s5714_s18 + $0x10] sm:$0xff] %vm3717_vm14, %v3655_v9  ;;  %v3406_v15 = vmul.f32 %v5222_v55, %v3266_v8 }
 0x284   : > { %vm2994_vm7 = vcmp.ge.f32.partialorder %v2798_v57, 0.0  ;;  %v3140_v60 = vmul.f32 %v5208_v0, %v2798_v57  ;;  %v2800_v53 = vadd.f32 %v2799_v38, %v5211_v21  ;;  %v3267_v61 = vsel %vm2993_vm6, %v2796_v50, %v3139_v63 }
 0x285   : > { %v2803_v6 = vpop.f32.mrf.mxu1  ;;  %3572 = vadd.xlane.f32.xlu1 %v3571_v11  ;;  %v3407_v7 = vmul.f32 %v5226_v59, %v3267_v61 }
 0x286   : > { %vm2995_vm8 = vcmp.ge.f32.partialorder %v2800_v53, 0.0  ;;  %v3141_v5 = vmul.f32 %v5214_v48, %v2800_v53  ;;  %v2804_v16 = vadd.f32 %v2803_v6, %v5201_v44  ;;  %v3268_v4 = vsel %vm2994_vm7, %v2798_v57, %v3140_v60 }
 0x287   : > { %v2805_v10 = vpop.f32.mrf.mxu1  ;;  %v3574_v17 = vadd.f32 %v3407_v7, %v3406_v15  ;;  %v3465_v22 = vpop.xlane.xlu1 %3464  ;;  %v3408_v12 = vmul.f32 %v5222_v55, %v3268_v4 }
 0x288   : > { %vm2996_vm9 = vcmp.ge.f32.partialorder %v2804_v16, 0.0  ;;  %v3142_v14 = vmul.f32 %v5208_v0, %v2804_v16  ;;  %v2806_v2 = vadd.f32 %v2805_v10, %v5211_v21  ;;  %v3269_v54 = vsel %vm2995_vm8, %v2800_v53, %v3141_v5 }
 0x289   : > { %v3656_v18 = vadd.f32 %v5706_v49, %v3465_v22  ;;  %v2807_v24 = vpop.f32.mrf.mxu1  ;;  %3575 = vadd.xlane.f32.xlu0 %v3574_v17  ;;  %v3409_v25 = vmul.f32 %v5226_v59, %v3269_v54 }
 0x28a   : > { %vm2997_vm10 = vcmp.ge.f32.partialorder %v2806_v2, 0.0  ;;  %v3143_v28 = vmul.f32 %v5214_v48, %v2806_v2  ;;  %v2808_v30 = vadd.f32 %v2807_v24, %v5201_v44  ;;  %v3270_v23 = vsel %vm2996_vm9, %v2804_v16, %v3142_v14 }
 0x28b   : > { %3721 = vst.msk [vmem:[%s5714_s18 + $0x18] sm:$0xff] %vm3717_vm14, %v3656_v18  ;;  %v2809_v34 = vpop.f32.mrf.mxu1  ;;  %v3577_v35 = vadd.f32 %v3409_v25, %v3408_v12  ;;  %v3468_v33 = vpop.xlane.xlu0 %3467  ;;  %v3410_v43 = vmul.f32 %v5222_v55, %v3270_v23 }
 0x28c   : > { %vm2998_vm11 = vcmp.ge.f32.partialorder %v2808_v30, 0.0  ;;  %v3144_v37 = vmul.f32 %v5208_v0, %v2808_v30  ;;  %v2810_v39 = vadd.f32 %v2809_v34, %v5211_v21  ;;  %v3271_v40 = vsel %vm2997_vm10, %v2806_v2, %v3143_v28 }
 0x28d   : > { %v3657_v42 = vadd.f32 %v5706_v49, %v3468_v33  ;;  %v2813_v26 = vpop.f32.mrf.mxu1  ;;  %3578 = vadd.xlane.f32.xlu1 %v3577_v35  ;;  %v3411_v13 = vmul.f32 %v5226_v59, %v3271_v40 }
 0x28e   : > { %vm2999_vm12 = vcmp.ge.f32.partialorder %v2810_v39, 0.0  ;;  %v3145_v20 = vmul.f32 %v5214_v48, %v2810_v39  ;;  %v2814_v29 = vadd.f32 %v2813_v26, %v5201_v44  ;;  %v3272_v46 = vsel %vm2998_vm11, %v2808_v30, %v3144_v37 }
 0x28f   : > { %3722 = vst.msk [vmem:[%s5714_s18 + $0x20] sm:$0xff] %vm3717_vm14, %v3657_v42  ;;  %v2815_v47 = vpop.f32.mrf.mxu1  ;;  %v3580_v58 = vadd.f32 %v3411_v13, %v3410_v43  ;;  %v3412_v27 = vmul.f32 %v5222_v55, %v3272_v46 }
 0x290   : > { %vm3000_vm13 = vcmp.ge.f32.partialorder %v2814_v29, 0.0  ;;  %v3146_v31 = vmul.f32 %v5208_v0, %v2814_v29  ;;  %v2816_v52 = vadd.f32 %v2815_v47, %v5211_v21  ;;  %v3273_v32 = vsel %vm2999_vm12, %v2810_v39, %v3145_v20 }
 0x291   : > { %v2817_v19 = vpop.f32.mrf.mxu1  ;;  %3581 = vadd.xlane.f32.xlu0 %v3580_v58  ;;  %v3413_v56 = vmul.f32 %v5226_v59, %v3273_v32  ;;  %v3471_v41 = vpop.xlane.xlu1 %3470 }
 0x292   : > { %vm3001_vm15 = vcmp.ge.f32.partialorder %v2816_v52, 0.0  ;;  %v3147_v50 = vmul.f32 %v5214_v48, %v2816_v52  ;;  %v2818_v45 = vadd.f32 %v2817_v19, %v5201_v44  ;;  %v3274_v62 = vsel %vm3000_vm13, %v2814_v29, %v3146_v31 }
 0x293   : > { %v3658_v1 = vadd.f32 %v5706_v49, %v3471_v41  ;;  %v2819_v3 = vpop.f32.mrf.mxu1  ;;  %v3583_v36 = vadd.f32 %v3413_v56, %v3412_v27  ;;  %v3414_v9 = vmul.f32 %v5222_v55, %v3274_v62 }
 0x294   : > { %vm3002_vm0 = vcmp.ge.f32.partialorder %v2818_v45, 0.0  ;;  %v3148_v51 = vmul.f32 %v5208_v0, %v2818_v45  ;;  %v2820_v63 = vadd.f32 %v2819_v3, %v5211_v21  ;;  %v3275_v57 = vsel %vm3001_vm15, %v2816_v52, %v3147_v50 }
 0x295   : > { %3723 = vst.msk [vmem:[%s5714_s18 + $0x28] sm:$0xff] %vm3717_vm14, %v3658_v1  ;;  %v2823_v8 = vpop.f32.mrf.mxu1  ;;  %3584 = vadd.xlane.f32.xlu1 %v3583_v36  ;;  %v3415_v38 = vmul.f32 %v5226_v59, %v3275_v57  ;;  %v3474_v11 = vpop.xlane.xlu0 %3473 }
 0x296   : > { %vm3003_vm1 = vcmp.ge.f32.partialorder %v2820_v63, 0.0  ;;  %v3149_v60 = vmul.f32 %v5214_v48, %v2820_v63  ;;  %v2824_v53 = vadd.f32 %v2823_v8, %v5201_v44  ;;  %v3276_v61 = vsel %vm3002_vm0, %v2818_v45, %v3148_v51 }
 0x297   : > { %v3659_v6 = vadd.f32 %v5706_v49, %v3474_v11  ;;  %v2825_v15 = vpop.f32.mrf.mxu1  ;;  %v3586_v7 = vadd.f32 %v3415_v38, %v3414_v9  ;;  %v3416_v17 = vmul.f32 %v5222_v55, %v3276_v61 }
 0x298   : > { %vm3004_vm2 = vcmp.ge.f32.partialorder %v2824_v53, 0.0  ;;  %v3150_v5 = vmul.f32 %v5208_v0, %v2824_v53  ;;  %v2826_v16 = vadd.f32 %v2825_v15, %v5211_v21  ;;  %v3277_v4 = vsel %vm3003_vm1, %v2820_v63, %v3149_v60 }
 0x299   : > { %3724 = vst.msk [vmem:[%s5714_s18 + $0x30] sm:$0xff] %vm3717_vm14, %v3659_v6  ;;  %v2827_v10 = vpop.f32.mrf.mxu1  ;;  %3587 = vadd.xlane.f32.xlu0 %v3586_v7  ;;  %v3417_v22 = vmul.f32 %v5226_v59, %v3277_v4 }
 0x29a   : > { %vm3005_vm3 = vcmp.ge.f32.partialorder %v2826_v16, 0.0  ;;  %v3151_v14 = vmul.f32 %v5214_v48, %v2826_v16  ;;  %v2828_v2 = vadd.f32 %v2827_v10, %v5201_v44  ;;  %v3278_v54 = vsel %vm3004_vm2, %v2824_v53, %v3150_v5 }
 0x29b   : > { %v2829_v18 = vpop.f32.mrf.mxu1  ;;  %v3589_v24 = vadd.f32 %v3417_v22, %v3416_v17  ;;  %v3418_v35 = vmul.f32 %v5222_v55, %v3278_v54 }
 0x29c   : > { %v3477_v12 = vpop.xlane.xlu1 %3476  ;;  %vm3006_vm4 = vcmp.ge.f32.partialorder %v2828_v2, 0.0  ;;  %v3152_v25 = vmul.f32 %v5208_v0, %v2828_v2  ;;  %v2830_v28 = vadd.f32 %v2829_v18, %v5211_v21  ;;  %v3279_v30 = vsel %vm3005_vm3, %v2826_v16, %v3151_v14 }
 0x29d   : > { %v3660_v23 = vadd.f32 %v5706_v49, %v3477_v12  ;;  %v2833_v34 = vpop.f32.mrf.mxu1  ;;  %3590 = vadd.xlane.f32.xlu1 %v3589_v24  ;;  %v3419_v33 = vmul.f32 %v5226_v59, %v3279_v30 }
 0x29e   : > { %vm3007_vm5 = vcmp.ge.f32.partialorder %v2830_v28, 0.0  ;;  %v3153_v37 = vmul.f32 %v5214_v48, %v2830_v28  ;;  %v2834_v39 = vadd.f32 %v2833_v34, %v5201_v44  ;;  %v3280_v40 = vsel %vm3006_vm4, %v2828_v2, %v3152_v25 }
 0x29f   : > { %3725 = vst.msk [vmem:[%s5714_s18 + $0x38] sm:$0xff] %vm3717_vm14, %v3660_v23  ;;  %v2835_v42 = vpop.f32.mrf.mxu1  ;;  %v3592_v26 = vadd.f32 %v3419_v33, %v3418_v35  ;;  %v3420_v58 = vmul.f32 %v5222_v55, %v3280_v40 }
 0x2a0   : > { %v3480_v43 = vpop.xlane.xlu0 %3479  ;;  %vm3008_vm6 = vcmp.ge.f32.partialorder %v2834_v39, 0.0  ;;  %v3154_v13 = vmul.f32 %v5208_v0, %v2834_v39  ;;  %v2836_v20 = vadd.f32 %v2835_v42, %v5211_v21  ;;  %v3281_v29 = vsel %vm3007_vm5, %v2830_v28, %v3153_v37 }
 0x2a1   : > { %v3661_v46 = vadd.f32 %v5706_v49, %v3480_v43  ;;  %v2837_v47 = vpop.f32.mrf.mxu1  ;;  %3593 = vadd.xlane.f32.xlu0 %v3592_v26  ;;  %v3421_v31 = vmul.f32 %v5226_v59, %v3281_v29 }
 0x2a2   : > { %vm3009_vm7 = vcmp.ge.f32.partialorder %v2836_v20, 0.0  ;;  %v3155_v52 = vmul.f32 %v5214_v48, %v2836_v20  ;;  %v2838_v32 = vadd.f32 %v2837_v47, %v5201_v44  ;;  %v3282_v19 = vsel %vm3008_vm6, %v2834_v39, %v3154_v13 }
 0x2a3   : > { %3726 = vst.msk [vmem:[%s5714_s18 + $0x40] sm:$0xff] %vm3717_vm14, %v3661_v46  ;;  %v2839_v27 = vpop.f32.mrf.mxu1  ;;  %v3595_v56 = vadd.f32 %v3421_v31, %v3420_v58  ;;  %v3422_v1 = vmul.f32 %v5222_v55, %v3282_v19 }
 0x2a4   : > { %vm3010_vm8 = vcmp.ge.f32.partialorder %v2838_v32, 0.0  ;;  %v3156_v41 = vmul.f32 %v5208_v0, %v2838_v32  ;;  %v2840_v50 = vadd.f32 %v2839_v27, %v5211_v21  ;;  %v3283_v45 = vsel %vm3009_vm7, %v2836_v20, %v3155_v52 }
 0x2a5   : > { %v2843_v62 = vpop.f32.mrf.mxu1  ;;  %3596 = vadd.xlane.f32.xlu1 %v3595_v56  ;;  %v3423_v3 = vmul.f32 %v5226_v59, %v3283_v45 }
 0x2a6   : > { %v3483_v36 = vpop.xlane.xlu1 %3482  ;;  %vm3011_vm9 = vcmp.ge.f32.partialorder %v2840_v50, 0.0  ;;  %v3157_v51 = vmul.f32 %v5214_v48, %v2840_v50  ;;  %v2844_v63 = vadd.f32 %v2843_v62, %v5201_v44  ;;  %v3284_v57 = vsel %vm3010_vm8, %v2838_v32, %v3156_v41 }
 0x2a7   : > { %v3662_v8 = vadd.f32 %v5706_v49, %v3483_v36  ;;  %v2845_v9 = vpop.f32.mrf.mxu1  ;;  %v3598_v38 = vadd.f32 %v3423_v3, %v3422_v1  ;;  %v3424_v15 = vmul.f32 %v5222_v55, %v3284_v57 }
 0x2a8   : > { %vm3012_vm10 = vcmp.ge.f32.partialorder %v2844_v63, 0.0  ;;  %v3158_v11 = vmul.f32 %v5208_v0, %v2844_v63  ;;  %v2846_v60 = vadd.f32 %v2845_v9, %v5211_v21  ;;  %v3285_v53 = vsel %vm3011_vm9, %v2840_v50, %v3157_v51 }
 0x2a9   : > { %3727 = vst.msk [vmem:[%s5714_s18 + $0x48] sm:$0xff] %vm3717_vm14, %v3662_v8  ;;  %v3486_v61 = vpop.xlane.xlu0 %3485  ;;  %v2847_v6 = vpop.f32.mrf.mxu1  ;;  %3599 = vadd.xlane.f32.xlu0 %v3598_v38  ;;  %v3425_v7 = vmul.f32 %v5226_v59, %v3285_v53 }
 0x2aa   : > { %v3663_v5 = vadd.f32 %v5706_v49, %v3486_v61  ;;  %vm3013_vm11 = vcmp.ge.f32.partialorder %v2846_v60, 0.0  ;;  %v3159_v16 = vmul.f32 %v5214_v48, %v2846_v60  ;;  %v2848_v4 = vadd.f32 %v2847_v6, %v5201_v44 }
 0x2ab   : > { %v2849_v10 = vpop.f32.mrf.mxu1  ;;  %v3601_v17 = vadd.f32 %v3425_v7, %v3424_v15  ;;  %v3286_v22 = vsel %vm3012_vm10, %v2844_v63, %v3158_v11 }
 0x2ac   : > { %3728 = vst.msk [vmem:[%s5714_s18 + $0x50] sm:$0xff] %vm3717_vm14, %v3663_v5  ;;  %v3489_v14 = vpop.xlane.xlu1 %3488  ;;  %vm3014_vm12 = vcmp.ge.f32.partialorder %v2848_v4, 0.0  ;;  %v3160_v2 = vmul.f32 %v5208_v0, %v2848_v4  ;;  %v2850_v54 = vadd.f32 %v2849_v10, %v5211_v21  ;;  %v3287_v18 = vsel %vm3013_vm11, %v2846_v60, %v3159_v16 }
 0x2ad   : > { %v3664_v24 = vadd.f32 %v5706_v49, %v3489_v14  ;;  %3602 = vadd.xlane.f32.xlu1 %v3601_v17  ;;  %v3426_v12 = vmul.f32 %v5222_v55, %v3286_v22  ;;  %v3427_v25 = vmul.f32 %v5226_v59, %v3287_v18  ;;  %v2853_v34 = vpop.f32.mrf.mxu1 }
 0x2ae   : > { %vm3015_vm13 = vcmp.ge.f32.partialorder %v2850_v54, 0.0  ;;  %v3161_v28 = vmul.f32 %v5214_v48, %v2850_v54  ;;  %v3288_v30 = vsel %vm3014_vm12, %v2848_v4, %v3160_v2  ;;  %v2854_v37 = vadd.f32 %v2853_v34, %v5201_v44 }
 0x2af   : > { %3729 = vst.msk [vmem:[%s5714_s18 + $0x58] sm:$0xff] %vm3717_vm14, %v3664_v24  ;;  %v3492_v23 = vpop.xlane.xlu0 %3491  ;;  %v3604_v35 = vadd.f32 %v3427_v25, %v3426_v12  ;;  %v2855_v40 = vpop.f32.mrf.mxu1  ;;  %v3428_v42 = vmul.f32 %v5222_v55, %v3288_v30 }
 0x2b0   : > { %v3665_v33 = vadd.f32 %v5706_v49, %v3492_v23  ;;  %v3289_v39 = vsel %vm3015_vm13, %v2850_v54, %v3161_v28  ;;  %vm3016_vm15 = vcmp.ge.f32.partialorder %v2854_v37, 0.0  ;;  %v3162_v13 = vmul.f32 %v5208_v0, %v2854_v37 }
 0x2b1   : > { %3605 = vadd.xlane.f32.xlu0 %v3604_v35  ;;  %v3429_v26 = vmul.f32 %v5226_v59, %v3289_v39  ;;  %v2856_v20 = vadd.f32 %v2855_v40, %v5211_v21  ;;  %v2857_v46 = vpop.f32.mrf.mxu1 }
 0x2b2   : > { %3730 = vst.msk [vmem:[%s5714_s18 + $0x60] sm:$0xff] %vm3717_vm14, %v3665_v33  ;;  %v3495_v43 = vpop.xlane.xlu1 %3494  ;;  %v2858_v52 = vadd.f32 %v2857_v46, %v5201_v44  ;;  %v3290_v32 = vsel %vm3016_vm15, %v2854_v37, %v3162_v13 }
 0x2b3   : > { %v3666_v29 = vadd.f32 %v5706_v49, %v3495_v43  ;;  %v3607_v47 = vadd.f32 %v3429_v26, %v3428_v42  ;;  %vm3017_vm0 = vcmp.ge.f32.partialorder %v2856_v20, 0.0  ;;  %v3163_v31 = vmul.f32 %v5214_v48, %v2856_v20  ;;  %v2859_v27 = vpop.f32.mrf.mxu1 }
 0x2b4   : > { %v3498_v58 = vpop.xlane.xlu0 %3497  ;;  %vm3018_vm1 = vcmp.ge.f32.partialorder %v2858_v52, 0.0  ;;  %v3164_v56 = vmul.f32 %v5208_v0, %v2858_v52  ;;  %v2860_v41 = vadd.f32 %v2859_v27, %v5211_v21  ;;  %v3430_v62 = vmul.f32 %v5222_v55, %v3290_v32 }
 0x2b5   : > { %3731 = vst.msk [vmem:[%s5714_s18 + $0x68] sm:$0xff] %vm3717_vm14, %v3666_v29  ;;  %v3667_v19 = vadd.f32 %v5706_v49, %v3498_v58  ;;  %3608 = vadd.xlane.f32.xlu1 %v3607_v47  ;;  %v3291_v50 = vsel %vm3017_vm0, %v2856_v20, %v3163_v31 }
 0x2b6   : > { %v3431_v1 = vmul.f32 %v5226_v59, %v3291_v50  ;;  %vm3019_vm2 = vcmp.ge.f32.partialorder %v2860_v41, 0.0  ;;  %v3165_v36 = vmul.f32 %v5214_v48, %v2860_v41  ;;  %v3292_v51 = vsel %vm3018_vm1, %v2858_v52, %v3164_v56 }
 0x2b7   : > { %3732 = vst.msk [vmem:[%s5714_s18 + $0x70] sm:$0xff] %vm3717_vm14, %v3667_v19  ;;  %v3501_v45 = vpop.xlane.xlu1 %3500  ;;  %v3432_v38 = vmul.f32 %v5222_v55, %v3292_v51 }
 0x2b8   : > { %v3668_v3 = vadd.f32 %v5706_v49, %v3501_v45  ;;  %v3610_v57 = vadd.f32 %v3431_v1, %v3430_v62  ;;  %v3293_v9 = vsel %vm3019_vm2, %v2860_v41, %v3165_v36 }
 0x2b9   : > { %v3504_v63 = vpop.xlane.xlu0 %3503  ;;  %v3433_v11 = vmul.f32 %v5226_v59, %v3293_v9 }
 0x2ba   : > { %3733 = vst.msk [vmem:[%s5714_s18 + $0x78] sm:$0xff] %vm3717_vm14, %v3668_v3  ;;  %v3669_v8 = vadd.f32 %v5706_v49, %v3504_v63  ;;  %3611 = vadd.xlane.f32.xlu0 %v3610_v57 }
 0x2bb   : > { %v2863_v60 = vpop.f32.mrf.mxu1  ;;  %v3613_v6 = vadd.f32 %v3433_v11, %v3432_v38 }
 0x2bc   : > { %3734 = vst.msk [vmem:[%s5714_s18 + $0x80] sm:$0xff] %vm3717_vm14, %v3669_v8  ;;  %v2864_v53 = vadd.f32 %v2863_v60, %v5201_v44 }
 0x2bd   : > { %v3507_v61 = vpop.xlane.xlu1 %3506  ;;  %v2865_v7 = vpop.f32.mrf.mxu1  ;;  %3614 = vadd.xlane.f32.xlu1 %v3613_v6 }
 0x2be   : > { %v3670_v15 = vadd.f32 %v5706_v49, %v3507_v61  ;;  %v3510_v5 = vpop.xlane.xlu0 %3509  ;;  %vm3020_vm3 = vcmp.ge.f32.partialorder %v2864_v53, 0.0  ;;  %v3166_v16 = vmul.f32 %v5208_v0, %v2864_v53  ;;  %v2866_v4 = vadd.f32 %v2865_v7, %v5211_v21 }
 0x2bf   : > { %v3671_v10 = vadd.f32 %v5706_v49, %v3510_v5  ;;  %v2867_v17 = vpop.f32.mrf.mxu1 }
 0x2c0   : > { %3735 = vst.msk [vmem:[%s5714_s18 + $0x88] sm:$0xff] %vm3717_vm14, %v3670_v15  ;;  %vm3021_vm4 = vcmp.ge.f32.partialorder %v2866_v4, 0.0  ;;  %v3167_v22 = vmul.f32 %v5214_v48, %v2866_v4  ;;  %v2868_v14 = vadd.f32 %v2867_v17, %v5201_v44  ;;  %v3294_v54 = vsel %vm3020_vm3, %v2864_v53, %v3166_v16 }
 0x2c1   : > { %3736 = vst.msk [vmem:[%s5714_s18 + $0x90] sm:$0xff] %vm3717_vm14, %v3671_v10  ;;  %v3513_v2 = vpop.xlane.xlu1 %3512  ;;  %v2869_v18 = vpop.f32.mrf.mxu1  ;;  %v3434_v23 = vmul.f32 %v5222_v55, %v3294_v54 }
 0x2c2   : > { %v3672_v24 = vadd.f32 %v5706_v49, %v3513_v2  ;;  %vm3022_vm5 = vcmp.ge.f32.partialorder %v2868_v14, 0.0  ;;  %v3168_v12 = vmul.f32 %v5208_v0, %v2868_v14  ;;  %v2870_v25 = vadd.f32 %v2869_v18, %v5211_v21 }
 0x2c3   : > { %v3295_v28 = vsel %vm3021_vm4, %v2866_v4, %v3167_v22  ;;  %v3516_v30 = vpop.xlane.xlu0 %3515 }
 0x2c4   : > { %3737 = vst.msk [vmem:[%s5714_s18 + $0x98] sm:$0xff] %vm3717_vm14, %v3672_v24  ;;  %v3435_v34 = vmul.f32 %v5226_v59, %v3295_v28  ;;  %v3673_v35 = vadd.f32 %v5706_v49, %v3516_v30  ;;  %vm3023_vm6 = vcmp.ge.f32.partialorder %v2870_v25, 0.0  ;;  %v3169_v33 = vmul.f32 %v5214_v48, %v2870_v25 }
 0x2c5   : > { %v3296_v37 = vsel %vm3022_vm5, %v2868_v14, %v3168_v12  ;;  %v2873_v39 = vpop.f32.mrf.mxu1 }
 0x2c6   : > { %v3616_v40 = vadd.f32 %v3435_v34, %v3434_v23  ;;  %3738 = vst.msk [vmem:[%s5714_s18 + $0xa0] sm:$0xff] %vm3717_vm14, %v3673_v35  ;;  %v2874_v42 = vadd.f32 %v2873_v39, %v5201_v44  ;;  %v3297_v26 = vsel %vm3023_vm6, %v2870_v25, %v3169_v33  ;;  %v3436_v20 = vmul.f32 %v5222_v55, %v3296_v37 }
 0x2c7   : > { %v3519_v43 = vpop.xlane.xlu1 %3518  ;;  %v2875_v13 = vpop.f32.mrf.mxu1  ;;  %v3437_v29 = vmul.f32 %v5226_v59, %v3297_v26 }
 0x2c8   : > { %3617 = vadd.xlane.f32.xlu0 %v3616_v40  ;;  %v3674_v46 = vadd.f32 %v5706_v49, %v3519_v43  ;;  %vm3024_vm7 = vcmp.ge.f32.partialorder %v2874_v42, 0.0  ;;  %v3170_v47 = vmul.f32 %v5208_v0, %v2874_v42  ;;  %v2876_v58 = vadd.f32 %v2875_v13, %v5211_v21 }
 0x2c9   : > { %v2877_v31 = vpop.f32.mrf.mxu1  ;;  %v3619_v52 = vadd.f32 %v3437_v29, %v3436_v20 }
 0x2ca   : > { %3739 = vst.msk [vmem:[%s5714_s18 + $0xa8] sm:$0xff] %vm3717_vm14, %v3674_v46  ;;  %vm3025_vm8 = vcmp.ge.f32.partialorder %v2876_v58, 0.0  ;;  %v3171_v32 = vmul.f32 %v5214_v48, %v2876_v58  ;;  %v2878_v19 = vadd.f32 %v2877_v31, %v5201_v44  ;;  %v3298_v27 = vsel %vm3024_vm7, %v2874_v42, %v3170_v47 }
 0x2cb   : > { %v3522_v56 = vpop.xlane.xlu0 %3521  ;;  %v2879_v41 = vpop.f32.mrf.mxu1  ;;  %3620 = vadd.xlane.f32.xlu1 %v3619_v52  ;;  %v3438_v3 = vmul.f32 %v5222_v55, %v3298_v27 }
 0x2cc   : > { %v3675_v50 = vadd.f32 %v5706_v49, %v3522_v56  ;;  %vm3026_vm9 = vcmp.ge.f32.partialorder %v2878_v19, 0.0  ;;  %v3172_v45 = vmul.f32 %v5208_v0, %v2878_v19  ;;  %v2880_v62 = vadd.f32 %v2879_v41, %v5211_v21 }
 0x2cd   : > { %v3299_v1 = vsel %vm3025_vm8, %v2876_v58, %v3171_v32 }
 0x2ce   : > { %v3439_v36 = vmul.f32 %v5226_v59, %v3299_v1  ;;  %3740 = vst.msk [vmem:[%s5714_s18 + $0xb0] sm:$0xff] %vm3717_vm14, %v3675_v50  ;;  %vm3027_vm10 = vcmp.ge.f32.partialorder %v2880_v62, 0.0  ;;  %v3173_v51 = vmul.f32 %v5214_v48, %v2880_v62  ;;  %v3300_v63 = vsel %vm3026_vm9, %v2878_v19, %v3172_v45 }
 0x2cf   : > { %v3525_v57 = vpop.xlane.xlu1 %3524  ;;  %v3440_v61 = vmul.f32 %v5222_v55, %v3300_v63 }
 0x2d0   : > { %v2883_v8 = vpop.f32.mrf.mxu1  ;;  %v3622_v9 = vadd.f32 %v3439_v36, %v3438_v3  ;;  %v3676_v38 = vadd.f32 %v5706_v49, %v3525_v57  ;;  %v3301_v60 = vsel %vm3027_vm10, %v2880_v62, %v3173_v51 }
 0x2d1   : > { %v2884_v11 = vadd.f32 %v2883_v8, %v5201_v44  ;;  %v3441_v6 = vmul.f32 %v5226_v59, %v3301_v60 }
 0x2d2   : > { %v2885_v53 = vpop.f32.mrf.mxu1  ;;  %3623 = vadd.xlane.f32.xlu0 %v3622_v9  ;;  %3741 = vst.msk [vmem:[%s5714_s18 + $0xb8] sm:$0xff] %vm3717_vm14, %v3676_v38 }
 0x2d3   : > { %vm3028_vm11 = vcmp.ge.f32.partialorder %v2884_v11, 0.0  ;;  %v3174_v15 = vmul.f32 %v5208_v0, %v2884_v11  ;;  %v2886_v7 = vadd.f32 %v2885_v53, %v5211_v21  ;;  %v3528_v5 = vpop.xlane.xlu0 %3527  ;;  %v3625_v4 = vadd.f32 %v3441_v6, %v3440_v61 }
 0x2d4   : > { %v2887_v16 = vpop.f32.mrf.mxu1  ;;  %v3677_v10 = vadd.f32 %v5706_v49, %v3528_v5 }
 0x2d5   : > { %vm3029_vm12 = vcmp.ge.f32.partialorder %v2886_v7, 0.0  ;;  %v3175_v17 = vmul.f32 %v5214_v48, %v2886_v7  ;;  %v2888_v22 = vadd.f32 %v2887_v16, %v5201_v44  ;;  %v3302_v14 = vsel %vm3028_vm11, %v2884_v11, %v3174_v15  ;;  %3626 = vadd.xlane.f32.xlu1 %v3625_v4 }
 0x2d6   : > { %v2889_v2 = vpop.f32.mrf.mxu1  ;;  %3742 = vst.msk [vmem:[%s5714_s18 + $0xc0] sm:$0xff] %vm3717_vm14, %v3677_v10  ;;  %v3442_v25 = vmul.f32 %v5222_v55, %v3302_v14 }
 0x2d7   : > { %vm3030_vm13 = vcmp.ge.f32.partialorder %v2888_v22, 0.0  ;;  %v3176_v54 = vmul.f32 %v5208_v0, %v2888_v22  ;;  %v2890_v18 = vadd.f32 %v2889_v2, %v5211_v21  ;;  %v3303_v24 = vsel %vm3029_vm12, %v2886_v7, %v3175_v17  ;;  %v3531_v12 = vpop.xlane.xlu1 %3530 }
 0x2d8   : > { %v3443_v28 = vmul.f32 %v5226_v59, %v3303_v24  ;;  %v3678_v30 = vadd.f32 %v5706_v49, %v3531_v12 }
 0x2d9   : > { %vm3031_vm15 = vcmp.ge.f32.partialorder %v2890_v18, 0.0  ;;  %v3177_v23 = vmul.f32 %v5214_v48, %v2890_v18  ;;  %v3304_v34 = vsel %vm3030_vm13, %v2888_v22, %v3176_v54 }
 0x2da   : > { %v2893_v35 = vpop.f32.mrf.mxu1  ;;  %v3628_v33 = vadd.f32 %v3443_v28, %v3442_v25  ;;  %3743 = vst.msk [vmem:[%s5714_s18 + $0xc8] sm:$0xff] %vm3717_vm14, %v3678_v30  ;;  %v3444_v26 = vmul.f32 %v5222_v55, %v3304_v34 }
 0x2db   : > { %v2894_v37 = vadd.f32 %v2893_v35, %v5201_v44  ;;  %v3305_v39 = vsel %vm3031_vm15, %v2890_v18, %v3177_v23  ;;  %v3534_v40 = vpop.xlane.xlu0 %3533 }
 0x2dc   : > { %v2895_v42 = vpop.f32.mrf.mxu1  ;;  %3629 = vadd.xlane.f32.xlu0 %v3628_v33  ;;  %v3445_v43 = vmul.f32 %v5226_v59, %v3305_v39  ;;  %v3679_v13 = vadd.f32 %v5706_v49, %v3534_v40 }
 0x2dd   : > { %vm3032_vm0 = vcmp.ge.f32.partialorder %v2894_v37, 0.0  ;;  %v3178_v20 = vmul.f32 %v5208_v0, %v2894_v37  ;;  %v2896_v29 = vadd.f32 %v2895_v42, %v5211_v21 }
 0x2de   : > { %v2897_v46 = vpop.f32.mrf.mxu1  ;;  %v3631_v47 = vadd.f32 %v3445_v43, %v3444_v26  ;;  %3744 = vst.msk [vmem:[%s5714_s18 + $0xd0] sm:$0xff] %vm3717_vm14, %v3679_v13 }
 0x2df   : > { %vm3033_vm1 = vcmp.ge.f32.partialorder %v2896_v29, 0.0  ;;  %v3179_v58 = vmul.f32 %v5214_v48, %v2896_v29  ;;  %v2898_v31 = vadd.f32 %v2897_v46, %v5201_v44  ;;  %v3306_v52 = vsel %vm3032_vm0, %v2894_v37, %v3178_v20  ;;  %v3537_v32 = vpop.xlane.xlu1 %3536 }
 0x2e0   : > { %v2899_v19 = vpop.f32.mrf.mxu1  ;;  %3632 = vadd.xlane.f32.xlu1 %v3631_v47  ;;  %v3680_v27 = vadd.f32 %v5706_v49, %v3537_v32  ;;  %v3446_v62 = vmul.f32 %v5222_v55, %v3306_v52 }
 0x2e1   : > { %vm3034_vm2 = vcmp.ge.f32.partialorder %v2898_v31, 0.0  ;;  %v3180_v56 = vmul.f32 %v5208_v0, %v2898_v31  ;;  %v2900_v41 = vadd.f32 %v2899_v19, %v5211_v21  ;;  %v3307_v50 = vsel %vm3033_vm1, %v2896_v29, %v3179_v58  ;;  %v6000_v58 = vld [vmem:[#allocation3] ss:$0 sm:$0xff] }
 0x2e2   : > { %v2903_v45 = vpop.f32.mrf.mxu1  ;;  %v3447_v1 = vmul.f32 %v5226_v59, %v3307_v50  ;;  %3745 = vst.msk [vmem:[%s5714_s18 + $0xd8] sm:$0xff] %vm3717_vm14, %v3680_v27 }
 0x2e3   : > { %vm3035_vm3 = vcmp.ge.f32.partialorder %v2900_v41, 0.0  ;;  %v3181_v3 = vmul.f32 %v5214_v48, %v2900_v41  ;;  %v2904_v36 = vadd.f32 %v2903_v45, %v5201_v44  ;;  %v3308_v51 = vsel %vm3034_vm2, %v2898_v31, %v3180_v56  ;;  %v3540_v63 = vpop.xlane.xlu0 %3539 }
 0x2e4   : > { %v2905_v57 = vpop.f32.mrf.mxu1  ;;  %v3634_v8 = vadd.f32 %v3447_v1, %v3446_v62  ;;  %v3681_v9 = vadd.f32 %v5706_v49, %v3540_v63  ;;  %v3448_v61 = vmul.f32 %v5222_v55, %v3308_v51 }
 0x2e5   : > { %vm3036_vm4 = vcmp.ge.f32.partialorder %v2904_v36, 0.0  ;;  %v3182_v38 = vmul.f32 %v5208_v0, %v2904_v36  ;;  %v2906_v11 = vadd.f32 %v2905_v57, %v5211_v21  ;;  %v3309_v60 = vsel %vm3035_vm3, %v2900_v41, %v3181_v3 }
 0x2e6   : > { %v2907_v53 = vpop.f32.mrf.mxu1  ;;  %3635 = vadd.xlane.f32.xlu0 %v3634_v8  ;;  %v3449_v6 = vmul.f32 %v5226_v59, %v3309_v60  ;;  %3746 = vst.msk [vmem:[%s5714_s18 + $0xe0] sm:$0xff] %vm3717_vm14, %v3681_v9 }
 0x2e7   : > { %vm3037_vm5 = vcmp.ge.f32.partialorder %v2906_v11, 0.0  ;;  %v3183_v15 = vmul.f32 %v5214_v48, %v2906_v11  ;;  %v2908_v7 = vadd.f32 %v2907_v53, %v5201_v44  ;;  %v3310_v5 = vsel %vm3036_vm4, %v2904_v36, %v3182_v38  ;;  %v3543_v16 = vpop.xlane.xlu1 %3542 }
 0x2e8   : > { %v2909_v4 = vpop.f32.mrf.mxu1  ;;  %v3637_v10 = vadd.f32 %v3449_v6, %v3448_v61  ;;  %v3682_v17 = vadd.f32 %v5706_v49, %v3543_v16  ;;  %v3450_v54 = vmul.f32 %v5222_v55, %v3310_v5 }
 0x2e9   : > { %vm3038_vm6 = vcmp.ge.f32.partialorder %v2908_v7, 0.0  ;;  %v3184_v22 = vmul.f32 %v5208_v0, %v2908_v7  ;;  %v2910_v14 = vadd.f32 %v2909_v4, %v5211_v21  ;;  %v3311_v2 = vsel %vm3037_vm5, %v2906_v11, %v3183_v15 }
 0x2ea   : > { %3638 = vadd.xlane.f32.xlu1 %v3637_v10  ;;  %v3451_v18 = vmul.f32 %v5226_v59, %v3311_v2  ;;  %3747 = vst.msk [vmem:[%s5714_s18 + $0xe8] sm:$0xff] %vm3717_vm14, %v3682_v17 }
 0x2eb   : > { %vm3039_vm7 = vcmp.ge.f32.partialorder %v2910_v14, 0.0  ;;  %v3185_v44 = vmul.f32 %v5214_v48, %v2910_v14  ;;  %v3312_v24 = vsel %vm3038_vm6, %v2908_v7, %v3184_v22  ;;  %v3546_v12 = vpop.xlane.xlu0 %3545 }
 0x2ec   : > { %v3640_v25 = vadd.f32 %v3451_v18, %v3450_v54  ;;  %v3683_v0 = vadd.f32 %v5706_v49, %v3546_v12  ;;  %v3452_v28 = vmul.f32 %v5222_v55, %v3312_v24 }
 0x2ed   : > { %v3313_v21 = vsel %vm3039_vm7, %v2910_v14, %v3185_v44 }
 0x2ee   : > { %3641 = vadd.xlane.f32.xlu0 %v3640_v25  ;;  %v3453_v30 = vmul.f32 %v5226_v59, %v3313_v21  ;;  %3748 = vst.msk [vmem:[%s5714_s18 + $0xf0] sm:$0xff] %vm3717_vm14, %v3683_v0 }
 0x2ef   : > { %v3549_v23 = vpop.xlane.xlu1 %3548 }
 0x2f0   : > { %v3643_v34 = vadd.f32 %v3453_v30, %v3452_v28  ;;  %v3684_v48 = vadd.f32 %v5706_v49, %v3549_v23 }
 0x2f2   : > { %3644 = vadd.xlane.f32.xlu1 %v3643_v34  ;;  %3749 = vst.msk [vmem:[%s5714_s18 + $0xf8] sm:$0xff] %vm3717_vm14, %v3684_v48 }
 0x2f3   : > { %v3552_v35 = vpop.xlane.xlu0 %3551 }
 0x2f4   : > { %v3685_v33 = vadd.f32 %v5706_v49, %v3552_v35 }
 0x2f6   : > { %3750 = vst.msk [vmem:[%s5714_s18 + $0x100] sm:$0xff] %vm3717_vm14, %v3685_v33 }
 0x2f7   : > { %v3555_v55 = vpop.xlane.xlu1 %3554 }
 0x2f8   : > { %v3686_v59 = vadd.f32 %v5706_v49, %v3555_v55 }
 0x2fa   : > { %3751 = vst.msk [vmem:[%s5714_s18 + $0x108] sm:$0xff] %vm3717_vm14, %v3686_v59 }
 0x2fb   : > { %v3558_v37 = vpop.xlane.xlu0 %3557 }
 0x2fc   : > { %v3687_v39 = vadd.f32 %v5706_v49, %v3558_v37 }
 0x2fe   : > { %3752 = vst.msk [vmem:[%s5714_s18 + $0x110] sm:$0xff] %vm3717_vm14, %v3687_v39 }
 0x2ff   : > { %v3561_v40 = vpop.xlane.xlu1 %3560 }
 0x300   : > { %v3688_v42 = vadd.f32 %v5706_v49, %v3561_v40 }
 0x302   : > { %3753 = vst.msk [vmem:[%s5714_s18 + $0x118] sm:$0xff] %vm3717_vm14, %v3688_v42 }
 0x303   : > { %v3564_v26 = vpop.xlane.xlu0 %3563 }
 0x304   : > { %v3689_v43 = vadd.f32 %v5706_v49, %v3564_v26 }
 0x306   : > { %3754 = vst.msk [vmem:[%s5714_s18 + $0x120] sm:$0xff] %vm3717_vm14, %v3689_v43 }
 0x307   : > { %v3567_v13 = vpop.xlane.xlu1 %3566 }
 0x308   : > { %v3690_v20 = vadd.f32 %v5706_v49, %v3567_v13 }
 0x30a   : > { %3755 = vst.msk [vmem:[%s5714_s18 + $0x128] sm:$0xff] %vm3717_vm14, %v3690_v20 }
 0x30c   : > { %v3570_v29 = vpop.xlane.xlu0 %3569 }
 0x30d   : > { %v3691_v46 = vadd.f32 %v5706_v49, %v3570_v29 }
 0x30e   : > { %v3573_v47 = vpop.xlane.xlu1 %3572 }
 0x30f   : > { %3756 = vst.msk [vmem:[%s5714_s18 + $0x130] sm:$0xff] %vm3717_vm14, %v3691_v46  ;;  %v3692_v31 = vadd.f32 %v6000_v58, %v3573_v47 }
 0x311   : > { %3757 = vst.msk [vmem:[%s5714_s18 + $0x138] sm:$0xff] %vm3717_vm14, %v3692_v31 }
 0x312   : > { %v3576_v52 = vpop.xlane.xlu0 %3575 }
 0x313   : > { %v3693_v32 = vadd.f32 %v6000_v58, %v3576_v52 }
 0x315   : > { %3758 = vst.msk [vmem:[%s5714_s18 + $0x140] sm:$0xff] %vm3717_vm14, %v3693_v32 }
 0x316   : > { %v3579_v19 = vpop.xlane.xlu1 %3578 }
 0x317   : > { %v3694_v49 = vadd.f32 %v6000_v58, %v3579_v19 }
 0x319   : > { %3759 = vst.msk [vmem:[%s5714_s18 + $0x148] sm:$0xff] %vm3717_vm14, %v3694_v49 }
 0x31a   : > { %v3582_v27 = vpop.xlane.xlu0 %3581 }
 0x31b   : > { %v3695_v56 = vadd.f32 %v6000_v58, %v3582_v27 }
 0x31d   : > { %3760 = vst.msk [vmem:[%s5714_s18 + $0x150] sm:$0xff] %vm3717_vm14, %v3695_v56 }
 0x31e   : > { %v3585_v41 = vpop.xlane.xlu1 %3584 }
 0x31f   : > { %v3696_v50 = vadd.f32 %v6000_v58, %v3585_v41 }
 0x321   : > { %3761 = vst.msk [vmem:[%s5714_s18 + $0x158] sm:$0xff] %vm3717_vm14, %v3696_v50 }
 0x322   : > { %v3588_v45 = vpop.xlane.xlu0 %3587 }
 0x323   : > { %v3697_v62 = vadd.f32 %v6000_v58, %v3588_v45 }
 0x325   : > { %3762 = vst.msk [vmem:[%s5714_s18 + $0x160] sm:$0xff] %vm3717_vm14, %v3697_v62 }
 0x326   : > { %v3591_v1 = vpop.xlane.xlu1 %3590 }
 0x327   : > { %v3698_v3 = vadd.f32 %v6000_v58, %v3591_v1 }
 0x329   : > { %3763 = vst.msk [vmem:[%s5714_s18 + $0x168] sm:$0xff] %vm3717_vm14, %v3698_v3 }
 0x32a   : > { %v3594_v36 = vpop.xlane.xlu0 %3593 }
 0x32b   : > { %v3699_v51 = vadd.f32 %v6000_v58, %v3594_v36 }
 0x32d   : > { %3764 = vst.msk [vmem:[%s5714_s18 + $0x170] sm:$0xff] %vm3717_vm14, %v3699_v51 }
 0x32e   : > { %v3597_v63 = vpop.xlane.xlu1 %3596 }
 0x32f   : > { %v3700_v57 = vadd.f32 %v6000_v58, %v3597_v63 }
 0x331   : > { %3765 = vst.msk [vmem:[%s5714_s18 + $0x178] sm:$0xff] %vm3717_vm14, %v3700_v57 }
 0x332   : > { %v3600_v8 = vpop.xlane.xlu0 %3599 }
 0x333   : > { %v3701_v9 = vadd.f32 %v6000_v58, %v3600_v8 }
 0x335   : > { %3766 = vst.msk [vmem:[%s5714_s18 + $0x180] sm:$0xff] %vm3717_vm14, %v3701_v9 }
 0x336   : > { %v3603_v38 = vpop.xlane.xlu1 %3602 }
 0x337   : > { %v3702_v11 = vadd.f32 %v6000_v58, %v3603_v38 }
 0x339   : > { %3767 = vst.msk [vmem:[%s5714_s18 + $0x188] sm:$0xff] %vm3717_vm14, %v3702_v11 }
 0x33a   : > { %v3606_v60 = vpop.xlane.xlu0 %3605 }
 0x33b   : > { %v3703_v53 = vadd.f32 %v6000_v58, %v3606_v60 }
 0x33d   : > { %3768 = vst.msk [vmem:[%s5714_s18 + $0x190] sm:$0xff] %vm3717_vm14, %v3703_v53 }
 0x33e   : > { %v3609_v61 = vpop.xlane.xlu1 %3608 }
 0x33f   : > { %v3704_v6 = vadd.f32 %v6000_v58, %v3609_v61 }
 0x341   : > { %3769 = vst.msk [vmem:[%s5714_s18 + $0x198] sm:$0xff] %vm3717_vm14, %v3704_v6 }
 0x343   : > { %v3612_v15 = vpop.xlane.xlu0 %3611 }
 0x344   : > { %v3705_v7 = vadd.f32 %v6000_v58, %v3612_v15 }
 0x346   : > { %3770 = vst.msk [vmem:[%s5714_s18 + $0x1a0] sm:$0xff] %vm3717_vm14, %v3705_v7  ;;  %v3615_v5 = vpop.xlane.xlu1 %3614 }
 0x347   : > { %v3706_v16 = vadd.f32 %v6000_v58, %v3615_v5 }
 0x349   : > { %3771 = vst.msk [vmem:[%s5714_s18 + $0x1a8] sm:$0xff] %vm3717_vm14, %v3706_v16 }
 0x351   : > { %v3618_v4 = vpop.xlane.xlu0 %3617 }
 0x352   : > { %v3707_v10 = vadd.f32 %v6000_v58, %v3618_v4 }
 0x354   : > { %3772 = vst.msk [vmem:[%s5714_s18 + $0x1b0] sm:$0xff] %vm3717_vm14, %v3707_v10  ;;  %v3621_v17 = vpop.xlane.xlu1 %3620 }
 0x355   : > { %v3708_v22 = vadd.f32 %v6000_v58, %v3621_v17 }
 0x357   : > { %3773 = vst.msk [vmem:[%s5714_s18 + $0x1b8] sm:$0xff] %vm3717_vm14, %v3708_v22 }
 0x35b   : > { %v3624_v14 = vpop.xlane.xlu0 %3623 }
 0x35c   : > { %v3709_v2 = vadd.f32 %v6000_v58, %v3624_v14 }
 0x35e   : > { %3774 = vst.msk [vmem:[%s5714_s18 + $0x1c0] sm:$0xff] %vm3717_vm14, %v3709_v2  ;;  %v3627_v54 = vpop.xlane.xlu1 %3626 }
 0x35f   : > { %v3710_v18 = vadd.f32 %v6000_v58, %v3627_v54 }
 0x361   : > { %3775 = vst.msk [vmem:[%s5714_s18 + $0x1c8] sm:$0xff] %vm3717_vm14, %v3710_v18 }
 0x365   : > { %v3630_v44 = vpop.xlane.xlu0 %3629 }
 0x366   : > { %v3711_v24 = vadd.f32 %v6000_v58, %v3630_v44 }
 0x368   : > { %3776 = vst.msk [vmem:[%s5714_s18 + $0x1d0] sm:$0xff] %vm3717_vm14, %v3711_v24 }
 0x369   : > { %v3633_v12 = vpop.xlane.xlu1 %3632 }
 0x36a   : > { %v3712_v25 = vadd.f32 %v6000_v58, %v3633_v12 }
 0x36c   : > { %3777 = vst.msk [vmem:[%s5714_s18 + $0x1d8] sm:$0xff] %vm3717_vm14, %v3712_v25 }
 0x36f   : > { %v3636_v0 = vpop.xlane.xlu0 %3635 }
 0x370   : > { %v3713_v21 = vadd.f32 %v6000_v58, %v3636_v0 }
 0x372   : > { %3778 = vst.msk [vmem:[%s5714_s18 + $0x1e0] sm:$0xff] %vm3717_vm14, %v3713_v21 }
 0x373   : > { %v3639_v28 = vpop.xlane.xlu1 %3638 }
 0x374   : > { %v3714_v30 = vadd.f32 %v6000_v58, %v3639_v28 }
 0x376   : > { %3779 = vst.msk [vmem:[%s5714_s18 + $0x1e8] sm:$0xff] %vm3717_vm14, %v3714_v30 }
 0x377   : > { %v3642_v23 = vpop.xlane.xlu0 %3641 }
 0x378   : > { %v3715_v34 = vadd.f32 %v6000_v58, %v3642_v23 }
 0x37a   : > { %3780 = vst.msk [vmem:[%s5714_s18 + $0x1f0] sm:$0xff] %vm3717_vm14, %v3715_v34 }
 0x37b   : > { %v3645_v48 = vpop.xlane.xlu1 %3644 }
 0x37c   : > { %v3716_v35 = vadd.f32 %v6000_v58, %v3645_v48 }
 0x37e   : > { %3781 = vst.msk [vmem:[%s5714_s18 + $0x1f8] sm:$0xff] %vm3717_vm14, %v3716_v35 }
 0x37f PF: > { %s19_s26 = sadd.s32 1, %s4316_s26  }
 0x380   : > { %p16_p4 = scmp.ge.s32.totalorder %s19_s26, 4  }
 0x382   :  { %18 = sbr.rel (!%p16_p4) target bundleno = 3 (0x3), region = 78 }

// kernel: tpu_custom_call.1
= control target key start
LH: loop header
LB: loop body
LE: loop exit
PB: predicated region body
PF: predicated region fallthrough
CT: control target
= control target key end

     0   :  { %s4362_s26 = smov 0   ;;  %s6080_s0 = inlined_call_operand.vmem [shape: f32[1024,200], index: 0, kind: input, shape index: {}]   ;;  %s6081_s1 = inlined_call_operand.vmem [shape: bf16[256,256], index: 1, kind: input, shape index: {}]   ;;  %s6082_s2 = inlined_call_operand.vmem [shape: f32[2,256], index: 2, kind: input, shape index: {}]   ;;  %s6083_s3 = inlined_call_operand.vmem [shape: bf16[256,256], index: 3, kind: input, shape index: {}]   ;;  %s6084_s4 = inlined_call_operand.vmem [shape: f32[2,256], index: 4, kind: input, shape index: {}]   ;;  %s6085_s5 = inlined_call_operand.vmem [shape: f32[1,256], index: 5, kind: input, shape index: {}]   ;;  %s6086_s6 = inlined_call_operand.<no memory space> [shape: f32[1,1], index: 6, kind: input, shape index: {}]   ;;  %s6087_s7 = inlined_call_operand.vmem [shape: f32[1024,1], index: 7, kind: output, shape index: {}]  }
   0x1   :  { %v12_v0 = vstv %s6086_s6 }
   0x2   :  { %13 = vst [vmem:[#allocation3] sm:$0x1] %v12_v0 }
   0x3 LB: > { %s3838_s27 = sadd.s32 4294967295, %s4316_s26   ;;  %p3842_p0 = scmp.ge.s32.totalorder %s4316_s26, 1  ;;  %s4316_s26 = sphi %s4362_s26, %s19_s26  }
   0x4   : > { %p241_p1 = scmp.lt.s32.totalorder %s4316_s26, 3 }
   0x6   : > { %p242_p2 = pnand %p3842_p0, %p241_p1 }
   0x7   : > { %s3843_s14 = sshll.u32 (!%p242_p2), %s3838_s27, 6 }
   0x8   : > { %245 = sbr.rel (%p242_p2) target bundleno = 895 (0x37f), region = 48  ;;  %p275_p3 = scmp.lt.s32.totalorder (!%p242_p2), %s3843_s14, 127 }
   0xd   : > { %v4117_v1 = vld [vmem:[%s6081_s1 + $0x74] ss:$8 sps:$4 sm:$0xff]   ;;  %v4119_v2 = vld [vmem:[%s6081_s1 + $0x70] ss:$8 sps:$4 sm:$0xff]   ;;  %v4120_v3 = vld [vmem:[%s6081_s1 + $0x64] ss:$8 sps:$4 sm:$0xff]  }
   0xe   : > { %1529 = vmatprep.subr.bf16.mxu0 %v4117_v1  ;;  %v4122_v4 = vld [vmem:[%s6081_s1 + $0x60] ss:$8 sps:$4 sm:$0xff]   ;;  %v4123_v5 = vld [vmem:[%s6081_s1 + $0x54] ss:$8 sps:$4 sm:$0xff]   ;;  %v4125_v6 = vld [vmem:[%s6081_s1 + $0x50] ss:$8 sps:$4 sm:$0xff]  }
   0xf   : > { %1530 = vmatpush1.bf16.msra.mxu0 %v4119_v2  ;;  %v4126_v7 = vld [vmem:[%s6081_s1 + $0x44] ss:$8 sps:$4 sm:$0xff]   ;;  %v4128_v8 = vld [vmem:[%s6081_s1 + $0x40] ss:$8 sps:$4 sm:$0xff]   ;;  %s6091_s14 = smov (!%p275_p3, %s3843_s14), 127  ;;  %vm802_vm0 = vcmask 1043456  }
  0x10   : > { %1531 = vmatprep.subr.bf16.mxu0 %v4120_v3  ;;  %v4129_v9 = vld [vmem:[%s6081_s1 + $0x34] ss:$8 sps:$4 sm:$0xff]   ;;  %v4131_v10 = vld [vmem:[%s6081_s1 + $0x30] ss:$8 sps:$4 sm:$0xff]   ;;  %s4043_s25 = sshll.u32 %s6091_s14, 4  ;;  %vm803_vm1 = vcmask 588804  }
  0x11   : > { %v4132_v11 = vld [vmem:[%s6081_s1 + $0x24] ss:$8 sps:$4 sm:$0xff]   ;;  %s4409_s30 = scalar_lea.vmem %s6080_s0, %s4043_s25  ;;  %v4134_v12 = vld [vmem:[%s6081_s1 + $0x20] ss:$8 sps:$4 sm:$0xff]   ;;  %v4135_v13 = vld [vmem:[%s6081_s1 + $0x14] ss:$8 sps:$4 sm:$0xff]  }
  0x12   : > { %v4137_v14 = vld [vmem:[%s6081_s1 + $0x10] ss:$8 sps:$4 sm:$0xff]   ;;  %v290_v15 = vld [vmem:[%s4409_s30] sm:$0xff]  ;;  %v291_v16 = vld [vmem:[%s4409_s30 + $0x8] sm:$0xff]  ;;  %vm869_vm3 = vcmask 1044032   ;;  %v4318_v31 = vmov 0  }
  0x13   : > { %1532 = vmatpush1.bf16.msra.mxu0 %v4122_v4  ;;  %v4138_v17 = vld [vmem:[%s6081_s1 + $0x4] ss:$8 sps:$4 sm:$0xff]   ;;  %v292_v18 = vld [vmem:[%s4409_s30 + $0x10] sm:$0xff]  ;;  %v293_v19 = vld [vmem:[%s4409_s30 + $0x18] sm:$0xff]  ;;  %v4044_v20 = vpack.c.bf16 %v291_v16, %v290_v15  ;;  %s3847_s15 = sshll.u32 %s6091_s14, 3 }
  0x14   : > { %1533 = vmatprep.subr.bf16.mxu0 %v4123_v5  ;;  %vm4427_vm2 = vmor %vm803_vm1, %vm802_vm0  ;;  %v4045_v22 = vpack.c.bf16 %v293_v19, %v292_v18  ;;  %v294_v23 = vld [vmem:[%s4409_s30 + $0x20] sm:$0xff]  ;;  %v295_v24 = vld [vmem:[%s4409_s30 + $0x28] sm:$0xff]  ;;  %s5714_s18 = scalar_lea.vmem %s6087_s7, %s3847_s15 }
  0x15   : > { %v296_v25 = vld [vmem:[%s4409_s30 + $0x30] sm:$0xff]  ;;  %805 = vst.msk [vmem:[#allocation2] sm:$0xff] %vm4427_vm2, %v4044_v20  ;;  %v297_v26 = vld [vmem:[%s4409_s30 + $0x38] sm:$0xff]  ;;  %v4046_v27 = vpack.c.bf16 %v295_v24, %v294_v23  ;;  %v298_v28 = vld [vmem:[%s4409_s30 + $0x40] sm:$0xff] }
  0x16   : > { %v299_v29 = vld [vmem:[%s4409_s30 + $0x48] sm:$0xff]  ;;  %806 = vst.msk [vmem:[#allocation2 + $0x8] sm:$0xff] %vm4427_vm2, %v4045_v22  ;;  %v4047_v32 = vpack.c.bf16 %v297_v26, %v296_v25  ;;  %v300_v33 = vld [vmem:[%s4409_s30 + $0x50] sm:$0xff]  ;;  %v301_v34 = vld [vmem:[%s4409_s30 + $0x58] sm:$0xff] }
  0x17   : > { %1534 = vmatpush1.bf16.msra.mxu0 %v4125_v6  ;;  %v4140_v30 = vld [vmem:[%s6081_s1] ss:$8 sps:$4 sm:$0xff]   ;;  %870 = vst.msk [vmem:[#allocation2 + $0x4] sm:$0xf] %vm869_vm3, %v4318_v31  ;;  %v4048_v35 = vpack.c.bf16 %v299_v29, %v298_v28  ;;  %v4141_v37 = vld [vmem:[%s6081_s1 + $0xf4] ss:$8 sps:$4 sm:$0xff]   ;;  %v4049_v38 = vpack.c.bf16 %v301_v34, %v300_v33 }
  0x18   : > { %1535 = vmatprep.subr.bf16.mxu0 %v4126_v7  ;;  %v302_v36 = vld [vmem:[%s4409_s30 + $0x60] sm:$0xff]  ;;  %871 = vst.msk [vmem:[#allocation2 + $0xc] sm:$0xf] %vm869_vm3, %v4318_v31  ;;  %v303_v39 = vld [vmem:[%s4409_s30 + $0x68] sm:$0xff]  ;;  %v304_v40 = vld [vmem:[%s4409_s30 + $0x70] sm:$0xff] }
  0x19   : > { %807 = vst.msk [vmem:[#allocation2 + $0x10] sm:$0xff] %vm4427_vm2, %v4046_v27  ;;  %v305_v41 = vld [vmem:[%s4409_s30 + $0x78] sm:$0xff]  ;;  %808 = vst.msk [vmem:[#allocation2 + $0x18] sm:$0xff] %vm4427_vm2, %v4047_v32  ;;  %v4050_v42 = vpack.c.bf16 %v303_v39, %v302_v36  ;;  %v306_v44 = vld [vmem:[%s4409_s30 + $0x80] sm:$0xff] }
  0x1a   : > { %872 = vst.msk [vmem:[#allocation2 + $0x14] sm:$0xf] %vm869_vm3, %v4318_v31  ;;  %v4051_v43 = vpack.c.bf16 %v305_v41, %v304_v40  ;;  %v307_v45 = vld [vmem:[%s4409_s30 + $0x88] sm:$0xff]  ;;  %v308_v46 = vld [vmem:[%s4409_s30 + $0x90] sm:$0xff]  ;;  %873 = vst.msk [vmem:[#allocation2 + $0x1c] sm:$0xf] %vm869_vm3, %v4318_v31 }
  0x1b   : > { %1536 = vmatpush1.bf16.msra.mxu0 %v4128_v8  ;;  %809 = vst.msk [vmem:[#allocation2 + $0x20] sm:$0xff] %vm4427_vm2, %v4048_v35  ;;  %810 = vst.msk [vmem:[#allocation2 + $0x28] sm:$0xff] %vm4427_vm2, %v4049_v38  ;;  %v309_v47 = vld [vmem:[%s4409_s30 + $0x98] sm:$0xff]  ;;  %v4052_v48 = vpack.c.bf16 %v307_v45, %v306_v44  ;;  %v310_v49 = vld [vmem:[%s4409_s30 + $0xa0] sm:$0xff] }
  0x1c   : > { %1537 = vmatprep.subr.bf16.mxu0 %v4129_v9  ;;  %874 = vst.msk [vmem:[#allocation2 + $0x24] sm:$0xf] %vm869_vm3, %v4318_v31  ;;  %v311_v50 = vld [vmem:[%s4409_s30 + $0xa8] sm:$0xff]  ;;  %v4143_v51 = vld [vmem:[%s6081_s1 + $0xf0] ss:$8 sps:$4 sm:$0xff]   ;;  %v4053_v52 = vpack.c.bf16 %v309_v47, %v308_v46  ;;  %v314_v56 = vld [vmem:[%s4409_s30 + $0xc0] sm:$0xff] }
  0x1d   : > { %875 = vst.msk [vmem:[#allocation2 + $0x2c] sm:$0xf] %vm869_vm3, %v4318_v31  ;;  %v312_v53 = vld [vmem:[%s4409_s30 + $0xb0] sm:$0xff]  ;;  %v313_v54 = vld [vmem:[%s4409_s30 + $0xb8] sm:$0xff]  ;;  %v4054_v55 = vpack.c.bf16 %v311_v50, %v310_v49  ;;  %v4144_v57 = vld [vmem:[%s6081_s1 + $0xe4] ss:$8 sps:$4 sm:$0xff]  }
  0x1e   : > { %811 = vst.msk [vmem:[#allocation2 + $0x30] sm:$0xff] %vm4427_vm2, %v4050_v42  ;;  %812 = vst.msk [vmem:[#allocation2 + $0x38] sm:$0xff] %vm4427_vm2, %v4051_v43  ;;  %v4055_v58 = vpack.c.bf16 %v313_v54, %v312_v53  ;;  %v315_v59 = vld [vmem:[%s4409_s30 + $0xc8] sm:$0xff]  ;;  %v316_v60 = vld [vmem:[%s4409_s30 + $0xd0] sm:$0xff] }
  0x1f   : > { %1538 = vmatpush1.bf16.msra.mxu0 %v4131_v10  ;;  %876 = vst.msk [vmem:[#allocation2 + $0x34] sm:$0xf] %vm869_vm3, %v4318_v31  ;;  %877 = vst.msk [vmem:[#allocation2 + $0x3c] sm:$0xf] %vm869_vm3, %v4318_v31  ;;  %v317_v61 = vld [vmem:[%s4409_s30 + $0xd8] sm:$0xff]  ;;  %v4056_v62 = vpack.c.bf16 %v315_v59, %v314_v56  ;;  %v318_v0 = vld [vmem:[%s4409_s30 + $0xe0] sm:$0xff] }
  0x20   : > { %1539 = vmatprep.subr.bf16.mxu0 %v4132_v11  ;;  %813 = vst.msk [vmem:[#allocation2 + $0x40] sm:$0xff] %vm4427_vm2, %v4052_v48  ;;  %814 = vst.msk [vmem:[#allocation2 + $0x48] sm:$0xff] %vm4427_vm2, %v4053_v52  ;;  %v4057_v63 = vpack.c.bf16 %v317_v61, %v316_v60  ;;  %v319_v1 = vld [vmem:[%s4409_s30 + $0xe8] sm:$0xff]  ;;  %v320_v2 = vld [vmem:[%s4409_s30 + $0xf0] sm:$0xff] }
  0x21   : > { %878 = vst.msk [vmem:[#allocation2 + $0x44] sm:$0xf] %vm869_vm3, %v4318_v31  ;;  %879 = vst.msk [vmem:[#allocation2 + $0x4c] sm:$0xf] %vm869_vm3, %v4318_v31  ;;  %v321_v3 = vld [vmem:[%s4409_s30 + $0xf8] sm:$0xff]  ;;  %v4058_v4 = vpack.c.bf16 %v319_v1, %v318_v0  ;;  %v322_v5 = vld [vmem:[%s4409_s30 + $0x100] sm:$0xff] }
  0x22   : > { %815 = vst.msk [vmem:[#allocation2 + $0x50] sm:$0xff] %vm4427_vm2, %v4054_v55  ;;  %816 = vst.msk [vmem:[#allocation2 + $0x58] sm:$0xff] %vm4427_vm2, %v4055_v58  ;;  %v4167_v6 = vld [vmem:[#allocation2 + $0x4] ss:$8 sps:$4 sm:$0xff]   ;;  %v4059_v7 = vpack.c.bf16 %v321_v3, %v320_v2  ;;  %v4146_v9 = vld [vmem:[%s6081_s1 + $0xe0] ss:$8 sps:$4 sm:$0xff]  }
  0x23   : > { %1540 = vmatpush1.bf16.msra.mxu0 %v4134_v12  ;;  %880 = vst.msk [vmem:[#allocation2 + $0x54] sm:$0xf] %vm869_vm3, %v4318_v31  ;;  %881 = vst.msk [vmem:[#allocation2 + $0x5c] sm:$0xf] %vm869_vm3, %v4318_v31  ;;  %v323_v8 = vld [vmem:[%s4409_s30 + $0x108] sm:$0xff]  ;;  %1561 = vmatprep.mubr.bf16.mxu0 %v4167_v6  ;;  %v326_v18 = vld [vmem:[%s4409_s30 + $0x120] sm:$0xff] }
  0x24   : > { %1541 = vmatprep.subr.bf16.mxu0 %v4135_v13  ;;  %817 = vst.msk [vmem:[#allocation2 + $0x60] sm:$0xff] %vm4427_vm2, %v4056_v62  ;;  %818 = vst.msk [vmem:[#allocation2 + $0x68] sm:$0xff] %vm4427_vm2, %v4057_v63  ;;  %v4060_v10 = vpack.c.bf16 %v323_v8, %v322_v5  ;;  %v4147_v11 = vld [vmem:[%s6081_s1 + $0xd4] ss:$8 sps:$4 sm:$0xff]   ;;  %v4149_v12 = vld [vmem:[%s6081_s1 + $0xd0] ss:$8 sps:$4 sm:$0xff]  }
  0x25   : > { %882 = vst.msk [vmem:[#allocation2 + $0x64] sm:$0xf] %vm869_vm3, %v4318_v31  ;;  %883 = vst.msk [vmem:[#allocation2 + $0x6c] sm:$0xf] %vm869_vm3, %v4318_v31  ;;  %v4150_v13 = vld [vmem:[%s6081_s1 + $0xc4] ss:$8 sps:$4 sm:$0xff]  }
  0x26   : > { %819 = vst.msk [vmem:[#allocation2 + $0x70] sm:$0xff] %vm4427_vm2, %v4058_v4  ;;  %820 = vst.msk [vmem:[#allocation2 + $0x78] sm:$0xff] %vm4427_vm2, %v4059_v7  ;;  %v4152_v15 = vld [vmem:[%s6081_s1 + $0xc0] ss:$8 sps:$4 sm:$0xff]   ;;  %v4153_v16 = vld [vmem:[%s6081_s1 + $0xb4] ss:$8 sps:$4 sm:$0xff]  }
  0x27   : > { %1542 = vmatpush1.bf16.msra.mxu0 %v4137_v14  ;;  %884 = vst.msk [vmem:[#allocation2 + $0x74] sm:$0xf] %vm869_vm3, %v4318_v31  ;;  %885 = vst.msk [vmem:[#allocation2 + $0x7c] sm:$0xf] %vm869_vm3, %v4318_v31  ;;  %v324_v14 = vld [vmem:[%s4409_s30 + $0x110] sm:$0xff]  ;;  %v327_v19 = vld [vmem:[%s4409_s30 + $0x128] sm:$0xff] }
  0x28   : > { %1543 = vmatprep.subr.bf16.mxu0 %v4138_v17  ;;  %821 = vst.msk [vmem:[#allocation2 + $0x80] sm:$0xff] %vm4427_vm2, %v4060_v10  ;;  %v325_v17 = vld [vmem:[%s4409_s30 + $0x118] sm:$0xff]  ;;  %v328_v23 = vld [vmem:[%s4409_s30 + $0x130] sm:$0xff]  ;;  %v4062_v25 = vpack.c.bf16 %v327_v19, %v326_v18  ;;  %v4156_v26 = vld [vmem:[%s6081_s1 + $0xa4] ss:$8 sps:$4 sm:$0xff]  }
  0x29   : > { %886 = vst.msk [vmem:[#allocation2 + $0x84] sm:$0xf] %vm869_vm3, %v4318_v31  ;;  %v4155_v20 = vld [vmem:[%s6081_s1 + $0xb0] ss:$8 sps:$4 sm:$0xff]   ;;  %v4061_v22 = vpack.c.bf16 %v325_v17, %v324_v14  ;;  %v330_v28 = vld [vmem:[%s4409_s30 + $0x140] sm:$0xff]  ;;  %v331_v29 = vld [vmem:[%s4409_s30 + $0x148] sm:$0xff] }
  0x2a   : > { %v329_v24 = vld [vmem:[%s4409_s30 + $0x138] sm:$0xff]  ;;  %823 = vst.msk [vmem:[#allocation2 + $0x90] sm:$0xff] %vm4427_vm2, %v4062_v25  ;;  %v4064_v33 = vpack.c.bf16 %v331_v29, %v330_v28  ;;  %v334_v34 = vld [vmem:[%s4409_s30 + $0x160] sm:$0xff]  ;;  %v335_v35 = vld [vmem:[%s4409_s30 + $0x168] sm:$0xff] }
  0x2b   : > { %1544 = vmatpush1.bf16.msra.mxu0 %v4140_v30  ;;  %v4063_v27 = vpack.c.bf16 %v329_v24, %v328_v23  ;;  %v332_v30 = vld [vmem:[%s4409_s30 + $0x150] sm:$0xff]  ;;  %822 = vst.msk [vmem:[#allocation2 + $0x88] sm:$0xff] %vm4427_vm2, %v4061_v22  ;;  %v333_v32 = vld [vmem:[%s4409_s30 + $0x158] sm:$0xff]  ;;  %v4066_v39 = vpack.c.bf16 %v335_v35, %v334_v34  ;;  %v338_v40 = vld [vmem:[%s4409_s30 + $0x180] sm:$0xff] }
  0x2c   : > { %1545 = vmatprep.subr.bf16.mxu0 %v4141_v37  ;;  %887 = vst.msk [vmem:[#allocation2 + $0x8c] sm:$0xf] %vm869_vm3, %v4318_v31  ;;  %888 = vst.msk [vmem:[#allocation2 + $0x94] sm:$0xf] %vm869_vm3, %v4318_v31  ;;  %v4065_v36 = vpack.c.bf16 %v333_v32, %v332_v30  ;;  %v336_v37 = vld [vmem:[%s4409_s30 + $0x170] sm:$0xff]  ;;  %v337_v38 = vld [vmem:[%s4409_s30 + $0x178] sm:$0xff] }
  0x2d   : > { %824 = vst.msk [vmem:[#allocation2 + $0x98] sm:$0xff] %vm4427_vm2, %v4063_v27  ;;  %v4158_v41 = vld [vmem:[%s6081_s1 + $0xa0] ss:$8 sps:$4 sm:$0xff]   ;;  %825 = vst.msk [vmem:[#allocation2 + $0xa0] sm:$0xff] %vm4427_vm2, %v4064_v33  ;;  %v4067_v42 = vpack.c.bf16 %v337_v38, %v336_v37  ;;  %v340_v44 = vld [vmem:[%s4409_s30 + $0x190] sm:$0xff] }
  0x2e   : > { %889 = vst.msk [vmem:[#allocation2 + $0x9c] sm:$0xf] %vm869_vm3, %v4318_v31  ;;  %v339_v43 = vld [vmem:[%s4409_s30 + $0x188] sm:$0xff]  ;;  %v341_v45 = vld [vmem:[%s4409_s30 + $0x198] sm:$0xff]  ;;  %890 = vst.msk [vmem:[#allocation2 + $0xa4] sm:$0xf] %vm869_vm3, %v4318_v31 }
  0x2f   : > { %1546 = vmatpush2.bf16.msra.mxu0 %v4143_v51  ;;  %v4159_v46 = vld [vmem:[%s6081_s1 + $0x94] ss:$8 sps:$4 sm:$0xff]   ;;  %826 = vst.msk [vmem:[#allocation2 + $0xa8] sm:$0xff] %vm4427_vm2, %v4065_v36  ;;  %827 = vst.msk [vmem:[#allocation2 + $0xb0] sm:$0xff] %vm4427_vm2, %v4066_v39  ;;  %v4068_v47 = vpack.c.bf16 %v339_v43, %v338_v40  ;;  %v4069_v48 = vpack.c.bf16 %v341_v45, %v340_v44  ;;  %v342_v49 = vld [vmem:[%s4409_s30 + $0x1a0] sm:$0xff] }
  0x30   : > { %1547 = vmatprep.subr.bf16.mxu0 %v4144_v57  ;;  %v343_v50 = vld [vmem:[%s4409_s30 + $0x1a8] sm:$0xff]  ;;  %v344_v51 = vld [vmem:[%s4409_s30 + $0x1b0] sm:$0xff]  ;;  %891 = vst.msk [vmem:[#allocation2 + $0xac] sm:$0xf] %vm869_vm3, %v4318_v31  ;;  %892 = vst.msk [vmem:[#allocation2 + $0xb4] sm:$0xf] %vm869_vm3, %v4318_v31 }
  0x31   : > { %828 = vst.msk [vmem:[#allocation2 + $0xb8] sm:$0xff] %vm4427_vm2, %v4067_v42  ;;  %v345_v52 = vld [vmem:[%s4409_s30 + $0x1b8] sm:$0xff]  ;;  %v4070_v53 = vpack.c.bf16 %v343_v50, %v342_v49  ;;  %v346_v54 = vld [vmem:[%s4409_s30 + $0x1c0] sm:$0xff]  ;;  %v347_v55 = vld [vmem:[%s4409_s30 + $0x1c8] sm:$0xff] }
  0x32   : > { %893 = vst.msk [vmem:[#allocation2 + $0xbc] sm:$0xf] %vm869_vm3, %v4318_v31  ;;  %v4071_v56 = vpack.c.bf16 %v345_v52, %v344_v51  ;;  %v348_v57 = vld [vmem:[%s4409_s30 + $0x1d0] sm:$0xff]  ;;  %v349_v58 = vld [vmem:[%s4409_s30 + $0x1d8] sm:$0xff]  ;;  %v4072_v59 = vpack.c.bf16 %v347_v55, %v346_v54  ;;  %v350_v60 = vld [vmem:[%s4409_s30 + $0x1e0] sm:$0xff] }
  0x33   : > { %1548 = vmatpush2.bf16.msra.mxu0 %v4146_v9  ;;  %829 = vst.msk [vmem:[#allocation2 + $0xc0] sm:$0xff] %vm4427_vm2, %v4068_v47  ;;  %830 = vst.msk [vmem:[#allocation2 + $0xc8] sm:$0xff] %vm4427_vm2, %v4069_v48  ;;  %v4073_v61 = vpack.c.bf16 %v349_v58, %v348_v57  ;;  %v351_v62 = vld [vmem:[%s4409_s30 + $0x1e8] sm:$0xff]  ;;  %v352_v63 = vld [vmem:[%s4409_s30 + $0x1f0] sm:$0xff] }
  0x34   : > { %1549 = vmatprep.subr.bf16.mxu0 %v4147_v11  ;;  %894 = vst.msk [vmem:[#allocation2 + $0xc4] sm:$0xf] %vm869_vm3, %v4318_v31  ;;  %895 = vst.msk [vmem:[#allocation2 + $0xcc] sm:$0xf] %vm869_vm3, %v4318_v31  ;;  %v353_v0 = vld [vmem:[%s4409_s30 + $0x1f8] sm:$0xff]  ;;  %v4074_v1 = vpack.c.bf16 %v351_v62, %v350_v60  ;;  %v354_v3 = vld [vmem:[%s4409_s30 + $0x200] sm:$0xff] }
  0x35   : > { %831 = vst.msk [vmem:[#allocation2 + $0xd0] sm:$0xff] %vm4427_vm2, %v4070_v53  ;;  %832 = vst.msk [vmem:[#allocation2 + $0xd8] sm:$0xff] %vm4427_vm2, %v4071_v56  ;;  %v4075_v2 = vpack.c.bf16 %v353_v0, %v352_v63  ;;  %v355_v4 = vld [vmem:[%s4409_s30 + $0x208] sm:$0xff]  ;;  %v4161_v5 = vld [vmem:[%s6081_s1 + $0x90] ss:$8 sps:$4 sm:$0xff]  }
  0x36   : > { %896 = vst.msk [vmem:[#allocation2 + $0xd4] sm:$0xf] %vm869_vm3, %v4318_v31  ;;  %897 = vst.msk [vmem:[#allocation2 + $0xdc] sm:$0xf] %vm869_vm3, %v4318_v31  ;;  %v356_v6 = vld [vmem:[%s4409_s30 + $0x210] sm:$0xff]  ;;  %v4076_v7 = vpack.c.bf16 %v355_v4, %v354_v3  ;;  %v357_v9 = vld [vmem:[%s4409_s30 + $0x218] sm:$0xff] }
  0x37   : > { %1550 = vmatpush2.bf16.msra.mxu0 %v4149_v12  ;;  %833 = vst.msk [vmem:[#allocation2 + $0xe0] sm:$0xff] %vm4427_vm2, %v4072_v59  ;;  %834 = vst.msk [vmem:[#allocation2 + $0xe8] sm:$0xff] %vm4427_vm2, %v4073_v61  ;;  %v4162_v8 = vld [vmem:[%s6081_s1 + $0x84] ss:$8 sps:$4 sm:$0xff]   ;;  %v4077_v10 = vpack.c.bf16 %v357_v9, %v356_v6  ;;  %v4164_v11 = vld [vmem:[%s6081_s1 + $0x80] ss:$8 sps:$4 sm:$0xff]  }
  0x38   : > { %1551 = vmatprep.subr.bf16.mxu0 %v4150_v13  ;;  %898 = vst.msk [vmem:[#allocation2 + $0xe4] sm:$0xf] %vm869_vm3, %v4318_v31  ;;  %899 = vst.msk [vmem:[#allocation2 + $0xec] sm:$0xf] %vm869_vm3, %v4318_v31  ;;  %v4165_v12 = vld [vmem:[#allocation2] ss:$8 sps:$4 sm:$0xff]  }
  0x39   : > { %835 = vst.msk [vmem:[#allocation2 + $0xf0] sm:$0xff] %vm4427_vm2, %v4074_v1  ;;  %836 = vst.msk [vmem:[#allocation2 + $0xf8] sm:$0xff] %vm4427_vm2, %v4075_v2  ;;  %v4168_v13 = vld [vmem:[#allocation2 + $0x14] ss:$8 sps:$4 sm:$0xff]   ;;  %v358_v14 = vld [vmem:[%s4409_s30 + $0x220] sm:$0xff] }
  0x3a   : > { %900 = vst.msk [vmem:[#allocation2 + $0xf4] sm:$0xf] %vm869_vm3, %v4318_v31  ;;  %901 = vst.msk [vmem:[#allocation2 + $0xfc] sm:$0xf] %vm869_vm3, %v4318_v31  ;;  %v361_v17 = vld [vmem:[%s4409_s30 + $0x238] sm:$0xff]  ;;  %v362_v23 = vld [vmem:[%s4409_s30 + $0x240] sm:$0xff] }
  0x3b   : > { %1552 = vmatpush2.bf16.msra.mxu0 %v4152_v15  ;;  %837 = vst.msk [vmem:[#allocation2 + $0x100] sm:$0xff] %vm4427_vm2, %v4076_v7  ;;  %838 = vst.msk [vmem:[#allocation2 + $0x108] sm:$0xff] %vm4427_vm2, %v4077_v10  ;;  %v359_v15 = vld [vmem:[%s4409_s30 + $0x228] sm:$0xff]  ;;  %v4170_v19 = vld [vmem:[#allocation2 + $0x10] ss:$8 sps:$4 sm:$0xff]  }
  0x3c   : > { %1553 = vmatprep.subr.bf16.mxu0 %v4153_v16  ;;  %902 = vst.msk [vmem:[#allocation2 + $0x104] sm:$0xf] %vm869_vm3, %v4318_v31  ;;  %903 = vst.msk [vmem:[#allocation2 + $0x10c] sm:$0xf] %vm869_vm3, %v4318_v31  ;;  %v360_v16 = vld [vmem:[%s4409_s30 + $0x230] sm:$0xff]  ;;  %v4078_v18 = vpack.c.bf16 %v359_v15, %v358_v14  ;;  %v363_v24 = vld [vmem:[%s4409_s30 + $0x248] sm:$0xff] }
  0x3d   : > { %v4171_v22 = vld [vmem:[#allocation2 + $0x24] ss:$8 sps:$4 sm:$0xff]   ;;  %v364_v25 = vld [vmem:[%s4409_s30 + $0x250] sm:$0xff]  ;;  %v4080_v27 = vpack.c.bf16 %v363_v24, %v362_v23  ;;  %v369_v34 = vld [vmem:[%s4409_s30 + $0x278] sm:$0xff] }
  0x3e   : > { %839 = vst.msk [vmem:[#allocation2 + $0x110] sm:$0xff] %vm4427_vm2, %v4078_v18  ;;  %v4221_v29 = vld [vmem:[%s6083_s3 + $0x74] ss:$8 sps:$4 sm:$0xff]   ;;  %v366_v30 = vld [vmem:[%s4409_s30 + $0x260] sm:$0xff]  ;;  %v367_v32 = vld [vmem:[%s4409_s30 + $0x268] sm:$0xff] }
  0x3f   : > { %1554 = vmatpush2.bf16.msra.mxu0 %v4155_v20  ;;  %v4079_v20 = vpack.c.bf16 %v361_v17, %v360_v16  ;;  %904 = vst.msk [vmem:[#allocation2 + $0x114] sm:$0xf] %vm869_vm3, %v4318_v31  ;;  %v368_v33 = vld [vmem:[%s4409_s30 + $0x270] sm:$0xff]  ;;  %2559 = vmatprep.subr.bf16.mxu1 %v4221_v29  ;;  %v4082_v35 = vpack.c.bf16 %v367_v32, %v366_v30  ;;  %v4173_v36 = vld [vmem:[#allocation2 + $0x20] ss:$8 sps:$4 sm:$0xff]   ;;  %v373_v47 = vld [vmem:[%s4409_s30 + $0x298] sm:$0xff] }
  0x40   : > { %1555 = vmatprep.subr.bf16.mxu0 %v4156_v26  ;;  %v365_v26 = vld [vmem:[%s4409_s30 + $0x258] sm:$0xff]  ;;  %841 = vst.msk [vmem:[#allocation2 + $0x120] sm:$0xff] %vm4427_vm2, %v4080_v27  ;;  %v4083_v38 = vpack.c.bf16 %v369_v34, %v368_v33  ;;  %v4225_v40 = vld [vmem:[%s6083_s3 + $0x64] ss:$8 sps:$4 sm:$0xff]   ;;  %v4236_v53 = vld [vmem:[%s6083_s3 + $0x40] ss:$8 sps:$4 sm:$0xff]  }
  0x41   : > { %840 = vst.msk [vmem:[#allocation2 + $0x118] sm:$0xff] %vm4427_vm2, %v4079_v20  ;;  %v4081_v28 = vpack.c.bf16 %v365_v26, %v364_v25  ;;  %v4174_v37 = vld [vmem:[#allocation2 + $0x34] ss:$8 sps:$4 sm:$0xff]   ;;  %843 = vst.msk [vmem:[#allocation2 + $0x130] sm:$0xff] %vm4427_vm2, %v4082_v35  ;;  %v4224_v39 = vld [vmem:[%s6083_s3 + $0x70] ss:$8 sps:$4 sm:$0xff]  }
  0x42   : > { %905 = vst.msk [vmem:[#allocation2 + $0x11c] sm:$0xf] %vm869_vm3, %v4318_v31  ;;  %906 = vst.msk [vmem:[#allocation2 + $0x124] sm:$0xf] %vm869_vm3, %v4318_v31  ;;  %2560 = vmatpush1.bf16.msra.mxu1 %v4224_v39  ;;  %v4230_v42 = vld [vmem:[%s6083_s3 + $0x54] ss:$8 sps:$4 sm:$0xff]  }
  0x43   : > { %1556 = vmatpush2.bf16.msra.mxu0 %v4158_v41  ;;  %842 = vst.msk [vmem:[#allocation2 + $0x128] sm:$0xff] %vm4427_vm2, %v4081_v28  ;;  %844 = vst.msk [vmem:[#allocation2 + $0x138] sm:$0xff] %vm4427_vm2, %v4083_v38  ;;  %v4227_v41 = vld [vmem:[%s6083_s3 + $0x60] ss:$8 sps:$4 sm:$0xff]   ;;  %v4176_v43 = vld [vmem:[#allocation2 + $0x30] ss:$8 sps:$4 sm:$0xff]   ;;  %2561 = vmatprep.subr.bf16.mxu1 %v4225_v40 }
  0x44   : > { %1557 = vmatprep.subr.bf16.mxu0 %v4159_v46  ;;  %907 = vst.msk [vmem:[#allocation2 + $0x12c] sm:$0xf] %vm869_vm3, %v4318_v31  ;;  %908 = vst.msk [vmem:[#allocation2 + $0x134] sm:$0xf] %vm869_vm3, %v4318_v31  ;;  %v370_v44 = vld [vmem:[%s4409_s30 + $0x280] sm:$0xff]  ;;  %v371_v45 = vld [vmem:[%s4409_s30 + $0x288] sm:$0xff] }
  0x45   : > { %909 = vst.msk [vmem:[#allocation2 + $0x13c] sm:$0xf] %vm869_vm3, %v4318_v31  ;;  %v372_v46 = vld [vmem:[%s4409_s30 + $0x290] sm:$0xff]  ;;  %v4084_v48 = vpack.c.bf16 %v371_v45, %v370_v44  ;;  %v4177_v50 = vld [vmem:[#allocation2 + $0x44] ss:$8 sps:$4 sm:$0xff]   ;;  %v377_v58 = vld [vmem:[%s4409_s30 + $0x2b8] sm:$0xff] }
  0x46   : > { %2562 = vmatpush1.bf16.msra.mxu1 %v4227_v41  ;;  %v4085_v49 = vpack.c.bf16 %v373_v47, %v372_v46  ;;  %v4233_v51 = vld [vmem:[%s6083_s3 + $0x50] ss:$8 sps:$4 sm:$0xff]   ;;  %v4234_v52 = vld [vmem:[%s6083_s3 + $0x44] ss:$8 sps:$4 sm:$0xff]   ;;  %v4239_v54 = vld [vmem:[%s6083_s3 + $0x34] ss:$8 sps:$4 sm:$0xff]  }
  0x47   : > { %1558 = vmatpush2.bf16.msra.mxu0 %v4161_v5  ;;  %2563 = vmatprep.subr.bf16.mxu1 %v4230_v42  ;;  %845 = vst.msk [vmem:[#allocation2 + $0x140] sm:$0xff] %vm4427_vm2, %v4084_v48  ;;  %v374_v55 = vld [vmem:[%s4409_s30 + $0x2a0] sm:$0xff]  ;;  %v375_v56 = vld [vmem:[%s4409_s30 + $0x2a8] sm:$0xff]  ;;  %v376_v57 = vld [vmem:[%s4409_s30 + $0x2b0] sm:$0xff] }
  0x48   : > { %1559 = vmatprep.subr.bf16.mxu0 %v4162_v8  ;;  %846 = vst.msk [vmem:[#allocation2 + $0x148] sm:$0xff] %vm4427_vm2, %v4085_v49  ;;  %v4086_v59 = vpack.c.bf16 %v375_v56, %v374_v55  ;;  %v4179_v60 = vld [vmem:[#allocation2 + $0x40] ss:$8 sps:$4 sm:$0xff]   ;;  %v4087_v61 = vpack.c.bf16 %v377_v58, %v376_v57  ;;  %v4180_v62 = vld [vmem:[#allocation2 + $0x54] ss:$8 sps:$4 sm:$0xff]  }
  0x49   : > { %910 = vst.msk [vmem:[#allocation2 + $0x144] sm:$0xf] %vm869_vm3, %v4318_v31  ;;  %911 = vst.msk [vmem:[#allocation2 + $0x14c] sm:$0xf] %vm869_vm3, %v4318_v31  ;;  %v4242_v63 = vld [vmem:[%s6083_s3 + $0x30] ss:$8 sps:$4 sm:$0xff]  }
  0x4a   : > { %2564 = vmatpush1.bf16.msra.mxu1 %v4233_v51  ;;  %847 = vst.msk [vmem:[#allocation2 + $0x150] sm:$0xff] %vm4427_vm2, %v4086_v59  ;;  %848 = vst.msk [vmem:[#allocation2 + $0x158] sm:$0xff] %vm4427_vm2, %v4087_v61  ;;  %v4243_v0 = vld [vmem:[%s6083_s3 + $0x24] ss:$8 sps:$4 sm:$0xff]   ;;  %v4245_v1 = vld [vmem:[%s6083_s3 + $0x20] ss:$8 sps:$4 sm:$0xff]  }
  0x4b   : > { %1560 = vmatpush2.bf16.msra.mxu0 %v4164_v11  ;;  %2565 = vmatprep.subr.bf16.mxu1 %v4234_v52  ;;  %912 = vst.msk [vmem:[#allocation2 + $0x154] sm:$0xf] %vm869_vm3, %v4318_v31  ;;  %913 = vst.msk [vmem:[#allocation2 + $0x15c] sm:$0xf] %vm869_vm3, %v4318_v31  ;;  %v4248_v2 = vld [vmem:[%s6083_s3 + $0x14] ss:$8 sps:$4 sm:$0xff]  }
  0x4c   : > { %v378_v3 = vld [vmem:[%s4409_s30 + $0x2c0] sm:$0xff]  ;;  %v379_v4 = vld [vmem:[%s4409_s30 + $0x2c8] sm:$0xff]  ;;  %v380_v5 = vld [vmem:[%s4409_s30 + $0x2d0] sm:$0xff] }
  0x4d   : > { %v381_v6 = vld [vmem:[%s4409_s30 + $0x2d8] sm:$0xff]  ;;  %v4088_v7 = vpack.c.bf16 %v379_v4, %v378_v3  ;;  %v4183_v10 = vld [vmem:[#allocation2 + $0x64] ss:$8 sps:$4 sm:$0xff]   ;;  %v384_v17 = vld [vmem:[%s4409_s30 + $0x2f0] sm:$0xff] }
  0x4e   : > { %1562 = vmatmul.mubr.bf16.vlgmr.msra.gmra.mxu0 %v4165_v12  ;;  %2566 = vmatpush1.bf16.msra.mxu1 %v4236_v53  ;;  %v4182_v8 = vld [vmem:[#allocation2 + $0x50] ss:$8 sps:$4 sm:$0xff]   ;;  %v4089_v9 = vpack.c.bf16 %v381_v6, %v380_v5  ;;  %v4252_v12 = vld [vmem:[%s6083_s3 + $0x4] ss:$8 sps:$4 sm:$0xff]   ;;  %v4257_v14 = vld [vmem:[%s6083_s3 + $0xf4] ss:$8 sps:$4 sm:$0xff]  }
  0x4f   : > { %1571 = vmatprep.mubr.bf16.mxu0 %v4168_v13  ;;  %2567 = vmatprep.subr.bf16.mxu1 %v4239_v54  ;;  %849 = vst.msk [vmem:[#allocation2 + $0x160] sm:$0xff] %vm4427_vm2, %v4088_v7  ;;  %v4251_v11 = vld [vmem:[%s6083_s3 + $0x10] ss:$8 sps:$4 sm:$0xff]   ;;  %v4254_v13 = vld [vmem:[%s6083_s3] ss:$8 sps:$4 sm:$0xff]  }
  0x50   : > { %850 = vst.msk [vmem:[#allocation2 + $0x168] sm:$0xff] %vm4427_vm2, %v4089_v9  ;;  %v382_v15 = vld [vmem:[%s4409_s30 + $0x2e0] sm:$0xff]  ;;  %v383_v16 = vld [vmem:[%s4409_s30 + $0x2e8] sm:$0xff]  ;;  %v385_v18 = vld [vmem:[%s4409_s30 + $0x2f8] sm:$0xff] }
  0x51   : > { %914 = vst.msk [vmem:[#allocation2 + $0x164] sm:$0xf] %vm869_vm3, %v4318_v31  ;;  %915 = vst.msk [vmem:[#allocation2 + $0x16c] sm:$0xf] %vm869_vm3, %v4318_v31  ;;  %v4185_v20 = vld [vmem:[#allocation2 + $0x60] ss:$8 sps:$4 sm:$0xff]  }
  0x52   : > { %2568 = vmatpush1.bf16.msra.mxu1 %v4242_v63  ;;  %v4186_v23 = vld [vmem:[#allocation2 + $0x74] ss:$8 sps:$4 sm:$0xff]   ;;  %v4260_v24 = vld [vmem:[%s6083_s3 + $0xf0] ss:$8 sps:$4 sm:$0xff]   ;;  %v4261_v25 = vld [vmem:[%s6083_s3 + $0xe4] ss:$8 sps:$4 sm:$0xff]  }
  0x53   : > { %2569 = vmatprep.subr.bf16.mxu1 %v4243_v0  ;;  %v4263_v26 = vld [vmem:[%s6083_s3 + $0xe0] ss:$8 sps:$4 sm:$0xff]   ;;  %v4266_v27 = vld [vmem:[%s6083_s3 + $0xd4] ss:$8 sps:$4 sm:$0xff]   ;;  %v4188_v34 = vld [vmem:[#allocation2 + $0x70] ss:$8 sps:$4 sm:$0xff]  }
  0x54   : > { %v386_v28 = vld [vmem:[%s4409_s30 + $0x300] sm:$0xff]  ;;  %v387_v29 = vld [vmem:[%s4409_s30 + $0x308] sm:$0xff]  ;;  %v388_v30 = vld [vmem:[%s4409_s30 + $0x310] sm:$0xff] }
  0x55   : > { %v389_v32 = vld [vmem:[%s4409_s30 + $0x318] sm:$0xff]  ;;  %v4092_v33 = vpack.c.bf16 %v387_v29, %v386_v28  ;;  %v4270_v38 = vld [vmem:[%s6083_s3 + $0xc4] ss:$8 sps:$4 sm:$0xff]   ;;  %v4272_v39 = vld [vmem:[%s6083_s3 + $0xc0] ss:$8 sps:$4 sm:$0xff]  }
  0x56   : > { %1572 = vmatmul.mubr.bf16.gmra.mxu0 %v4170_v19  ;;  %2570 = vmatpush1.bf16.msra.mxu1 %v4245_v1  ;;  %v4090_v19 = vpack.c.bf16 %v383_v16, %v382_v15  ;;  %v4093_v35 = vpack.c.bf16 %v389_v32, %v388_v30  ;;  %v4275_v40 = vld [vmem:[%s6083_s3 + $0xb4] ss:$8 sps:$4 sm:$0xff]   ;;  %v390_v41 = vld [vmem:[%s4409_s30 + $0x320] sm:$0xff]  ;;  %v391_v42 = vld [vmem:[%s4409_s30 + $0x328] sm:$0xff] }
  0x57   : > { %1581 = vmatprep.mubr.bf16.mxu0 %v4171_v22  ;;  %2571 = vmatprep.subr.bf16.mxu1 %v4248_v2  ;;  %v4091_v22 = vpack.c.bf16 %v385_v18, %v384_v17  ;;  %853 = vst.msk [vmem:[#allocation2 + $0x180] sm:$0xff] %vm4427_vm2, %v4092_v33  ;;  %v393_v44 = vld [vmem:[%s4409_s30 + $0x338] sm:$0xff]  ;;  %v4094_v45 = vpack.c.bf16 %v391_v42, %v390_v41  ;;  %v4191_v46 = vld [vmem:[#allocation2 + $0x80] ss:$8 sps:$4 sm:$0xff]   ;;  %v396_v54 = vld [vmem:[%s4409_s30 + $0x350] sm:$0xff] }
  0x58   : > { %851 = vst.msk [vmem:[#allocation2 + $0x170] sm:$0xff] %vm4427_vm2, %v4090_v19  ;;  %854 = vst.msk [vmem:[#allocation2 + $0x188] sm:$0xff] %vm4427_vm2, %v4093_v35  ;;  %v4192_v48 = vld [vmem:[#allocation2 + $0x94] ss:$8 sps:$4 sm:$0xff]   ;;  %v4278_v49 = vld [vmem:[%s6083_s3 + $0xb0] ss:$8 sps:$4 sm:$0xff]  }
  0x59   : > { %852 = vst.msk [vmem:[#allocation2 + $0x178] sm:$0xff] %vm4427_vm2, %v4091_v22  ;;  %855 = vst.msk [vmem:[#allocation2 + $0x190] sm:$0xff] %vm4427_vm2, %v4094_v45  ;;  %v4281_v51 = vld [vmem:[%s6083_s3 + $0xa0] ss:$8 sps:$4 sm:$0xff]   ;;  %v397_v55 = vld [vmem:[%s4409_s30 + $0x358] sm:$0xff] }
  0x5a   : > { %2572 = vmatpush1.bf16.msra.mxu1 %v4251_v11  ;;  %916 = vst.msk [vmem:[#allocation2 + $0x174] sm:$0xf] %vm869_vm3, %v4318_v31  ;;  %917 = vst.msk [vmem:[#allocation2 + $0x17c] sm:$0xf] %vm869_vm3, %v4318_v31  ;;  %v394_v52 = vld [vmem:[%s4409_s30 + $0x340] sm:$0xff]  ;;  %v395_v53 = vld [vmem:[%s4409_s30 + $0x348] sm:$0xff]  ;;  %v4097_v58 = vpack.c.bf16 %v397_v55, %v396_v54 }
  0x5b   : > { %2573 = vmatprep.subr.bf16.mxu1 %v4252_v12  ;;  %918 = vst.msk [vmem:[#allocation2 + $0x184] sm:$0xf] %vm869_vm3, %v4318_v31  ;;  %919 = vst.msk [vmem:[#allocation2 + $0x18c] sm:$0xf] %vm869_vm3, %v4318_v31  ;;  %v4096_v56 = vpack.c.bf16 %v395_v53, %v394_v52  ;;  %v4194_v57 = vld [vmem:[#allocation2 + $0x90] ss:$8 sps:$4 sm:$0xff]  }
  0x5c   : > { %920 = vst.msk [vmem:[#allocation2 + $0x194] sm:$0xf] %vm869_vm3, %v4318_v31  ;;  %v4195_v59 = vld [vmem:[#allocation2 + $0xa4] ss:$8 sps:$4 sm:$0xff]   ;;  %v4287_v61 = vld [vmem:[%s6083_s3 + $0x90] ss:$8 sps:$4 sm:$0xff]  }
  0x5d   : > { %857 = vst.msk [vmem:[#allocation2 + $0x1a0] sm:$0xff] %vm4427_vm2, %v4096_v56  ;;  %858 = vst.msk [vmem:[#allocation2 + $0x1a8] sm:$0xff] %vm4427_vm2, %v4097_v58  ;;  %v4290_v63 = vld [vmem:[%s6083_s3 + $0x80] ss:$8 sps:$4 sm:$0xff]   ;;  %v400_v2 = vld [vmem:[%s4409_s30 + $0x370] sm:$0xff]  ;;  %v1031_v56 = vlaneseq }
  0x5e   : > { %1582 = vmatmul.mubr.bf16.gmra.mxu0 %v4173_v36  ;;  %2574 = vmatpush1.bf16.msra.mxu1 %v4254_v13  ;;  %v4189_v36 = vld [vmem:[#allocation2 + $0x84] ss:$8 sps:$4 sm:$0xff]   ;;  %922 = vst.msk [vmem:[#allocation2 + $0x1a4] sm:$0xf] %vm869_vm3, %v4318_v31  ;;  %923 = vst.msk [vmem:[#allocation2 + $0x1ac] sm:$0xf] %vm869_vm3, %v4318_v31 }
  0x5f   : > { %1591 = vmatprep.mubr.bf16.mxu0 %v4174_v37  ;;  %2575 = vmatprep.subr.bf16.mxu1 %v4257_v14  ;;  %v4269_v37 = vld [vmem:[%s6083_s3 + $0xd0] ss:$8 sps:$4 sm:$0xff]   ;;  %v398_v0 = vld [vmem:[%s4409_s30 + $0x360] sm:$0xff]  ;;  %v399_v1 = vld [vmem:[%s4409_s30 + $0x368] sm:$0xff]  ;;  %v4958_v58 = vshrl.u32 %v1031_v56, 7 }
  0x60   : > { %v401_v3 = vld [vmem:[%s4409_s30 + $0x378] sm:$0xff]  ;;  %v4098_v4 = vpack.c.bf16 %v399_v1, %v398_v0  ;;  %v4197_v5 = vld [vmem:[#allocation2 + $0xa0] ss:$8 sps:$4 sm:$0xff]   ;;  %v4201_v15 = vld [vmem:[#allocation2 + $0xc4] ss:$8 sps:$4 sm:$0xff]  }
  0x61   : > { %v4099_v6 = vpack.c.bf16 %v401_v3, %v400_v2  ;;  %v4198_v7 = vld [vmem:[#allocation2 + $0xb4] ss:$8 sps:$4 sm:$0xff]   ;;  %v403_v9 = vld [vmem:[%s4409_s30 + $0x388] sm:$0xff]  ;;  %v4200_v13 = vld [vmem:[#allocation2 + $0xb0] ss:$8 sps:$4 sm:$0xff]   ;;  %v2016_v0 = vsub.s32 3, %v4958_v58 }
  0x62   : > { %2576 = vmatpush2.bf16.msra.mxu1 %v4260_v24  ;;  %859 = vst.msk [vmem:[#allocation2 + $0x1b0] sm:$0xff] %vm4427_vm2, %v4098_v4  ;;  %v405_v11 = vld [vmem:[%s4409_s30 + $0x398] sm:$0xff]  ;;  %v406_v16 = vld [vmem:[%s4409_s30 + $0x3a0] sm:$0xff]  ;;  %v407_v17 = vld [vmem:[%s4409_s30 + $0x3a8] sm:$0xff]  ;;  %v4972_v2 = vsub.s32 1, %v4958_v58 }
  0x63   : > { %2577 = vmatprep.subr.bf16.mxu1 %v4261_v25  ;;  %860 = vst.msk [vmem:[#allocation2 + $0x1b8] sm:$0xff] %vm4427_vm2, %v4099_v6  ;;  %v408_v18 = vld [vmem:[%s4409_s30 + $0x3b0] sm:$0xff]  ;;  %v409_v19 = vld [vmem:[%s4409_s30 + $0x3b8] sm:$0xff]  ;;  %v4203_v22 = vld [vmem:[#allocation2 + $0xc0] ss:$8 sps:$4 sm:$0xff]  }
  0x64   : > { %924 = vst.msk [vmem:[#allocation2 + $0x1b4] sm:$0xf] %vm869_vm3, %v4318_v31  ;;  %925 = vst.msk [vmem:[#allocation2 + $0x1bc] sm:$0xf] %vm869_vm3, %v4318_v31  ;;  %v4204_v24 = vld [vmem:[#allocation2 + $0xd4] ss:$8 sps:$4 sm:$0xff]  }
  0x65   : > { %v410_v25 = vld [vmem:[%s4409_s30 + $0x3c0] sm:$0xff]  ;;  %v413_v28 = vld [vmem:[%s4409_s30 + $0x3d8] sm:$0xff]  ;;  %v415_v35 = vld [vmem:[%s4409_s30 + $0x3e8] sm:$0xff] }
  0x66   : > { %1592 = vmatmul.mubr.bf16.gmra.mxu0 %v4176_v43  ;;  %2578 = vmatpush2.bf16.msra.mxu1 %v4263_v26  ;;  %v392_v43 = vld [vmem:[%s4409_s30 + $0x330] sm:$0xff]  ;;  %v411_v26 = vld [vmem:[%s4409_s30 + $0x3c8] sm:$0xff] }
  0x67   : > { %1601 = vmatprep.mubr.bf16.mxu0 %v4177_v50  ;;  %2579 = vmatprep.subr.bf16.mxu1 %v4266_v27  ;;  %v4095_v47 = vpack.c.bf16 %v393_v44, %v392_v43  ;;  %v4279_v50 = vld [vmem:[%s6083_s3 + $0xa4] ss:$8 sps:$4 sm:$0xff]   ;;  %v412_v27 = vld [vmem:[%s4409_s30 + $0x3d0] sm:$0xff]  ;;  %v4104_v29 = vpack.c.bf16 %v411_v26, %v410_v25  ;;  %v4215_v44 = vld [vmem:[#allocation2 + $0x100] ss:$8 sps:$4 sm:$0xff]  }
  0x68   : > { %v4206_v30 = vld [vmem:[#allocation2 + $0xd0] ss:$8 sps:$4 sm:$0xff]   ;;  %v4105_v32 = vpack.c.bf16 %v413_v28, %v412_v27  ;;  %v4207_v33 = vld [vmem:[#allocation2 + $0xe4] ss:$8 sps:$4 sm:$0xff]   ;;  %v4210_v41 = vld [vmem:[#allocation2 + $0xf4] ss:$8 sps:$4 sm:$0xff]  }
  0x69   : > { %856 = vst.msk [vmem:[#allocation2 + $0x198] sm:$0xff] %vm4427_vm2, %v4095_v47  ;;  %865 = vst.msk [vmem:[#allocation2 + $0x1e0] sm:$0xff] %vm4427_vm2, %v4104_v29  ;;  %v4212_v42 = vld [vmem:[#allocation2 + $0xf0] ss:$8 sps:$4 sm:$0xff]   ;;  %v4213_v43 = vld [vmem:[#allocation2 + $0x104] ss:$8 sps:$4 sm:$0xff]  }
  0x6a   : > { %2580 = vmatpush2.bf16.msra.mxu1 %v4269_v37  ;;  %921 = vst.msk [vmem:[#allocation2 + $0x19c] sm:$0xf] %vm869_vm3, %v4318_v31  ;;  %930 = vst.msk [vmem:[#allocation2 + $0x1e4] sm:$0xf] %vm869_vm3, %v4318_v31  ;;  %v417_v37 = vld [vmem:[%s4409_s30 + $0x3f8] sm:$0xff] }
  0x6b   : > { %2581 = vmatprep.subr.bf16.mxu1 %v4270_v38  ;;  %866 = vst.msk [vmem:[#allocation2 + $0x1e8] sm:$0xff] %vm4427_vm2, %v4105_v32  ;;  %v4216_v45 = vld [vmem:[#allocation2 + $0x114] ss:$8 sps:$4 sm:$0xff]   ;;  %v4219_v47 = vld [vmem:[#allocation2 + $0x124] ss:$8 sps:$4 sm:$0xff]  }
  0x6c   : > { %931 = vst.msk [vmem:[#allocation2 + $0x1ec] sm:$0xf] %vm869_vm3, %v4318_v31  ;;  %v4223_v21 = vld [vmem:[#allocation2 + $0x120] ss:$8 sps:$4 sm:$0xff]   ;;  %v4250_v52 = vld [vmem:[#allocation2 + $0x150] ss:$8 sps:$4 sm:$0xff]  }
  0x6d   : > { %v4255_v53 = vld [vmem:[#allocation2 + $0x164] ss:$8 sps:$4 sm:$0xff]   ;;  %v4259_v54 = vld [vmem:[#allocation2 + $0x160] ss:$8 sps:$4 sm:$0xff]   ;;  %v4264_v55 = vld [vmem:[#allocation2 + $0x174] ss:$8 sps:$4 sm:$0xff]  }
  0x6e   : > { %1602 = vmatmul.mubr.bf16.gmra.mxu0 %v4179_v60  ;;  %2582 = vmatpush2.bf16.msra.mxu1 %v4272_v39  ;;  %v4284_v60 = vld [vmem:[%s6083_s3 + $0x94] ss:$8 sps:$4 sm:$0xff]   ;;  %v4209_v39 = vld [vmem:[#allocation2 + $0xe0] ss:$8 sps:$4 sm:$0xff]  }
  0x6f   : > { %1611 = vmatprep.mubr.bf16.mxu0 %v4180_v62  ;;  %2583 = vmatprep.subr.bf16.mxu1 %v4275_v40  ;;  %v4288_v62 = vld [vmem:[%s6083_s3 + $0x84] ss:$8 sps:$4 sm:$0xff]   ;;  %v4277_v3 = vld [vmem:[#allocation2 + $0x180] ss:$8 sps:$4 sm:$0xff]  }
  0x71   : > { %v4282_v4 = vld [vmem:[#allocation2 + $0x194] ss:$8 sps:$4 sm:$0xff]  }
  0x72   : > { %2584 = vmatpush2.bf16.msra.mxu1 %v4278_v49  ;;  %v4232_v49 = vld [vmem:[#allocation2 + $0x130] ss:$8 sps:$4 sm:$0xff]  }
  0x73   : > { %2585 = vmatprep.subr.bf16.mxu1 %v4279_v50  ;;  %v4241_v50 = vld [vmem:[#allocation2 + $0x140] ss:$8 sps:$4 sm:$0xff]  }
  0x76   : > { %1612 = vmatmul.mubr.bf16.gmra.mxu0 %v4182_v8  ;;  %2586 = vmatpush2.bf16.msra.mxu1 %v4281_v51  ;;  %v402_v8 = vld [vmem:[%s4409_s30 + $0x380] sm:$0xff]  ;;  %v4246_v51 = vld [vmem:[#allocation2 + $0x154] ss:$8 sps:$4 sm:$0xff]  }
  0x77   : > { %1621 = vmatprep.mubr.bf16.mxu0 %v4183_v10  ;;  %2587 = vmatprep.subr.bf16.mxu1 %v4284_v60  ;;  %v404_v10 = vld [vmem:[%s4409_s30 + $0x390] sm:$0xff]  ;;  %v4100_v12 = vpack.c.bf16 %v403_v9, %v402_v8  ;;  %v1037_v60 = vsub.s32 2, %v4958_v58 }
  0x78   : > { %v4101_v14 = vpack.c.bf16 %v405_v11, %v404_v10 }
  0x79   : > { %861 = vst.msk [vmem:[#allocation2 + $0x1c0] sm:$0xff] %vm4427_vm2, %v4100_v12 }
  0x7a   : > { %2588 = vmatpush2.bf16.msra.mxu1 %v4287_v61  ;;  %862 = vst.msk [vmem:[#allocation2 + $0x1c8] sm:$0xff] %vm4427_vm2, %v4101_v14  ;;  %v4962_v61 = vsub.s32 0, %v4958_v58  ;;  %v3314_v58 = vld [vmem:[%s6085_s5] sm:$0x3] }
  0x7b   : > { %2589 = vmatprep.subr.bf16.mxu1 %v4288_v62  ;;  %926 = vst.msk [vmem:[#allocation2 + $0x1c4] sm:$0xf] %vm869_vm3, %v4318_v31  ;;  %927 = vst.msk [vmem:[#allocation2 + $0x1cc] sm:$0xf] %vm869_vm3, %v4318_v31  ;;  %v288_v62 = vld [vmem:[%s6082_s2] sm:$0xf] }
  0x7c   : > { %v1034_v1 = vrot.slane %v288_v62, %v4962_v61  ;;  %v2017_v6 = vrot.slane %v288_v62, %v2016_v0  ;;  %v2013_v9 = vrot.slane %v288_v62, %v4972_v2 }
  0x7e   : > { %1622 = vmatmul.mubr.bf16.gmra.mxu0 %v4185_v20  ;;  %2590 = vmatpush2.bf16.msra.mxu1 %v4290_v63  ;;  %v4102_v20 = vpack.c.bf16 %v407_v17, %v406_v16  ;;  %v1038_v63 = vrot.slane %v288_v62, %v1037_v60  ;;  %v4985_v12 = vrot.slane %v2017_v6, %v4972_v2  ;;  %v4286_v16 = vld [vmem:[#allocation2 + $0x190] ss:$8 sps:$4 sm:$0xff]  }
  0x7f   : > { %1631 = vmatprep.mubr.bf16.mxu0 %v4186_v23  ;;  %v4103_v23 = vpack.c.bf16 %v409_v19, %v408_v18  ;;  %v4989_v14 = vrot.slane %v2013_v9, %v4972_v2  ;;  %v4291_v18 = vld [vmem:[#allocation2 + $0x1a4] ss:$8 sps:$4 sm:$0xff]  }
  0x80   : > { %863 = vst.msk [vmem:[#allocation2 + $0x1d0] sm:$0xff] %vm4427_vm2, %v4102_v20 }
  0x81   : > { %864 = vst.msk [vmem:[#allocation2 + $0x1d8] sm:$0xff] %vm4427_vm2, %v4103_v23 }
  0x82   : > { %928 = vst.msk [vmem:[#allocation2 + $0x1d4] sm:$0xf] %vm869_vm3, %v4318_v31  ;;  %929 = vst.msk [vmem:[#allocation2 + $0x1dc] sm:$0xf] %vm869_vm3, %v4318_v31 }
  0x86   : > { %1632 = vmatmul.mubr.bf16.gmra.mxu0 %v4188_v34  ;;  %v414_v34 = vld [vmem:[%s4409_s30 + $0x3e0] sm:$0xff] }
  0x87   : > { %1641 = vmatprep.mubr.bf16.mxu0 %v4189_v36  ;;  %v416_v36 = vld [vmem:[%s4409_s30 + $0x3f0] sm:$0xff]  ;;  %v4106_v38 = vpack.c.bf16 %v415_v35, %v414_v34 }
  0x88   : > { %v4107_v40 = vpack.c.bf16 %v417_v37, %v416_v36  ;;  %v4293_v37 = vld [vmem:[#allocation2 + $0x1a0] ss:$8 sps:$4 sm:$0xff]  }
  0x89   : > { %867 = vst.msk [vmem:[#allocation2 + $0x1f0] sm:$0xff] %vm4427_vm2, %v4106_v38 }
  0x8a   : > { %868 = vst.msk [vmem:[#allocation2 + $0x1f8] sm:$0xff] %vm4427_vm2, %v4107_v40  ;;  %v4294_v40 = vld [vmem:[#allocation2 + $0x1b4] ss:$8 sps:$4 sm:$0xff]  }
  0x8b   : > { %932 = vst.msk [vmem:[#allocation2 + $0x1f4] sm:$0xf] %vm869_vm3, %v4318_v31  ;;  %933 = vst.msk [vmem:[#allocation2 + $0x1fc] sm:$0xf] %vm869_vm3, %v4318_v31  ;;  %v4237_v31 = vld [vmem:[#allocation2 + $0x144] ss:$8 sps:$4 sm:$0xff]  }
  0x8e   : > { %1642 = vmatmul.mubr.bf16.gmra.mxu0 %v4191_v46  ;;  %v4218_v46 = vld [vmem:[#allocation2 + $0x110] ss:$8 sps:$4 sm:$0xff]  }
  0x8f   : > { %1651 = vmatprep.mubr.bf16.mxu0 %v4192_v48  ;;  %v4228_v48 = vld [vmem:[#allocation2 + $0x134] ss:$8 sps:$4 sm:$0xff]  }
  0x96   : > { %1652 = vmatmul.mubr.bf16.gmra.mxu0 %v4194_v57  ;;  %v4268_v57 = vld [vmem:[#allocation2 + $0x170] ss:$8 sps:$4 sm:$0xff]  }
  0x97   : > { %1661 = vmatprep.mubr.bf16.mxu0 %v4195_v59  ;;  %v4273_v59 = vld [vmem:[#allocation2 + $0x184] ss:$8 sps:$4 sm:$0xff]  }
  0x9e   : > { %1662 = vmatmul.mubr.bf16.gmra.mxu0 %v4197_v5  ;;  %v4975_v5 = vrot.slane %v1038_v63, %v4962_v61 }
  0x9f   : > { %1671 = vmatprep.mubr.bf16.mxu0 %v4198_v7  ;;  %v4980_v7 = vrot.slane %v1034_v1, %v4962_v61 }
  0xa6   : > { %1672 = vmatmul.mubr.bf16.gmra.mxu0 %v4200_v13 }
  0xa7   : > { %1681 = vmatprep.mubr.bf16.mxu0 %v4201_v15 }
  0xae   : > { %1682 = vmatmul.mubr.bf16.gmra.mxu0 %v4203_v22 }
  0xaf   : > { %1691 = vmatprep.mubr.bf16.mxu0 %v4204_v24 }
  0xb6   : > { %1692 = vmatmul.mubr.bf16.gmra.mxu0 %v4206_v30 }
  0xb7   : > { %1701 = vmatprep.mubr.bf16.mxu0 %v4207_v33 }
  0xbe   : > { %1702 = vmatmul.mubr.bf16.gmra.mxu0 %v4209_v39 }
  0xbf   : > { %1711 = vmatprep.mubr.bf16.mxu0 %v4210_v41 }
  0xc6   : > { %1712 = vmatmul.mubr.bf16.gmra.mxu0 %v4212_v42 }
  0xc7   : > { %1721 = vmatprep.mubr.bf16.mxu0 %v4213_v43 }
  0xce   : > { %1722 = vmatmul.mubr.bf16.gmra.mxu0 %v4215_v44 }
  0xcf   : > { %1731 = vmatprep.mubr.bf16.mxu0 %v4216_v45 }
  0xd6   : > { %1732 = vmatmul.mubr.bf16.gmra.mxu0 %v4218_v46 }
  0xd7   : > { %1741 = vmatprep.mubr.bf16.mxu0 %v4219_v47 }
  0xde   : > { %1742 = vmatmul.mubr.bf16.gmra.mxu0 %v4223_v21 }
  0xdf   : > { %1751 = vmatprep.mubr.bf16.mxu0 %v4228_v48 }
  0xe6   : > { %1752 = vmatmul.mubr.bf16.gmra.mxu0 %v4232_v49 }
  0xe7   : > { %1761 = vmatprep.mubr.bf16.mxu0 %v4237_v31 }
  0xee   : > { %1762 = vmatmul.mubr.bf16.gmra.mxu0 %v4241_v50 }
  0xef   : > { %1771 = vmatprep.mubr.bf16.mxu0 %v4246_v51 }
  0xf6   : > { %1772 = vmatmul.mubr.bf16.gmra.mxu0 %v4250_v52 }
  0xf7   : > { %1781 = vmatprep.mubr.bf16.mxu0 %v4255_v53 }
  0xfe   : > { %1782 = vmatmul.mubr.bf16.gmra.mxu0 %v4259_v54 }
  0xff   : > { %1791 = vmatprep.mubr.bf16.mxu0 %v4264_v55  ;;  %v4296_v55 = vld [vmem:[#allocation2 + $0x1b0] ss:$8 sps:$4 sm:$0xff]  }
 0x106   : > { %1792 = vmatmul.mubr.bf16.gmra.mxu0 %v4268_v57 }
 0x107   : > { %1801 = vmatprep.mubr.bf16.mxu0 %v4273_v59  ;;  %v4299_v59 = vld [vmem:[#allocation2 + $0x1c4] ss:$8 sps:$4 sm:$0xff]  }
 0x10e   : > { %v1563_v8 = vpop.f32.mrf.mxu0  ;;  %1802 = vmatmul.mubr.bf16.gmra.mxu0 %v4277_v3 }
 0x10f   : > { %1811 = vmatprep.mubr.bf16.mxu0 %v4282_v4  ;;  %v1564_v13 = vadd.f32 %v1563_v8, %v4980_v7 }
 0x110   : > { %v1565_v10 = vpop.f32.mrf.mxu0 }
 0x111   : > { %v1566_v11 = vadd.f32 %v1565_v10, %v4975_v5  ;;  %v2028_v24 = vmul.f32 %v4989_v14, %v1564_v13  ;;  %vm1882_vm6 = vcmp.ge.f32.partialorder %v1564_v13, 0.0 }
 0x112   : > { %v1567_v15 = vpop.f32.mrf.mxu0 }
 0x113   : > { %v1568_v17 = vadd.f32 %v1567_v15, %v4980_v7  ;;  %v2029_v20 = vmul.f32 %v4985_v12, %v1566_v11  ;;  %vm1883_vm5 = vcmp.ge.f32.partialorder %v1566_v11, 0.0  ;;  %v2156_v36 = vsel %vm1882_vm6, %v1564_v13, %v2028_v24  ;;  %v4302_v24 = vld [vmem:[#allocation2 + $0x1d4] ss:$8 sps:$4 sm:$0xff]  }
 0x114   : > { %v1569_v19 = vpop.f32.mrf.mxu0 }
 0x115   : > { %vm1884_vm4 = vcmp.ge.f32.partialorder %v1568_v17, 0.0  ;;  %v2030_v22 = vmul.f32 %v4989_v14, %v1568_v17  ;;  %v1570_v23 = vadd.f32 %v1569_v19, %v4975_v5  ;;  %v2157_v30 = vsel %vm1883_vm5, %v1566_v11, %v2029_v20  ;;  %v4297_v19 = vld [vmem:[#allocation2 + $0x1c0] ss:$8 sps:$4 sm:$0xff]  }
 0x116   : > { %v1573_v25 = vpop.f32.mrf.mxu0  ;;  %1812 = vmatmul.mubr.bf16.gmra.mxu0 %v4286_v16 }
 0x117   : > { %vm1885_vm7 = vcmp.ge.f32.partialorder %v1570_v23, 0.0  ;;  %v2031_v26 = vmul.f32 %v4985_v12, %v1570_v23  ;;  %1821 = vmatprep.mubr.bf16.mxu0 %v4291_v18  ;;  %v2158_v28 = vsel %vm1884_vm4, %v1568_v17, %v2030_v22  ;;  %v1574_v33 = vadd.f32 %v1573_v25, %v4980_v7 }
 0x118   : > { %v1575_v27 = vpop.f32.mrf.mxu0  ;;  %v2284_v39 = vpack.c.bf16 %v2158_v28, %v2156_v36 }
 0x119   : > { %v1576_v29 = vadd.f32 %v1575_v27, %v4975_v5  ;;  %v2159_v32 = vsel %vm1885_vm7, %v1570_v23, %v2031_v26  ;;  %v2032_v45 = vmul.f32 %v4989_v14, %v1574_v33  ;;  %vm1886_vm10 = vcmp.ge.f32.partialorder %v1574_v33, 0.0 }
 0x11a   : > { %v1577_v34 = vpop.f32.mrf.mxu0  ;;  %v2285_v35 = vpack.c.bf16 %v2159_v32, %v2157_v30 }
 0x11b   : > { %v1578_v38 = vadd.f32 %v1577_v34, %v4980_v7  ;;  %v2033_v42 = vmul.f32 %v4985_v12, %v1576_v29  ;;  %vm1887_vm9 = vcmp.ge.f32.partialorder %v1576_v29, 0.0  ;;  %v2160_v54 = vsel %vm1886_vm10, %v1574_v33, %v2032_v45  ;;  %v4305_v45 = vld [vmem:[#allocation2 + $0x1e4] ss:$8 sps:$4 sm:$0xff]  }
 0x11c   : > { %v1579_v41 = vpop.f32.mrf.mxu0  ;;  %2591 = vmatprep.mubr.bf16.mxu1 %v2285_v35 }
 0x11d   : > { %vm1888_vm8 = vcmp.ge.f32.partialorder %v1578_v38, 0.0  ;;  %v2034_v43 = vmul.f32 %v4989_v14, %v1578_v38  ;;  %v1580_v44 = vadd.f32 %v1579_v41, %v4975_v5  ;;  %2592 = vmatmul.mubr.bf16.vlgmr.msra.gmra.mxu1 %v2284_v39  ;;  %v2161_v31 = vsel %vm1887_vm9, %v1576_v29, %v2033_v42  ;;  %v4300_v41 = vld [vmem:[#allocation2 + $0x1d0] ss:$8 sps:$4 sm:$0xff]  }
 0x11e   : > { %v1583_v46 = vpop.f32.mrf.mxu0  ;;  %1822 = vmatmul.mubr.bf16.gmra.mxu0 %v4293_v37 }
 0x11f   : > { %vm1889_vm11 = vcmp.ge.f32.partialorder %v1580_v44, 0.0  ;;  %v2035_v47 = vmul.f32 %v4985_v12, %v1580_v44  ;;  %1831 = vmatprep.mubr.bf16.mxu0 %v4294_v40  ;;  %v2162_v48 = vsel %vm1888_vm8, %v1578_v38, %v2034_v43  ;;  %v1584_v51 = vadd.f32 %v1583_v46, %v4980_v7 }
 0x120   : > { %v1585_v21 = vpop.f32.mrf.mxu0  ;;  %v2286_v57 = vpack.c.bf16 %v2162_v48, %v2160_v54 }
 0x121   : > { %v1586_v49 = vadd.f32 %v1585_v21, %v4975_v5  ;;  %v2163_v50 = vsel %vm1889_vm11, %v1580_v44, %v2035_v47  ;;  %v2036_v4 = vmul.f32 %v4989_v14, %v1584_v51  ;;  %vm1890_vm14 = vcmp.ge.f32.partialorder %v1584_v51, 0.0 }
 0x122   : > { %v1587_v52 = vpop.f32.mrf.mxu0  ;;  %v2287_v53 = vpack.c.bf16 %v2163_v50, %v2161_v31 }
 0x123   : > { %v1588_v56 = vadd.f32 %v1587_v52, %v4980_v7  ;;  %v2037_v63 = vmul.f32 %v4985_v12, %v1586_v49  ;;  %vm1891_vm13 = vcmp.ge.f32.partialorder %v1586_v49, 0.0  ;;  %v2164_v20 = vsel %vm1890_vm14, %v1584_v51, %v2036_v4  ;;  %v4308_v4 = vld [vmem:[#allocation2 + $0x1f4] ss:$8 sps:$4 sm:$0xff]  }
 0x124   : > { %v1589_v62 = vpop.f32.mrf.mxu0  ;;  %2601 = vmatprep.mubr.bf16.mxu1 %v2287_v53 }
 0x125   : > { %vm1892_vm12 = vcmp.ge.f32.partialorder %v1588_v56, 0.0  ;;  %v2038_v1 = vmul.f32 %v4989_v14, %v1588_v56  ;;  %v1590_v3 = vadd.f32 %v1589_v62, %v4975_v5  ;;  %2602 = vmatmul.mubr.bf16.gmra.mxu1 %v2286_v57  ;;  %v2165_v13 = vsel %vm1891_vm13, %v1586_v49, %v2037_v63  ;;  %v4303_v62 = vld [vmem:[#allocation2 + $0x1e0] ss:$8 sps:$4 sm:$0xff]  }
 0x126   : > { %v1593_v6 = vpop.f32.mrf.mxu0  ;;  %1832 = vmatmul.mubr.bf16.gmra.mxu0 %v4296_v55 }
 0x127   : > { %vm1893_vm15 = vcmp.ge.f32.partialorder %v1590_v3, 0.0  ;;  %v2039_v8 = vmul.f32 %v4985_v12, %v1590_v3  ;;  %1841 = vmatprep.mubr.bf16.mxu0 %v4299_v59  ;;  %v2166_v10 = vsel %vm1892_vm12, %v1588_v56, %v2038_v1  ;;  %v1594_v16 = vadd.f32 %v1593_v6, %v4980_v7 }
 0x128   : > { %v1595_v9 = vpop.f32.mrf.mxu0  ;;  %v2288_v23 = vpack.c.bf16 %v2166_v10, %v2164_v20 }
 0x129   : > { %v1596_v11 = vadd.f32 %v1595_v9, %v4975_v5  ;;  %v2167_v15 = vsel %vm1893_vm15, %v1590_v3, %v2039_v8  ;;  %v2040_v29 = vmul.f32 %v4989_v14, %v1594_v16  ;;  %vm1894_vm2 = vcmp.ge.f32.partialorder %v1594_v16, 0.0 }
 0x12a   : > { %v1597_v17 = vpop.f32.mrf.mxu0  ;;  %v2289_v18 = vpack.c.bf16 %v2167_v15, %v2165_v13 }
 0x12b   : > { %v1598_v22 = vadd.f32 %v1597_v17, %v4980_v7  ;;  %v2041_v26 = vmul.f32 %v4985_v12, %v1596_v11  ;;  %vm1895_vm1 = vcmp.ge.f32.partialorder %v1596_v11, 0.0  ;;  %v2168_v42 = vsel %vm1894_vm2, %v1594_v16, %v2040_v29 }
 0x12c   : > { %v1599_v25 = vpop.f32.mrf.mxu0  ;;  %2611 = vmatprep.mubr.bf16.mxu1 %v2289_v18 }
 0x12d   : > { %vm1896_vm0 = vcmp.ge.f32.partialorder %v1598_v22, 0.0  ;;  %v2042_v27 = vmul.f32 %v4989_v14, %v1598_v22  ;;  %v1600_v28 = vadd.f32 %v1599_v25, %v4975_v5  ;;  %2612 = vmatmul.mubr.bf16.gmra.mxu1 %v2288_v23  ;;  %v2169_v36 = vsel %vm1895_vm1, %v1596_v11, %v2041_v26  ;;  %v4306_v25 = vld [vmem:[#allocation2 + $0x1f0] ss:$8 sps:$4 sm:$0xff]  }
 0x12e   : > { %v1603_v30 = vpop.f32.mrf.mxu0  ;;  %1842 = vmatmul.mubr.bf16.gmra.mxu0 %v4297_v19 }
 0x12f   : > { %vm1897_vm3 = vcmp.ge.f32.partialorder %v1600_v28, 0.0  ;;  %v2043_v32 = vmul.f32 %v4985_v12, %v1600_v28  ;;  %1851 = vmatprep.mubr.bf16.mxu0 %v4302_v24  ;;  %v2170_v34 = vsel %vm1896_vm0, %v1598_v22, %v2042_v27  ;;  %v1604_v38 = vadd.f32 %v1603_v30, %v4980_v7 }
 0x130   : > { %v1605_v33 = vpop.f32.mrf.mxu0  ;;  %v2290_v44 = vpack.c.bf16 %v2170_v34, %v2168_v42 }
 0x131   : > { %v1606_v35 = vadd.f32 %v1605_v33, %v4975_v5  ;;  %v2171_v37 = vsel %vm1897_vm3, %v1600_v28, %v2043_v32  ;;  %v2044_v49 = vmul.f32 %v4989_v14, %v1604_v38  ;;  %vm1898_vm6 = vcmp.ge.f32.partialorder %v1604_v38, 0.0 }
 0x132   : > { %v1607_v39 = vpop.f32.mrf.mxu0  ;;  %v2291_v40 = vpack.c.bf16 %v2171_v37, %v2169_v36 }
 0x133   : > { %v1608_v43 = vadd.f32 %v1607_v39, %v4980_v7  ;;  %v2045_v47 = vmul.f32 %v4985_v12, %v1606_v35  ;;  %vm1899_vm5 = vcmp.ge.f32.partialorder %v1606_v35, 0.0  ;;  %v2172_v63 = vsel %vm1898_vm6, %v1604_v38, %v2044_v49 }
 0x134   : > { %v1609_v46 = vpop.f32.mrf.mxu0  ;;  %2621 = vmatprep.mubr.bf16.mxu1 %v2291_v40 }
 0x135   : > { %vm1900_vm4 = vcmp.ge.f32.partialorder %v1608_v43, 0.0  ;;  %v2046_v21 = vmul.f32 %v4989_v14, %v1608_v43  ;;  %v1610_v48 = vadd.f32 %v1609_v46, %v4975_v5  ;;  %2622 = vmatmul.mubr.bf16.gmra.mxu1 %v2290_v44  ;;  %v2173_v54 = vsel %vm1899_vm5, %v1606_v35, %v2045_v47 }
 0x136   : > { %v1613_v31 = vpop.f32.mrf.mxu0  ;;  %1852 = vmatmul.mubr.bf16.gmra.mxu0 %v4300_v41 }
 0x137   : > { %vm1901_vm7 = vcmp.ge.f32.partialorder %v1610_v48, 0.0  ;;  %v2047_v50 = vmul.f32 %v4985_v12, %v1610_v48  ;;  %1861 = vmatprep.mubr.bf16.mxu0 %v4305_v45  ;;  %v2174_v52 = vsel %vm1900_vm4, %v1608_v43, %v2046_v21  ;;  %v1614_v56 = vadd.f32 %v1613_v31, %v4980_v7 }
 0x138   : > { %v1615_v51 = vpop.f32.mrf.mxu0  ;;  %v2292_v3 = vpack.c.bf16 %v2174_v52, %v2172_v63 }
 0x139   : > { %v1616_v53 = vadd.f32 %v1615_v51, %v4975_v5  ;;  %v2175_v55 = vsel %vm1901_vm7, %v1610_v48, %v2047_v50  ;;  %v2048_v11 = vmul.f32 %v4989_v14, %v1614_v56  ;;  %vm1902_vm10 = vcmp.ge.f32.partialorder %v1614_v56, 0.0 }
 0x13a   : > { %v1617_v57 = vpop.f32.mrf.mxu0  ;;  %v2293_v59 = vpack.c.bf16 %v2175_v55, %v2173_v54 }
 0x13b   : > { %v1618_v1 = vadd.f32 %v1617_v57, %v4980_v7  ;;  %v2049_v8 = vmul.f32 %v4985_v12, %v1616_v53  ;;  %vm1903_vm9 = vcmp.ge.f32.partialorder %v1616_v53, 0.0  ;;  %v2176_v26 = vsel %vm1902_vm10, %v1614_v56, %v2048_v11 }
 0x13c   : > { %v1619_v6 = vpop.f32.mrf.mxu0  ;;  %2631 = vmatprep.mubr.bf16.mxu1 %v2293_v59 }
 0x13d   : > { %vm1904_vm8 = vcmp.ge.f32.partialorder %v1618_v1, 0.0  ;;  %v2050_v9 = vmul.f32 %v4989_v14, %v1618_v1  ;;  %v1620_v10 = vadd.f32 %v1619_v6, %v4975_v5  ;;  %2632 = vmatmul.mubr.bf16.gmra.mxu1 %v2292_v3  ;;  %v2177_v19 = vsel %vm1903_vm9, %v1616_v53, %v2049_v8 }
 0x13e   : > { %v1623_v13 = vpop.f32.mrf.mxu0  ;;  %1862 = vmatmul.mubr.bf16.gmra.mxu0 %v4303_v62 }
 0x13f   : > { %vm1905_vm11 = vcmp.ge.f32.partialorder %v1620_v10, 0.0  ;;  %v2051_v15 = vmul.f32 %v4985_v12, %v1620_v10  ;;  %1871 = vmatprep.mubr.bf16.mxu0 %v4308_v4  ;;  %v2178_v17 = vsel %vm1904_vm8, %v1618_v1, %v2050_v9  ;;  %v1624_v22 = vadd.f32 %v1623_v13, %v4980_v7 }
 0x140   : > { %v1625_v16 = vpop.f32.mrf.mxu0  ;;  %v2294_v28 = vpack.c.bf16 %v2178_v17, %v2176_v26 }
 0x141   : > { %v1626_v18 = vadd.f32 %v1625_v16, %v4975_v5  ;;  %v2179_v20 = vsel %vm1905_vm11, %v1620_v10, %v2051_v15  ;;  %v2052_v34 = vmul.f32 %v4989_v14, %v1624_v22  ;;  %vm1906_vm14 = vcmp.ge.f32.partialorder %v1624_v22, 0.0 }
 0x142   : > { %v1627_v23 = vpop.f32.mrf.mxu0  ;;  %v2295_v24 = vpack.c.bf16 %v2179_v20, %v2177_v19 }
 0x143   : > { %v1628_v27 = vadd.f32 %v1627_v23, %v4980_v7  ;;  %v2053_v30 = vmul.f32 %v4985_v12, %v1626_v18  ;;  %vm1907_vm13 = vcmp.ge.f32.partialorder %v1626_v18, 0.0  ;;  %v2180_v45 = vsel %vm1906_vm14, %v1624_v22, %v2052_v34 }
 0x144   : > { %v1629_v29 = vpop.f32.mrf.mxu0  ;;  %2641 = vmatprep.mubr.bf16.mxu1 %v2295_v24 }
 0x145   : > { %vm1908_vm12 = vcmp.ge.f32.partialorder %v1628_v27, 0.0  ;;  %v2054_v32 = vmul.f32 %v4989_v14, %v1628_v27  ;;  %v1630_v33 = vadd.f32 %v1629_v29, %v4975_v5  ;;  %2642 = vmatmul.mubr.bf16.gmra.mxu1 %v2294_v28  ;;  %v2181_v40 = vsel %vm1907_vm13, %v1626_v18, %v2053_v30 }
 0x146   : > { %v1633_v35 = vpop.f32.mrf.mxu0  ;;  %1872 = vmatmul.mubr.bf16.gmra.mxu0 %v4306_v25 }
 0x147   : > { %vm1909_vm15 = vcmp.ge.f32.partialorder %v1630_v33, 0.0  ;;  %v2055_v36 = vmul.f32 %v4985_v12, %v1630_v33  ;;  %v2182_v38 = vsel %vm1908_vm12, %v1628_v27, %v2054_v32  ;;  %v1634_v42 = vadd.f32 %v1633_v35, %v4980_v7 }
 0x148   : > { %v1635_v37 = vpop.f32.mrf.mxu0  ;;  %v2296_v47 = vpack.c.bf16 %v2182_v38, %v2180_v45 }
 0x149   : > { %v1636_v39 = vadd.f32 %v1635_v37, %v4975_v5  ;;  %v2183_v41 = vsel %vm1909_vm15, %v1630_v33, %v2055_v36  ;;  %v2056_v50 = vmul.f32 %v4989_v14, %v1634_v42  ;;  %vm1910_vm2 = vcmp.ge.f32.partialorder %v1634_v42, 0.0 }
 0x14a   : > { %v1637_v43 = vpop.f32.mrf.mxu0  ;;  %v2297_v44 = vpack.c.bf16 %v2183_v41, %v2181_v40 }
 0x14b   : > { %v1638_v46 = vadd.f32 %v1637_v43, %v4980_v7  ;;  %v2057_v48 = vmul.f32 %v4985_v12, %v1636_v39  ;;  %vm1911_vm1 = vcmp.ge.f32.partialorder %v1636_v39, 0.0  ;;  %v2184_v1 = vsel %vm1910_vm2, %v1634_v42, %v2056_v50 }
 0x14c   : > { %v1639_v21 = vpop.f32.mrf.mxu0  ;;  %2651 = vmatprep.mubr.bf16.mxu1 %v2297_v44 }
 0x14d   : > { %vm1912_vm0 = vcmp.ge.f32.partialorder %v1638_v46, 0.0  ;;  %v2058_v49 = vmul.f32 %v4989_v14, %v1638_v46  ;;  %v1640_v31 = vadd.f32 %v1639_v21, %v4975_v5  ;;  %2652 = vmatmul.mubr.bf16.gmra.mxu1 %v2296_v47  ;;  %v2185_v56 = vsel %vm1911_vm1, %v1636_v39, %v2057_v48 }
 0x14e   : > { %v1643_v51 = vpop.f32.mrf.mxu0 }
 0x14f   : > { %vm1913_vm3 = vcmp.ge.f32.partialorder %v1640_v31, 0.0  ;;  %v2059_v52 = vmul.f32 %v4985_v12, %v1640_v31  ;;  %v2186_v54 = vsel %vm1912_vm0, %v1638_v46, %v2058_v49  ;;  %v1644_v59 = vadd.f32 %v1643_v51, %v4980_v7 }
 0x150   : > { %v1645_v53 = vpop.f32.mrf.mxu0  ;;  %v2298_v4 = vpack.c.bf16 %v2186_v54, %v2184_v1 }
 0x151   : > { %v1646_v55 = vadd.f32 %v1645_v53, %v4975_v5  ;;  %v2187_v57 = vsel %vm1913_vm3, %v1640_v31, %v2059_v52  ;;  %v2060_v11 = vmul.f32 %v4989_v14, %v1644_v59  ;;  %vm1914_vm6 = vcmp.ge.f32.partialorder %v1644_v59, 0.0 }
 0x152   : > { %v1647_v62 = vpop.f32.mrf.mxu0  ;;  %v2299_v63 = vpack.c.bf16 %v2187_v57, %v2185_v56 }
 0x153   : > { %v1648_v3 = vadd.f32 %v1647_v62, %v4980_v7  ;;  %v2061_v8 = vmul.f32 %v4985_v12, %v1646_v55  ;;  %vm1915_vm5 = vcmp.ge.f32.partialorder %v1646_v55, 0.0  ;;  %v2188_v25 = vsel %vm1914_vm6, %v1644_v59, %v2060_v11 }
 0x154   : > { %v1649_v6 = vpop.f32.mrf.mxu0  ;;  %2661 = vmatprep.mubr.bf16.mxu1 %v2299_v63 }
 0x155   : > { %vm1916_vm4 = vcmp.ge.f32.partialorder %v1648_v3, 0.0  ;;  %v2062_v9 = vmul.f32 %v4989_v14, %v1648_v3  ;;  %v1650_v10 = vadd.f32 %v1649_v6, %v4975_v5  ;;  %2662 = vmatmul.mubr.bf16.gmra.mxu1 %v2298_v4  ;;  %v2189_v19 = vsel %vm1915_vm5, %v1646_v55, %v2061_v8 }
 0x156   : > { %v1653_v13 = vpop.f32.mrf.mxu0 }
 0x157   : > { %vm1917_vm7 = vcmp.ge.f32.partialorder %v1650_v10, 0.0  ;;  %v2063_v15 = vmul.f32 %v4985_v12, %v1650_v10  ;;  %v2190_v17 = vsel %vm1916_vm4, %v1648_v3, %v2062_v9  ;;  %v1654_v22 = vadd.f32 %v1653_v13, %v4980_v7 }
 0x158   : > { %v1655_v16 = vpop.f32.mrf.mxu0  ;;  %v2300_v27 = vpack.c.bf16 %v2190_v17, %v2188_v25 }
 0x159   : > { %v1656_v18 = vadd.f32 %v1655_v16, %v4975_v5  ;;  %v2191_v20 = vsel %vm1917_vm7, %v1650_v10, %v2063_v15  ;;  %v2064_v33 = vmul.f32 %v4989_v14, %v1654_v22  ;;  %vm1918_vm10 = vcmp.ge.f32.partialorder %v1654_v22, 0.0 }
 0x15a   : > { %v1657_v23 = vpop.f32.mrf.mxu0  ;;  %v2301_v24 = vpack.c.bf16 %v2191_v20, %v2189_v19 }
 0x15b   : > { %v1658_v26 = vadd.f32 %v1657_v23, %v4980_v7  ;;  %v2065_v29 = vmul.f32 %v4985_v12, %v1656_v18  ;;  %vm1919_vm9 = vcmp.ge.f32.partialorder %v1656_v18, 0.0  ;;  %v2192_v44 = vsel %vm1918_vm10, %v1654_v22, %v2064_v33 }
 0x15c   : > { %v1659_v28 = vpop.f32.mrf.mxu0  ;;  %2671 = vmatprep.mubr.bf16.mxu1 %v2301_v24 }
 0x15d   : > { %vm1920_vm8 = vcmp.ge.f32.partialorder %v1658_v26, 0.0  ;;  %v2066_v30 = vmul.f32 %v4989_v14, %v1658_v26  ;;  %v1660_v32 = vadd.f32 %v1659_v28, %v4975_v5  ;;  %2672 = vmatmul.mubr.bf16.gmra.mxu1 %v2300_v27  ;;  %v2193_v39 = vsel %vm1919_vm9, %v1656_v18, %v2065_v29 }
 0x15e   : > { %v1663_v34 = vpop.f32.mrf.mxu0 }
 0x15f   : > { %vm1921_vm11 = vcmp.ge.f32.partialorder %v1660_v32, 0.0  ;;  %v2067_v35 = vmul.f32 %v4985_v12, %v1660_v32  ;;  %v2194_v37 = vsel %vm1920_vm8, %v1658_v26, %v2066_v30  ;;  %v1664_v41 = vadd.f32 %v1663_v34, %v4980_v7 }
 0x160   : > { %v1665_v36 = vpop.f32.mrf.mxu0  ;;  %v2302_v46 = vpack.c.bf16 %v2194_v37, %v2192_v44 }
 0x161   : > { %v1666_v38 = vadd.f32 %v1665_v36, %v4975_v5  ;;  %v2195_v40 = vsel %vm1921_vm11, %v1660_v32, %v2067_v35  ;;  %v2068_v31 = vmul.f32 %v4989_v14, %v1664_v41  ;;  %vm1922_vm14 = vcmp.ge.f32.partialorder %v1664_v41, 0.0 }
 0x162   : > { %v1667_v42 = vpop.f32.mrf.mxu0  ;;  %v2303_v43 = vpack.c.bf16 %v2195_v40, %v2193_v39 }
 0x163   : > { %v1668_v45 = vadd.f32 %v1667_v42, %v4980_v7  ;;  %v2069_v21 = vmul.f32 %v4985_v12, %v1666_v38  ;;  %vm1923_vm13 = vcmp.ge.f32.partialorder %v1666_v38, 0.0  ;;  %v2196_v63 = vsel %vm1922_vm14, %v1664_v41, %v2068_v31 }
 0x164   : > { %v1669_v47 = vpop.f32.mrf.mxu0  ;;  %2681 = vmatprep.mubr.bf16.mxu1 %v2303_v43 }
 0x165   : > { %vm1924_vm12 = vcmp.ge.f32.partialorder %v1668_v45, 0.0  ;;  %v2070_v48 = vmul.f32 %v4989_v14, %v1668_v45  ;;  %v1670_v49 = vadd.f32 %v1669_v47, %v4975_v5  ;;  %2682 = vmatmul.mubr.bf16.gmra.mxu1 %v2302_v46  ;;  %v2197_v55 = vsel %vm1923_vm13, %v1666_v38, %v2069_v21 }
 0x166   : > { %v1673_v50 = vpop.f32.mrf.mxu0 }
 0x167   : > { %vm1925_vm15 = vcmp.ge.f32.partialorder %v1670_v49, 0.0  ;;  %v2071_v51 = vmul.f32 %v4985_v12, %v1670_v49  ;;  %v2198_v53 = vsel %vm1924_vm12, %v1668_v45, %v2070_v48  ;;  %v1674_v57 = vadd.f32 %v1673_v50, %v4980_v7 }
 0x168   : > { %v1675_v52 = vpop.f32.mrf.mxu0  ;;  %v2304_v3 = vpack.c.bf16 %v2198_v53, %v2196_v63 }
 0x169   : > { %v1676_v54 = vadd.f32 %v1675_v52, %v4975_v5  ;;  %v2199_v56 = vsel %vm1925_vm15, %v1670_v49, %v2071_v51  ;;  %v2072_v10 = vmul.f32 %v4989_v14, %v1674_v57  ;;  %vm1926_vm2 = vcmp.ge.f32.partialorder %v1674_v57, 0.0 }
 0x16a   : > { %v1677_v59 = vpop.f32.mrf.mxu0  ;;  %v2305_v62 = vpack.c.bf16 %v2199_v56, %v2197_v55 }
 0x16b   : > { %v1678_v1 = vadd.f32 %v1677_v59, %v4980_v7  ;;  %v2073_v6 = vmul.f32 %v4985_v12, %v1676_v54  ;;  %vm1927_vm1 = vcmp.ge.f32.partialorder %v1676_v54, 0.0  ;;  %v2200_v24 = vsel %vm1926_vm2, %v1674_v57, %v2072_v10 }
 0x16c   : > { %v1679_v4 = vpop.f32.mrf.mxu0  ;;  %2691 = vmatprep.mubr.bf16.mxu1 %v2305_v62 }
 0x16d   : > { %vm1928_vm0 = vcmp.ge.f32.partialorder %v1678_v1, 0.0  ;;  %v2074_v8 = vmul.f32 %v4989_v14, %v1678_v1  ;;  %v1680_v9 = vadd.f32 %v1679_v4, %v4975_v5  ;;  %2692 = vmatmul.mubr.bf16.gmra.mxu1 %v2304_v3  ;;  %v2201_v18 = vsel %vm1927_vm1, %v1676_v54, %v2073_v6 }
 0x16e   : > { %v1683_v11 = vpop.f32.mrf.mxu0 }
 0x16f   : > { %vm1929_vm3 = vcmp.ge.f32.partialorder %v1680_v9, 0.0  ;;  %v2075_v13 = vmul.f32 %v4985_v12, %v1680_v9  ;;  %v2202_v16 = vsel %vm1928_vm0, %v1678_v1, %v2074_v8  ;;  %v1684_v20 = vadd.f32 %v1683_v11, %v4980_v7 }
 0x170   : > { %v1685_v15 = vpop.f32.mrf.mxu0  ;;  %v2306_v26 = vpack.c.bf16 %v2202_v16, %v2200_v24 }
 0x171   : > { %v1686_v17 = vadd.f32 %v1685_v15, %v4975_v5  ;;  %v2203_v19 = vsel %vm1929_vm3, %v1680_v9, %v2075_v13  ;;  %v2076_v32 = vmul.f32 %v4989_v14, %v1684_v20  ;;  %vm1930_vm6 = vcmp.ge.f32.partialorder %v1684_v20, 0.0 }
 0x172   : > { %v1687_v22 = vpop.f32.mrf.mxu0  ;;  %v2307_v23 = vpack.c.bf16 %v2203_v19, %v2201_v18 }
 0x173   : > { %v1688_v25 = vadd.f32 %v1687_v22, %v4980_v7  ;;  %v2077_v28 = vmul.f32 %v4985_v12, %v1686_v17  ;;  %vm1931_vm5 = vcmp.ge.f32.partialorder %v1686_v17, 0.0  ;;  %v2204_v43 = vsel %vm1930_vm6, %v1684_v20, %v2076_v32 }
 0x174   : > { %v1689_v27 = vpop.f32.mrf.mxu0  ;;  %2701 = vmatprep.mubr.bf16.mxu1 %v2307_v23 }
 0x175   : > { %vm1932_vm4 = vcmp.ge.f32.partialorder %v1688_v25, 0.0  ;;  %v2078_v29 = vmul.f32 %v4989_v14, %v1688_v25  ;;  %v1690_v30 = vadd.f32 %v1689_v27, %v4975_v5  ;;  %2702 = vmatmul.mubr.bf16.gmra.mxu1 %v2306_v26  ;;  %v2205_v38 = vsel %vm1931_vm5, %v1686_v17, %v2077_v28 }
 0x176   : > { %v1693_v33 = vpop.f32.mrf.mxu0 }
 0x177   : > { %vm1933_vm7 = vcmp.ge.f32.partialorder %v1690_v30, 0.0  ;;  %v2079_v34 = vmul.f32 %v4985_v12, %v1690_v30  ;;  %v2206_v36 = vsel %vm1932_vm4, %v1688_v25, %v2078_v29  ;;  %v1694_v40 = vadd.f32 %v1693_v33, %v4980_v7 }
 0x178   : > { %v1695_v35 = vpop.f32.mrf.mxu0  ;;  %v2308_v45 = vpack.c.bf16 %v2206_v36, %v2204_v43 }
 0x179   : > { %v1696_v37 = vadd.f32 %v1695_v35, %v4975_v5  ;;  %v2207_v39 = vsel %vm1933_vm7, %v1690_v30, %v2079_v34  ;;  %v2080_v49 = vmul.f32 %v4989_v14, %v1694_v40  ;;  %vm1934_vm10 = vcmp.ge.f32.partialorder %v1694_v40, 0.0 }
 0x17a   : > { %v1697_v41 = vpop.f32.mrf.mxu0  ;;  %v2309_v42 = vpack.c.bf16 %v2207_v39, %v2205_v38 }
 0x17b   : > { %v1698_v44 = vadd.f32 %v1697_v41, %v4980_v7  ;;  %v2081_v47 = vmul.f32 %v4985_v12, %v1696_v37  ;;  %vm1935_vm9 = vcmp.ge.f32.partialorder %v1696_v37, 0.0  ;;  %v2208_v62 = vsel %vm1934_vm10, %v1694_v40, %v2080_v49 }
 0x17c   : > { %v1699_v46 = vpop.f32.mrf.mxu0  ;;  %2711 = vmatprep.mubr.bf16.mxu1 %v2309_v42 }
 0x17d   : > { %vm1936_vm8 = vcmp.ge.f32.partialorder %v1698_v44, 0.0  ;;  %v2082_v21 = vmul.f32 %v4989_v14, %v1698_v44  ;;  %v1700_v48 = vadd.f32 %v1699_v46, %v4975_v5  ;;  %2712 = vmatmul.mubr.bf16.gmra.mxu1 %v2308_v45  ;;  %v2209_v54 = vsel %vm1935_vm9, %v1696_v37, %v2081_v47 }
 0x17e   : > { %v1703_v31 = vpop.f32.mrf.mxu0 }
 0x17f   : > { %vm1937_vm11 = vcmp.ge.f32.partialorder %v1700_v48, 0.0  ;;  %v2083_v50 = vmul.f32 %v4985_v12, %v1700_v48  ;;  %v2210_v52 = vsel %vm1936_vm8, %v1698_v44, %v2082_v21  ;;  %v1704_v56 = vadd.f32 %v1703_v31, %v4980_v7 }
 0x180   : > { %v1705_v51 = vpop.f32.mrf.mxu0  ;;  %v2310_v1 = vpack.c.bf16 %v2210_v52, %v2208_v62 }
 0x181   : > { %v1706_v53 = vadd.f32 %v1705_v51, %v4975_v5  ;;  %v2211_v55 = vsel %vm1937_vm11, %v1700_v48, %v2083_v50  ;;  %v2084_v9 = vmul.f32 %v4989_v14, %v1704_v56  ;;  %vm1938_vm14 = vcmp.ge.f32.partialorder %v1704_v56, 0.0 }
 0x182   : > { %v1707_v57 = vpop.f32.mrf.mxu0  ;;  %v2311_v59 = vpack.c.bf16 %v2211_v55, %v2209_v54 }
 0x183   : > { %v1708_v63 = vadd.f32 %v1707_v57, %v4980_v7  ;;  %v2085_v4 = vmul.f32 %v4985_v12, %v1706_v53  ;;  %vm1939_vm13 = vcmp.ge.f32.partialorder %v1706_v53, 0.0  ;;  %v2212_v23 = vsel %vm1938_vm14, %v1704_v56, %v2084_v9 }
 0x184   : > { %v1709_v3 = vpop.f32.mrf.mxu0  ;;  %2721 = vmatprep.mubr.bf16.mxu1 %v2311_v59 }
 0x185   : > { %vm1940_vm12 = vcmp.ge.f32.partialorder %v1708_v63, 0.0  ;;  %v2086_v6 = vmul.f32 %v4989_v14, %v1708_v63  ;;  %v1710_v8 = vadd.f32 %v1709_v3, %v4975_v5  ;;  %2722 = vmatmul.mubr.bf16.gmra.mxu1 %v2310_v1  ;;  %v2213_v17 = vsel %vm1939_vm13, %v1706_v53, %v2085_v4 }
 0x186   : > { %v1713_v10 = vpop.f32.mrf.mxu0 }
 0x187   : > { %vm1941_vm15 = vcmp.ge.f32.partialorder %v1710_v8, 0.0  ;;  %v2087_v11 = vmul.f32 %v4985_v12, %v1710_v8  ;;  %v2214_v15 = vsel %vm1940_vm12, %v1708_v63, %v2086_v6  ;;  %v1714_v19 = vadd.f32 %v1713_v10, %v4980_v7 }
 0x188   : > { %v1715_v13 = vpop.f32.mrf.mxu0  ;;  %v2312_v25 = vpack.c.bf16 %v2214_v15, %v2212_v23 }
 0x189   : > { %v1716_v16 = vadd.f32 %v1715_v13, %v4975_v5  ;;  %v2215_v18 = vsel %vm1941_vm15, %v1710_v8, %v2087_v11  ;;  %v2088_v30 = vmul.f32 %v4989_v14, %v1714_v19  ;;  %vm1942_vm2 = vcmp.ge.f32.partialorder %v1714_v19, 0.0 }
 0x18a   : > { %v1717_v20 = vpop.f32.mrf.mxu0  ;;  %v2313_v22 = vpack.c.bf16 %v2215_v18, %v2213_v17 }
 0x18b   : > { %v1718_v24 = vadd.f32 %v1717_v20, %v4980_v7  ;;  %v2089_v27 = vmul.f32 %v4985_v12, %v1716_v16  ;;  %vm1943_vm1 = vcmp.ge.f32.partialorder %v1716_v16, 0.0  ;;  %v2216_v42 = vsel %vm1942_vm2, %v1714_v19, %v2088_v30 }
 0x18c   : > { %v1719_v26 = vpop.f32.mrf.mxu0  ;;  %2731 = vmatprep.mubr.bf16.mxu1 %v2313_v22 }
 0x18d   : > { %vm1944_vm0 = vcmp.ge.f32.partialorder %v1718_v24, 0.0  ;;  %v2090_v28 = vmul.f32 %v4989_v14, %v1718_v24  ;;  %v1720_v29 = vadd.f32 %v1719_v26, %v4975_v5  ;;  %2732 = vmatmul.mubr.bf16.gmra.mxu1 %v2312_v25  ;;  %v2217_v37 = vsel %vm1943_vm1, %v1716_v16, %v2089_v27 }
 0x18e   : > { %v1723_v32 = vpop.f32.mrf.mxu0 }
 0x18f   : > { %vm1945_vm3 = vcmp.ge.f32.partialorder %v1720_v29, 0.0  ;;  %v2091_v33 = vmul.f32 %v4985_v12, %v1720_v29  ;;  %v2218_v35 = vsel %vm1944_vm0, %v1718_v24, %v2090_v28  ;;  %v1724_v39 = vadd.f32 %v1723_v32, %v4980_v7 }
 0x190   : > { %v1725_v34 = vpop.f32.mrf.mxu0  ;;  %v2314_v44 = vpack.c.bf16 %v2218_v35, %v2216_v42 }
 0x191   : > { %v1726_v36 = vadd.f32 %v1725_v34, %v4975_v5  ;;  %v2219_v38 = vsel %vm1945_vm3, %v1720_v29, %v2091_v33  ;;  %v2092_v48 = vmul.f32 %v4989_v14, %v1724_v39  ;;  %vm1946_vm6 = vcmp.ge.f32.partialorder %v1724_v39, 0.0 }
 0x192   : > { %v1727_v40 = vpop.f32.mrf.mxu0  ;;  %v2315_v41 = vpack.c.bf16 %v2219_v38, %v2217_v37 }
 0x193   : > { %v1728_v43 = vadd.f32 %v1727_v40, %v4980_v7  ;;  %v2093_v46 = vmul.f32 %v4985_v12, %v1726_v36  ;;  %vm1947_vm5 = vcmp.ge.f32.partialorder %v1726_v36, 0.0  ;;  %v2220_v59 = vsel %vm1946_vm6, %v1724_v39, %v2092_v48 }
 0x194   : > { %v1729_v45 = vpop.f32.mrf.mxu0  ;;  %2741 = vmatprep.mubr.bf16.mxu1 %v2315_v41 }
 0x195   : > { %vm1948_vm4 = vcmp.ge.f32.partialorder %v1728_v43, 0.0  ;;  %v2094_v47 = vmul.f32 %v4989_v14, %v1728_v43  ;;  %v1730_v21 = vadd.f32 %v1729_v45, %v4975_v5  ;;  %2742 = vmatmul.mubr.bf16.gmra.mxu1 %v2314_v44  ;;  %v2221_v53 = vsel %vm1947_vm5, %v1726_v36, %v2093_v46 }
 0x196   : > { %v1733_v49 = vpop.f32.mrf.mxu0 }
 0x197   : > { %vm1949_vm7 = vcmp.ge.f32.partialorder %v1730_v21, 0.0  ;;  %v2095_v31 = vmul.f32 %v4985_v12, %v1730_v21  ;;  %v2222_v51 = vsel %vm1948_vm4, %v1728_v43, %v2094_v47  ;;  %v1734_v55 = vadd.f32 %v1733_v49, %v4980_v7 }
 0x198   : > { %v1735_v50 = vpop.f32.mrf.mxu0  ;;  %v2316_v63 = vpack.c.bf16 %v2222_v51, %v2220_v59 }
 0x199   : > { %v1736_v52 = vadd.f32 %v1735_v50, %v4975_v5  ;;  %v2223_v54 = vsel %vm1949_vm7, %v1730_v21, %v2095_v31  ;;  %v2096_v8 = vmul.f32 %v4989_v14, %v1734_v55  ;;  %vm1950_vm10 = vcmp.ge.f32.partialorder %v1734_v55, 0.0 }
 0x19a   : > { %v1737_v56 = vpop.f32.mrf.mxu0  ;;  %v2317_v57 = vpack.c.bf16 %v2223_v54, %v2221_v53 }
 0x19b   : > { %v1738_v62 = vadd.f32 %v1737_v56, %v4980_v7  ;;  %v2097_v3 = vmul.f32 %v4985_v12, %v1736_v52  ;;  %vm1951_vm9 = vcmp.ge.f32.partialorder %v1736_v52, 0.0  ;;  %v2224_v22 = vsel %vm1950_vm10, %v1734_v55, %v2096_v8 }
 0x19c   : > { %v1739_v1 = vpop.f32.mrf.mxu0  ;;  %2751 = vmatprep.mubr.bf16.mxu1 %v2317_v57 }
 0x19d   : > { %vm1952_vm8 = vcmp.ge.f32.partialorder %v1738_v62, 0.0  ;;  %v2098_v4 = vmul.f32 %v4989_v14, %v1738_v62  ;;  %v1740_v6 = vadd.f32 %v1739_v1, %v4975_v5  ;;  %2752 = vmatmul.mubr.bf16.gmra.mxu1 %v2316_v63  ;;  %v2225_v16 = vsel %vm1951_vm9, %v1736_v52, %v2097_v3 }
 0x19e   : > { %v1743_v9 = vpop.f32.mrf.mxu0 }
 0x19f   : > { %vm1953_vm11 = vcmp.ge.f32.partialorder %v1740_v6, 0.0  ;;  %v2099_v10 = vmul.f32 %v4985_v12, %v1740_v6  ;;  %v2226_v13 = vsel %vm1952_vm8, %v1738_v62, %v2098_v4  ;;  %v1744_v18 = vadd.f32 %v1743_v9, %v4980_v7 }
 0x1a0   : > { %v1745_v11 = vpop.f32.mrf.mxu0  ;;  %v2318_v24 = vpack.c.bf16 %v2226_v13, %v2224_v22 }
 0x1a1   : > { %v1746_v15 = vadd.f32 %v1745_v11, %v4975_v5  ;;  %v2227_v17 = vsel %vm1953_vm11, %v1740_v6, %v2099_v10  ;;  %v2100_v29 = vmul.f32 %v4989_v14, %v1744_v18  ;;  %vm1954_vm14 = vcmp.ge.f32.partialorder %v1744_v18, 0.0 }
 0x1a2   : > { %v1747_v19 = vpop.f32.mrf.mxu0  ;;  %v2319_v20 = vpack.c.bf16 %v2227_v17, %v2225_v16 }
 0x1a3   : > { %v1748_v23 = vadd.f32 %v1747_v19, %v4980_v7  ;;  %v2101_v26 = vmul.f32 %v4985_v12, %v1746_v15  ;;  %vm1955_vm13 = vcmp.ge.f32.partialorder %v1746_v15, 0.0  ;;  %v2228_v41 = vsel %vm1954_vm14, %v1744_v18, %v2100_v29 }
 0x1a4   : > { %v1749_v25 = vpop.f32.mrf.mxu0  ;;  %2761 = vmatprep.mubr.bf16.mxu1 %v2319_v20 }
 0x1a5   : > { %vm1956_vm12 = vcmp.ge.f32.partialorder %v1748_v23, 0.0  ;;  %v2102_v27 = vmul.f32 %v4989_v14, %v1748_v23  ;;  %v1750_v28 = vadd.f32 %v1749_v25, %v4975_v5  ;;  %2762 = vmatmul.mubr.bf16.gmra.mxu1 %v2318_v24  ;;  %v2229_v36 = vsel %vm1955_vm13, %v1746_v15, %v2101_v26 }
 0x1a6   : > { %v1753_v30 = vpop.f32.mrf.mxu0 }
 0x1a7   : > { %vm1957_vm15 = vcmp.ge.f32.partialorder %v1750_v28, 0.0  ;;  %v2103_v32 = vmul.f32 %v4985_v12, %v1750_v28  ;;  %v2230_v34 = vsel %vm1956_vm12, %v1748_v23, %v2102_v27  ;;  %v1754_v38 = vadd.f32 %v1753_v30, %v4980_v7 }
 0x1a8   : > { %v1755_v33 = vpop.f32.mrf.mxu0  ;;  %v2320_v43 = vpack.c.bf16 %v2230_v34, %v2228_v41 }
 0x1a9   : > { %v1756_v35 = vadd.f32 %v1755_v33, %v4975_v5  ;;  %v2231_v37 = vsel %vm1957_vm15, %v1750_v28, %v2103_v32  ;;  %v2104_v21 = vmul.f32 %v4989_v14, %v1754_v38  ;;  %vm1958_vm2 = vcmp.ge.f32.partialorder %v1754_v38, 0.0 }
 0x1aa   : > { %v1757_v39 = vpop.f32.mrf.mxu0  ;;  %v2321_v40 = vpack.c.bf16 %v2231_v37, %v2229_v36 }
 0x1ab   : > { %v1758_v42 = vadd.f32 %v1757_v39, %v4980_v7  ;;  %v2105_v45 = vmul.f32 %v4985_v12, %v1756_v35  ;;  %vm1959_vm1 = vcmp.ge.f32.partialorder %v1756_v35, 0.0  ;;  %v2232_v57 = vsel %vm1958_vm2, %v1754_v38, %v2104_v21 }
 0x1ac   : > { %v1759_v44 = vpop.f32.mrf.mxu0  ;;  %2771 = vmatprep.mubr.bf16.mxu1 %v2321_v40 }
 0x1ad   : > { %vm1960_vm0 = vcmp.ge.f32.partialorder %v1758_v42, 0.0  ;;  %v2106_v46 = vmul.f32 %v4989_v14, %v1758_v42  ;;  %v1760_v47 = vadd.f32 %v1759_v44, %v4975_v5  ;;  %2772 = vmatmul.mubr.bf16.gmra.mxu1 %v2320_v43  ;;  %v2233_v52 = vsel %vm1959_vm1, %v1756_v35, %v2105_v45 }
 0x1ae   : > { %v1763_v48 = vpop.f32.mrf.mxu0 }
 0x1af   : > { %vm1961_vm3 = vcmp.ge.f32.partialorder %v1760_v47, 0.0  ;;  %v2107_v49 = vmul.f32 %v4985_v12, %v1760_v47  ;;  %v2234_v50 = vsel %vm1960_vm0, %v1758_v42, %v2106_v46  ;;  %v1764_v54 = vadd.f32 %v1763_v48, %v4980_v7 }
 0x1b0   : > { %v1765_v31 = vpop.f32.mrf.mxu0  ;;  %v2322_v62 = vpack.c.bf16 %v2234_v50, %v2232_v57 }
 0x1b1   : > { %v1766_v51 = vadd.f32 %v1765_v31, %v4975_v5  ;;  %v2235_v53 = vsel %vm1961_vm3, %v1760_v47, %v2107_v49  ;;  %v2108_v6 = vmul.f32 %v4989_v14, %v1764_v54  ;;  %vm1962_vm6 = vcmp.ge.f32.partialorder %v1764_v54, 0.0 }
 0x1b2   : > { %v1767_v55 = vpop.f32.mrf.mxu0  ;;  %v2323_v56 = vpack.c.bf16 %v2235_v53, %v2233_v52 }
 0x1b3   : > { %v1768_v59 = vadd.f32 %v1767_v55, %v4980_v7  ;;  %v2109_v1 = vmul.f32 %v4985_v12, %v1766_v51  ;;  %vm1963_vm5 = vcmp.ge.f32.partialorder %v1766_v51, 0.0  ;;  %v2236_v20 = vsel %vm1962_vm6, %v1764_v54, %v2108_v6 }
 0x1b4   : > { %v1769_v63 = vpop.f32.mrf.mxu0  ;;  %2781 = vmatprep.mubr.bf16.mxu1 %v2323_v56 }
 0x1b5   : > { %vm1964_vm4 = vcmp.ge.f32.partialorder %v1768_v59, 0.0  ;;  %v2110_v3 = vmul.f32 %v4989_v14, %v1768_v59  ;;  %v1770_v4 = vadd.f32 %v1769_v63, %v4975_v5  ;;  %2782 = vmatmul.mubr.bf16.gmra.mxu1 %v2322_v62  ;;  %v2237_v15 = vsel %vm1963_vm5, %v1766_v51, %v2109_v1 }
 0x1b6   : > { %v1773_v8 = vpop.f32.mrf.mxu0 }
 0x1b7   : > { %vm1965_vm7 = vcmp.ge.f32.partialorder %v1770_v4, 0.0  ;;  %v2111_v9 = vmul.f32 %v4985_v12, %v1770_v4  ;;  %v2238_v11 = vsel %vm1964_vm4, %v1768_v59, %v2110_v3  ;;  %v1774_v17 = vadd.f32 %v1773_v8, %v4980_v7 }
 0x1b8   : > { %v1775_v10 = vpop.f32.mrf.mxu0  ;;  %v2324_v23 = vpack.c.bf16 %v2238_v11, %v2236_v20 }
 0x1b9   : > { %v1776_v13 = vadd.f32 %v1775_v10, %v4975_v5  ;;  %v2239_v16 = vsel %vm1965_vm7, %v1770_v4, %v2111_v9  ;;  %v2112_v28 = vmul.f32 %v4989_v14, %v1774_v17  ;;  %vm1966_vm10 = vcmp.ge.f32.partialorder %v1774_v17, 0.0 }
 0x1ba   : > { %v1777_v18 = vpop.f32.mrf.mxu0  ;;  %v2325_v19 = vpack.c.bf16 %v2239_v16, %v2237_v15 }
 0x1bb   : > { %v1778_v22 = vadd.f32 %v1777_v18, %v4980_v7  ;;  %v2113_v25 = vmul.f32 %v4985_v12, %v1776_v13  ;;  %vm1967_vm9 = vcmp.ge.f32.partialorder %v1776_v13, 0.0  ;;  %v2240_v40 = vsel %vm1966_vm10, %v1774_v17, %v2112_v28 }
 0x1bc   : > { %v1779_v24 = vpop.f32.mrf.mxu0  ;;  %2791 = vmatprep.mubr.bf16.mxu1 %v2325_v19 }
 0x1bd   : > { %vm1968_vm8 = vcmp.ge.f32.partialorder %v1778_v22, 0.0  ;;  %v2114_v26 = vmul.f32 %v4989_v14, %v1778_v22  ;;  %v1780_v27 = vadd.f32 %v1779_v24, %v4975_v5  ;;  %2792 = vmatmul.mubr.bf16.gmra.mxu1 %v2324_v23  ;;  %v2241_v35 = vsel %vm1967_vm9, %v1776_v13, %v2113_v25  ;;  %v289_v23 = vld [vmem:[%s6084_s4] sm:$0xf] }
 0x1be   : > { %v1783_v29 = vpop.f32.mrf.mxu0 }
 0x1bf   : > { %vm1969_vm11 = vcmp.ge.f32.partialorder %v1780_v27, 0.0  ;;  %v2115_v30 = vmul.f32 %v4985_v12, %v1780_v27  ;;  %v2242_v33 = vsel %vm1968_vm8, %v1778_v22, %v2114_v26  ;;  %v1784_v37 = vadd.f32 %v1783_v29, %v4980_v7 }
 0x1c0   : > { %v1785_v32 = vpop.f32.mrf.mxu0  ;;  %v2326_v42 = vpack.c.bf16 %v2242_v33, %v2240_v40 }
 0x1c1   : > { %v1786_v34 = vadd.f32 %v1785_v32, %v4975_v5  ;;  %v2243_v36 = vsel %vm1969_vm11, %v1780_v27, %v2115_v30  ;;  %v2116_v47 = vmul.f32 %v4989_v14, %v1784_v37  ;;  %vm1970_vm14 = vcmp.ge.f32.partialorder %v1784_v37, 0.0 }
 0x1c2   : > { %v1787_v38 = vpop.f32.mrf.mxu0  ;;  %v2327_v39 = vpack.c.bf16 %v2243_v36, %v2241_v35  ;;  %v2384_v30 = vrot.slane %v289_v23, %v4962_v61  ;;  %v2388_v36 = vrot.slane %v289_v23, %v1037_v60 }
 0x1c3   : > { %v1788_v41 = vadd.f32 %v1787_v38, %v4980_v7  ;;  %v2117_v44 = vmul.f32 %v4985_v12, %v1786_v34  ;;  %vm1971_vm13 = vcmp.ge.f32.partialorder %v1786_v34, 0.0  ;;  %v2244_v56 = vsel %vm1970_vm14, %v1784_v37, %v2116_v47 }
 0x1c4   : > { %v1789_v43 = vpop.f32.mrf.mxu0  ;;  %2801 = vmatprep.mubr.bf16.mxu1 %v2327_v39  ;;  %v3047_v37 = vrot.slane %v289_v23, %v2016_v0 }
 0x1c5   : > { %vm1972_vm12 = vcmp.ge.f32.partialorder %v1788_v41, 0.0  ;;  %v2118_v45 = vmul.f32 %v4989_v14, %v1788_v41  ;;  %v1790_v46 = vadd.f32 %v1789_v43, %v4975_v5  ;;  %2802 = vmatmul.mubr.bf16.gmra.mxu1 %v2326_v42  ;;  %v2245_v51 = vsel %vm1971_vm13, %v1786_v34, %v2117_v44 }
 0x1c6   : > { %v1793_v21 = vpop.f32.mrf.mxu0  ;;  %v3043_v34 = vrot.slane %v289_v23, %v4972_v2  ;;  %v5201_v44 = vrot.slane %v2384_v30, %v4962_v61 }
 0x1c7   : > { %vm1973_vm15 = vcmp.ge.f32.partialorder %v1790_v46, 0.0  ;;  %v2119_v48 = vmul.f32 %v4985_v12, %v1790_v46  ;;  %v2246_v31 = vsel %vm1972_vm12, %v1788_v41, %v2118_v45  ;;  %v1794_v53 = vadd.f32 %v1793_v21, %v4980_v7 }
 0x1c8   : > { %v1795_v49 = vpop.f32.mrf.mxu0  ;;  %v2328_v59 = vpack.c.bf16 %v2246_v31, %v2244_v56  ;;  %v5208_v0 = vrot.slane %v3043_v34, %v4972_v2  ;;  %v5211_v21 = vrot.slane %v2388_v36, %v4962_v61 }
 0x1c9   : > { %v1796_v50 = vadd.f32 %v1795_v49, %v4975_v5  ;;  %v2247_v52 = vsel %vm1973_vm15, %v1790_v46, %v2119_v48  ;;  %v2120_v4 = vmul.f32 %v4989_v14, %v1794_v53  ;;  %vm1974_vm2 = vcmp.ge.f32.partialorder %v1794_v53, 0.0 }
 0x1ca   : > { %v1797_v54 = vpop.f32.mrf.mxu0  ;;  %v2329_v55 = vpack.c.bf16 %v2247_v52, %v2245_v51  ;;  %v5214_v48 = vrot.slane %v3047_v37, %v4972_v2 }
 0x1cb   : > { %v1798_v57 = vadd.f32 %v1797_v54, %v4980_v7  ;;  %v2121_v63 = vmul.f32 %v4985_v12, %v1796_v50  ;;  %vm1975_vm1 = vcmp.ge.f32.partialorder %v1796_v50, 0.0  ;;  %v2248_v19 = vsel %vm1974_vm2, %v1794_v53, %v2120_v4 }
 0x1cc   : > { %v1799_v62 = vpop.f32.mrf.mxu0  ;;  %2811 = vmatprep.mubr.bf16.mxu1 %v2329_v55  ;;  %v5222_v55 = vrot.slane %v3314_v58, %v4962_v61 }
 0x1cd   : > { %vm1976_vm0 = vcmp.ge.f32.partialorder %v1798_v57, 0.0  ;;  %v2122_v1 = vmul.f32 %v4989_v14, %v1798_v57  ;;  %v1800_v3 = vadd.f32 %v1799_v62, %v4975_v5  ;;  %2812 = vmatmul.mubr.bf16.gmra.mxu1 %v2328_v59  ;;  %v2249_v13 = vsel %vm1975_vm1, %v1796_v50, %v2121_v63 }
 0x1ce   : > { %v1803_v6 = vpop.f32.mrf.mxu0  ;;  %v5226_v59 = vrot.slane %v3314_v58, %v4972_v2 }
 0x1cf   : > { %vm1977_vm3 = vcmp.ge.f32.partialorder %v1800_v3, 0.0  ;;  %v2123_v8 = vmul.f32 %v4985_v12, %v1800_v3  ;;  %v2250_v10 = vsel %vm1976_vm0, %v1798_v57, %v2122_v1  ;;  %v1804_v16 = vadd.f32 %v1803_v6, %v4980_v7 }
 0x1d0   : > { %v1805_v9 = vpop.f32.mrf.mxu0  ;;  %v2330_v22 = vpack.c.bf16 %v2250_v10, %v2248_v19 }
 0x1d1   : > { %v1806_v11 = vadd.f32 %v1805_v9, %v4975_v5  ;;  %v2251_v15 = vsel %vm1977_vm3, %v1800_v3, %v2123_v8  ;;  %v2124_v28 = vmul.f32 %v4989_v14, %v1804_v16  ;;  %vm1978_vm6 = vcmp.ge.f32.partialorder %v1804_v16, 0.0 }
 0x1d2   : > { %v1807_v17 = vpop.f32.mrf.mxu0  ;;  %v2331_v18 = vpack.c.bf16 %v2251_v15, %v2249_v13 }
 0x1d3   : > { %v1808_v20 = vadd.f32 %v1807_v17, %v4980_v7  ;;  %v2125_v25 = vmul.f32 %v4985_v12, %v1806_v11  ;;  %vm1979_vm5 = vcmp.ge.f32.partialorder %v1806_v11, 0.0  ;;  %v2252_v45 = vsel %vm1978_vm6, %v1804_v16, %v2124_v28 }
 0x1d4   : > { %v1809_v24 = vpop.f32.mrf.mxu0  ;;  %2821 = vmatprep.mubr.bf16.mxu1 %v2331_v18 }
 0x1d5   : > { %vm1980_vm4 = vcmp.ge.f32.partialorder %v1808_v20, 0.0  ;;  %v2126_v26 = vmul.f32 %v4989_v14, %v1808_v20  ;;  %v1810_v27 = vadd.f32 %v1809_v24, %v4975_v5  ;;  %2822 = vmatmul.mubr.bf16.gmra.mxu1 %v2330_v22  ;;  %v2253_v39 = vsel %vm1979_vm5, %v1806_v11, %v2125_v25 }
 0x1d6   : > { %v1813_v29 = vpop.f32.mrf.mxu0 }
 0x1d7   : > { %vm1981_vm7 = vcmp.ge.f32.partialorder %v1810_v27, 0.0  ;;  %v2127_v32 = vmul.f32 %v4985_v12, %v1810_v27  ;;  %v2254_v35 = vsel %vm1980_vm4, %v1808_v20, %v2126_v26  ;;  %v1814_v41 = vadd.f32 %v1813_v29, %v4980_v7 }
 0x1d8   : > { %v1815_v33 = vpop.f32.mrf.mxu0  ;;  %v2332_v47 = vpack.c.bf16 %v2254_v35, %v2252_v45 }
 0x1d9   : > { %v1816_v38 = vadd.f32 %v1815_v33, %v4975_v5  ;;  %v2255_v40 = vsel %vm1981_vm7, %v1810_v27, %v2127_v32  ;;  %v2128_v52 = vmul.f32 %v4989_v14, %v1814_v41  ;;  %vm1982_vm10 = vcmp.ge.f32.partialorder %v1814_v41, 0.0 }
 0x1da   : > { %v1817_v42 = vpop.f32.mrf.mxu0  ;;  %v2333_v43 = vpack.c.bf16 %v2255_v40, %v2253_v39 }
 0x1db   : > { %v1818_v46 = vadd.f32 %v1817_v42, %v4980_v7  ;;  %v2129_v49 = vmul.f32 %v4985_v12, %v1816_v38  ;;  %vm1983_vm9 = vcmp.ge.f32.partialorder %v1816_v38, 0.0  ;;  %v2256_v13 = vsel %vm1982_vm10, %v1814_v41, %v2128_v52 }
 0x1dc   : > { %v1819_v60 = vpop.f32.mrf.mxu0  ;;  %2831 = vmatprep.mubr.bf16.mxu1 %v2333_v43 }
 0x1dd   : > { %vm1984_vm8 = vcmp.ge.f32.partialorder %v1818_v46, 0.0  ;;  %v2130_v31 = vmul.f32 %v4989_v14, %v1818_v46  ;;  %v1820_v50 = vadd.f32 %v1819_v60, %v4975_v5  ;;  %v2593_v51 = vpop.f32.mrf.mxu1  ;;  %2832 = vmatmul.mubr.bf16.gmra.mxu1 %v2332_v47  ;;  %v2257_v8 = vsel %vm1983_vm9, %v1816_v38, %v2129_v49 }
 0x1de   : > { %v2594_v53 = vadd.f32 %v2593_v51, %v5201_v44  ;;  %v1823_v54 = vpop.f32.mrf.mxu0 }
 0x1df   : > { %vm1985_vm11 = vcmp.ge.f32.partialorder %v1820_v50, 0.0  ;;  %v2131_v56 = vmul.f32 %v4985_v12, %v1820_v50  ;;  %v2595_v57 = vpop.f32.mrf.mxu1  ;;  %v2258_v3 = vsel %vm1984_vm8, %v1818_v46, %v2130_v31  ;;  %v1824_v4 = vadd.f32 %v1823_v54, %v4980_v7 }
 0x1e0   : > { %vm2912_vm12 = vcmp.ge.f32.partialorder %v2594_v53, 0.0  ;;  %v3058_v62 = vmul.f32 %v5208_v0, %v2594_v53  ;;  %v2596_v63 = vadd.f32 %v2595_v57, %v5211_v21  ;;  %v1825_v1 = vpop.f32.mrf.mxu0  ;;  %v2334_v16 = vpack.c.bf16 %v2258_v3, %v2256_v13 }
 0x1e1   : > { %v1826_v61 = vadd.f32 %v1825_v1, %v4975_v5  ;;  %v2597_v6 = vpop.f32.mrf.mxu1  ;;  %v2259_v9 = vsel %vm1985_vm11, %v1820_v50, %v2131_v56  ;;  %vm1986_vm14 = vcmp.ge.f32.partialorder %v1824_v4, 0.0  ;;  %v2132_v29 = vmul.f32 %v4989_v14, %v1824_v4 }
 0x1e2   : > { %vm2913_vm13 = vcmp.ge.f32.partialorder %v2596_v63, 0.0  ;;  %v3059_v2 = vmul.f32 %v5214_v48, %v2596_v63  ;;  %v1827_v10 = vpop.f32.mrf.mxu0  ;;  %v2335_v11 = vpack.c.bf16 %v2259_v9, %v2257_v8  ;;  %v3186_v17 = vsel %vm2912_vm12, %v2594_v53, %v3058_v62 }
 0x1e3   : > { %v2599_v15 = vpop.f32.mrf.mxu1  ;;  %v1828_v18 = vadd.f32 %v1827_v10, %v4980_v7  ;;  %v2133_v22 = vmul.f32 %v4985_v12, %v1826_v61  ;;  %vm1987_vm15 = vcmp.ge.f32.partialorder %v1826_v61, 0.0  ;;  %v2598_v25 = vadd.f32 %v2597_v6, %v5201_v44 }
 0x1e4   : > { %v1829_v19 = vpop.f32.mrf.mxu0  ;;  %2841 = vmatprep.mubr.bf16.mxu1 %v2335_v11  ;;  %v3187_v20 = vsel %vm2913_vm13, %v2596_v63, %v3059_v2  ;;  %v3326_v27 = vmul.f32 %v5222_v55, %v3186_v17  ;;  %v2600_v30 = vadd.f32 %v2599_v15, %v5211_v21  ;;  %v2260_v52 = vsel %vm1986_vm14, %v1824_v4, %v2132_v29 }
 0x1e5   : > { %v1830_v23 = vadd.f32 %v1829_v19, %v4975_v5  ;;  %v2603_v24 = vpop.f32.mrf.mxu1  ;;  %2842 = vmatmul.mubr.bf16.gmra.mxu1 %v2334_v16  ;;  %v3327_v28 = vmul.f32 %v5226_v59, %v3187_v20  ;;  %vm1988_vm1 = vcmp.ge.f32.partialorder %v1828_v18, 0.0  ;;  %v2134_v34 = vmul.f32 %v4989_v14, %v1828_v18 }
 0x1e6   : > { %v1833_v26 = vpop.f32.mrf.mxu0  ;;  %v2604_v35 = vadd.f32 %v2603_v24, %v5201_v44  ;;  %v2261_v41 = vsel %vm1987_vm15, %v1826_v61, %v2133_v22  ;;  %vm2914_vm2 = vcmp.ge.f32.partialorder %v2598_v25, 0.0  ;;  %v3060_v43 = vmul.f32 %v5208_v0, %v2598_v25 }
 0x1e7   : > { %vm1989_vm0 = vcmp.ge.f32.partialorder %v1830_v23, 0.0  ;;  %v2135_v32 = vmul.f32 %v4985_v12, %v1830_v23  ;;  %v2605_v33 = vpop.f32.mrf.mxu1  ;;  %v3454_v37 = vadd.f32 %v3327_v28, %v3326_v27  ;;  %v5249_v38 = vadd.f32 %v1833_v26, %v4980_v7 }
 0x1e8   : > { %v1835_v36 = vpop.f32.mrf.mxu0  ;;  %v2606_v39 = vadd.f32 %v2605_v33, %v5211_v21  ;;  %vm2915_vm3 = vcmp.ge.f32.partialorder %v2600_v30, 0.0  ;;  %v3061_v58 = vmul.f32 %v5214_v48, %v2600_v30  ;;  %vm2916_vm4 = vcmp.ge.f32.partialorder %v2604_v35, 0.0 }
 0x1e9   : > { %v2607_v40 = vpop.f32.mrf.mxu1  ;;  %v2263_v42 = vsel %vm1989_vm0, %v1830_v23, %v2135_v32  ;;  %v5255_v45 = vadd.f32 %v1835_v36, %v4975_v5  ;;  %3455 = vadd.xlane.f32.xlu0 %v3454_v37  ;;  %v3062_v50 = vmul.f32 %v5208_v0, %v2604_v35  ;;  %v2262_v53 = vsel %vm1988_vm1, %v1828_v18, %v2134_v34 }
 0x1ea   : > { %v1837_v46 = vpop.f32.mrf.mxu0  ;;  %v2337_v47 = vpack.c.bf16 %v2263_v42, %v2261_v41  ;;  %v5259_v60 = vadd.f32 %v2607_v40, %v5201_v44  ;;  %v5269_v54 = vmul.f32 %v4989_v14, %v5249_v38  ;;  %vm2917_vm5 = vcmp.ge.f32.partialorder %v2606_v39, 0.0 }
 0x1eb   : > { %v5262_v49 = vadd.f32 %v1837_v46, %v4980_v7  ;;  %v2609_v31 = vpop.f32.mrf.mxu1  ;;  %v2336_v62 = vpack.c.bf16 %v2262_v53, %v2260_v52  ;;  %vm1990_vm6 = vcmp.ge.f32.partialorder %v5249_v38, 0.0  ;;  %v3063_v63 = vmul.f32 %v5214_v48, %v2606_v39 }
 0x1ec   : > { %v1839_v51 = vpop.f32.mrf.mxu0  ;;  %2851 = vmatprep.mubr.bf16.mxu1 %v2337_v47  ;;  %vm1991_vm7 = vcmp.ge.f32.partialorder %v5255_v45, 0.0  ;;  %v2137_v1 = vmul.f32 %v4985_v12, %v5255_v45  ;;  %v3188_v3 = vsel %vm2914_vm2, %v2598_v25, %v3060_v43  ;;  %vm2918_vm8 = vcmp.ge.f32.partialorder %v5259_v60, 0.0 }
 0x1ed   : > { %v1840_v56 = vadd.f32 %v1839_v51, %v4975_v5  ;;  %v2613_v57 = vpop.f32.mrf.mxu1  ;;  %v5281_v61 = vmul.f32 %v5208_v0, %v5259_v60  ;;  %vm1992_vm9 = vcmp.ge.f32.partialorder %v5262_v49, 0.0  ;;  %v5285_v6 = vadd.f32 %v2609_v31, %v5211_v21  ;;  %2852 = vmatmul.mubr.bf16.gmra.mxu1 %v2336_v62 }
 0x1ee   : > { %v1843_v4 = vpop.f32.mrf.mxu0  ;;  %v3189_v8 = vsel %vm2915_vm3, %v2600_v30, %v3061_v58  ;;  %v5289_v2 = vadd.f32 %v2613_v57, %v5201_v44  ;;  %v3328_v10 = vmul.f32 %v5222_v55, %v3188_v3  ;;  %v2138_v16 = vmul.f32 %v4989_v14, %v5262_v49 }
 0x1ef   : > { %v2615_v9 = vpop.f32.mrf.mxu1  ;;  %v3329_v11 = vmul.f32 %v5226_v59, %v3189_v8  ;;  %v1844_v13 = vadd.f32 %v1843_v4, %v4980_v7  ;;  %v2139_v17 = vmul.f32 %v4985_v12, %v1840_v56  ;;  %v3190_v24 = vsel %vm2916_vm4, %v2604_v35, %v3062_v50 }
 0x1f0   : > { %v1845_v15 = vpop.f32.mrf.mxu0  ;;  %v5298_v18 = vadd.f32 %v2615_v9, %v5211_v21  ;;  %v3191_v25 = vsel %vm2917_vm5, %v2606_v39, %v3063_v63  ;;  %vm2919_vm10 = vcmp.ge.f32.partialorder %v5285_v6, 0.0  ;;  %vm1993_vm11 = vcmp.ge.f32.partialorder %v1840_v56, 0.0 }
 0x1f1   : > { %v5301_v19 = vadd.f32 %v1845_v15, %v4975_v5  ;;  %v2617_v20 = vpop.f32.mrf.mxu1  ;;  %v3457_v22 = vadd.f32 %v3329_v11, %v3328_v10  ;;  %v2140_v23 = vmul.f32 %v4989_v14, %v1844_v13  ;;  %vm1994_vm12 = vcmp.ge.f32.partialorder %v1844_v13, 0.0 }
 0x1f2   : > { %v1847_v26 = vpop.f32.mrf.mxu0  ;;  %v5308_v27 = vadd.f32 %v2617_v20, %v5201_v44  ;;  %v3065_v29 = vmul.f32 %v5214_v48, %v5285_v6  ;;  %vm2920_vm13 = vcmp.ge.f32.partialorder %v5289_v2, 0.0  ;;  %v3066_v30 = vmul.f32 %v5208_v0, %v5289_v2 }
 0x1f3   : > { %v2619_v28 = vpop.f32.mrf.mxu1  ;;  %3458 = vadd.xlane.f32.xlu0 %v3457_v22  ;;  %vm2921_vm14 = vcmp.ge.f32.partialorder %v5298_v18, 0.0  ;;  %v3330_v33 = vmul.f32 %v5222_v55, %v3190_v24  ;;  %v3331_v34 = vmul.f32 %v5226_v59, %v3191_v25  ;;  %v1848_v35 = vadd.f32 %v1847_v26, %v4980_v7 }
 0x1f4   : > { %v1849_v32 = vpop.f32.mrf.mxu0  ;;  %v5320_v36 = vadd.f32 %v2619_v28, %v5211_v21  ;;  %v5322_v39 = vsel %vm1994_vm12, %v1844_v13, %v2140_v23  ;;  %v3067_v40 = vmul.f32 %v5214_v48, %v5298_v18  ;;  %v5328_v41 = vmul.f32 %v4985_v12, %v5301_v19 }
 0x1f5   : > { %v2623_v37 = vpop.f32.mrf.mxu1  ;;  %v2267_v42 = vsel %vm1993_vm11, %v1840_v56, %v2139_v17  ;;  %vm1995_vm15 = vcmp.ge.f32.partialorder %v5301_v19, 0.0  ;;  %vm2922_vm0 = vcmp.ge.f32.partialorder %v5308_v27, 0.0  ;;  %v3460_v46 = vadd.f32 %v3331_v34, %v3330_v33 }
 0x1f6   : > { %v1853_v43 = vpop.f32.mrf.mxu0  ;;  %vm1996_vm1 = vcmp.ge.f32.partialorder %v1848_v35, 0.0  ;;  %v2142_v47 = vmul.f32 %v4989_v14, %v1848_v35  ;;  %v2265_v58 = vsel %vm1991_vm7, %v5255_v45, %v2137_v1  ;;  %v3068_v50 = vmul.f32 %v5208_v0, %v5308_v27 }
 0x1f7   : > { %v2625_v31 = vpop.f32.mrf.mxu1  ;;  %v1850_v51 = vadd.f32 %v1849_v32, %v4975_v5  ;;  %v2339_v52 = vpack.c.bf16 %v2267_v42, %v2265_v58  ;;  %v5341_v53 = vadd.f32 %v2623_v37, %v5201_v44  ;;  %3461 = vadd.xlane.f32.xlu1 %v3460_v46  ;;  %vm2923_vm2 = vcmp.ge.f32.partialorder %v5320_v36, 0.0 }
 0x1f8   : > { %v1855_v56 = vpop.f32.mrf.mxu0  ;;  %v5346_v57 = vmul.f32 %v5214_v48, %v5320_v36  ;;  %v2264_v45 = vsel %vm1990_vm6, %v5249_v38, %v5269_v54  ;;  %v2266_v62 = vsel %vm1992_vm9, %v5262_v49, %v2138_v16  ;;  %v5355_v1 = vsel %vm1996_vm1, %v1848_v35, %v2142_v47 }
 0x1f9   : > { %v2627_v63 = vpop.f32.mrf.mxu1  ;;  %2861 = vmatprep.mubr.bf16.mxu1 %v2339_v52  ;;  %v2338_v3 = vpack.c.bf16 %v2266_v62, %v2264_v45  ;;  %v3192_v4 = vsel %vm2918_vm8, %v5259_v60, %v5281_v61  ;;  %v3193_v8 = vsel %vm2919_vm10, %v5285_v6, %v3065_v29  ;;  %v1854_v49 = vadd.f32 %v1853_v43, %v4980_v7 }
 0x1fa   : > { %v1857_v9 = vpop.f32.mrf.mxu0  ;;  %v3332_v38 = vmul.f32 %v5222_v55, %v3192_v4  ;;  %v3333_v54 = vmul.f32 %v5226_v59, %v3193_v8  ;;  %v2626_v10 = vadd.f32 %v2625_v31, %v5211_v21  ;;  %vm1997_vm3 = vcmp.ge.f32.partialorder %v1850_v51, 0.0 }
 0x1fb   : > { %v2629_v11 = vpop.f32.mrf.mxu1  ;;  %2862 = vmatmul.mubr.bf16.gmra.mxu1 %v2338_v3  ;;  %v5369_v13 = vadd.f32 %v1855_v56, %v4975_v5  ;;  %v3194_v60 = vsel %vm2920_vm13, %v5289_v2, %v3066_v30  ;;  %v3195_v61 = vsel %vm2921_vm14, %v5298_v18, %v3067_v40  ;;  %v2143_v15 = vmul.f32 %v4985_v12, %v1850_v51 }
 0x1fc   : > { %v1859_v6 = vpop.f32.mrf.mxu0  ;;  %v3463_v16 = vadd.f32 %v3333_v54, %v3332_v38  ;;  %v2144_v17 = vmul.f32 %v4989_v14, %v1854_v49  ;;  %v5380_v20 = vadd.f32 %v2627_v63, %v5201_v44  ;;  %v2340_v23 = vpack.c.bf16 %v5355_v1, %v5322_v39 }
 0x1fd   : > { %v2633_v22 = vpop.f32.mrf.mxu1  ;;  %vm2924_vm4 = vcmp.ge.f32.partialorder %v5341_v53, 0.0  ;;  %v3070_v2 = vmul.f32 %v5208_v0, %v5341_v53  ;;  %vm1998_vm5 = vcmp.ge.f32.partialorder %v1854_v49, 0.0  ;;  %vm2925_vm6 = vcmp.ge.f32.partialorder %v2626_v10, 0.0 }
 0x1fe   : > { %v1863_v18 = vpop.f32.mrf.mxu0  ;;  %3464 = vadd.xlane.f32.xlu1 %v3463_v16  ;;  %v3071_v24 = vmul.f32 %v5214_v48, %v2626_v10  ;;  %v3334_v25 = vmul.f32 %v5222_v55, %v3194_v60  ;;  %v3335_v26 = vmul.f32 %v5226_v59, %v3195_v61  ;;  %v5392_v29 = vmul.f32 %v4985_v12, %v5369_v13 }
 0x1ff   : > { %v2635_v28 = vpop.f32.mrf.mxu1  ;;  %v1858_v30 = vadd.f32 %v1857_v9, %v4980_v7  ;;  %v5396_v32 = vadd.f32 %v2629_v11, %v5211_v21  ;;  %v1860_v33 = vadd.f32 %v1859_v6, %v4975_v5  ;;  %v5399_v35 = vsel %vm1998_vm5, %v1854_v49, %v2144_v17 }
 0x200   : > { %v1865_v34 = vpop.f32.mrf.mxu0  ;;  %vm1999_vm7 = vcmp.ge.f32.partialorder %v5369_v13, 0.0  ;;  %vm2926_vm8 = vcmp.ge.f32.partialorder %v5380_v20, 0.0  ;;  %v3466_v37 = vadd.f32 %v3335_v26, %v3334_v25  ;;  %v2271_v39 = vsel %vm1997_vm3, %v1850_v51, %v2143_v15 }
 0x201   : > { %v2637_v40 = vpop.f32.mrf.mxu1  ;;  %vm2000_vm9 = vcmp.ge.f32.partialorder %v1858_v30, 0.0  ;;  %v2146_v42 = vmul.f32 %v4989_v14, %v1858_v30  ;;  %v2269_v43 = vsel %vm1995_vm15, %v5301_v19, %v5328_v41  ;;  %v3196_v46 = vsel %vm2922_vm0, %v5308_v27, %v3068_v50 }
 0x202   : > { %v1867_v47 = vpop.f32.mrf.mxu0  ;;  %v3072_v58 = vmul.f32 %v5208_v0, %v5380_v20  ;;  %3467 = vadd.xlane.f32.xlu0 %v3466_v37  ;;  %vm2927_vm10 = vcmp.ge.f32.partialorder %v5396_v32, 0.0  ;;  %v2341_v31 = vpack.c.bf16 %v2271_v39, %v2269_v43  ;;  %v5416_v51 = vadd.f32 %v2633_v22, %v5201_v44 }
 0x203   : > { %v2639_v52 = vpop.f32.mrf.mxu1  ;;  %v5418_v56 = vsel %vm2000_vm9, %v1858_v30, %v2146_v42  ;;  %v3073_v19 = vmul.f32 %v5214_v48, %v5396_v32  ;;  %vm2001_vm11 = vcmp.ge.f32.partialorder %v1860_v33, 0.0  ;;  %v3197_v27 = vsel %vm2923_vm2, %v5320_v36, %v5346_v57 }
 0x204   : > { %v1869_v41 = vpop.f32.mrf.mxu0  ;;  %2871 = vmatprep.mubr.bf16.mxu1 %v2341_v31  ;;  %v3336_v50 = vmul.f32 %v5222_v55, %v3196_v46  ;;  %v3337_v45 = vmul.f32 %v5226_v59, %v3197_v27  ;;  %v1864_v62 = vadd.f32 %v1863_v18, %v4980_v7  ;;  %v2636_v63 = vadd.f32 %v2635_v28, %v5211_v21 }
 0x205   : > { %v2643_v1 = vpop.f32.mrf.mxu1  ;;  %v2147_v3 = vmul.f32 %v4985_v12, %v1860_v33  ;;  %2872 = vmatmul.mubr.bf16.gmra.mxu1 %v2340_v23  ;;  %v5432_v4 = vadd.f32 %v1865_v34, %v4975_v5  ;;  %v3198_v36 = vsel %vm2924_vm4, %v5341_v53, %v3070_v2  ;;  %v3199_v57 = vsel %vm2925_vm6, %v2626_v10, %v3071_v24 }
 0x206   : > { %v1873_v8 = vpop.f32.mrf.mxu0  ;;  %v3469_v9 = vadd.f32 %v3337_v45, %v3336_v50  ;;  %vm2002_vm12 = vcmp.ge.f32.partialorder %v1864_v62, 0.0  ;;  %v2148_v38 = vmul.f32 %v4989_v14, %v1864_v62  ;;  %v5440_v54 = vadd.f32 %v2637_v40, %v5201_v44 }
 0x207   : > { %v2645_v49 = vpop.f32.mrf.mxu1  ;;  %v2342_v11 = vpack.c.bf16 %v5418_v56, %v5399_v35  ;;  %vm2928_vm13 = vcmp.ge.f32.partialorder %v5416_v51, 0.0  ;;  %v3074_v60 = vmul.f32 %v5208_v0, %v5416_v51  ;;  %vm2929_vm14 = vcmp.ge.f32.partialorder %v2636_v63, 0.0 }
 0x208   : > { %3470 = vadd.xlane.f32.xlu1 %v3469_v9  ;;  %v3075_v53 = vmul.f32 %v5214_v48, %v2636_v63  ;;  %v5450_v10 = vmul.f32 %v4985_v12, %v5432_v4  ;;  %v3338_v61 = vmul.f32 %v5222_v55, %v3198_v36  ;;  %v3339_v6 = vmul.f32 %v5226_v59, %v3199_v57  ;;  %v1875_v15 = vpop.f32.mrf.mxu0 }
 0x209   : > { %v2647_v16 = vpop.f32.mrf.mxu1  ;;  %v5454_v17 = vsel %vm2002_vm12, %v1864_v62, %v2148_v38  ;;  %vm2003_vm15 = vcmp.ge.f32.partialorder %v5432_v4, 0.0  ;;  %v1868_v22 = vadd.f32 %v1867_v47, %v4980_v7  ;;  %v5459_v23 = vadd.f32 %v2639_v52, %v5211_v21 }
 0x20a   : > { %v1870_v2 = vadd.f32 %v1869_v41, %v4975_v5  ;;  %vm2930_vm0 = vcmp.ge.f32.partialorder %v5440_v54, 0.0  ;;  %v3076_v18 = vmul.f32 %v5208_v0, %v5440_v54  ;;  %v3472_v24 = vadd.f32 %v3339_v6, %v3338_v61  ;;  %v1877_v39 = vpop.f32.mrf.mxu0 }
 0x20b   : > { %v2275_v25 = vsel %vm2001_vm11, %v1860_v33, %v2147_v3  ;;  %v5467_v26 = vadd.f32 %v2643_v1, %v5201_v44  ;;  %v2649_v28 = vpop.f32.mrf.mxu1  ;;  %vm2004_vm1 = vcmp.ge.f32.partialorder %v1868_v22, 0.0  ;;  %v2150_v30 = vmul.f32 %v4989_v14, %v1868_v22 }
 0x20c   : > { %v2273_v34 = vsel %vm1999_vm7, %v5369_v13, %v5392_v29  ;;  %v3200_v35 = vsel %vm2926_vm8, %v5380_v20, %v3072_v58  ;;  %3473 = vadd.xlane.f32.xlu0 %v3472_v24  ;;  %vm2931_vm2 = vcmp.ge.f32.partialorder %v5459_v23, 0.0  ;;  %v3077_v33 = vmul.f32 %v5214_v48, %v5459_v23  ;;  %v1879_v45 = vpop.f32.mrf.mxu0 }
 0x20d   : > { %vm2005_vm3 = vcmp.ge.f32.partialorder %v1870_v2, 0.0  ;;  %v2343_v37 = vpack.c.bf16 %v2275_v25, %v2273_v34  ;;  %v2653_v40 = vpop.f32.mrf.mxu1  ;;  %v2278_v42 = vsel %vm2004_vm1, %v1868_v22, %v2150_v30  ;;  %v2151_v43 = vmul.f32 %v4985_v12, %v1870_v2 }
 0x20e   : > { %v3078_v13 = vmul.f32 %v5208_v0, %v5467_v26  ;;  %v3201_v20 = vsel %vm2927_vm10, %v5396_v32, %v3073_v19  ;;  %vm2932_vm4 = vcmp.ge.f32.partialorder %v5467_v26, 0.0  ;;  %v3340_v29 = vmul.f32 %v5222_v55, %v3200_v35 }
 0x20f   : > { %2881 = vmatprep.mubr.bf16.mxu1 %v2343_v37  ;;  %v3341_v46 = vmul.f32 %v5226_v59, %v3201_v20  ;;  %v1874_v47 = vadd.f32 %v1873_v8, %v4980_v7  ;;  %v2646_v58 = vadd.f32 %v2645_v49, %v5211_v21  ;;  %v2655_v31 = vpop.f32.mrf.mxu1  ;;  %v1876_v52 = vadd.f32 %v1875_v15, %v4975_v5 }
 0x210   : > { %2882 = vmatmul.mubr.bf16.gmra.mxu1 %v2342_v11  ;;  %v5493_v56 = vadd.f32 %v2647_v16, %v5201_v44  ;;  %v3202_v32 = vsel %vm2928_vm13, %v5416_v51, %v3074_v60  ;;  %v3203_v19 = vsel %vm2929_vm14, %v2636_v63, %v3075_v53  ;;  %v2344_v27 = vpack.c.bf16 %v2278_v42, %v5454_v17 }
 0x211   : > { %v3475_v41 = vadd.f32 %v3341_v46, %v3340_v29  ;;  %vm2006_vm5 = vcmp.ge.f32.partialorder %v1874_v47, 0.0  ;;  %v2152_v50 = vmul.f32 %v4989_v14, %v1874_v47  ;;  %v2657_v62 = vpop.f32.mrf.mxu1  ;;  %vm2933_vm6 = vcmp.ge.f32.partialorder %v2646_v58, 0.0 }
 0x212   : > { %v3079_v1 = vmul.f32 %v5214_v48, %v2646_v58  ;;  %vm2007_vm7 = vcmp.ge.f32.partialorder %v1876_v52, 0.0  ;;  %v2153_v3 = vmul.f32 %v4985_v12, %v1876_v52  ;;  %vm2934_vm8 = vcmp.ge.f32.partialorder %v5493_v56, 0.0 }
 0x213   : > { %3476 = vadd.xlane.f32.xlu1 %v3475_v41  ;;  %v5503_v36 = vsel %vm2006_vm5, %v1874_v47, %v2152_v50  ;;  %v3342_v51 = vmul.f32 %v5222_v55, %v3202_v32  ;;  %v3343_v63 = vmul.f32 %v5226_v59, %v3203_v19  ;;  %v2659_v57 = vpop.f32.mrf.mxu1  ;;  %v3080_v8 = vmul.f32 %v5208_v0, %v5493_v56 }
 0x214   : > { %v1878_v9 = vadd.f32 %v1877_v39, %v4980_v7  ;;  %v2650_v38 = vadd.f32 %v2649_v28, %v5211_v21  ;;  %v1880_v49 = vadd.f32 %v1879_v45, %v4975_v5  ;;  %v2277_v60 = vsel %vm2003_vm15, %v5432_v4, %v5450_v10 }
 0x215   : > { %v3478_v11 = vadd.f32 %v3343_v63, %v3342_v51  ;;  %v2279_v53 = vsel %vm2005_vm3, %v1870_v2, %v2151_v43  ;;  %v2654_v61 = vadd.f32 %v2653_v40, %v5201_v44  ;;  %v2663_v6 = vpop.f32.mrf.mxu1  ;;  %v3204_v7 = vsel %vm2930_vm0, %v5440_v54, %v3076_v18 }
 0x216   : > { %vm2008_vm9 = vcmp.ge.f32.partialorder %v1878_v9, 0.0  ;;  %v2154_v15 = vmul.f32 %v4989_v14, %v1878_v9  ;;  %vm2935_vm10 = vcmp.ge.f32.partialorder %v2650_v38, 0.0  ;;  %v3081_v5 = vmul.f32 %v5214_v48, %v2650_v38 }
 0x217   : > { %3479 = vadd.xlane.f32.xlu0 %v3478_v11  ;;  %vm2009_vm11 = vcmp.ge.f32.partialorder %v1880_v49, 0.0  ;;  %v2155_v16 = vmul.f32 %v4985_v12, %v1880_v49  ;;  %v2345_v4 = vpack.c.bf16 %v2279_v53, %v2277_v60  ;;  %v2665_v10 = vpop.f32.mrf.mxu1  ;;  %vm2936_vm12 = vcmp.ge.f32.partialorder %v2654_v61, 0.0 }
 0x218   : > { %v2282_v17 = vsel %vm2008_vm9, %v1878_v9, %v2154_v15  ;;  %v3082_v22 = vmul.f32 %v5208_v0, %v2654_v61  ;;  %v3205_v14 = vsel %vm2931_vm2, %v5459_v23, %v3077_v33  ;;  %v3344_v2 = vmul.f32 %v5222_v55, %v3204_v7 }
 0x219   : > { %2891 = vmatprep.mubr.bf16.mxu1 %v2345_v4  ;;  %v3345_v54 = vmul.f32 %v5226_v59, %v3205_v14  ;;  %v2656_v18 = vadd.f32 %v2655_v31, %v5211_v21  ;;  %v2658_v24 = vadd.f32 %v2657_v62, %v5201_v44  ;;  %v2667_v12 = vpop.f32.mrf.mxu1  ;;  %v2346_v25 = vpack.c.bf16 %v2282_v17, %v5503_v36 }
 0x21a   : > { %2892 = vmatmul.mubr.bf16.gmra.mxu1 %v2344_v27  ;;  %v3206_v28 = vsel %vm2932_vm4, %v5467_v26, %v3078_v13  ;;  %v3207_v30 = vsel %vm2933_vm6, %v2646_v58, %v3079_v1  ;;  %v2660_v23 = vadd.f32 %v2659_v57, %v5211_v21  ;;  %v2281_v33 = vsel %vm2007_vm7, %v1876_v52, %v2153_v3 }
 0x21b   : > { %v3481_v34 = vadd.f32 %v3345_v54, %v3344_v2  ;;  %vm2937_vm13 = vcmp.ge.f32.partialorder %v2656_v18, 0.0  ;;  %v3083_v35 = vmul.f32 %v5214_v48, %v2656_v18  ;;  %v2669_v37 = vpop.f32.mrf.mxu1  ;;  %vm2938_vm14 = vcmp.ge.f32.partialorder %v2658_v24, 0.0 }
 0x21c   : > { %v3084_v39 = vmul.f32 %v5208_v0, %v2658_v24  ;;  %v3346_v40 = vmul.f32 %v5222_v55, %v3206_v28  ;;  %v3347_v42 = vmul.f32 %v5226_v59, %v3207_v30  ;;  %vm2939_vm15 = vcmp.ge.f32.partialorder %v2660_v23, 0.0 }
 0x21d   : > { %3482 = vadd.xlane.f32.xlu1 %v3481_v34  ;;  %v2283_v26 = vsel %vm2009_vm11, %v1880_v49, %v2155_v16  ;;  %v2664_v43 = vadd.f32 %v2663_v6, %v5201_v44  ;;  %v3208_v13 = vsel %vm2934_vm8, %v5493_v56, %v3080_v8  ;;  %v2673_v20 = vpop.f32.mrf.mxu1  ;;  %v3085_v46 = vmul.f32 %v5214_v48, %v2660_v23 }
 0x21e   : > { %v3484_v29 = vadd.f32 %v3347_v42, %v3346_v40  ;;  %v2347_v47 = vpack.c.bf16 %v2283_v26, %v2281_v33  ;;  %v3209_v58 = vsel %vm2935_vm10, %v2650_v38, %v3081_v5  ;;  %v3348_v52 = vmul.f32 %v5222_v55, %v3208_v13 }
 0x21f   : > { %v3086_v31 = vmul.f32 %v5208_v0, %v2664_v43  ;;  %v3349_v32 = vmul.f32 %v5226_v59, %v3209_v58  ;;  %v2666_v19 = vadd.f32 %v2665_v10, %v5211_v21  ;;  %v2675_v27 = vpop.f32.mrf.mxu1  ;;  %vm2940_vm0 = vcmp.ge.f32.partialorder %v2664_v43, 0.0 }
 0x220   : > { %3485 = vadd.xlane.f32.xlu0 %v3484_v29  ;;  %2901 = vmatprep.mubr.bf16.mxu1 %v2347_v47  ;;  %v2668_v56 = vadd.f32 %v2667_v12, %v5201_v44  ;;  %v3210_v41 = vsel %vm2936_vm12, %v2654_v61, %v3082_v22  ;;  %v3211_v50 = vsel %vm2937_vm13, %v2656_v18, %v3083_v35 }
 0x221   : > { %v3487_v45 = vadd.f32 %v3349_v32, %v3348_v52  ;;  %vm2941_vm1 = vcmp.ge.f32.partialorder %v2666_v19, 0.0  ;;  %v3087_v62 = vmul.f32 %v5214_v48, %v2666_v19  ;;  %v3350_v1 = vmul.f32 %v5222_v55, %v3210_v41  ;;  %v2677_v3 = vpop.f32.mrf.mxu1 }
 0x222   : > { %2902 = vmatmul.mubr.bf16.gmra.mxu1 %v2346_v25  ;;  %vm2942_vm2 = vcmp.ge.f32.partialorder %v2668_v56, 0.0  ;;  %v3088_v36 = vmul.f32 %v5208_v0, %v2668_v56  ;;  %v3351_v51 = vmul.f32 %v5226_v59, %v3211_v50  ;;  %v2670_v63 = vadd.f32 %v2669_v37, %v5211_v21 }
 0x223   : > { %3488 = vadd.xlane.f32.xlu1 %v3487_v45  ;;  %v2674_v57 = vadd.f32 %v2673_v20, %v5201_v44  ;;  %v3212_v8 = vsel %vm2938_vm14, %v2658_v24, %v3084_v39  ;;  %v3213_v9 = vsel %vm2939_vm15, %v2660_v23, %v3085_v46  ;;  %v2676_v38 = vadd.f32 %v2675_v27, %v5211_v21  ;;  %v2679_v49 = vpop.f32.mrf.mxu1 }
 0x224   : > { %v3490_v11 = vadd.f32 %v3351_v51, %v3350_v1  ;;  %vm2943_vm3 = vcmp.ge.f32.partialorder %v2670_v63, 0.0  ;;  %v3089_v60 = vmul.f32 %v5214_v48, %v2670_v63  ;;  %v3352_v53 = vmul.f32 %v5222_v55, %v3212_v8 }
 0x225   : > { %vm2944_vm4 = vcmp.ge.f32.partialorder %v2674_v57, 0.0  ;;  %v3090_v61 = vmul.f32 %v5208_v0, %v2674_v57  ;;  %v3353_v6 = vmul.f32 %v5226_v59, %v3213_v9  ;;  %vm2945_vm5 = vcmp.ge.f32.partialorder %v2676_v38, 0.0  ;;  %v2683_v15 = vpop.f32.mrf.mxu1 }
 0x226   : > { %3491 = vadd.xlane.f32.xlu0 %v3490_v11  ;;  %v3091_v7 = vmul.f32 %v5214_v48, %v2676_v38  ;;  %v2678_v5 = vadd.f32 %v2677_v3, %v5201_v44  ;;  %v3214_v16 = vsel %vm2940_vm0, %v2664_v43, %v3086_v31  ;;  %v3215_v4 = vsel %vm2941_vm1, %v2666_v19, %v3087_v62 }
 0x227   : > { %v3493_v10 = vadd.f32 %v3353_v6, %v3352_v53  ;;  %v3354_v17 = vmul.f32 %v5222_v55, %v3214_v16  ;;  %v3355_v22 = vmul.f32 %v5226_v59, %v3215_v4  ;;  %v2680_v14 = vadd.f32 %v2679_v49, %v5211_v21  ;;  %v2685_v2 = vpop.f32.mrf.mxu1 }
 0x228   : > { %vm2946_vm6 = vcmp.ge.f32.partialorder %v2678_v5, 0.0  ;;  %v3092_v54 = vmul.f32 %v5208_v0, %v2678_v5  ;;  %v2684_v18 = vadd.f32 %v2683_v15, %v5201_v44  ;;  %v3216_v24 = vsel %vm2942_vm2, %v2668_v56, %v3088_v36 }
 0x229   : > { %3494 = vadd.xlane.f32.xlu1 %v3493_v10  ;;  %v3496_v12 = vadd.f32 %v3355_v22, %v3354_v17  ;;  %vm2947_vm7 = vcmp.ge.f32.partialorder %v2680_v14, 0.0  ;;  %v3093_v25 = vmul.f32 %v5214_v48, %v2680_v14  ;;  %v3217_v28 = vsel %vm2943_vm3, %v2670_v63, %v3089_v60  ;;  %v2687_v30 = vpop.f32.mrf.mxu1 }
 0x22a   : > { %vm2948_vm8 = vcmp.ge.f32.partialorder %v2684_v18, 0.0  ;;  %v3094_v23 = vmul.f32 %v5208_v0, %v2684_v18  ;;  %v3356_v34 = vmul.f32 %v5222_v55, %v3216_v24  ;;  %v3357_v35 = vmul.f32 %v5226_v59, %v3217_v28 }
 0x22b   : > { %3497 = vadd.xlane.f32.xlu0 %v3496_v12  ;;  %v2686_v33 = vadd.f32 %v2685_v2, %v5211_v21  ;;  %v2688_v37 = vadd.f32 %v2687_v30, %v5201_v44  ;;  %v3218_v39 = vsel %vm2944_vm4, %v2674_v57, %v3090_v61  ;;  %v3219_v40 = vsel %vm2945_vm5, %v2676_v38, %v3091_v7  ;;  %v2689_v42 = vpop.f32.mrf.mxu1 }
 0x22c   : > { %v3499_v26 = vadd.f32 %v3357_v35, %v3356_v34  ;;  %v3358_v43 = vmul.f32 %v5222_v55, %v3218_v39  ;;  %v3359_v13 = vmul.f32 %v5226_v59, %v3219_v40  ;;  %v2690_v20 = vadd.f32 %v2689_v42, %v5211_v21 }
 0x22d   : > { %vm2949_vm9 = vcmp.ge.f32.partialorder %v2686_v33, 0.0  ;;  %v3095_v29 = vmul.f32 %v5214_v48, %v2686_v33  ;;  %vm2950_vm10 = vcmp.ge.f32.partialorder %v2688_v37, 0.0  ;;  %v3096_v46 = vmul.f32 %v5208_v0, %v2688_v37  ;;  %v2693_v47 = vpop.f32.mrf.mxu1 }
 0x22e   : > { %3500 = vadd.xlane.f32.xlu1 %v3499_v26  ;;  %v3502_v58 = vadd.f32 %v3359_v13, %v3358_v43  ;;  %vm2951_vm11 = vcmp.ge.f32.partialorder %v2690_v20, 0.0  ;;  %v3097_v31 = vmul.f32 %v5214_v48, %v2690_v20  ;;  %v2694_v52 = vadd.f32 %v2693_v47, %v5201_v44 }
 0x22f   : > { %v3220_v32 = vsel %vm2946_vm6, %v2678_v5, %v3092_v54  ;;  %v3221_v19 = vsel %vm2947_vm7, %v2680_v14, %v3093_v25  ;;  %v2695_v27 = vpop.f32.mrf.mxu1  ;;  %v3222_v56 = vsel %vm2948_vm8, %v2684_v18, %v3094_v23  ;;  %v3223_v41 = vsel %vm2949_vm9, %v2686_v33, %v3095_v29 }
 0x230   : > { %3503 = vadd.xlane.f32.xlu0 %v3502_v58  ;;  %vm2952_vm12 = vcmp.ge.f32.partialorder %v2694_v52, 0.0  ;;  %v3098_v50 = vmul.f32 %v5208_v0, %v2694_v52  ;;  %v3360_v45 = vmul.f32 %v5222_v55, %v3220_v32  ;;  %v3361_v62 = vmul.f32 %v5226_v59, %v3221_v19 }
 0x231   : > { %v2696_v1 = vadd.f32 %v2695_v27, %v5211_v21  ;;  %v2697_v3 = vpop.f32.mrf.mxu1  ;;  %v3362_v36 = vmul.f32 %v5222_v55, %v3222_v56  ;;  %v3363_v51 = vmul.f32 %v5226_v59, %v3223_v41  ;;  %v3224_v63 = vsel %vm2950_vm10, %v2688_v37, %v3096_v46 }
 0x232   : > { %v3505_v57 = vadd.f32 %v3361_v62, %v3360_v45  ;;  %v2698_v8 = vadd.f32 %v2697_v3, %v5201_v44  ;;  %v3225_v9 = vsel %vm2951_vm11, %v2690_v20, %v3097_v31  ;;  %v3364_v38 = vmul.f32 %v5222_v55, %v3224_v63 }
 0x233   : > { %vm2953_vm13 = vcmp.ge.f32.partialorder %v2696_v1, 0.0  ;;  %v3099_v49 = vmul.f32 %v5214_v48, %v2696_v1  ;;  %v3508_v11 = vadd.f32 %v3363_v51, %v3362_v36  ;;  %v2699_v60 = vpop.f32.mrf.mxu1  ;;  %v3365_v53 = vmul.f32 %v5226_v59, %v3225_v9 }
 0x234   : > { %3506 = vadd.xlane.f32.xlu1 %v3505_v57  ;;  %vm2954_vm14 = vcmp.ge.f32.partialorder %v2698_v8, 0.0  ;;  %v3100_v61 = vmul.f32 %v5208_v0, %v2698_v8  ;;  %v2700_v6 = vadd.f32 %v2699_v60, %v5211_v21  ;;  %v3226_v15 = vsel %vm2952_vm12, %v2694_v52, %v3098_v50 }
 0x235   : > { %3509 = vadd.xlane.f32.xlu0 %v3508_v11  ;;  %v2703_v7 = vpop.f32.mrf.mxu1  ;;  %v3511_v5 = vadd.f32 %v3365_v53, %v3364_v38  ;;  %v3227_v16 = vsel %vm2953_vm13, %v2696_v1, %v3099_v49  ;;  %v3366_v4 = vmul.f32 %v5222_v55, %v3226_v15 }
 0x236   : > { %vm2955_vm15 = vcmp.ge.f32.partialorder %v2700_v6, 0.0  ;;  %v3101_v10 = vmul.f32 %v5214_v48, %v2700_v6  ;;  %v2704_v17 = vadd.f32 %v2703_v7, %v5201_v44  ;;  %v3367_v22 = vmul.f32 %v5226_v59, %v3227_v16 }
 0x237   : > { %v2705_v14 = vpop.f32.mrf.mxu1  ;;  %v3228_v2 = vsel %vm2954_vm14, %v2698_v8, %v3100_v61 }
 0x238   : > { %vm2956_vm0 = vcmp.ge.f32.partialorder %v2704_v17, 0.0  ;;  %v3102_v54 = vmul.f32 %v5208_v0, %v2704_v17  ;;  %3512 = vadd.xlane.f32.xlu1 %v3511_v5  ;;  %v2706_v18 = vadd.f32 %v2705_v14, %v5211_v21  ;;  %v3514_v24 = vadd.f32 %v3367_v22, %v3366_v4 }
 0x239   : > { %v2707_v12 = vpop.f32.mrf.mxu1  ;;  %v3229_v25 = vsel %vm2955_vm15, %v2700_v6, %v3101_v10  ;;  %v3368_v28 = vmul.f32 %v5222_v55, %v3228_v2 }
 0x23a   : > { %vm2957_vm1 = vcmp.ge.f32.partialorder %v2706_v18, 0.0  ;;  %v3103_v30 = vmul.f32 %v5214_v48, %v2706_v18  ;;  %v2708_v23 = vadd.f32 %v2707_v12, %v5201_v44  ;;  %3515 = vadd.xlane.f32.xlu0 %v3514_v24  ;;  %v3369_v34 = vmul.f32 %v5226_v59, %v3229_v25 }
 0x23b   : > { %v2709_v35 = vpop.f32.mrf.mxu1  ;;  %v3230_v33 = vsel %vm2956_vm0, %v2704_v17, %v3102_v54 }
 0x23c   : > { %vm2958_vm2 = vcmp.ge.f32.partialorder %v2708_v23, 0.0  ;;  %v3104_v37 = vmul.f32 %v5208_v0, %v2708_v23  ;;  %v2710_v39 = vadd.f32 %v2709_v35, %v5211_v21  ;;  %v3517_v40 = vadd.f32 %v3369_v34, %v3368_v28 }
 0x23d   : > { %v2713_v42 = vpop.f32.mrf.mxu1  ;;  %v3231_v26 = vsel %vm2957_vm1, %v2706_v18, %v3103_v30  ;;  %v3370_v43 = vmul.f32 %v5222_v55, %v3230_v33 }
 0x23e   : > { %vm2959_vm3 = vcmp.ge.f32.partialorder %v2710_v39, 0.0  ;;  %v3105_v13 = vmul.f32 %v5214_v48, %v2710_v39  ;;  %v2714_v20 = vadd.f32 %v2713_v42, %v5201_v44  ;;  %3518 = vadd.xlane.f32.xlu1 %v3517_v40  ;;  %v3371_v29 = vmul.f32 %v5226_v59, %v3231_v26 }
 0x23f   : > { %v2715_v46 = vpop.f32.mrf.mxu1  ;;  %v3232_v47 = vsel %vm2958_vm2, %v2708_v23, %v3104_v37 }
 0x240   : > { %vm2960_vm4 = vcmp.ge.f32.partialorder %v2714_v20, 0.0  ;;  %v3106_v58 = vmul.f32 %v5208_v0, %v2714_v20  ;;  %v2716_v31 = vadd.f32 %v2715_v46, %v5211_v21  ;;  %v3520_v52 = vadd.f32 %v3371_v29, %v3370_v43 }
 0x241   : > { %v2717_v32 = vpop.f32.mrf.mxu1  ;;  %v3233_v19 = vsel %vm2959_vm3, %v2710_v39, %v3105_v13  ;;  %v3372_v27 = vmul.f32 %v5222_v55, %v3232_v47 }
 0x242   : > { %vm2961_vm5 = vcmp.ge.f32.partialorder %v2716_v31, 0.0  ;;  %v3107_v56 = vmul.f32 %v5214_v48, %v2716_v31  ;;  %v2718_v41 = vadd.f32 %v2717_v32, %v5201_v44  ;;  %3521 = vadd.xlane.f32.xlu0 %v3520_v52  ;;  %v3373_v50 = vmul.f32 %v5226_v59, %v3233_v19 }
 0x243   : > { %v2719_v45 = vpop.f32.mrf.mxu1  ;;  %v3234_v62 = vsel %vm2960_vm4, %v2714_v20, %v3106_v58 }
 0x244   : > { %vm2962_vm6 = vcmp.ge.f32.partialorder %v2718_v41, 0.0  ;;  %v3108_v1 = vmul.f32 %v5208_v0, %v2718_v41  ;;  %v2720_v3 = vadd.f32 %v2719_v45, %v5211_v21  ;;  %v3523_v36 = vadd.f32 %v3373_v50, %v3372_v27 }
 0x245   : > { %v2723_v51 = vpop.f32.mrf.mxu1  ;;  %v3235_v63 = vsel %vm2961_vm5, %v2716_v31, %v3107_v56  ;;  %v3374_v57 = vmul.f32 %v5222_v55, %v3234_v62 }
 0x246   : > { %vm2963_vm7 = vcmp.ge.f32.partialorder %v2720_v3, 0.0  ;;  %v3109_v8 = vmul.f32 %v5214_v48, %v2720_v3  ;;  %v2724_v9 = vadd.f32 %v2723_v51, %v5201_v44  ;;  %3524 = vadd.xlane.f32.xlu1 %v3523_v36  ;;  %v3375_v38 = vmul.f32 %v5226_v59, %v3235_v63 }
 0x247   : > { %v2725_v49 = vpop.f32.mrf.mxu1  ;;  %v3236_v11 = vsel %vm2962_vm6, %v2718_v41, %v3108_v1 }
 0x248   : > { %vm2964_vm8 = vcmp.ge.f32.partialorder %v2724_v9, 0.0  ;;  %v3110_v60 = vmul.f32 %v5208_v0, %v2724_v9  ;;  %v2726_v53 = vadd.f32 %v2725_v49, %v5211_v21  ;;  %v3526_v61 = vadd.f32 %v3375_v38, %v3374_v57 }
 0x249   : > { %v2727_v6 = vpop.f32.mrf.mxu1  ;;  %v3237_v15 = vsel %vm2963_vm7, %v2720_v3, %v3109_v8  ;;  %v3376_v7 = vmul.f32 %v5222_v55, %v3236_v11 }
 0x24a   : > { %vm2965_vm9 = vcmp.ge.f32.partialorder %v2726_v53, 0.0  ;;  %v3111_v5 = vmul.f32 %v5214_v48, %v2726_v53  ;;  %v2728_v16 = vadd.f32 %v2727_v6, %v5201_v44  ;;  %3527 = vadd.xlane.f32.xlu0 %v3526_v61  ;;  %v3377_v4 = vmul.f32 %v5226_v59, %v3237_v15 }
 0x24b   : > { %v2729_v10 = vpop.f32.mrf.mxu1  ;;  %v3238_v17 = vsel %vm2964_vm8, %v2724_v9, %v3110_v60 }
 0x24c   : > { %vm2966_vm10 = vcmp.ge.f32.partialorder %v2728_v16, 0.0  ;;  %v3112_v22 = vmul.f32 %v5208_v0, %v2728_v16  ;;  %v2730_v14 = vadd.f32 %v2729_v10, %v5211_v21  ;;  %v3529_v2 = vadd.f32 %v3377_v4, %v3376_v7 }
 0x24d   : > { %v2733_v54 = vpop.f32.mrf.mxu1  ;;  %v3239_v18 = vsel %vm2965_vm9, %v2726_v53, %v3111_v5  ;;  %v3378_v24 = vmul.f32 %v5222_v55, %v3238_v17 }
 0x24e   : > { %vm2967_vm11 = vcmp.ge.f32.partialorder %v2730_v14, 0.0  ;;  %v3113_v12 = vmul.f32 %v5214_v48, %v2730_v14  ;;  %v2734_v25 = vadd.f32 %v2733_v54, %v5201_v44  ;;  %3530 = vadd.xlane.f32.xlu1 %v3529_v2  ;;  %v3379_v28 = vmul.f32 %v5226_v59, %v3239_v18 }
 0x24f   : > { %v2735_v30 = vpop.f32.mrf.mxu1  ;;  %v3240_v23 = vsel %vm2966_vm10, %v2728_v16, %v3112_v22 }
 0x250   : > { %vm2968_vm12 = vcmp.ge.f32.partialorder %v2734_v25, 0.0  ;;  %v3114_v34 = vmul.f32 %v5208_v0, %v2734_v25  ;;  %v2736_v35 = vadd.f32 %v2735_v30, %v5211_v21  ;;  %v3532_v33 = vadd.f32 %v3379_v28, %v3378_v24 }
 0x251   : > { %v2737_v37 = vpop.f32.mrf.mxu1  ;;  %v3241_v39 = vsel %vm2967_vm11, %v2730_v14, %v3113_v12  ;;  %v3380_v40 = vmul.f32 %v5222_v55, %v3240_v23 }
 0x252   : > { %vm2969_vm13 = vcmp.ge.f32.partialorder %v2736_v35, 0.0  ;;  %v3115_v42 = vmul.f32 %v5214_v48, %v2736_v35  ;;  %v2738_v26 = vadd.f32 %v2737_v37, %v5201_v44  ;;  %3533 = vadd.xlane.f32.xlu0 %v3532_v33  ;;  %v3381_v43 = vmul.f32 %v5226_v59, %v3241_v39 }
 0x253   : > { %v2739_v13 = vpop.f32.mrf.mxu1  ;;  %v3242_v20 = vsel %vm2968_vm12, %v2734_v25, %v3114_v34 }
 0x254   : > { %vm2970_vm14 = vcmp.ge.f32.partialorder %v2738_v26, 0.0  ;;  %v3116_v29 = vmul.f32 %v5208_v0, %v2738_v26  ;;  %v2740_v46 = vadd.f32 %v2739_v13, %v5211_v21  ;;  %v3535_v47 = vadd.f32 %v3381_v43, %v3380_v40 }
 0x255   : > { %v2743_v58 = vpop.f32.mrf.mxu1  ;;  %v3243_v31 = vsel %vm2969_vm13, %v2736_v35, %v3115_v42  ;;  %v3382_v52 = vmul.f32 %v5222_v55, %v3242_v20 }
 0x256   : > { %vm2971_vm15 = vcmp.ge.f32.partialorder %v2740_v46, 0.0  ;;  %v3117_v32 = vmul.f32 %v5214_v48, %v2740_v46  ;;  %v2744_v19 = vadd.f32 %v2743_v58, %v5201_v44  ;;  %3536 = vadd.xlane.f32.xlu1 %v3535_v47  ;;  %v3383_v27 = vmul.f32 %v5226_v59, %v3243_v31 }
 0x257   : > { %v2745_v56 = vpop.f32.mrf.mxu1  ;;  %v3244_v41 = vsel %vm2970_vm14, %v2738_v26, %v3116_v29  ;;  %vm3717_vm14 = vcmask 7168  }
 0x258   : > { %vm2972_vm0 = vcmp.ge.f32.partialorder %v2744_v19, 0.0  ;;  %v3118_v50 = vmul.f32 %v5208_v0, %v2744_v19  ;;  %v2746_v45 = vadd.f32 %v2745_v56, %v5211_v21  ;;  %v3538_v62 = vadd.f32 %v3383_v27, %v3382_v52 }
 0x259   : > { %v2747_v1 = vpop.f32.mrf.mxu1  ;;  %v3245_v3 = vsel %vm2971_vm15, %v2740_v46, %v3117_v32  ;;  %v3384_v36 = vmul.f32 %v5222_v55, %v3244_v41 }
 0x25a   : > { %vm2973_vm1 = vcmp.ge.f32.partialorder %v2746_v45, 0.0  ;;  %v3119_v51 = vmul.f32 %v5214_v48, %v2746_v45  ;;  %v2748_v63 = vadd.f32 %v2747_v1, %v5201_v44  ;;  %3539 = vadd.xlane.f32.xlu0 %v3538_v62  ;;  %v3385_v57 = vmul.f32 %v5226_v59, %v3245_v3 }
 0x25b   : > { %v2749_v8 = vpop.f32.mrf.mxu1  ;;  %v3246_v9 = vsel %vm2972_vm0, %v2744_v19, %v3118_v50 }
 0x25c   : > { %vm2974_vm2 = vcmp.ge.f32.partialorder %v2748_v63, 0.0  ;;  %v3120_v38 = vmul.f32 %v5208_v0, %v2748_v63  ;;  %v2750_v49 = vadd.f32 %v2749_v8, %v5211_v21  ;;  %v3541_v11 = vadd.f32 %v3385_v57, %v3384_v36 }
 0x25d   : > { %v2753_v60 = vpop.f32.mrf.mxu1  ;;  %v3247_v53 = vsel %vm2973_vm1, %v2746_v45, %v3119_v51  ;;  %v3386_v61 = vmul.f32 %v5222_v55, %v3246_v9 }
 0x25e   : > { %vm2975_vm3 = vcmp.ge.f32.partialorder %v2750_v49, 0.0  ;;  %v3121_v6 = vmul.f32 %v5214_v48, %v2750_v49  ;;  %v2754_v15 = vadd.f32 %v2753_v60, %v5201_v44  ;;  %3542 = vadd.xlane.f32.xlu1 %v3541_v11  ;;  %v3387_v7 = vmul.f32 %v5226_v59, %v3247_v53 }
 0x25f   : > { %v2755_v5 = vpop.f32.mrf.mxu1  ;;  %v3248_v16 = vsel %vm2974_vm2, %v2748_v63, %v3120_v38 }
 0x260   : > { %vm2976_vm4 = vcmp.ge.f32.partialorder %v2754_v15, 0.0  ;;  %v3122_v4 = vmul.f32 %v5208_v0, %v2754_v15  ;;  %v2756_v10 = vadd.f32 %v2755_v5, %v5211_v21  ;;  %v3544_v17 = vadd.f32 %v3387_v7, %v3386_v61 }
 0x261   : > { %v2757_v22 = vpop.f32.mrf.mxu1  ;;  %v3249_v14 = vsel %vm2975_vm3, %v2750_v49, %v3121_v6  ;;  %v3388_v2 = vmul.f32 %v5222_v55, %v3248_v16  ;;  %v5706_v49 = vld [vmem:[#allocation3] ss:$0 sm:$0xff] }
 0x262   : > { %vm2977_vm5 = vcmp.ge.f32.partialorder %v2756_v10, 0.0  ;;  %v3123_v54 = vmul.f32 %v5214_v48, %v2756_v10  ;;  %v2758_v18 = vadd.f32 %v2757_v22, %v5201_v44  ;;  %3545 = vadd.xlane.f32.xlu0 %v3544_v17  ;;  %v3389_v24 = vmul.f32 %v5226_v59, %v3249_v14 }
 0x263   : > { %v2759_v12 = vpop.f32.mrf.mxu1  ;;  %v3250_v25 = vsel %vm2976_vm4, %v2754_v15, %v3122_v4 }
 0x264   : > { %vm2978_vm6 = vcmp.ge.f32.partialorder %v2758_v18, 0.0  ;;  %v3124_v28 = vmul.f32 %v5208_v0, %v2758_v18  ;;  %v2760_v30 = vadd.f32 %v2759_v12, %v5211_v21  ;;  %v3547_v23 = vadd.f32 %v3389_v24, %v3388_v2 }
 0x265   : > { %v2763_v34 = vpop.f32.mrf.mxu1  ;;  %v3251_v35 = vsel %vm2977_vm5, %v2756_v10, %v3123_v54  ;;  %v3390_v33 = vmul.f32 %v5222_v55, %v3250_v25 }
 0x266   : > { %vm2979_vm7 = vcmp.ge.f32.partialorder %v2760_v30, 0.0  ;;  %v3125_v37 = vmul.f32 %v5214_v48, %v2760_v30  ;;  %v2764_v39 = vadd.f32 %v2763_v34, %v5201_v44  ;;  %3548 = vadd.xlane.f32.xlu1 %v3547_v23  ;;  %v3391_v40 = vmul.f32 %v5226_v59, %v3251_v35 }
 0x267   : > { %v2765_v42 = vpop.f32.mrf.mxu1  ;;  %v3252_v26 = vsel %vm2978_vm6, %v2758_v18, %v3124_v28 }
 0x268   : > { %vm2980_vm8 = vcmp.ge.f32.partialorder %v2764_v39, 0.0  ;;  %v3126_v43 = vmul.f32 %v5208_v0, %v2764_v39  ;;  %v2766_v13 = vadd.f32 %v2765_v42, %v5211_v21  ;;  %v3550_v20 = vadd.f32 %v3391_v40, %v3390_v33 }
 0x269   : > { %v2767_v29 = vpop.f32.mrf.mxu1  ;;  %v3253_v46 = vsel %vm2979_vm7, %v2760_v30, %v3125_v37  ;;  %v3392_v47 = vmul.f32 %v5222_v55, %v3252_v26 }
 0x26a   : > { %vm2981_vm9 = vcmp.ge.f32.partialorder %v2766_v13, 0.0  ;;  %v3127_v58 = vmul.f32 %v5214_v48, %v2766_v13  ;;  %v2768_v31 = vadd.f32 %v2767_v29, %v5201_v44  ;;  %3551 = vadd.xlane.f32.xlu0 %v3550_v20  ;;  %v3393_v52 = vmul.f32 %v5226_v59, %v3253_v46 }
 0x26b   : > { %v2769_v32 = vpop.f32.mrf.mxu1  ;;  %v3254_v19 = vsel %vm2980_vm8, %v2764_v39, %v3126_v43 }
 0x26c   : > { %vm2982_vm10 = vcmp.ge.f32.partialorder %v2768_v31, 0.0  ;;  %v3128_v27 = vmul.f32 %v5208_v0, %v2768_v31  ;;  %v2770_v56 = vadd.f32 %v2769_v32, %v5211_v21  ;;  %v3553_v41 = vadd.f32 %v3393_v52, %v3392_v47 }
 0x26d   : > { %v2773_v50 = vpop.f32.mrf.mxu1  ;;  %v3255_v45 = vsel %vm2981_vm9, %v2766_v13, %v3127_v58  ;;  %v3394_v62 = vmul.f32 %v5222_v55, %v3254_v19 }
 0x26e   : > { %vm2983_vm11 = vcmp.ge.f32.partialorder %v2770_v56, 0.0  ;;  %v3129_v1 = vmul.f32 %v5214_v48, %v2770_v56  ;;  %v2774_v3 = vadd.f32 %v2773_v50, %v5201_v44  ;;  %3554 = vadd.xlane.f32.xlu1 %v3553_v41  ;;  %v3395_v36 = vmul.f32 %v5226_v59, %v3255_v45 }
 0x26f   : > { %v2775_v51 = vpop.f32.mrf.mxu1  ;;  %v3256_v63 = vsel %vm2982_vm10, %v2768_v31, %v3128_v27 }
 0x270   : > { %vm2984_vm12 = vcmp.ge.f32.partialorder %v2774_v3, 0.0  ;;  %v3130_v57 = vmul.f32 %v5208_v0, %v2774_v3  ;;  %v2776_v8 = vadd.f32 %v2775_v51, %v5211_v21  ;;  %v3556_v9 = vadd.f32 %v3395_v36, %v3394_v62 }
 0x271   : > { %v2777_v38 = vpop.f32.mrf.mxu1  ;;  %v3257_v11 = vsel %vm2983_vm11, %v2770_v56, %v3129_v1  ;;  %v3396_v7 = vmul.f32 %v5222_v55, %v3256_v63 }
 0x272   : > { %vm2985_vm13 = vcmp.ge.f32.partialorder %v2776_v8, 0.0  ;;  %v3131_v60 = vmul.f32 %v5214_v48, %v2776_v8  ;;  %v2778_v53 = vadd.f32 %v2777_v38, %v5201_v44  ;;  %3557 = vadd.xlane.f32.xlu0 %v3556_v9  ;;  %v3397_v61 = vmul.f32 %v5226_v59, %v3257_v11  ;;  %v3456_v6 = vpop.xlane.xlu0 %3455 }
 0x273   : > { %v2779_v15 = vpop.f32.mrf.mxu1  ;;  %v3258_v5 = vsel %vm2984_vm12, %v2774_v3, %v3130_v57  ;;  %v3653_v4 = vadd.f32 %v5706_v49, %v3456_v6 }
 0x274   : > { %vm2986_vm15 = vcmp.ge.f32.partialorder %v2778_v53, 0.0  ;;  %v3132_v16 = vmul.f32 %v5208_v0, %v2778_v53  ;;  %v2780_v10 = vadd.f32 %v2779_v15, %v5211_v21  ;;  %v3559_v22 = vadd.f32 %v3397_v61, %v3396_v7 }
 0x275   : > { %v2783_v17 = vpop.f32.mrf.mxu1  ;;  %v3259_v14 = vsel %vm2985_vm13, %v2776_v8, %v3131_v60  ;;  %v3398_v2 = vmul.f32 %v5222_v55, %v3258_v5  ;;  %3718 = vst.msk [vmem:[%s5714_s18] sm:$0xff] %vm3717_vm14, %v3653_v4 }
 0x276   : > { %vm2987_vm0 = vcmp.ge.f32.partialorder %v2780_v10, 0.0  ;;  %v3133_v54 = vmul.f32 %v5214_v48, %v2780_v10  ;;  %v2784_v18 = vadd.f32 %v2783_v17, %v5201_v44  ;;  %v3399_v24 = vmul.f32 %v5226_v59, %v3259_v14  ;;  %3560 = vadd.xlane.f32.xlu1 %v3559_v22 }
 0x277   : > { %v2785_v12 = vpop.f32.mrf.mxu1  ;;  %v3260_v25 = vsel %vm2986_vm15, %v2778_v53, %v3132_v16 }
 0x278   : > { %vm2988_vm1 = vcmp.ge.f32.partialorder %v2784_v18, 0.0  ;;  %v3134_v28 = vmul.f32 %v5208_v0, %v2784_v18  ;;  %v2786_v30 = vadd.f32 %v2785_v12, %v5211_v21  ;;  %v3562_v23 = vadd.f32 %v3399_v24, %v3398_v2 }
 0x279   : > { %v2787_v34 = vpop.f32.mrf.mxu1  ;;  %v3261_v35 = vsel %vm2987_vm0, %v2780_v10, %v3133_v54  ;;  %v3400_v33 = vmul.f32 %v5222_v55, %v3260_v25 }
 0x27a   : > { %vm2989_vm2 = vcmp.ge.f32.partialorder %v2786_v30, 0.0  ;;  %v3135_v37 = vmul.f32 %v5214_v48, %v2786_v30  ;;  %v2788_v39 = vadd.f32 %v2787_v34, %v5201_v44  ;;  %3563 = vadd.xlane.f32.xlu0 %v3562_v23  ;;  %v3401_v40 = vmul.f32 %v5226_v59, %v3261_v35 }
 0x27b   : > { %v2789_v42 = vpop.f32.mrf.mxu1  ;;  %v3262_v26 = vsel %vm2988_vm1, %v2784_v18, %v3134_v28 }
 0x27c   : > { %vm2990_vm3 = vcmp.ge.f32.partialorder %v2788_v39, 0.0  ;;  %v3136_v43 = vmul.f32 %v5208_v0, %v2788_v39  ;;  %v2790_v13 = vadd.f32 %v2789_v42, %v5211_v21  ;;  %v3565_v20 = vadd.f32 %v3401_v40, %v3400_v33  ;;  %v3459_v29 = vpop.xlane.xlu0 %3458 }
 0x27d   : > { %v2793_v46 = vpop.f32.mrf.mxu1  ;;  %v3263_v47 = vsel %vm2989_vm2, %v2786_v30, %v3135_v37  ;;  %v3654_v58 = vadd.f32 %v5706_v49, %v3459_v29  ;;  %v3402_v19 = vmul.f32 %v5222_v55, %v3262_v26 }
 0x27e   : > { %vm2991_vm4 = vcmp.ge.f32.partialorder %v2790_v13, 0.0  ;;  %v3137_v31 = vmul.f32 %v5214_v48, %v2790_v13  ;;  %v2794_v52 = vadd.f32 %v2793_v46, %v5201_v44  ;;  %3566 = vadd.xlane.f32.xlu1 %v3565_v20  ;;  %v3403_v27 = vmul.f32 %v5226_v59, %v3263_v47 }
 0x27f   : > { %v2795_v32 = vpop.f32.mrf.mxu1  ;;  %v3264_v56 = vsel %vm2990_vm3, %v2788_v39, %v3136_v43  ;;  %3719 = vst.msk [vmem:[%s5714_s18 + $0x8] sm:$0xff] %vm3717_vm14, %v3654_v58 }
 0x280   : > { %vm2992_vm5 = vcmp.ge.f32.partialorder %v2794_v52, 0.0  ;;  %v3138_v41 = vmul.f32 %v5208_v0, %v2794_v52  ;;  %v2796_v50 = vadd.f32 %v2795_v32, %v5211_v21  ;;  %v3265_v45 = vsel %vm2991_vm4, %v2790_v13, %v3137_v31  ;;  %v3462_v51 = vpop.xlane.xlu1 %3461 }
 0x281   : > { %v2797_v62 = vpop.f32.mrf.mxu1  ;;  %v3568_v1 = vadd.f32 %v3403_v27, %v3402_v19  ;;  %v3404_v3 = vmul.f32 %v5222_v55, %v3264_v56  ;;  %v3405_v36 = vmul.f32 %v5226_v59, %v3265_v45  ;;  %v3655_v9 = vadd.f32 %v5706_v49, %v3462_v51 }
 0x282   : > { %vm2993_vm6 = vcmp.ge.f32.partialorder %v2796_v50, 0.0  ;;  %v3139_v63 = vmul.f32 %v5214_v48, %v2796_v50  ;;  %v2798_v57 = vadd.f32 %v2797_v62, %v5201_v44  ;;  %v3266_v8 = vsel %vm2992_vm5, %v2794_v52, %v3138_v41 }
 0x283   : > { %3569 = vadd.xlane.f32.xlu0 %v3568_v1  ;;  %v2799_v38 = vpop.f32.mrf.mxu1  ;;  %v3571_v11 = vadd.f32 %v3405_v36, %v3404_v3  ;;  %3720 = vst.msk [vmem:[%s5714_s18 + $0x10] sm:$0xff] %vm3717_vm14, %v3655_v9  ;;  %v3406_v15 = vmul.f32 %v5222_v55, %v3266_v8 }
 0x284   : > { %vm2994_vm7 = vcmp.ge.f32.partialorder %v2798_v57, 0.0  ;;  %v3140_v60 = vmul.f32 %v5208_v0, %v2798_v57  ;;  %v2800_v53 = vadd.f32 %v2799_v38, %v5211_v21  ;;  %v3267_v61 = vsel %vm2993_vm6, %v2796_v50, %v3139_v63 }
 0x285   : > { %v2803_v6 = vpop.f32.mrf.mxu1  ;;  %3572 = vadd.xlane.f32.xlu1 %v3571_v11  ;;  %v3407_v7 = vmul.f32 %v5226_v59, %v3267_v61 }
 0x286   : > { %vm2995_vm8 = vcmp.ge.f32.partialorder %v2800_v53, 0.0  ;;  %v3141_v5 = vmul.f32 %v5214_v48, %v2800_v53  ;;  %v2804_v16 = vadd.f32 %v2803_v6, %v5201_v44  ;;  %v3268_v4 = vsel %vm2994_vm7, %v2798_v57, %v3140_v60 }
 0x287   : > { %v2805_v10 = vpop.f32.mrf.mxu1  ;;  %v3574_v17 = vadd.f32 %v3407_v7, %v3406_v15  ;;  %v3465_v22 = vpop.xlane.xlu1 %3464  ;;  %v3408_v12 = vmul.f32 %v5222_v55, %v3268_v4 }
 0x288   : > { %vm2996_vm9 = vcmp.ge.f32.partialorder %v2804_v16, 0.0  ;;  %v3142_v14 = vmul.f32 %v5208_v0, %v2804_v16  ;;  %v2806_v2 = vadd.f32 %v2805_v10, %v5211_v21  ;;  %v3269_v54 = vsel %vm2995_vm8, %v2800_v53, %v3141_v5 }
 0x289   : > { %v3656_v18 = vadd.f32 %v5706_v49, %v3465_v22  ;;  %v2807_v24 = vpop.f32.mrf.mxu1  ;;  %3575 = vadd.xlane.f32.xlu0 %v3574_v17  ;;  %v3409_v25 = vmul.f32 %v5226_v59, %v3269_v54 }
 0x28a   : > { %vm2997_vm10 = vcmp.ge.f32.partialorder %v2806_v2, 0.0  ;;  %v3143_v28 = vmul.f32 %v5214_v48, %v2806_v2  ;;  %v2808_v30 = vadd.f32 %v2807_v24, %v5201_v44  ;;  %v3270_v23 = vsel %vm2996_vm9, %v2804_v16, %v3142_v14 }
 0x28b   : > { %3721 = vst.msk [vmem:[%s5714_s18 + $0x18] sm:$0xff] %vm3717_vm14, %v3656_v18  ;;  %v2809_v34 = vpop.f32.mrf.mxu1  ;;  %v3577_v35 = vadd.f32 %v3409_v25, %v3408_v12  ;;  %v3468_v33 = vpop.xlane.xlu0 %3467  ;;  %v3410_v43 = vmul.f32 %v5222_v55, %v3270_v23 }
 0x28c   : > { %vm2998_vm11 = vcmp.ge.f32.partialorder %v2808_v30, 0.0  ;;  %v3144_v37 = vmul.f32 %v5208_v0, %v2808_v30  ;;  %v2810_v39 = vadd.f32 %v2809_v34, %v5211_v21  ;;  %v3271_v40 = vsel %vm2997_vm10, %v2806_v2, %v3143_v28 }
 0x28d   : > { %v3657_v42 = vadd.f32 %v5706_v49, %v3468_v33  ;;  %v2813_v26 = vpop.f32.mrf.mxu1  ;;  %3578 = vadd.xlane.f32.xlu1 %v3577_v35  ;;  %v3411_v13 = vmul.f32 %v5226_v59, %v3271_v40 }
 0x28e   : > { %vm2999_vm12 = vcmp.ge.f32.partialorder %v2810_v39, 0.0  ;;  %v3145_v20 = vmul.f32 %v5214_v48, %v2810_v39  ;;  %v2814_v29 = vadd.f32 %v2813_v26, %v5201_v44  ;;  %v3272_v46 = vsel %vm2998_vm11, %v2808_v30, %v3144_v37 }
 0x28f   : > { %3722 = vst.msk [vmem:[%s5714_s18 + $0x20] sm:$0xff] %vm3717_vm14, %v3657_v42  ;;  %v2815_v47 = vpop.f32.mrf.mxu1  ;;  %v3580_v58 = vadd.f32 %v3411_v13, %v3410_v43  ;;  %v3412_v27 = vmul.f32 %v5222_v55, %v3272_v46 }
 0x290   : > { %vm3000_vm13 = vcmp.ge.f32.partialorder %v2814_v29, 0.0  ;;  %v3146_v31 = vmul.f32 %v5208_v0, %v2814_v29  ;;  %v2816_v52 = vadd.f32 %v2815_v47, %v5211_v21  ;;  %v3273_v32 = vsel %vm2999_vm12, %v2810_v39, %v3145_v20 }
 0x291   : > { %v2817_v19 = vpop.f32.mrf.mxu1  ;;  %3581 = vadd.xlane.f32.xlu0 %v3580_v58  ;;  %v3413_v56 = vmul.f32 %v5226_v59, %v3273_v32  ;;  %v3471_v41 = vpop.xlane.xlu1 %3470 }
 0x292   : > { %vm3001_vm15 = vcmp.ge.f32.partialorder %v2816_v52, 0.0  ;;  %v3147_v50 = vmul.f32 %v5214_v48, %v2816_v52  ;;  %v2818_v45 = vadd.f32 %v2817_v19, %v5201_v44  ;;  %v3274_v62 = vsel %vm3000_vm13, %v2814_v29, %v3146_v31 }
 0x293   : > { %v3658_v1 = vadd.f32 %v5706_v49, %v3471_v41  ;;  %v2819_v3 = vpop.f32.mrf.mxu1  ;;  %v3583_v36 = vadd.f32 %v3413_v56, %v3412_v27  ;;  %v3414_v9 = vmul.f32 %v5222_v55, %v3274_v62 }
 0x294   : > { %vm3002_vm0 = vcmp.ge.f32.partialorder %v2818_v45, 0.0  ;;  %v3148_v51 = vmul.f32 %v5208_v0, %v2818_v45  ;;  %v2820_v63 = vadd.f32 %v2819_v3, %v5211_v21  ;;  %v3275_v57 = vsel %vm3001_vm15, %v2816_v52, %v3147_v50 }
 0x295   : > { %3723 = vst.msk [vmem:[%s5714_s18 + $0x28] sm:$0xff] %vm3717_vm14, %v3658_v1  ;;  %v2823_v8 = vpop.f32.mrf.mxu1  ;;  %3584 = vadd.xlane.f32.xlu1 %v3583_v36  ;;  %v3415_v38 = vmul.f32 %v5226_v59, %v3275_v57  ;;  %v3474_v11 = vpop.xlane.xlu0 %3473 }
 0x296   : > { %vm3003_vm1 = vcmp.ge.f32.partialorder %v2820_v63, 0.0  ;;  %v3149_v60 = vmul.f32 %v5214_v48, %v2820_v63  ;;  %v2824_v53 = vadd.f32 %v2823_v8, %v5201_v44  ;;  %v3276_v61 = vsel %vm3002_vm0, %v2818_v45, %v3148_v51 }
 0x297   : > { %v3659_v6 = vadd.f32 %v5706_v49, %v3474_v11  ;;  %v2825_v15 = vpop.f32.mrf.mxu1  ;;  %v3586_v7 = vadd.f32 %v3415_v38, %v3414_v9  ;;  %v3416_v17 = vmul.f32 %v5222_v55, %v3276_v61 }
 0x298   : > { %vm3004_vm2 = vcmp.ge.f32.partialorder %v2824_v53, 0.0  ;;  %v3150_v5 = vmul.f32 %v5208_v0, %v2824_v53  ;;  %v2826_v16 = vadd.f32 %v2825_v15, %v5211_v21  ;;  %v3277_v4 = vsel %vm3003_vm1, %v2820_v63, %v3149_v60 }
 0x299   : > { %3724 = vst.msk [vmem:[%s5714_s18 + $0x30] sm:$0xff] %vm3717_vm14, %v3659_v6  ;;  %v2827_v10 = vpop.f32.mrf.mxu1  ;;  %3587 = vadd.xlane.f32.xlu0 %v3586_v7  ;;  %v3417_v22 = vmul.f32 %v5226_v59, %v3277_v4 }
 0x29a   : > { %vm3005_vm3 = vcmp.ge.f32.partialorder %v2826_v16, 0.0  ;;  %v3151_v14 = vmul.f32 %v5214_v48, %v2826_v16  ;;  %v2828_v2 = vadd.f32 %v2827_v10, %v5201_v44  ;;  %v3278_v54 = vsel %vm3004_vm2, %v2824_v53, %v3150_v5 }
 0x29b   : > { %v2829_v18 = vpop.f32.mrf.mxu1  ;;  %v3589_v24 = vadd.f32 %v3417_v22, %v3416_v17  ;;  %v3418_v35 = vmul.f32 %v5222_v55, %v3278_v54 }
 0x29c   : > { %v3477_v12 = vpop.xlane.xlu1 %3476  ;;  %vm3006_vm4 = vcmp.ge.f32.partialorder %v2828_v2, 0.0  ;;  %v3152_v25 = vmul.f32 %v5208_v0, %v2828_v2  ;;  %v2830_v28 = vadd.f32 %v2829_v18, %v5211_v21  ;;  %v3279_v30 = vsel %vm3005_vm3, %v2826_v16, %v3151_v14 }
 0x29d   : > { %v3660_v23 = vadd.f32 %v5706_v49, %v3477_v12  ;;  %v2833_v34 = vpop.f32.mrf.mxu1  ;;  %3590 = vadd.xlane.f32.xlu1 %v3589_v24  ;;  %v3419_v33 = vmul.f32 %v5226_v59, %v3279_v30 }
 0x29e   : > { %vm3007_vm5 = vcmp.ge.f32.partialorder %v2830_v28, 0.0  ;;  %v3153_v37 = vmul.f32 %v5214_v48, %v2830_v28  ;;  %v2834_v39 = vadd.f32 %v2833_v34, %v5201_v44  ;;  %v3280_v40 = vsel %vm3006_vm4, %v2828_v2, %v3152_v25 }
 0x29f   : > { %3725 = vst.msk [vmem:[%s5714_s18 + $0x38] sm:$0xff] %vm3717_vm14, %v3660_v23  ;;  %v2835_v42 = vpop.f32.mrf.mxu1  ;;  %v3592_v26 = vadd.f32 %v3419_v33, %v3418_v35  ;;  %v3420_v58 = vmul.f32 %v5222_v55, %v3280_v40 }
 0x2a0   : > { %v3480_v43 = vpop.xlane.xlu0 %3479  ;;  %vm3008_vm6 = vcmp.ge.f32.partialorder %v2834_v39, 0.0  ;;  %v3154_v13 = vmul.f32 %v5208_v0, %v2834_v39  ;;  %v2836_v20 = vadd.f32 %v2835_v42, %v5211_v21  ;;  %v3281_v29 = vsel %vm3007_vm5, %v2830_v28, %v3153_v37 }
 0x2a1   : > { %v3661_v46 = vadd.f32 %v5706_v49, %v3480_v43  ;;  %v2837_v47 = vpop.f32.mrf.mxu1  ;;  %3593 = vadd.xlane.f32.xlu0 %v3592_v26  ;;  %v3421_v31 = vmul.f32 %v5226_v59, %v3281_v29 }
 0x2a2   : > { %vm3009_vm7 = vcmp.ge.f32.partialorder %v2836_v20, 0.0  ;;  %v3155_v52 = vmul.f32 %v5214_v48, %v2836_v20  ;;  %v2838_v32 = vadd.f32 %v2837_v47, %v5201_v44  ;;  %v3282_v19 = vsel %vm3008_vm6, %v2834_v39, %v3154_v13 }
 0x2a3   : > { %3726 = vst.msk [vmem:[%s5714_s18 + $0x40] sm:$0xff] %vm3717_vm14, %v3661_v46  ;;  %v2839_v27 = vpop.f32.mrf.mxu1  ;;  %v3595_v56 = vadd.f32 %v3421_v31, %v3420_v58  ;;  %v3422_v1 = vmul.f32 %v5222_v55, %v3282_v19 }
 0x2a4   : > { %vm3010_vm8 = vcmp.ge.f32.partialorder %v2838_v32, 0.0  ;;  %v3156_v41 = vmul.f32 %v5208_v0, %v2838_v32  ;;  %v2840_v50 = vadd.f32 %v2839_v27, %v5211_v21  ;;  %v3283_v45 = vsel %vm3009_vm7, %v2836_v20, %v3155_v52 }
 0x2a5   : > { %v2843_v62 = vpop.f32.mrf.mxu1  ;;  %3596 = vadd.xlane.f32.xlu1 %v3595_v56  ;;  %v3423_v3 = vmul.f32 %v5226_v59, %v3283_v45 }
 0x2a6   : > { %v3483_v36 = vpop.xlane.xlu1 %3482  ;;  %vm3011_vm9 = vcmp.ge.f32.partialorder %v2840_v50, 0.0  ;;  %v3157_v51 = vmul.f32 %v5214_v48, %v2840_v50  ;;  %v2844_v63 = vadd.f32 %v2843_v62, %v5201_v44  ;;  %v3284_v57 = vsel %vm3010_vm8, %v2838_v32, %v3156_v41 }
 0x2a7   : > { %v3662_v8 = vadd.f32 %v5706_v49, %v3483_v36  ;;  %v2845_v9 = vpop.f32.mrf.mxu1  ;;  %v3598_v38 = vadd.f32 %v3423_v3, %v3422_v1  ;;  %v3424_v15 = vmul.f32 %v5222_v55, %v3284_v57 }
 0x2a8   : > { %vm3012_vm10 = vcmp.ge.f32.partialorder %v2844_v63, 0.0  ;;  %v3158_v11 = vmul.f32 %v5208_v0, %v2844_v63  ;;  %v2846_v60 = vadd.f32 %v2845_v9, %v5211_v21  ;;  %v3285_v53 = vsel %vm3011_vm9, %v2840_v50, %v3157_v51 }
 0x2a9   : > { %3727 = vst.msk [vmem:[%s5714_s18 + $0x48] sm:$0xff] %vm3717_vm14, %v3662_v8  ;;  %v3486_v61 = vpop.xlane.xlu0 %3485  ;;  %v2847_v6 = vpop.f32.mrf.mxu1  ;;  %3599 = vadd.xlane.f32.xlu0 %v3598_v38  ;;  %v3425_v7 = vmul.f32 %v5226_v59, %v3285_v53 }
 0x2aa   : > { %v3663_v5 = vadd.f32 %v5706_v49, %v3486_v61  ;;  %vm3013_vm11 = vcmp.ge.f32.partialorder %v2846_v60, 0.0  ;;  %v3159_v16 = vmul.f32 %v5214_v48, %v2846_v60  ;;  %v2848_v4 = vadd.f32 %v2847_v6, %v5201_v44 }
 0x2ab   : > { %v2849_v10 = vpop.f32.mrf.mxu1  ;;  %v3601_v17 = vadd.f32 %v3425_v7, %v3424_v15  ;;  %v3286_v22 = vsel %vm3012_vm10, %v2844_v63, %v3158_v11 }
 0x2ac   : > { %3728 = vst.msk [vmem:[%s5714_s18 + $0x50] sm:$0xff] %vm3717_vm14, %v3663_v5  ;;  %v3489_v14 = vpop.xlane.xlu1 %3488  ;;  %vm3014_vm12 = vcmp.ge.f32.partialorder %v2848_v4, 0.0  ;;  %v3160_v2 = vmul.f32 %v5208_v0, %v2848_v4  ;;  %v2850_v54 = vadd.f32 %v2849_v10, %v5211_v21  ;;  %v3287_v18 = vsel %vm3013_vm11, %v2846_v60, %v3159_v16 }
 0x2ad   : > { %v3664_v24 = vadd.f32 %v5706_v49, %v3489_v14  ;;  %3602 = vadd.xlane.f32.xlu1 %v3601_v17  ;;  %v3426_v12 = vmul.f32 %v5222_v55, %v3286_v22  ;;  %v3427_v25 = vmul.f32 %v5226_v59, %v3287_v18  ;;  %v2853_v34 = vpop.f32.mrf.mxu1 }
 0x2ae   : > { %vm3015_vm13 = vcmp.ge.f32.partialorder %v2850_v54, 0.0  ;;  %v3161_v28 = vmul.f32 %v5214_v48, %v2850_v54  ;;  %v3288_v30 = vsel %vm3014_vm12, %v2848_v4, %v3160_v2  ;;  %v2854_v37 = vadd.f32 %v2853_v34, %v5201_v44 }
 0x2af   : > { %3729 = vst.msk [vmem:[%s5714_s18 + $0x58] sm:$0xff] %vm3717_vm14, %v3664_v24  ;;  %v3492_v23 = vpop.xlane.xlu0 %3491  ;;  %v3604_v35 = vadd.f32 %v3427_v25, %v3426_v12  ;;  %v2855_v40 = vpop.f32.mrf.mxu1  ;;  %v3428_v42 = vmul.f32 %v5222_v55, %v3288_v30 }
 0x2b0   : > { %v3665_v33 = vadd.f32 %v5706_v49, %v3492_v23  ;;  %v3289_v39 = vsel %vm3015_vm13, %v2850_v54, %v3161_v28  ;;  %vm3016_vm15 = vcmp.ge.f32.partialorder %v2854_v37, 0.0  ;;  %v3162_v13 = vmul.f32 %v5208_v0, %v2854_v37 }
 0x2b1   : > { %3605 = vadd.xlane.f32.xlu0 %v3604_v35  ;;  %v3429_v26 = vmul.f32 %v5226_v59, %v3289_v39  ;;  %v2856_v20 = vadd.f32 %v2855_v40, %v5211_v21  ;;  %v2857_v46 = vpop.f32.mrf.mxu1 }
 0x2b2   : > { %3730 = vst.msk [vmem:[%s5714_s18 + $0x60] sm:$0xff] %vm3717_vm14, %v3665_v33  ;;  %v3495_v43 = vpop.xlane.xlu1 %3494  ;;  %v2858_v52 = vadd.f32 %v2857_v46, %v5201_v44  ;;  %v3290_v32 = vsel %vm3016_vm15, %v2854_v37, %v3162_v13 }
 0x2b3   : > { %v3666_v29 = vadd.f32 %v5706_v49, %v3495_v43  ;;  %v3607_v47 = vadd.f32 %v3429_v26, %v3428_v42  ;;  %vm3017_vm0 = vcmp.ge.f32.partialorder %v2856_v20, 0.0  ;;  %v3163_v31 = vmul.f32 %v5214_v48, %v2856_v20  ;;  %v2859_v27 = vpop.f32.mrf.mxu1 }
 0x2b4   : > { %v3498_v58 = vpop.xlane.xlu0 %3497  ;;  %vm3018_vm1 = vcmp.ge.f32.partialorder %v2858_v52, 0.0  ;;  %v3164_v56 = vmul.f32 %v5208_v0, %v2858_v52  ;;  %v2860_v41 = vadd.f32 %v2859_v27, %v5211_v21  ;;  %v3430_v62 = vmul.f32 %v5222_v55, %v3290_v32 }
 0x2b5   : > { %3731 = vst.msk [vmem:[%s5714_s18 + $0x68] sm:$0xff] %vm3717_vm14, %v3666_v29  ;;  %v3667_v19 = vadd.f32 %v5706_v49, %v3498_v58  ;;  %3608 = vadd.xlane.f32.xlu1 %v3607_v47  ;;  %v3291_v50 = vsel %vm3017_vm0, %v2856_v20, %v3163_v31 }
 0x2b6   : > { %v3431_v1 = vmul.f32 %v5226_v59, %v3291_v50  ;;  %vm3019_vm2 = vcmp.ge.f32.partialorder %v2860_v41, 0.0  ;;  %v3165_v36 = vmul.f32 %v5214_v48, %v2860_v41  ;;  %v3292_v51 = vsel %vm3018_vm1, %v2858_v52, %v3164_v56 }
 0x2b7   : > { %3732 = vst.msk [vmem:[%s5714_s18 + $0x70] sm:$0xff] %vm3717_vm14, %v3667_v19  ;;  %v3501_v45 = vpop.xlane.xlu1 %3500  ;;  %v3432_v38 = vmul.f32 %v5222_v55, %v3292_v51 }
 0x2b8   : > { %v3668_v3 = vadd.f32 %v5706_v49, %v3501_v45  ;;  %v3610_v57 = vadd.f32 %v3431_v1, %v3430_v62  ;;  %v3293_v9 = vsel %vm3019_vm2, %v2860_v41, %v3165_v36 }
 0x2b9   : > { %v3504_v63 = vpop.xlane.xlu0 %3503  ;;  %v3433_v11 = vmul.f32 %v5226_v59, %v3293_v9 }
 0x2ba   : > { %3733 = vst.msk [vmem:[%s5714_s18 + $0x78] sm:$0xff] %vm3717_vm14, %v3668_v3  ;;  %v3669_v8 = vadd.f32 %v5706_v49, %v3504_v63  ;;  %3611 = vadd.xlane.f32.xlu0 %v3610_v57 }
 0x2bb   : > { %v2863_v60 = vpop.f32.mrf.mxu1  ;;  %v3613_v6 = vadd.f32 %v3433_v11, %v3432_v38 }
 0x2bc   : > { %3734 = vst.msk [vmem:[%s5714_s18 + $0x80] sm:$0xff] %vm3717_vm14, %v3669_v8  ;;  %v2864_v53 = vadd.f32 %v2863_v60, %v5201_v44 }
 0x2bd   : > { %v3507_v61 = vpop.xlane.xlu1 %3506  ;;  %v2865_v7 = vpop.f32.mrf.mxu1  ;;  %3614 = vadd.xlane.f32.xlu1 %v3613_v6 }
 0x2be   : > { %v3670_v15 = vadd.f32 %v5706_v49, %v3507_v61  ;;  %v3510_v5 = vpop.xlane.xlu0 %3509  ;;  %vm3020_vm3 = vcmp.ge.f32.partialorder %v2864_v53, 0.0  ;;  %v3166_v16 = vmul.f32 %v5208_v0, %v2864_v53  ;;  %v2866_v4 = vadd.f32 %v2865_v7, %v5211_v21 }
 0x2bf   : > { %v3671_v10 = vadd.f32 %v5706_v49, %v3510_v5  ;;  %v2867_v17 = vpop.f32.mrf.mxu1 }
 0x2c0   : > { %3735 = vst.msk [vmem:[%s5714_s18 + $0x88] sm:$0xff] %vm3717_vm14, %v3670_v15  ;;  %vm3021_vm4 = vcmp.ge.f32.partialorder %v2866_v4, 0.0  ;;  %v3167_v22 = vmul.f32 %v5214_v48, %v2866_v4  ;;  %v2868_v14 = vadd.f32 %v2867_v17, %v5201_v44  ;;  %v3294_v54 = vsel %vm3020_vm3, %v2864_v53, %v3166_v16 }
 0x2c1   : > { %3736 = vst.msk [vmem:[%s5714_s18 + $0x90] sm:$0xff] %vm3717_vm14, %v3671_v10  ;;  %v3513_v2 = vpop.xlane.xlu1 %3512  ;;  %v2869_v18 = vpop.f32.mrf.mxu1  ;;  %v3434_v23 = vmul.f32 %v5222_v55, %v3294_v54 }
 0x2c2   : > { %v3672_v24 = vadd.f32 %v5706_v49, %v3513_v2  ;;  %vm3022_vm5 = vcmp.ge.f32.partialorder %v2868_v14, 0.0  ;;  %v3168_v12 = vmul.f32 %v5208_v0, %v2868_v14  ;;  %v2870_v25 = vadd.f32 %v2869_v18, %v5211_v21 }
 0x2c3   : > { %v3295_v28 = vsel %vm3021_vm4, %v2866_v4, %v3167_v22  ;;  %v3516_v30 = vpop.xlane.xlu0 %3515 }
 0x2c4   : > { %3737 = vst.msk [vmem:[%s5714_s18 + $0x98] sm:$0xff] %vm3717_vm14, %v3672_v24  ;;  %v3435_v34 = vmul.f32 %v5226_v59, %v3295_v28  ;;  %v3673_v35 = vadd.f32 %v5706_v49, %v3516_v30  ;;  %vm3023_vm6 = vcmp.ge.f32.partialorder %v2870_v25, 0.0  ;;  %v3169_v33 = vmul.f32 %v5214_v48, %v2870_v25 }
 0x2c5   : > { %v3296_v37 = vsel %vm3022_vm5, %v2868_v14, %v3168_v12  ;;  %v2873_v39 = vpop.f32.mrf.mxu1 }
 0x2c6   : > { %v3616_v40 = vadd.f32 %v3435_v34, %v3434_v23  ;;  %3738 = vst.msk [vmem:[%s5714_s18 + $0xa0] sm:$0xff] %vm3717_vm14, %v3673_v35  ;;  %v2874_v42 = vadd.f32 %v2873_v39, %v5201_v44  ;;  %v3297_v26 = vsel %vm3023_vm6, %v2870_v25, %v3169_v33  ;;  %v3436_v20 = vmul.f32 %v5222_v55, %v3296_v37 }
 0x2c7   : > { %v3519_v43 = vpop.xlane.xlu1 %3518  ;;  %v2875_v13 = vpop.f32.mrf.mxu1  ;;  %v3437_v29 = vmul.f32 %v5226_v59, %v3297_v26 }
 0x2c8   : > { %3617 = vadd.xlane.f32.xlu0 %v3616_v40  ;;  %v3674_v46 = vadd.f32 %v5706_v49, %v3519_v43  ;;  %vm3024_vm7 = vcmp.ge.f32.partialorder %v2874_v42, 0.0  ;;  %v3170_v47 = vmul.f32 %v5208_v0, %v2874_v42  ;;  %v2876_v58 = vadd.f32 %v2875_v13, %v5211_v21 }
 0x2c9   : > { %v2877_v31 = vpop.f32.mrf.mxu1  ;;  %v3619_v52 = vadd.f32 %v3437_v29, %v3436_v20 }
 0x2ca   : > { %3739 = vst.msk [vmem:[%s5714_s18 + $0xa8] sm:$0xff] %vm3717_vm14, %v3674_v46  ;;  %vm3025_vm8 = vcmp.ge.f32.partialorder %v2876_v58, 0.0  ;;  %v3171_v32 = vmul.f32 %v5214_v48, %v2876_v58  ;;  %v2878_v19 = vadd.f32 %v2877_v31, %v5201_v44  ;;  %v3298_v27 = vsel %vm3024_vm7, %v2874_v42, %v3170_v47 }
 0x2cb   : > { %v3522_v56 = vpop.xlane.xlu0 %3521  ;;  %v2879_v41 = vpop.f32.mrf.mxu1  ;;  %3620 = vadd.xlane.f32.xlu1 %v3619_v52  ;;  %v3438_v3 = vmul.f32 %v5222_v55, %v3298_v27 }
 0x2cc   : > { %v3675_v50 = vadd.f32 %v5706_v49, %v3522_v56  ;;  %vm3026_vm9 = vcmp.ge.f32.partialorder %v2878_v19, 0.0  ;;  %v3172_v45 = vmul.f32 %v5208_v0, %v2878_v19  ;;  %v2880_v62 = vadd.f32 %v2879_v41, %v5211_v21 }
 0x2cd   : > { %v3299_v1 = vsel %vm3025_vm8, %v2876_v58, %v3171_v32 }
 0x2ce   : > { %v3439_v36 = vmul.f32 %v5226_v59, %v3299_v1  ;;  %3740 = vst.msk [vmem:[%s5714_s18 + $0xb0] sm:$0xff] %vm3717_vm14, %v3675_v50  ;;  %vm3027_vm10 = vcmp.ge.f32.partialorder %v2880_v62, 0.0  ;;  %v3173_v51 = vmul.f32 %v5214_v48, %v2880_v62  ;;  %v3300_v63 = vsel %vm3026_vm9, %v2878_v19, %v3172_v45 }
 0x2cf   : > { %v3525_v57 = vpop.xlane.xlu1 %3524  ;;  %v3440_v61 = vmul.f32 %v5222_v55, %v3300_v63 }
 0x2d0   : > { %v2883_v8 = vpop.f32.mrf.mxu1  ;;  %v3622_v9 = vadd.f32 %v3439_v36, %v3438_v3  ;;  %v3676_v38 = vadd.f32 %v5706_v49, %v3525_v57  ;;  %v3301_v60 = vsel %vm3027_vm10, %v2880_v62, %v3173_v51 }
 0x2d1   : > { %v2884_v11 = vadd.f32 %v2883_v8, %v5201_v44  ;;  %v3441_v6 = vmul.f32 %v5226_v59, %v3301_v60 }
 0x2d2   : > { %v2885_v53 = vpop.f32.mrf.mxu1  ;;  %3623 = vadd.xlane.f32.xlu0 %v3622_v9  ;;  %3741 = vst.msk [vmem:[%s5714_s18 + $0xb8] sm:$0xff] %vm3717_vm14, %v3676_v38 }
 0x2d3   : > { %vm3028_vm11 = vcmp.ge.f32.partialorder %v2884_v11, 0.0  ;;  %v3174_v15 = vmul.f32 %v5208_v0, %v2884_v11  ;;  %v2886_v7 = vadd.f32 %v2885_v53, %v5211_v21  ;;  %v3528_v5 = vpop.xlane.xlu0 %3527  ;;  %v3625_v4 = vadd.f32 %v3441_v6, %v3440_v61 }
 0x2d4   : > { %v2887_v16 = vpop.f32.mrf.mxu1  ;;  %v3677_v10 = vadd.f32 %v5706_v49, %v3528_v5 }
 0x2d5   : > { %vm3029_vm12 = vcmp.ge.f32.partialorder %v2886_v7, 0.0  ;;  %v3175_v17 = vmul.f32 %v5214_v48, %v2886_v7  ;;  %v2888_v22 = vadd.f32 %v2887_v16, %v5201_v44  ;;  %v3302_v14 = vsel %vm3028_vm11, %v2884_v11, %v3174_v15  ;;  %3626 = vadd.xlane.f32.xlu1 %v3625_v4 }
 0x2d6   : > { %v2889_v2 = vpop.f32.mrf.mxu1  ;;  %3742 = vst.msk [vmem:[%s5714_s18 + $0xc0] sm:$0xff] %vm3717_vm14, %v3677_v10  ;;  %v3442_v25 = vmul.f32 %v5222_v55, %v3302_v14 }
 0x2d7   : > { %vm3030_vm13 = vcmp.ge.f32.partialorder %v2888_v22, 0.0  ;;  %v3176_v54 = vmul.f32 %v5208_v0, %v2888_v22  ;;  %v2890_v18 = vadd.f32 %v2889_v2, %v5211_v21  ;;  %v3303_v24 = vsel %vm3029_vm12, %v2886_v7, %v3175_v17  ;;  %v3531_v12 = vpop.xlane.xlu1 %3530 }
 0x2d8   : > { %v3443_v28 = vmul.f32 %v5226_v59, %v3303_v24  ;;  %v3678_v30 = vadd.f32 %v5706_v49, %v3531_v12 }
 0x2d9   : > { %vm3031_vm15 = vcmp.ge.f32.partialorder %v2890_v18, 0.0  ;;  %v3177_v23 = vmul.f32 %v5214_v48, %v2890_v18  ;;  %v3304_v34 = vsel %vm3030_vm13, %v2888_v22, %v3176_v54 }
 0x2da   : > { %v2893_v35 = vpop.f32.mrf.mxu1  ;;  %v3628_v33 = vadd.f32 %v3443_v28, %v3442_v25  ;;  %3743 = vst.msk [vmem:[%s5714_s18 + $0xc8] sm:$0xff] %vm3717_vm14, %v3678_v30  ;;  %v3444_v26 = vmul.f32 %v5222_v55, %v3304_v34 }
 0x2db   : > { %v2894_v37 = vadd.f32 %v2893_v35, %v5201_v44  ;;  %v3305_v39 = vsel %vm3031_vm15, %v2890_v18, %v3177_v23  ;;  %v3534_v40 = vpop.xlane.xlu0 %3533 }
 0x2dc   : > { %v2895_v42 = vpop.f32.mrf.mxu1  ;;  %3629 = vadd.xlane.f32.xlu0 %v3628_v33  ;;  %v3445_v43 = vmul.f32 %v5226_v59, %v3305_v39  ;;  %v3679_v13 = vadd.f32 %v5706_v49, %v3534_v40 }
 0x2dd   : > { %vm3032_vm0 = vcmp.ge.f32.partialorder %v2894_v37, 0.0  ;;  %v3178_v20 = vmul.f32 %v5208_v0, %v2894_v37  ;;  %v2896_v29 = vadd.f32 %v2895_v42, %v5211_v21 }
 0x2de   : > { %v2897_v46 = vpop.f32.mrf.mxu1  ;;  %v3631_v47 = vadd.f32 %v3445_v43, %v3444_v26  ;;  %3744 = vst.msk [vmem:[%s5714_s18 + $0xd0] sm:$0xff] %vm3717_vm14, %v3679_v13 }
 0x2df   : > { %vm3033_vm1 = vcmp.ge.f32.partialorder %v2896_v29, 0.0  ;;  %v3179_v58 = vmul.f32 %v5214_v48, %v2896_v29  ;;  %v2898_v31 = vadd.f32 %v2897_v46, %v5201_v44  ;;  %v3306_v52 = vsel %vm3032_vm0, %v2894_v37, %v3178_v20  ;;  %v3537_v32 = vpop.xlane.xlu1 %3536 }
 0x2e0   : > { %v2899_v19 = vpop.f32.mrf.mxu1  ;;  %3632 = vadd.xlane.f32.xlu1 %v3631_v47  ;;  %v3680_v27 = vadd.f32 %v5706_v49, %v3537_v32  ;;  %v3446_v62 = vmul.f32 %v5222_v55, %v3306_v52 }
 0x2e1   : > { %vm3034_vm2 = vcmp.ge.f32.partialorder %v2898_v31, 0.0  ;;  %v3180_v56 = vmul.f32 %v5208_v0, %v2898_v31  ;;  %v2900_v41 = vadd.f32 %v2899_v19, %v5211_v21  ;;  %v3307_v50 = vsel %vm3033_vm1, %v2896_v29, %v3179_v58  ;;  %v6000_v58 = vld [vmem:[#allocation3] ss:$0 sm:$0xff] }
 0x2e2   : > { %v2903_v45 = vpop.f32.mrf.mxu1  ;;  %v3447_v1 = vmul.f32 %v5226_v59, %v3307_v50  ;;  %3745 = vst.msk [vmem:[%s5714_s18 + $0xd8] sm:$0xff] %vm3717_vm14, %v3680_v27 }
 0x2e3   : > { %vm3035_vm3 = vcmp.ge.f32.partialorder %v2900_v41, 0.0  ;;  %v3181_v3 = vmul.f32 %v5214_v48, %v2900_v41  ;;  %v2904_v36 = vadd.f32 %v2903_v45, %v5201_v44  ;;  %v3308_v51 = vsel %vm3034_vm2, %v2898_v31, %v3180_v56  ;;  %v3540_v63 = vpop.xlane.xlu0 %3539 }
 0x2e4   : > { %v2905_v57 = vpop.f32.mrf.mxu1  ;;  %v3634_v8 = vadd.f32 %v3447_v1, %v3446_v62  ;;  %v3681_v9 = vadd.f32 %v5706_v49, %v3540_v63  ;;  %v3448_v61 = vmul.f32 %v5222_v55, %v3308_v51 }
 0x2e5   : > { %vm3036_vm4 = vcmp.ge.f32.partialorder %v2904_v36, 0.0  ;;  %v3182_v38 = vmul.f32 %v5208_v0, %v2904_v36  ;;  %v2906_v11 = vadd.f32 %v2905_v57, %v5211_v21  ;;  %v3309_v60 = vsel %vm3035_vm3, %v2900_v41, %v3181_v3 }
 0x2e6   : > { %v2907_v53 = vpop.f32.mrf.mxu1  ;;  %3635 = vadd.xlane.f32.xlu0 %v3634_v8  ;;  %v3449_v6 = vmul.f32 %v5226_v59, %v3309_v60  ;;  %3746 = vst.msk [vmem:[%s5714_s18 + $0xe0] sm:$0xff] %vm3717_vm14, %v3681_v9 }
 0x2e7   : > { %vm3037_vm5 = vcmp.ge.f32.partialorder %v2906_v11, 0.0  ;;  %v3183_v15 = vmul.f32 %v5214_v48, %v2906_v11  ;;  %v2908_v7 = vadd.f32 %v2907_v53, %v5201_v44  ;;  %v3310_v5 = vsel %vm3036_vm4, %v2904_v36, %v3182_v38  ;;  %v3543_v16 = vpop.xlane.xlu1 %3542 }
 0x2e8   : > { %v2909_v4 = vpop.f32.mrf.mxu1  ;;  %v3637_v10 = vadd.f32 %v3449_v6, %v3448_v61  ;;  %v3682_v17 = vadd.f32 %v5706_v49, %v3543_v16  ;;  %v3450_v54 = vmul.f32 %v5222_v55, %v3310_v5 }
 0x2e9   : > { %vm3038_vm6 = vcmp.ge.f32.partialorder %v2908_v7, 0.0  ;;  %v3184_v22 = vmul.f32 %v5208_v0, %v2908_v7  ;;  %v2910_v14 = vadd.f32 %v2909_v4, %v5211_v21  ;;  %v3311_v2 = vsel %vm3037_vm5, %v2906_v11, %v3183_v15 }
 0x2ea   : > { %3638 = vadd.xlane.f32.xlu1 %v3637_v10  ;;  %v3451_v18 = vmul.f32 %v5226_v59, %v3311_v2  ;;  %3747 = vst.msk [vmem:[%s5714_s18 + $0xe8] sm:$0xff] %vm3717_vm14, %v3682_v17 }
 0x2eb   : > { %vm3039_vm7 = vcmp.ge.f32.partialorder %v2910_v14, 0.0  ;;  %v3185_v44 = vmul.f32 %v5214_v48, %v2910_v14  ;;  %v3312_v24 = vsel %vm3038_vm6, %v2908_v7, %v3184_v22  ;;  %v3546_v12 = vpop.xlane.xlu0 %3545 }
 0x2ec   : > { %v3640_v25 = vadd.f32 %v3451_v18, %v3450_v54  ;;  %v3683_v0 = vadd.f32 %v5706_v49, %v3546_v12  ;;  %v3452_v28 = vmul.f32 %v5222_v55, %v3312_v24 }
 0x2ed   : > { %v3313_v21 = vsel %vm3039_vm7, %v2910_v14, %v3185_v44 }
 0x2ee   : > { %3641 = vadd.xlane.f32.xlu0 %v3640_v25  ;;  %v3453_v30 = vmul.f32 %v5226_v59, %v3313_v21  ;;  %3748 = vst.msk [vmem:[%s5714_s18 + $0xf0] sm:$0xff] %vm3717_vm14, %v3683_v0 }
 0x2ef   : > { %v3549_v23 = vpop.xlane.xlu1 %3548 }
 0x2f0   : > { %v3643_v34 = vadd.f32 %v3453_v30, %v3452_v28  ;;  %v3684_v48 = vadd.f32 %v5706_v49, %v3549_v23 }
 0x2f2   : > { %3644 = vadd.xlane.f32.xlu1 %v3643_v34  ;;  %3749 = vst.msk [vmem:[%s5714_s18 + $0xf8] sm:$0xff] %vm3717_vm14, %v3684_v48 }
 0x2f3   : > { %v3552_v35 = vpop.xlane.xlu0 %3551 }
 0x2f4   : > { %v3685_v33 = vadd.f32 %v5706_v49, %v3552_v35 }
 0x2f6   : > { %3750 = vst.msk [vmem:[%s5714_s18 + $0x100] sm:$0xff] %vm3717_vm14, %v3685_v33 }
 0x2f7   : > { %v3555_v55 = vpop.xlane.xlu1 %3554 }
 0x2f8   : > { %v3686_v59 = vadd.f32 %v5706_v49, %v3555_v55 }
 0x2fa   : > { %3751 = vst.msk [vmem:[%s5714_s18 + $0x108] sm:$0xff] %vm3717_vm14, %v3686_v59 }
 0x2fb   : > { %v3558_v37 = vpop.xlane.xlu0 %3557 }
 0x2fc   : > { %v3687_v39 = vadd.f32 %v5706_v49, %v3558_v37 }
 0x2fe   : > { %3752 = vst.msk [vmem:[%s5714_s18 + $0x110] sm:$0xff] %vm3717_vm14, %v3687_v39 }
 0x2ff   : > { %v3561_v40 = vpop.xlane.xlu1 %3560 }
 0x300   : > { %v3688_v42 = vadd.f32 %v5706_v49, %v3561_v40 }
 0x302   : > { %3753 = vst.msk [vmem:[%s5714_s18 + $0x118] sm:$0xff] %vm3717_vm14, %v3688_v42 }
 0x303   : > { %v3564_v26 = vpop.xlane.xlu0 %3563 }
 0x304   : > { %v3689_v43 = vadd.f32 %v5706_v49, %v3564_v26 }
 0x306   : > { %3754 = vst.msk [vmem:[%s5714_s18 + $0x120] sm:$0xff] %vm3717_vm14, %v3689_v43 }
 0x307   : > { %v3567_v13 = vpop.xlane.xlu1 %3566 }
 0x308   : > { %v3690_v20 = vadd.f32 %v5706_v49, %v3567_v13 }
 0x30a   : > { %3755 = vst.msk [vmem:[%s5714_s18 + $0x128] sm:$0xff] %vm3717_vm14, %v3690_v20 }
 0x30c   : > { %v3570_v29 = vpop.xlane.xlu0 %3569 }
 0x30d   : > { %v3691_v46 = vadd.f32 %v5706_v49, %v3570_v29 }
 0x30e   : > { %v3573_v47 = vpop.xlane.xlu1 %3572 }
 0x30f   : > { %3756 = vst.msk [vmem:[%s5714_s18 + $0x130] sm:$0xff] %vm3717_vm14, %v3691_v46  ;;  %v3692_v31 = vadd.f32 %v6000_v58, %v3573_v47 }
 0x311   : > { %3757 = vst.msk [vmem:[%s5714_s18 + $0x138] sm:$0xff] %vm3717_vm14, %v3692_v31 }
 0x312   : > { %v3576_v52 = vpop.xlane.xlu0 %3575 }
 0x313   : > { %v3693_v32 = vadd.f32 %v6000_v58, %v3576_v52 }
 0x315   : > { %3758 = vst.msk [vmem:[%s5714_s18 + $0x140] sm:$0xff] %vm3717_vm14, %v3693_v32 }
 0x316   : > { %v3579_v19 = vpop.xlane.xlu1 %3578 }
 0x317   : > { %v3694_v49 = vadd.f32 %v6000_v58, %v3579_v19 }
 0x319   : > { %3759 = vst.msk [vmem:[%s5714_s18 + $0x148] sm:$0xff] %vm3717_vm14, %v3694_v49 }
 0x31a   : > { %v3582_v27 = vpop.xlane.xlu0 %3581 }
 0x31b   : > { %v3695_v56 = vadd.f32 %v6000_v58, %v3582_v27 }
 0x31d   : > { %3760 = vst.msk [vmem:[%s5714_s18 + $0x150] sm:$0xff] %vm3717_vm14, %v3695_v56 }
 0x31e   : > { %v3585_v41 = vpop.xlane.xlu1 %3584 }
 0x31f   : > { %v3696_v50 = vadd.f32 %v6000_v58, %v3585_v41 }
 0x321   : > { %3761 = vst.msk [vmem:[%s5714_s18 + $0x158] sm:$0xff] %vm3717_vm14, %v3696_v50 }
 0x322   : > { %v3588_v45 = vpop.xlane.xlu0 %3587 }
 0x323   : > { %v3697_v62 = vadd.f32 %v6000_v58, %v3588_v45 }
 0x325   : > { %3762 = vst.msk [vmem:[%s5714_s18 + $0x160] sm:$0xff] %vm3717_vm14, %v3697_v62 }
 0x326   : > { %v3591_v1 = vpop.xlane.xlu1 %3590 }
 0x327   : > { %v3698_v3 = vadd.f32 %v6000_v58, %v3591_v1 }
 0x329   : > { %3763 = vst.msk [vmem:[%s5714_s18 + $0x168] sm:$0xff] %vm3717_vm14, %v3698_v3 }
 0x32a   : > { %v3594_v36 = vpop.xlane.xlu0 %3593 }
 0x32b   : > { %v3699_v51 = vadd.f32 %v6000_v58, %v3594_v36 }
 0x32d   : > { %3764 = vst.msk [vmem:[%s5714_s18 + $0x170] sm:$0xff] %vm3717_vm14, %v3699_v51 }
 0x32e   : > { %v3597_v63 = vpop.xlane.xlu1 %3596 }
 0x32f   : > { %v3700_v57 = vadd.f32 %v6000_v58, %v3597_v63 }
 0x331   : > { %3765 = vst.msk [vmem:[%s5714_s18 + $0x178] sm:$0xff] %vm3717_vm14, %v3700_v57 }
 0x332   : > { %v3600_v8 = vpop.xlane.xlu0 %3599 }
 0x333   : > { %v3701_v9 = vadd.f32 %v6000_v58, %v3600_v8 }
 0x335   : > { %3766 = vst.msk [vmem:[%s5714_s18 + $0x180] sm:$0xff] %vm3717_vm14, %v3701_v9 }
 0x336   : > { %v3603_v38 = vpop.xlane.xlu1 %3602 }
 0x337   : > { %v3702_v11 = vadd.f32 %v6000_v58, %v3603_v38 }
 0x339   : > { %3767 = vst.msk [vmem:[%s5714_s18 + $0x188] sm:$0xff] %vm3717_vm14, %v3702_v11 }
 0x33a   : > { %v3606_v60 = vpop.xlane.xlu0 %3605 }
 0x33b   : > { %v3703_v53 = vadd.f32 %v6000_v58, %v3606_v60 }
 0x33d   : > { %3768 = vst.msk [vmem:[%s5714_s18 + $0x190] sm:$0xff] %vm3717_vm14, %v3703_v53 }
 0x33e   : > { %v3609_v61 = vpop.xlane.xlu1 %3608 }
 0x33f   : > { %v3704_v6 = vadd.f32 %v6000_v58, %v3609_v61 }
 0x341   : > { %3769 = vst.msk [vmem:[%s5714_s18 + $0x198] sm:$0xff] %vm3717_vm14, %v3704_v6 }
 0x343   : > { %v3612_v15 = vpop.xlane.xlu0 %3611 }
 0x344   : > { %v3705_v7 = vadd.f32 %v6000_v58, %v3612_v15 }
 0x346   : > { %3770 = vst.msk [vmem:[%s5714_s18 + $0x1a0] sm:$0xff] %vm3717_vm14, %v3705_v7  ;;  %v3615_v5 = vpop.xlane.xlu1 %3614 }
 0x347   : > { %v3706_v16 = vadd.f32 %v6000_v58, %v3615_v5 }
 0x349   : > { %3771 = vst.msk [vmem:[%s5714_s18 + $0x1a8] sm:$0xff] %vm3717_vm14, %v3706_v16 }
 0x351   : > { %v3618_v4 = vpop.xlane.xlu0 %3617 }
 0x352   : > { %v3707_v10 = vadd.f32 %v6000_v58, %v3618_v4 }
 0x354   : > { %3772 = vst.msk [vmem:[%s5714_s18 + $0x1b0] sm:$0xff] %vm3717_vm14, %v3707_v10  ;;  %v3621_v17 = vpop.xlane.xlu1 %3620 }
 0x355   : > { %v3708_v22 = vadd.f32 %v6000_v58, %v3621_v17 }
 0x357   : > { %3773 = vst.msk [vmem:[%s5714_s18 + $0x1b8] sm:$0xff] %vm3717_vm14, %v3708_v22 }
 0x35b   : > { %v3624_v14 = vpop.xlane.xlu0 %3623 }
 0x35c   : > { %v3709_v2 = vadd.f32 %v6000_v58, %v3624_v14 }
 0x35e   : > { %3774 = vst.msk [vmem:[%s5714_s18 + $0x1c0] sm:$0xff] %vm3717_vm14, %v3709_v2  ;;  %v3627_v54 = vpop.xlane.xlu1 %3626 }
 0x35f   : > { %v3710_v18 = vadd.f32 %v6000_v58, %v3627_v54 }
 0x361   : > { %3775 = vst.msk [vmem:[%s5714_s18 + $0x1c8] sm:$0xff] %vm3717_vm14, %v3710_v18 }
 0x365   : > { %v3630_v44 = vpop.xlane.xlu0 %3629 }
 0x366   : > { %v3711_v24 = vadd.f32 %v6000_v58, %v3630_v44 }
 0x368   : > { %3776 = vst.msk [vmem:[%s5714_s18 + $0x1d0] sm:$0xff] %vm3717_vm14, %v3711_v24 }
 0x369   : > { %v3633_v12 = vpop.xlane.xlu1 %3632 }
 0x36a   : > { %v3712_v25 = vadd.f32 %v6000_v58, %v3633_v12 }
 0x36c   : > { %3777 = vst.msk [vmem:[%s5714_s18 + $0x1d8] sm:$0xff] %vm3717_vm14, %v3712_v25 }
 0x36f   : > { %v3636_v0 = vpop.xlane.xlu0 %3635 }
 0x370   : > { %v3713_v21 = vadd.f32 %v6000_v58, %v3636_v0 }
 0x372   : > { %3778 = vst.msk [vmem:[%s5714_s18 + $0x1e0] sm:$0xff] %vm3717_vm14, %v3713_v21 }
 0x373   : > { %v3639_v28 = vpop.xlane.xlu1 %3638 }
 0x374   : > { %v3714_v30 = vadd.f32 %v6000_v58, %v3639_v28 }
 0x376   : > { %3779 = vst.msk [vmem:[%s5714_s18 + $0x1e8] sm:$0xff] %vm3717_vm14, %v3714_v30 }
 0x377   : > { %v3642_v23 = vpop.xlane.xlu0 %3641 }
 0x378   : > { %v3715_v34 = vadd.f32 %v6000_v58, %v3642_v23 }
 0x37a   : > { %3780 = vst.msk [vmem:[%s5714_s18 + $0x1f0] sm:$0xff] %vm3717_vm14, %v3715_v34 }
 0x37b   : > { %v3645_v48 = vpop.xlane.xlu1 %3644 }
 0x37c   : > { %v3716_v35 = vadd.f32 %v6000_v58, %v3645_v48 }
 0x37e   : > { %3781 = vst.msk [vmem:[%s5714_s18 + $0x1f8] sm:$0xff] %vm3717_vm14, %v3716_v35 }
 0x37f PF: > { %s19_s26 = sadd.s32 1, %s4316_s26  }
 0x380   : > { %p16_p4 = scmp.ge.s32.totalorder %s19_s26, 4  }
 0x382   :  { %18 = sbr.rel (!%p16_p4) target bundleno = 3 (0x3), region = 78 }

</bundles_post_ra>
